<compile_context>
chip_gen: v7x
topology: tpu7x:2x2x1
jax: 0.10.0
libtpu: 0.0.40
codegen_flags: <defaults>
</compile_context>

<pallas_src>
import functools

import jax
import jax.numpy as jnp
from jax.experimental import pallas as pl
from jax.experimental.pallas import tpu as pltpu

BN_EPS = 1e-5
LANE = 128
VMEM_LIMIT = 48 * 1024 * 1024  # < v7x 64 MiB physical, fine on v5e/v6e


def _round_up(x, m):
    return (x + m - 1) // m * m


# ----------------------- fused tiled GEMM (+BN/ReLU) ------------------------

def _gemm_fused_kernel(x_ref, w_ref, si_ref, bi_ref, so_ref, bo_ref, o_ref, acc_ref, *,
                       pre_affine, pre_relu, post_affine, post_relu):
    k = pl.program_id(2)

    @pl.when(k == 0)
    def _():
        acc_ref[...] = jnp.zeros_like(acc_ref)

    a = x_ref[...]
    if pre_affine:
        a = a * si_ref[...] + bi_ref[...]          # per-input-channel folded BN (f32)
    if pre_relu:
        a = jnp.maximum(a, 0.0)
    acc_ref[...] += jnp.dot(a.astype(jnp.bfloat16), w_ref[...],
                            preferred_element_type=jnp.float32)

    @pl.when(k == pl.num_programs(2) - 1)
    def _():
        y = acc_ref[...]
        if post_affine:
            y = y * so_ref[...] + bo_ref[...]      # per-output-channel folded BN (f32)
        if post_relu:
            y = jnp.maximum(y, 0.0)
        o_ref[...] = y.astype(o_ref.dtype)


def gemm_bn(x, w, si=None, bi=None, so=None, bo=None, *,
            pre_relu=False, post_relu=False, keep_pad_n=False,
            out_dtype=jnp.float32):
    """y = post(pre(x) @ w), pre/post = optional folded-BN affine + ReLU.

    x: (M, K) f32, w: (K, N).  M/K/N are padded to tile multiples (zero pad); padded
    weight rows/cols are zero so padding never changes the valid outputs.
    """
    M, K = x.shape
    Kw, N = w.shape
    assert K == Kw
    tn = LANE
    tk = min(512, _round_up(K, LANE))
    tm = min(512, _round_up(M, 8))
    Mp, Kp, Np = _round_up(M, tm), _round_up(K, tk), _round_up(N, tn)

    xp = jnp.pad(x.astype(jnp.float32), ((0, Mp - M), (0, Kp - K)))
    wp = jnp.pad(w, ((0, Kp - K), (0, Np - N))).astype(jnp.bfloat16)

    pre_affine = si is not None
    post_affine = so is not None
    si = jnp.ones((K,), jnp.float32) if si is None else si.astype(jnp.float32)
    bi = jnp.zeros((K,), jnp.float32) if bi is None else bi.astype(jnp.float32)
    so = jnp.ones((N,), jnp.float32) if so is None else so.astype(jnp.float32)
    bo = jnp.zeros((N,), jnp.float32) if bo is None else bo.astype(jnp.float32)
    sip = jnp.pad(si, (0, Kp - K), constant_values=1.0).reshape(1, Kp)
    bip = jnp.pad(bi, (0, Kp - K)).reshape(1, Kp)
    sop = jnp.pad(so, (0, Np - N), constant_values=1.0).reshape(1, Np)
    bop = jnp.pad(bo, (0, Np - N)).reshape(1, Np)

    kernel = functools.partial(_gemm_fused_kernel, pre_affine=pre_affine,
                               pre_relu=pre_relu, post_affine=post_affine,
                               post_relu=post_relu)
    yp = pl.pallas_call(
        kernel,
        out_shape=jax.ShapeDtypeStruct((Mp, Np), out_dtype),
        grid=(Mp // tm, Np // tn, Kp // tk),
        in_specs=[
            pl.BlockSpec((tm, tk), lambda i, j, k: (i, k)),
            pl.BlockSpec((tk, tn), lambda i, j, k: (k, j)),
            pl.BlockSpec((1, tk), lambda i, j, k: (0, k)),
            pl.BlockSpec((1, tk), lambda i, j, k: (0, k)),
            pl.BlockSpec((1, tn), lambda i, j, k: (0, j)),
            pl.BlockSpec((1, tn), lambda i, j, k: (0, j)),
        ],
        out_specs=pl.BlockSpec((tm, tn), lambda i, j, k: (i, j)),
        scratch_shapes=[pltpu.VMEM((tm, tn), jnp.float32)],
        compiler_params=pltpu.CompilerParams(
            dimension_semantics=("parallel", "parallel", "arbitrary"),
            vmem_limit_bytes=VMEM_LIMIT),
        cost_estimate=pl.CostEstimate(
            flops=2 * Mp * Np * Kp, transcendentals=0,
            bytes_accessed=4 * Mp * Kp + 2 * Kp * Np + 4 * Mp * Np),
    )(xp, wp, sip, bip, sop, bop)

    yp = yp[:M]
    return yp if keep_pad_n else yp[:, :N]


# -------------------- direct 3x3 conv (stride 1, pad 1) ---------------------

def _conv3x3_kernel(x_ref, w_ref, o_ref, *, Ho, Wo):
    # x_ref: (Hp, Wp, Cp)  zero-padded, already-activated input (one image)
    # w_ref: (9, Cp, Coutp) bf16,  o_ref: (Ho, Wo, Coutp) f32
    def row(h, carry):
        acc = jnp.zeros((Wo, o_ref.shape[-1]), jnp.float32)
        for di in range(3):
            xr = x_ref[h + di].astype(jnp.bfloat16)          # (Wp, Cp)
            for dj in range(3):
                acc = acc + jnp.dot(xr[dj:dj + Wo, :], w_ref[3 * di + dj],
                                    preferred_element_type=jnp.float32)
        o_ref[h] = acc
        return carry

    jax.lax.fori_loop(0, Ho, row, 0)


def conv3x3_same(x, w_oihw):
    """3x3 / stride 1 / pad 1 conv (no bias) on an already-activated NHWC tensor.

    x may carry zero-padded (lane-dense) channels; the weight's Cin/Cout are zero-padded
    to match, so padded channels contribute nothing.
    """
    N, H, W, Cp = x.shape
    Cout, Cin_w, KH, KW = w_oihw.shape
    assert (KH, KW) == (3, 3) and Cin_w <= Cp and Cout <= LANE
    Coutp = LANE
    wk = jnp.transpose(w_oihw, (2, 3, 1, 0)).reshape(9, Cin_w, Cout)
    wk = jnp.pad(wk, ((0, 0), (0, Cp - Cin_w), (0, Coutp - Cout))).astype(jnp.bfloat16)
    xp = jnp.pad(x, ((0, 0), (1, 1), (1, 1), (0, 0)))        # zero-pad the activated tensor
    Hp, Wp = H + 2, W + 2

    kernel = functools.partial(_conv3x3_kernel, Ho=H, Wo=W)
    out = pl.pallas_call(
        kernel,
        out_shape=jax.ShapeDtypeStruct((N, H, W, Coutp), jnp.float32),
        grid=(N,),
        in_specs=[
            pl.BlockSpec((None, Hp, Wp, Cp), lambda n: (n, 0, 0, 0)),
            pl.BlockSpec((9, Cp, Coutp), lambda n: (0, 0, 0)),
        ],
        out_specs=pl.BlockSpec((None, H, W, Coutp), lambda n: (n, 0, 0, 0)),
        compiler_params=pltpu.CompilerParams(
            dimension_semantics=("parallel",), vmem_limit_bytes=VMEM_LIMIT),
    )(xp, wk)
    return out[..., :Cout]


# ------------------- fused BN + ReLU + 2x2/s2 average pool ------------------

def _bn_relu_avgpool_kernel(x0_ref, x1_ref, s_ref, b_ref, o_ref):
    # x0/x1: even/odd input rows of each 2x2 window, shape (Ho, Wo, 2, C)
    s = s_ref[...]
    b = b_ref[...]
    y = (jnp.maximum(x0_ref[...] * s + b, 0.0)
         + jnp.maximum(x1_ref[...] * s + b, 0.0))            # (Ho, Wo, 2, C)
    o_ref[...] = 0.25 * jnp.sum(y, axis=2)                   # (Ho, Wo, C)


def bn_relu_avgpool2x2(x, scale, shift):
    N, H, W, C = x.shape
    assert H % 2 == 0 and W % 2 == 0
    Ho, Wo = H // 2, W // 2
    xr = x.reshape(N * Ho, 2, Wo, 2, C)                      # zero-copy window view
    s = scale.astype(jnp.float32).reshape(1, 1, 1, C)
    b = shift.astype(jnp.float32).reshape(1, 1, 1, C)
    out = pl.pallas_call(
        _bn_relu_avgpool_kernel,
        out_shape=jax.ShapeDtypeStruct((N * Ho, Wo, C), jnp.float32),
        grid=(N,),
        in_specs=[
            pl.BlockSpec((Ho, None, Wo, 2, C), lambda n: (n, 0, 0, 0, 0)),
            pl.BlockSpec((Ho, None, Wo, 2, C), lambda n: (n, 1, 0, 0, 0)),
            pl.BlockSpec((1, 1, 1, C), lambda n: (0, 0, 0, 0)),
            pl.BlockSpec((1, 1, 1, C), lambda n: (0, 0, 0, 0)),
        ],
        out_specs=pl.BlockSpec((Ho, Wo, C), lambda n: (n, 0, 0)),
        compiler_params=pltpu.CompilerParams(dimension_semantics=("parallel",)),
    )(xr, xr, s, b)
    return out.reshape(N, Ho, Wo, C)


# ------------------------------ max pool 3x3/s2 ------------------------------

def _max_reduce_kernel(x_ref, o_ref):
    o_ref[...] = jnp.max(x_ref[...], axis=1)


def maxpool_3x3_s2_p1(x):
    # TODO(synk): overlapping 3x3 windows still materialized in JAX (runs once, on the
    # small conv0 output); could be fused into the conv0 epilogue with halo blocks.
    N, H, W, C = x.shape
    neg = float(jnp.finfo(jnp.float32).min)
    patches, Ho, Wo = im2col(x, 3, 3, 2, 1, pad_value=neg)
    M = N * Ho * Wo
    wins = patches.reshape(M, 9, C)
    bm = min(512, _round_up(M, 8))
    Mp = _round_up(M, bm)
    wins = jnp.pad(wins, ((0, Mp - M), (0, 0), (0, 0)), constant_values=neg)
    out = pl.pallas_call(
        _max_reduce_kernel,
        out_shape=jax.ShapeDtypeStruct((Mp, C), jnp.float32),
        grid=(Mp // bm,),
        in_specs=[pl.BlockSpec((bm, 9, C), lambda i: (i, 0, 0))],
        out_specs=pl.BlockSpec((bm, C), lambda i: (i, 0)),
        compiler_params=pltpu.CompilerParams(dimension_semantics=("parallel",)),
    )(wins)
    return out[:M].reshape(N, Ho, Wo, C)


# ------------------------------- final BN+ReLU -------------------------------

def _bn_relu_kernel(x_ref, s_ref, b_ref, o_ref):
    o_ref[...] = jnp.maximum(x_ref[...] * s_ref[...] + b_ref[...], 0.0)


def bn_relu(x2d, scale, shift):
    M, C = x2d.shape
    bm = min(1024, _round_up(M, 8))
    Mp = _round_up(M, bm)
    xp = jnp.pad(x2d, ((0, Mp - M), (0, 0)))
    out = pl.pallas_call(
        _bn_relu_kernel,
        out_shape=jax.ShapeDtypeStruct((Mp, C), jnp.float32),
        grid=(Mp // bm,),
        in_specs=[pl.BlockSpec((bm, C), lambda i: (i, 0)),
                  pl.BlockSpec((1, C), lambda i: (0, 0)),
                  pl.BlockSpec((1, C), lambda i: (0, 0))],
        out_specs=pl.BlockSpec((bm, C), lambda i: (i, 0)),
        compiler_params=pltpu.CompilerParams(dimension_semantics=("parallel",)),
    )(xp, scale.astype(jnp.float32).reshape(1, C), shift.astype(jnp.float32).reshape(1, C))
    return out[:M]


# ---------------------------------- JAX glue ---------------------------------

def bn_affine(bn):
    """Eval-mode BatchNorm folded to (scale, shift) per channel."""
    scale = bn["gamma"] / jnp.sqrt(bn["var"] + BN_EPS)
    shift = bn["beta"] - bn["mean"] * scale
    return scale, shift


def im2col(x, kh, kw, stride, pad, pad_value=0.0):
    """x: (N,H,W,C) NHWC -> (N, Ho, Wo, kh*kw, C).  Used only for conv0 and maxpool0."""
    N, H, W, C = x.shape
    xp = jnp.pad(x, ((0, 0), (pad, pad), (pad, pad), (0, 0)), constant_values=pad_value)
    Ho = (H + 2 * pad - kh) // stride + 1
    Wo = (W + 2 * pad - kw) // stride + 1
    cols = []
    for i in range(kh):
        for j in range(kw):
            cols.append(xp[:, i:i + stride * (Ho - 1) + 1:stride,
                           j:j + stride * (Wo - 1) + 1:stride, :])
    return jnp.stack(cols, axis=3), Ho, Wo


# ------------------------------ parameter setup -------------------------------

def kaiming_normal(key, shape):
    cout, cin, kh, kw = shape
    fan_in = cin * kh * kw
    std = (2.0 / fan_in) ** 0.5
    return std * jax.random.normal(key, shape, dtype=jnp.float32)


def make_bn(c):
    return {"gamma": jnp.ones((c,), jnp.float32), "beta": jnp.zeros((c,), jnp.float32),
            "mean": jnp.zeros((c,), jnp.float32), "var": jnp.ones((c,), jnp.float32)}


def init_params(key, cfg):
    keys = iter(jax.random.split(key, 256))
    g, bn_size = cfg["growth_rate"], cfg["bn_size"]
    params = {
        "conv0": kaiming_normal(next(keys), (cfg["num_init_features"],
                                             cfg["input_channel"], 7, 7)),
        "norm0": make_bn(cfg["num_init_features"]),
    }
    num_features = cfg["num_init_features"]
    blocks, transitions = [], []
    for i, num_layers in enumerate(cfg["block_config"]):
        layers = []
        for l in range(num_layers):
            cin = num_features + l * g
            layers.append({
                "norm1": make_bn(cin),
                "conv1": kaiming_normal(next(keys), (bn_size * g, cin, 1, 1)),
                "norm2": make_bn(bn_size * g),
                "conv2": kaiming_normal(next(keys), (g, bn_size * g, 3, 3)),
            })
        blocks.append(layers)
        num_features += num_layers * g
        if i != len(cfg["block_config"]) - 1:
            transitions.append({
                "norm": make_bn(num_features),
                "conv": kaiming_normal(next(keys), (num_features // 2, num_features, 1, 1)),
            })
            num_features //= 2
    params["blocks"] = blocks
    params["transitions"] = transitions
    params["norm5"] = make_bn(num_features)
    return params


# ---------------------------------- forward -----------------------------------

def densenet_encoder_forward(params, x_nchw, cfg):
    x = jnp.transpose(x_nchw, (0, 2, 3, 1)).astype(jnp.float32)   # NCHW -> NHWC
    N = x.shape[0]

    # conv0 (7x7 s2 p3, no bias) with norm0 + relu0 fused as the GEMM epilogue.
    w0 = params["conv0"]
    C0, in_ch, KH, KW = w0.shape
    patches, Ho, Wo = im2col(x, KH, KW, 2, 3)
    M, K = N * Ho * Wo, KH * KW * in_ch
    xm = patches.reshape(M, K)
    wm = jnp.transpose(w0, (2, 3, 1, 0)).reshape(K, C0)
    s0, b0 = bn_affine(params["norm0"])
    x = gemm_bn(xm, wm, so=s0, bo=b0, post_relu=True).reshape(N, Ho, Wo, C0)
    x = maxpool_3x3_s2_p1(x)

    for bi, num_layers in enumerate(cfg["block_config"]):
        block = params["blocks"][bi]
        for li in range(num_layers):
            lp = block[li]
            Nn, H, W, C = x.shape
            s1, b1 = bn_affine(lp["norm1"])
            s2, b2 = bn_affine(lp["norm2"])
            w1 = lp["conv1"][:, :, 0, 0].T                     # (Cin, bn_size*growth)
            # norm1 -> ReLU -> conv1x1, with norm2 -> ReLU fused as the epilogue, so the
            # 3x3 below zero-pads the already-activated tensor (PyTorch padding order).
            bneck = gemm_bn(x.reshape(Nn * H * W, C), w1, si=s1, bi=b1, pre_relu=True,
                            so=s2, bo=b2, post_relu=True, keep_pad_n=True,
                            out_dtype=jnp.bfloat16)
            bneck = bneck.reshape(Nn, H, W, bneck.shape[-1])   # lane-dense (128) channels
            nf = conv3x3_same(bneck, lp["conv2"])              # (N, H, W, growth_rate)
            # TODO(synk): nn.Dropout(p=0.5) / batch-statistics BN are training-only;
            # eval-mode semantics (identity dropout, running-stat BN) are implemented.
            x = jnp.concatenate([x, nf], axis=-1)
        if bi != len(cfg["block_config"]) - 1:
            tp = params["transitions"][bi]
            st, bt = bn_affine(tp["norm"])
            # PyTorch order is BN->ReLU->conv1x1->avgpool; avgpool commutes with the 1x1
            # conv, so pooling first (fused with BN+ReLU) gives identical results on 4x
            # fewer pixels.
            pooled = bn_relu_avgpool2x2(x, st, bt)
            Nn, H2, W2, C = pooled.shape
            wt = tp["conv"][:, :, 0, 0].T
            x = gemm_bn(pooled.reshape(Nn * H2 * W2, C), wt).reshape(Nn, H2, W2, wt.shape[1])

    # norm5 -> final ReLU; output is NHWC which equals PyTorch's permute(0, 2, 3, 1).
    s5, b5 = bn_affine(params["norm5"])
    Nn, H, W, C = x.shape
    x = bn_relu(x.reshape(Nn * H * W, C), s5, b5).reshape(Nn, H, W, C)
    return x


# ------------------------------------ main -------------------------------------

if __name__ == "__main__":
    # Small DenseNet-BC config (same architecture, scaled hyper-parameters).
    cfg = dict(growth_rate=8, block_config=(2, 2, 2), num_init_features=16,
               bn_size=4, input_channel=1)

    key = jax.random.PRNGKey(0)
    pkey, xkey = jax.random.split(key)
    params = init_params(pkey, cfg)

    # NCHW grayscale input, as the PyTorch module expects.
    x = jax.random.normal(xkey, (2, 1, 32, 32), dtype=jnp.float32)

    fwd = jax.jit(lambda p, inp: densenet_encoder_forward(p, inp, cfg))
    out = jax.block_until_ready(fwd(params, x))

    # 32x32 -> conv0/pool0 -> 8x8 -> trans1 -> 4x4 -> trans2 -> 2x2; 32 channels.
    assert out.shape == (2, 2, 2, 32), out.shape
    assert out.dtype == jnp.float32
    assert bool(jnp.all(jnp.isfinite(out)))
    print("KERNEL_OK")
</pallas_src>

<mosaic_0001>
module attributes {stable_mosaic.version = 11 : i64} {
  func.func @_gemm_fused_kernel(%arg0: i32, %arg1: i32, %arg2: i32, %arg3: memref<512x128xf32, #tpu.memory_space<vmem>>, %arg4: memref<128x128xbf16, #tpu.memory_space<vmem>>, %arg5: memref<1x128xf32, #tpu.memory_space<vmem>>, %arg6: memref<1x128xf32, #tpu.memory_space<vmem>>, %arg7: memref<1x128xf32, #tpu.memory_space<vmem>>, %arg8: memref<1x128xf32, #tpu.memory_space<vmem>>, %arg9: memref<512x128xf32, #tpu.memory_space<vmem>>, %arg10: memref<512x128xf32, #tpu.memory_space<vmem>>) attributes {dimension_semantics = [#tpu.dimension_semantics<parallel>, #tpu.dimension_semantics<parallel>, #tpu.dimension_semantics<arbitrary>], iteration_bounds = array<i64: 1, 1, 1>, scalar_prefetch = 0 : i64, scratch_operands = 1 : i64, tpu.core_type = #tpu.core_type<tc>, window_params = [{transform_indices = @transform_0, window_bounds = array<i64: 512, 128>}, {transform_indices = @transform_1, window_bounds = array<i64: 128, 128>}, {transform_indices = @transform_2, window_bounds = array<i64: 1, 128>}, {transform_indices = @transform_3, window_bounds = array<i64: 1, 128>}, {transform_indices = @transform_4, window_bounds = array<i64: 1, 128>}, {transform_indices = @transform_5, window_bounds = array<i64: 1, 128>}, {transform_indices = @transform_6, window_bounds = array<i64: 512, 128>}]} {
    %c0_i32 = arith.constant 0 : i32
    %0 = arith.cmpi eq, %arg2, %c0_i32 : i32
    %1 = arith.extui %0 : i1 to i32
    %c0_i32_0 = arith.constant 0 : i32
    %2 = arith.cmpi ne, %1, %c0_i32_0 : i32
    scf.if %2 {
      %cst_10 = arith.constant 0.000000e+00 : f32
      %13 = vector.broadcast %cst_10 : f32 to vector<512x128xf32>
      %c0_11 = arith.constant 0 : index
      %c0_12 = arith.constant 0 : index
      %14 = vector.load %arg10[%c0_11, %c0_12] : memref<512x128xf32, #tpu.memory_space<vmem>>, vector<512x128xf32>
      tpu.vector_store %arg10[%c0_11, %c0_12], %13 {strides = array<i32>} : memref<512x128xf32, #tpu.memory_space<vmem>>, vector<512x128xf32>,
    } else {
    }
    %c0 = arith.constant 0 : index
    %c0_1 = arith.constant 0 : index
    %3 = vector.load %arg3[%c0, %c0_1] : memref<512x128xf32, #tpu.memory_space<vmem>>, vector<512x128xf32>
    %c0_2 = arith.constant 0 : index
    %c0_3 = arith.constant 0 : index
    %4 = vector.load %arg10[%c0_2, %c0_3] : memref<512x128xf32, #tpu.memory_space<vmem>>, vector<512x128xf32>
    %5 = arith.truncf %3 : vector<512x128xf32> to vector<512x128xbf16>
    %c0_4 = arith.constant 0 : index
    %c0_5 = arith.constant 0 : index
    %6 = vector.load %arg4[%c0_4, %c0_5] : memref<128x128xbf16, #tpu.memory_space<vmem>>, vector<128x128xbf16>
    %cst = arith.constant dense<0.000000e+00> : vector<512x128xf32>
    %7 = tpu.matmul %5, %6, %cst {dimension_numbers = #tpu.dot_dimension_numbers<[1], [0], [0], [1], [0, 0, 1, 1], [], []>} : vector<512x128xbf16>, vector<128x128xbf16>, vector<512x128xf32> -> vector<512x128xf32>
    %8 = arith.addf %4, %7 : vector<512x128xf32>
    %c0_6 = arith.constant 0 : index
    %c0_7 = arith.constant 0 : index
    %9 = vector.load %arg10[%c0_6, %c0_7] : memref<512x128xf32, #tpu.memory_space<vmem>>, vector<512x128xf32>
    tpu.vector_store %arg10[%c0_6, %c0_7], %8 {strides = array<i32>} : memref<512x128xf32, #tpu.memory_space<vmem>>, vector<512x128xf32>,
    %c0_i32_8 = arith.constant 0 : i32
    %10 = arith.cmpi eq, %arg2, %c0_i32_8 : i32
    %11 = arith.extui %10 : i1 to i32
    %c0_i32_9 = arith.constant 0 : i32
    %12 = arith.cmpi ne, %11, %c0_i32_9 : i32
    scf.if %12 {
      %c0_10 = arith.constant 0 : index
      %c0_11 = arith.constant 0 : index
      %13 = vector.load %arg10[%c0_10, %c0_11] : memref<512x128xf32, #tpu.memory_space<vmem>>, vector<512x128xf32>
      %c0_12 = arith.constant 0 : index
      %c0_13 = arith.constant 0 : index
      %14 = vector.load %arg7[%c0_12, %c0_13] : memref<1x128xf32, #tpu.memory_space<vmem>>, vector<1x128xf32>
      %15 = vector.broadcast %14 : vector<1x128xf32> to vector<512x128xf32>
      %16 = arith.mulf %13, %15 : vector<512x128xf32>
      %c0_14 = arith.constant 0 : index
      %c0_15 = arith.constant 0 : index
      %17 = vector.load %arg8[%c0_14, %c0_15] : memref<1x128xf32, #tpu.memory_space<vmem>>, vector<1x128xf32>
      %18 = vector.broadcast %17 : vector<1x128xf32> to vector<512x128xf32>
      %19 = arith.addf %16, %18 : vector<512x128xf32>
      %cst_16 = arith.constant 0.000000e+00 : f32
      %20 = vector.broadcast %cst_16 : f32 to vector<512x128xf32>
      %21 = arith.maximumf %19, %20 : vector<512x128xf32>
      %c0_17 = arith.constant 0 : index
      %c0_18 = arith.constant 0 : index
      %22 = vector.load %arg9[%c0_17, %c0_18] : memref<512x128xf32, #tpu.memory_space<vmem>>, vector<512x128xf32>
      tpu.vector_store %arg9[%c0_17, %c0_18], %21 {strides = array<i32>} : memref<512x128xf32, #tpu.memory_space<vmem>>, vector<512x128xf32>,
    } else {
    }
    return
  }
  func.func @transform_0(%arg0: i32, %arg1: i32, %arg2: i32) -> (i32, i32) {
    %c0_i32 = arith.constant 0 : i32
    return %arg0, %arg2 : i32, i32
  }
  func.func @transform_1(%arg0: i32, %arg1: i32, %arg2: i32) -> (i32, i32) {
    %c0_i32 = arith.constant 0 : i32
    return %arg2, %arg1 : i32, i32
  }
  func.func @transform_2(%arg0: i32, %arg1: i32, %arg2: i32) -> (i32, i32) {
    %c0_i32 = arith.constant 0 : i32
    %c0_i32_0 = arith.constant 0 : i32
    return %c0_i32, %arg2 : i32, i32
  }
  func.func @transform_3(%arg0: i32, %arg1: i32, %arg2: i32) -> (i32, i32) {
    %c0_i32 = arith.constant 0 : i32
    %c0_i32_0 = arith.constant 0 : i32
    return %c0_i32, %arg2 : i32, i32
  }
  func.func @transform_4(%arg0: i32, %arg1: i32, %arg2: i32) -> (i32, i32) {
    %c0_i32 = arith.constant 0 : i32
    %c0_i32_0 = arith.constant 0 : i32
    return %c0_i32, %arg1 : i32, i32
  }
  func.func @transform_5(%arg0: i32, %arg1: i32, %arg2: i32) -> (i32, i32) {
    %c0_i32 = arith.constant 0 : i32
    %c0_i32_0 = arith.constant 0 : i32
    return %c0_i32, %arg1 : i32, i32
  }
  func.func @transform_6(%arg0: i32, %arg1: i32, %arg2: i32) -> (i32, i32) {
    %c0_i32 = arith.constant 0 : i32
    return %arg0, %arg1 : i32, i32
  }
}

module attributes {stable_mosaic.version = 11 : i64} {
  func.func @_max_reduce_kernel(%arg0: i32, %arg1: memref<128x9x16xf32, #tpu.memory_space<vmem>>, %arg2: memref<128x16xf32, #tpu.memory_space<vmem>>) attributes {dimension_semantics = [#tpu.dimension_semantics<parallel>], iteration_bounds = array<i64: 1>, scalar_prefetch = 0 : i64, scratch_operands = 0 : i64, tpu.core_type = #tpu.core_type<tc>, window_params = [{transform_indices = @transform_0, window_bounds = array<i64: 128, 9, 16>}, {transform_indices = @transform_1, window_bounds = array<i64: 128, 16>}]} {
    %c0 = arith.constant 0 : index
    %c0_0 = arith.constant 0 : index
    %c0_1 = arith.constant 0 : index
    %0 = vector.load %arg1[%c0, %c0_0, %c0_1] : memref<128x9x16xf32, #tpu.memory_space<vmem>>, vector<128x9x16xf32>
    %cst = arith.constant dense<0xFF800000> : vector<128x16xf32>
    %1 = vector.multi_reduction <maximumf>, %0, %cst [1] : vector<128x9x16xf32> to vector<128x16xf32>
    %c0_2 = arith.constant 0 : index
    %c0_3 = arith.constant 0 : index
    %2 = vector.load %arg2[%c0_2, %c0_3] : memref<128x16xf32, #tpu.memory_space<vmem>>, vector<128x16xf32>
    tpu.vector_store %arg2[%c0_2, %c0_3], %1 {strides = array<i32>} : memref<128x16xf32, #tpu.memory_space<vmem>>, vector<128x16xf32>,
    return
  }
  func.func @transform_0(%arg0: i32) -> (i32, i32, i32) {
    %c0_i32 = arith.constant 0 : i32
    %c0_i32_0 = arith.constant 0 : i32
    %c0_i32_1 = arith.constant 0 : i32
    return %arg0, %c0_i32, %c0_i32_0 : i32, i32, i32
  }
  func.func @transform_1(%arg0: i32) -> (i32, i32) {
    %c0_i32 = arith.constant 0 : i32
    %c0_i32_0 = arith.constant 0 : i32
    return %arg0, %c0_i32 : i32, i32
  }
}

module attributes {stable_mosaic.version = 11 : i64} {
  func.func @_gemm_fused_kernel(%arg0: i32, %arg1: i32, %arg2: i32, %arg3: memref<128x128xf32, #tpu.memory_space<vmem>>, %arg4: memref<128x128xbf16, #tpu.memory_space<vmem>>, %arg5: memref<1x128xf32, #tpu.memory_space<vmem>>, %arg6: memref<1x128xf32, #tpu.memory_space<vmem>>, %arg7: memref<1x128xf32, #tpu.memory_space<vmem>>, %arg8: memref<1x128xf32, #tpu.memory_space<vmem>>, %arg9: memref<128x128xbf16, #tpu.memory_space<vmem>>, %arg10: memref<128x128xf32, #tpu.memory_space<vmem>>) attributes {dimension_semantics = [#tpu.dimension_semantics<parallel>, #tpu.dimension_semantics<parallel>, #tpu.dimension_semantics<arbitrary>], iteration_bounds = array<i64: 1, 1, 1>, scalar_prefetch = 0 : i64, scratch_operands = 1 : i64, tpu.core_type = #tpu.core_type<tc>, window_params = [{transform_indices = @transform_0, window_bounds = array<i64: 128, 128>}, {transform_indices = @transform_1, window_bounds = array<i64: 128, 128>}, {transform_indices = @transform_2, window_bounds = array<i64: 1, 128>}, {transform_indices = @transform_3, window_bounds = array<i64: 1, 128>}, {transform_indices = @transform_4, window_bounds = array<i64: 1, 128>}, {transform_indices = @transform_5, window_bounds = array<i64: 1, 128>}, {transform_indices = @transform_6, window_bounds = array<i64: 128, 128>}]} {
    %c0_i32 = arith.constant 0 : i32
    %0 = arith.cmpi eq, %arg2, %c0_i32 : i32
    %1 = arith.extui %0 : i1 to i32
    %c0_i32_0 = arith.constant 0 : i32
    %2 = arith.cmpi ne, %1, %c0_i32_0 : i32
    scf.if %2 {
      %cst_15 = arith.constant 0.000000e+00 : f32
      %21 = vector.broadcast %cst_15 : f32 to vector<128x128xf32>
      %c0_16 = arith.constant 0 : index
      %c0_17 = arith.constant 0 : index
      %22 = vector.load %arg10[%c0_16, %c0_17] : memref<128x128xf32, #tpu.memory_space<vmem>>, vector<128x128xf32>
      tpu.vector_store %arg10[%c0_16, %c0_17], %21 {strides = array<i32>} : memref<128x128xf32, #tpu.memory_space<vmem>>, vector<128x128xf32>,
    } else {
    }
    %c0 = arith.constant 0 : index
    %c0_1 = arith.constant 0 : index
    %3 = vector.load %arg3[%c0, %c0_1] : memref<128x128xf32, #tpu.memory_space<vmem>>, vector<128x128xf32>
    %c0_2 = arith.constant 0 : index
    %c0_3 = arith.constant 0 : index
    %4 = vector.load %arg5[%c0_2, %c0_3] : memref<1x128xf32, #tpu.memory_space<vmem>>, vector<1x128xf32>
    %5 = vector.broadcast %4 : vector<1x128xf32> to vector<128x128xf32>
    %6 = arith.mulf %3, %5 : vector<128x128xf32>
    %c0_4 = arith.constant 0 : index
    %c0_5 = arith.constant 0 : index
    %7 = vector.load %arg6[%c0_4, %c0_5] : memref<1x128xf32, #tpu.memory_space<vmem>>, vector<1x128xf32>
    %8 = vector.broadcast %7 : vector<1x128xf32> to vector<128x128xf32>
    %9 = arith.addf %6, %8 : vector<128x128xf32>
    %cst = arith.constant 0.000000e+00 : f32
    %10 = vector.broadcast %cst : f32 to vector<128x128xf32>
    %11 = arith.maximumf %9, %10 : vector<128x128xf32>
    %c0_6 = arith.constant 0 : index
    %c0_7 = arith.constant 0 : index
    %12 = vector.load %arg10[%c0_6, %c0_7] : memref<128x128xf32, #tpu.memory_space<vmem>>, vector<128x128xf32>
    %13 = arith.truncf %11 : vector<128x128xf32> to vector<128x128xbf16>
    %c0_8 = arith.constant 0 : index
    %c0_9 = arith.constant 0 : index
    %14 = vector.load %arg4[%c0_8, %c0_9] : memref<128x128xbf16, #tpu.memory_space<vmem>>, vector<128x128xbf16>
    %cst_10 = arith.constant dense<0.000000e+00> : vector<128x128xf32>
    %15 = tpu.matmul %13, %14, %cst_10 {dimension_numbers = #tpu.dot_dimension_numbers<[1], [0], [0], [1], [0, 0, 1, 1], [], []>} : vector<128x128xbf16>, vector<128x128xbf16>, vector<128x128xf32> -> vector<128x128xf32>
    %16 = arith.addf %12, %15 : vector<128x128xf32>
    %c0_11 = arith.constant 0 : index
    %c0_12 = arith.constant 0 : index
    %17 = vector.load %arg10[%c0_11, %c0_12] : memref<128x128xf32, #tpu.memory_space<vmem>>, vector<128x128xf32>
    tpu.vector_store %arg10[%c0_11, %c0_12], %16 {strides = array<i32>} : memref<128x128xf32, #tpu.memory_space<vmem>>, vector<128x128xf32>,
    %c0_i32_13 = arith.constant 0 : i32
    %18 = arith.cmpi eq, %arg2, %c0_i32_13 : i32
    %19 = arith.extui %18 : i1 to i32
    %c0_i32_14 = arith.constant 0 : i32
    %20 = arith.cmpi ne, %19, %c0_i32_14 : i32
    scf.if %20 {
      %c0_15 = arith.constant 0 : index
      %c0_16 = arith.constant 0 : index
      %21 = vector.load %arg10[%c0_15, %c0_16] : memref<128x128xf32, #tpu.memory_space<vmem>>, vector<128x128xf32>
      %c0_17 = arith.constant 0 : index
      %c0_18 = arith.constant 0 : index
      %22 = vector.load %arg7[%c0_17, %c0_18] : memref<1x128xf32, #tpu.memory_space<vmem>>, vector<1x128xf32>
      %23 = vector.broadcast %22 : vector<1x128xf32> to vector<128x128xf32>
      %24 = arith.mulf %21, %23 : vector<128x128xf32>
      %c0_19 = arith.constant 0 : index
      %c0_20 = arith.constant 0 : index
      %25 = vector.load %arg8[%c0_19, %c0_20] : memref<1x128xf32, #tpu.memory_space<vmem>>, vector<1x128xf32>
      %26 = vector.broadcast %25 : vector<1x128xf32> to vector<128x128xf32>
      %27 = arith.addf %24, %26 : vector<128x128xf32>
      %cst_21 = arith.constant 0.000000e+00 : f32
      %28 = vector.broadcast %cst_21 : f32 to vector<128x128xf32>
      %29 = arith.maximumf %27, %28 : vector<128x128xf32>
      %30 = arith.truncf %29 : vector<128x128xf32> to vector<128x128xbf16>
      %c0_22 = arith.constant 0 : index
      %c0_23 = arith.constant 0 : index
      %31 = vector.load %arg9[%c0_22, %c0_23] : memref<128x128xbf16, #tpu.memory_space<vmem>>, vector<128x128xbf16>
      tpu.vector_store %arg9[%c0_22, %c0_23], %30 {strides = array<i32>} : memref<128x128xbf16, #tpu.memory_space<vmem>>, vector<128x128xbf16>,
    } else {
    }
    return
  }
  func.func @transform_0(%arg0: i32, %arg1: i32, %arg2: i32) -> (i32, i32) {
    %c0_i32 = arith.constant 0 : i32
    return %arg0, %arg2 : i32, i32
  }
  func.func @transform_1(%arg0: i32, %arg1: i32, %arg2: i32) -> (i32, i32) {
    %c0_i32 = arith.constant 0 : i32
    return %arg2, %arg1 : i32, i32
  }
  func.func @transform_2(%arg0: i32, %arg1: i32, %arg2: i32) -> (i32, i32) {
    %c0_i32 = arith.constant 0 : i32
    %c0_i32_0 = arith.constant 0 : i32
    return %c0_i32, %arg2 : i32, i32
  }
  func.func @transform_3(%arg0: i32, %arg1: i32, %arg2: i32) -> (i32, i32) {
    %c0_i32 = arith.constant 0 : i32
    %c0_i32_0 = arith.constant 0 : i32
    return %c0_i32, %arg2 : i32, i32
  }
  func.func @transform_4(%arg0: i32, %arg1: i32, %arg2: i32) -> (i32, i32) {
    %c0_i32 = arith.constant 0 : i32
    %c0_i32_0 = arith.constant 0 : i32
    return %c0_i32, %arg1 : i32, i32
  }
  func.func @transform_5(%arg0: i32, %arg1: i32, %arg2: i32) -> (i32, i32) {
    %c0_i32 = arith.constant 0 : i32
    %c0_i32_0 = arith.constant 0 : i32
    return %c0_i32, %arg1 : i32, i32
  }
  func.func @transform_6(%arg0: i32, %arg1: i32, %arg2: i32) -> (i32, i32) {
    %c0_i32 = arith.constant 0 : i32
    return %arg0, %arg1 : i32, i32
  }
}

module attributes {stable_mosaic.version = 11 : i64} {
  func.func @_conv3x3_kernel(%arg0: i32, %arg1: memref<1x10x10x128xbf16, #tpu.memory_space<vmem>>, %arg2: memref<9x128x128xbf16, #tpu.memory_space<vmem>>, %arg3: memref<1x8x8x128xf32, #tpu.memory_space<vmem>>) attributes {dimension_semantics = [#tpu.dimension_semantics<parallel>], iteration_bounds = array<i64: 2>, scalar_prefetch = 0 : i64, scratch_operands = 0 : i64, tpu.core_type = #tpu.core_type<tc>, window_params = [{transform_indices = @transform_0, window_bounds = array<i64: 1, 10, 10, 128>}, {pipeline_mode = #tpu.pipeline_mode<synchronous>, transform_indices = @transform_1, window_bounds = array<i64: 9, 128, 128>}, {transform_indices = @transform_2, window_bounds = array<i64: 1, 8, 8, 128>}]} {
    %c0_i32 = arith.constant 0 : i32
    %c8_i32 = arith.constant 8 : i32
    %0 = arith.addi %c0_i32, %c8_i32 : i32
    %c1_i32 = arith.constant 1 : i32
    scf.for %arg4 = %c0_i32 to %0 step %c1_i32  : i32 {
      %cst = arith.constant 0.000000e+00 : f32
      %1 = vector.broadcast %cst : f32 to vector<8x128xf32>
      %c0_i32_1 = arith.constant 0 : i32
      %2 = arith.addi %arg4, %c0_i32_1 : i32
      %c0 = arith.constant 0 : index
      %3 = arith.index_cast %2 : i32 to index
      %c0_2 = arith.constant 0 : index
      %c0_3 = arith.constant 0 : index
      %4 = vector.load %arg1[%c0, %3, %c0_2, %c0_3] : memref<1x10x10x128xbf16, #tpu.memory_space<vmem>>, vector<1x1x10x128xbf16>
      %5 = vector.shape_cast %4 : vector<1x1x10x128xbf16> to vector<10x128xbf16>
      %6 = vector.extract_strided_slice %5 {offsets = [0, 0], sizes = [8, 128], strides = [1, 1]} : vector<10x128xbf16> to vector<8x128xbf16>
      %c0_4 = arith.constant 0 : index
      %c0_5 = arith.constant 0 : index
      %c0_6 = arith.constant 0 : index
      %7 = vector.load %arg2[%c0_4, %c0_5, %c0_6] : memref<9x128x128xbf16, #tpu.memory_space<vmem>>, vector<1x128x128xbf16>
      %8 = vector.shape_cast %7 : vector<1x128x128xbf16> to vector<128x128xbf16>
      %cst_7 = arith.constant dense<0.000000e+00> : vector<8x128xf32>
      %9 = tpu.matmul %6, %8, %cst_7 {dimension_numbers = #tpu.dot_dimension_numbers<[1], [0], [0], [1], [0, 0, 1, 1], [], []>} : vector<8x128xbf16>, vector<128x128xbf16>, vector<8x128xf32> -> vector<8x128xf32>
      %10 = arith.addf %1, %9 : vector<8x128xf32>
      %11 = vector.extract_strided_slice %5 {offsets = [1, 0], sizes = [8, 128], strides = [1, 1]} : vector<10x128xbf16> to vector<8x128xbf16>
      %c1 = arith.constant 1 : index
      %c0_8 = arith.constant 0 : index
      %c0_9 = arith.constant 0 : index
      %12 = vector.load %arg2[%c1, %c0_8, %c0_9] : memref<9x128x128xbf16, #tpu.memory_space<vmem>>, vector<1x128x128xbf16>
      %13 = vector.shape_cast %12 : vector<1x128x128xbf16> to vector<128x128xbf16>
      %cst_10 = arith.constant dense<0.000000e+00> : vector<8x128xf32>
      %14 = tpu.matmul %11, %13, %cst_10 {dimension_numbers = #tpu.dot_dimension_numbers<[1], [0], [0], [1], [0, 0, 1, 1], [], []>} : vector<8x128xbf16>, vector<128x128xbf16>, vector<8x128xf32> -> vector<8x128xf32>
      %15 = arith.addf %10, %14 : vector<8x128xf32>
      %16 = vector.extract_strided_slice %5 {offsets = [2, 0], sizes = [8, 128], strides = [1, 1]} : vector<10x128xbf16> to vector<8x128xbf16>
      %c2 = arith.constant 2 : index
      %c0_11 = arith.constant 0 : index
      %c0_12 = arith.constant 0 : index
      %17 = vector.load %arg2[%c2, %c0_11, %c0_12] : memref<9x128x128xbf16, #tpu.memory_space<vmem>>, vector<1x128x128xbf16>
      %18 = vector.shape_cast %17 : vector<1x128x128xbf16> to vector<128x128xbf16>
      %cst_13 = arith.constant dense<0.000000e+00> : vector<8x128xf32>
      %19 = tpu.matmul %16, %18, %cst_13 {dimension_numbers = #tpu.dot_dimension_numbers<[1], [0], [0], [1], [0, 0, 1, 1], [], []>} : vector<8x128xbf16>, vector<128x128xbf16>, vector<8x128xf32> -> vector<8x128xf32>
      %20 = arith.addf %15, %19 : vector<8x128xf32>
      %c1_i32_14 = arith.constant 1 : i32
      %21 = arith.addi %arg4, %c1_i32_14 : i32
      %c0_15 = arith.constant 0 : index
      %22 = arith.index_cast %21 : i32 to index
      %c0_16 = arith.constant 0 : index
      %c0_17 = arith.constant 0 : index
      %23 = vector.load %arg1[%c0_15, %22, %c0_16, %c0_17] : memref<1x10x10x128xbf16, #tpu.memory_space<vmem>>, vector<1x1x10x128xbf16>
      %24 = vector.shape_cast %23 : vector<1x1x10x128xbf16> to vector<10x128xbf16>
      %25 = vector.extract_strided_slice %24 {offsets = [0, 0], sizes = [8, 128], strides = [1, 1]} : vector<10x128xbf16> to vector<8x128xbf16>
      %c3 = arith.constant 3 : index
      %c0_18 = arith.constant 0 : index
      %c0_19 = arith.constant 0 : index
      %26 = vector.load %arg2[%c3, %c0_18, %c0_19] : memref<9x128x128xbf16, #tpu.memory_space<vmem>>, vector<1x128x128xbf16>
      %27 = vector.shape_cast %26 : vector<1x128x128xbf16> to vector<128x128xbf16>
      %cst_20 = arith.constant dense<0.000000e+00> : vector<8x128xf32>
      %28 = tpu.matmul %25, %27, %cst_20 {dimension_numbers = #tpu.dot_dimension_numbers<[1], [0], [0], [1], [0, 0, 1, 1], [], []>} : vector<8x128xbf16>, vector<128x128xbf16>, vector<8x128xf32> -> vector<8x128xf32>
      %29 = arith.addf %20, %28 : vector<8x128xf32>
      %30 = vector.extract_strided_slice %24 {offsets = [1, 0], sizes = [8, 128], strides = [1, 1]} : vector<10x128xbf16> to vector<8x128xbf16>
      %c4 = arith.constant 4 : index
      %c0_21 = arith.constant 0 : index
      %c0_22 = arith.constant 0 : index
      %31 = vector.load %arg2[%c4, %c0_21, %c0_22] : memref<9x128x128xbf16, #tpu.memory_space<vmem>>, vector<1x128x128xbf16>
      %32 = vector.shape_cast %31 : vector<1x128x128xbf16> to vector<128x128xbf16>
      %cst_23 = arith.constant dense<0.000000e+00> : vector<8x128xf32>
      %33 = tpu.matmul %30, %32, %cst_23 {dimension_numbers = #tpu.dot_dimension_numbers<[1], [0], [0], [1], [0, 0, 1, 1], [], []>} : vector<8x128xbf16>, vector<128x128xbf16>, vector<8x128xf32> -> vector<8x128xf32>
      %34 = arith.addf %29, %33 : vector<8x128xf32>
      %35 = vector.extract_strided_slice %24 {offsets = [2, 0], sizes = [8, 128], strides = [1, 1]} : vector<10x128xbf16> to vector<8x128xbf16>
      %c5 = arith.constant 5 : index
      %c0_24 = arith.constant 0 : index
      %c0_25 = arith.constant 0 : index
      %36 = vector.load %arg2[%c5, %c0_24, %c0_25] : memref<9x128x128xbf16, #tpu.memory_space<vmem>>, vector<1x128x128xbf16>
      %37 = vector.shape_cast %36 : vector<1x128x128xbf16> to vector<128x128xbf16>
      %cst_26 = arith.constant dense<0.000000e+00> : vector<8x128xf32>
      %38 = tpu.matmul %35, %37, %cst_26 {dimension_numbers = #tpu.dot_dimension_numbers<[1], [0], [0], [1], [0, 0, 1, 1], [], []>} : vector<8x128xbf16>, vector<128x128xbf16>, vector<8x128xf32> -> vector<8x128xf32>
      %39 = arith.addf %34, %38 : vector<8x128xf32>
      %c2_i32 = arith.constant 2 : i32
      %40 = arith.addi %arg4, %c2_i32 : i32
      %c0_27 = arith.constant 0 : index
      %41 = arith.index_cast %40 : i32 to index
      %c0_28 = arith.constant 0 : index
      %c0_29 = arith.constant 0 : index
      %42 = vector.load %arg1[%c0_27, %41, %c0_28, %c0_29] : memref<1x10x10x128xbf16, #tpu.memory_space<vmem>>, vector<1x1x10x128xbf16>
      %43 = vector.shape_cast %42 : vector<1x1x10x128xbf16> to vector<10x128xbf16>
      %44 = vector.extract_strided_slice %43 {offsets = [0, 0], sizes = [8, 128], strides = [1, 1]} : vector<10x128xbf16> to vector<8x128xbf16>
      %c6 = arith.constant 6 : index
      %c0_30 = arith.constant 0 : index
      %c0_31 = arith.constant 0 : index
      %45 = vector.load %arg2[%c6, %c0_30, %c0_31] : memref<9x128x128xbf16, #tpu.memory_space<vmem>>, vector<1x128x128xbf16>
      %46 = vector.shape_cast %45 : vector<1x128x128xbf16> to vector<128x128xbf16>
      %cst_32 = arith.constant dense<0.000000e+00> : vector<8x128xf32>
      %47 = tpu.matmul %44, %46, %cst_32 {dimension_numbers = #tpu.dot_dimension_numbers<[1], [0], [0], [1], [0, 0, 1, 1], [], []>} : vector<8x128xbf16>, vector<128x128xbf16>, vector<8x128xf32> -> vector<8x128xf32>
      %48 = arith.addf %39, %47 : vector<8x128xf32>
      %49 = vector.extract_strided_slice %43 {offsets = [1, 0], sizes = [8, 128], strides = [1, 1]} : vector<10x128xbf16> to vector<8x128xbf16>
      %c7 = arith.constant 7 : index
      %c0_33 = arith.constant 0 : index
      %c0_34 = arith.constant 0 : index
      %50 = vector.load %arg2[%c7, %c0_33, %c0_34] : memref<9x128x128xbf16, #tpu.memory_space<vmem>>, vector<1x128x128xbf16>
      %51 = vector.shape_cast %50 : vector<1x128x128xbf16> to vector<128x128xbf16>
      %cst_35 = arith.constant dense<0.000000e+00> : vector<8x128xf32>
      %52 = tpu.matmul %49, %51, %cst_35 {dimension_numbers = #tpu.dot_dimension_numbers<[1], [0], [0], [1], [0, 0, 1, 1], [], []>} : vector<8x128xbf16>, vector<128x128xbf16>, vector<8x128xf32> -> vector<8x128xf32>
      %53 = arith.addf %48, %52 : vector<8x128xf32>
      %54 = vector.extract_strided_slice %43 {offsets = [2, 0], sizes = [8, 128], strides = [1, 1]} : vector<10x128xbf16> to vector<8x128xbf16>
      %c8 = arith.constant 8 : index
      %c0_36 = arith.constant 0 : index
      %c0_37 = arith.constant 0 : index
      %55 = vector.load %arg2[%c8, %c0_36, %c0_37] : memref<9x128x128xbf16, #tpu.memory_space<vmem>>, vector<1x128x128xbf16>
      %56 = vector.shape_cast %55 : vector<1x128x128xbf16> to vector<128x128xbf16>
      %cst_38 = arith.constant dense<0.000000e+00> : vector<8x128xf32>
      %57 = tpu.matmul %54, %56, %cst_38 {dimension_numbers = #tpu.dot_dimension_numbers<[1], [0], [0], [1], [0, 0, 1, 1], [], []>} : vector<8x128xbf16>, vector<128x128xbf16>, vector<8x128xf32> -> vector<8x128xf32>
      %58 = arith.addf %53, %57 : vector<8x128xf32>
      %c0_39 = arith.constant 0 : index
      %59 = arith.index_cast %arg4 : i32 to index
      %c0_40 = arith.constant 0 : index
      %c0_41 = arith.constant 0 : index
      %60 = vector.load %arg3[%c0_39, %59, %c0_40, %c0_41] : memref<1x8x8x128xf32, #tpu.memory_space<vmem>>, vector<1x1x8x128xf32>
      %61 = vector.shape_cast %60 : vector<1x1x8x128xf32> to vector<8x128xf32>
      %62 = vector.shape_cast %58 : vector<8x128xf32> to vector<1x1x8x128xf32>
      tpu.vector_store %arg3[%c0_39, %59, %c0_40, %c0_41], %62 {strides = array<i32>} : memref<1x8x8x128xf32, #tpu.memory_space<vmem>>, vector<1x1x8x128xf32>,
    }
    %c8_i32_0 = arith.constant 8 : i32
    return
  }
  func.func @transform_0(%arg0: i32) -> (i32, i32, i32, i32) {
    %c0_i32 = arith.constant 0 : i32
    %c0_i32_0 = arith.constant 0 : i32
    %c0_i32_1 = arith.constant 0 : i32
    %c0_i32_2 = arith.constant 0 : i32
    return %arg0, %c0_i32, %c0_i32_0, %c0_i32_1 : i32, i32, i32, i32
  }
  func.func @transform_1(%arg0: i32) -> (i32, i32, i32) {
    %c0_i32 = arith.constant 0 : i32
    %c0_i32_0 = arith.constant 0 : i32
    %c0_i32_1 = arith.constant 0 : i32
    %c0_i32_2 = arith.constant 0 : i32
    return %c0_i32, %c0_i32_0, %c0_i32_1 : i32, i32, i32
  }
  func.func @transform_2(%arg0: i32) -> (i32, i32, i32, i32) {
    %c0_i32 = arith.constant 0 : i32
    %c0_i32_0 = arith.constant 0 : i32
    %c0_i32_1 = arith.constant 0 : i32
    %c0_i32_2 = arith.constant 0 : i32
    return %arg0, %c0_i32, %c0_i32_0, %c0_i32_1 : i32, i32, i32, i32
  }
}

module attributes {stable_mosaic.version = 11 : i64} {
  func.func @_bn_relu_avgpool_kernel(%arg0: i32, %arg1: memref<4x1x4x2x32xf32, #tpu.memory_space<vmem>>, %arg2: memref<4x1x4x2x32xf32, #tpu.memory_space<vmem>>, %arg3: memref<1x1x1x32xf32, #tpu.memory_space<vmem>>, %arg4: memref<1x1x1x32xf32, #tpu.memory_space<vmem>>, %arg5: memref<4x4x32xf32, #tpu.memory_space<vmem>>) attributes {dimension_semantics = [#tpu.dimension_semantics<parallel>], iteration_bounds = array<i64: 2>, scalar_prefetch = 0 : i64, scratch_operands = 0 : i64, tpu.core_type = #tpu.core_type<tc>, window_params = [{transform_indices = @transform_0, window_bounds = array<i64: 4, 1, 4, 2, 32>}, {transform_indices = @transform_1, window_bounds = array<i64: 4, 1, 4, 2, 32>}, {pipeline_mode = #tpu.pipeline_mode<synchronous>, transform_indices = @transform_2, window_bounds = array<i64: 1, 1, 1, 32>}, {pipeline_mode = #tpu.pipeline_mode<synchronous>, transform_indices = @transform_3, window_bounds = array<i64: 1, 1, 1, 32>}, {transform_indices = @transform_4, window_bounds = array<i64: 4, 4, 32>}]} {
    %c0 = arith.constant 0 : index
    %c0_0 = arith.constant 0 : index
    %c0_1 = arith.constant 0 : index
    %c0_2 = arith.constant 0 : index
    %0 = vector.load %arg3[%c0, %c0_0, %c0_1, %c0_2] : memref<1x1x1x32xf32, #tpu.memory_space<vmem>>, vector<1x1x1x32xf32>
    %c0_3 = arith.constant 0 : index
    %c0_4 = arith.constant 0 : index
    %c0_5 = arith.constant 0 : index
    %c0_6 = arith.constant 0 : index
    %1 = vector.load %arg4[%c0_3, %c0_4, %c0_5, %c0_6] : memref<1x1x1x32xf32, #tpu.memory_space<vmem>>, vector<1x1x1x32xf32>
    %c0_7 = arith.constant 0 : index
    %c0_8 = arith.constant 0 : index
    %c0_9 = arith.constant 0 : index
    %c0_10 = arith.constant 0 : index
    %c0_11 = arith.constant 0 : index
    %2 = vector.load %arg1[%c0_7, %c0_8, %c0_9, %c0_10, %c0_11] : memref<4x1x4x2x32xf32, #tpu.memory_space<vmem>>, vector<4x1x4x2x32xf32>
    %3 = vector.shape_cast %2 : vector<4x1x4x2x32xf32> to vector<4x4x2x32xf32>
    %4 = vector.broadcast %0 : vector<1x1x1x32xf32> to vector<4x4x2x32xf32>
    %5 = arith.mulf %3, %4 : vector<4x4x2x32xf32>
    %6 = vector.broadcast %1 : vector<1x1x1x32xf32> to vector<4x4x2x32xf32>
    %7 = arith.addf %5, %6 : vector<4x4x2x32xf32>
    %cst = arith.constant 0.000000e+00 : f32
    %8 = vector.broadcast %cst : f32 to vector<4x4x2x32xf32>
    %9 = arith.maximumf %7, %8 : vector<4x4x2x32xf32>
    %c0_12 = arith.constant 0 : index
    %c0_13 = arith.constant 0 : index
    %c0_14 = arith.constant 0 : index
    %c0_15 = arith.constant 0 : index
    %c0_16 = arith.constant 0 : index
    %10 = vector.load %arg2[%c0_12, %c0_13, %c0_14, %c0_15, %c0_16] : memref<4x1x4x2x32xf32, #tpu.memory_space<vmem>>, vector<4x1x4x2x32xf32>
    %11 = vector.shape_cast %10 : vector<4x1x4x2x32xf32> to vector<4x4x2x32xf32>
    %12 = vector.broadcast %0 : vector<1x1x1x32xf32> to vector<4x4x2x32xf32>
    %13 = arith.mulf %11, %12 : vector<4x4x2x32xf32>
    %14 = vector.broadcast %1 : vector<1x1x1x32xf32> to vector<4x4x2x32xf32>
    %15 = arith.addf %13, %14 : vector<4x4x2x32xf32>
    %cst_17 = arith.constant 0.000000e+00 : f32
    %16 = vector.broadcast %cst_17 : f32 to vector<4x4x2x32xf32>
    %17 = arith.maximumf %15, %16 : vector<4x4x2x32xf32>
    %18 = arith.addf %9, %17 : vector<4x4x2x32xf32>
    %cst_18 = arith.constant dense<0.000000e+00> : vector<4x4x32xf32>
    %19 = vector.multi_reduction <add>, %18, %cst_18 [2] : vector<4x4x2x32xf32> to vector<4x4x32xf32>
    %cst_19 = arith.constant 2.500000e-01 : f32
    %20 = vector.broadcast %cst_19 : f32 to vector<4x4x32xf32>
    %21 = arith.mulf %20, %19 : vector<4x4x32xf32>
    %c0_20 = arith.constant 0 : index
    %c0_21 = arith.constant 0 : index
    %c0_22 = arith.constant 0 : index
    %22 = vector.load %arg5[%c0_20, %c0_21, %c0_22] : memref<4x4x32xf32, #tpu.memory_space<vmem>>, vector<4x4x32xf32>
    tpu.vector_store %arg5[%c0_20, %c0_21, %c0_22], %21 {strides = array<i32>} : memref<4x4x32xf32, #tpu.memory_space<vmem>>, vector<4x4x32xf32>,
    return
  }
  func.func @transform_0(%arg0: i32) -> (i32, i32, i32, i32, i32) {
    %c0_i32 = arith.constant 0 : i32
    %c0_i32_0 = arith.constant 0 : i32
    %c0_i32_1 = arith.constant 0 : i32
    %c0_i32_2 = arith.constant 0 : i32
    %c0_i32_3 = arith.constant 0 : i32
    return %arg0, %c0_i32, %c0_i32_0, %c0_i32_1, %c0_i32_2 : i32, i32, i32, i32, i32
  }
  func.func @transform_1(%arg0: i32) -> (i32, i32, i32, i32, i32) {
    %c1_i32 = arith.constant 1 : i32
    %c0_i32 = arith.constant 0 : i32
    %c0_i32_0 = arith.constant 0 : i32
    %c0_i32_1 = arith.constant 0 : i32
    %c0_i32_2 = arith.constant 0 : i32
    return %arg0, %c1_i32, %c0_i32, %c0_i32_0, %c0_i32_1 : i32, i32, i32, i32, i32
  }
  func.func @transform_2(%arg0: i32) -> (i32, i32, i32, i32) {
    %c0_i32 = arith.constant 0 : i32
    %c0_i32_0 = arith.constant 0 : i32
    %c0_i32_1 = arith.constant 0 : i32
    %c0_i32_2 = arith.constant 0 : i32
    %c0_i32_3 = arith.constant 0 : i32
    return %c0_i32, %c0_i32_0, %c0_i32_1, %c0_i32_2 : i32, i32, i32, i32
  }
  func.func @transform_3(%arg0: i32) -> (i32, i32, i32, i32) {
    %c0_i32 = arith.constant 0 : i32
    %c0_i32_0 = arith.constant 0 : i32
    %c0_i32_1 = arith.constant 0 : i32
    %c0_i32_2 = arith.constant 0 : i32
    %c0_i32_3 = arith.constant 0 : i32
    return %c0_i32, %c0_i32_0, %c0_i32_1, %c0_i32_2 : i32, i32, i32, i32
  }
  func.func @transform_4(%arg0: i32) -> (i32, i32, i32) {
    %c0_i32 = arith.constant 0 : i32
    %c0_i32_0 = arith.constant 0 : i32
    %c0_i32_1 = arith.constant 0 : i32
    return %arg0, %c0_i32, %c0_i32_0 : i32, i32, i32
  }
}

module attributes {stable_mosaic.version = 11 : i64} {
  func.func @_gemm_fused_kernel(%arg0: i32, %arg1: i32, %arg2: i32, %arg3: memref<32x128xf32, #tpu.memory_space<vmem>>, %arg4: memref<128x128xbf16, #tpu.memory_space<vmem>>, %arg5: memref<1x128xf32, #tpu.memory_space<vmem>>, %arg6: memref<1x128xf32, #tpu.memory_space<vmem>>, %arg7: memref<1x128xf32, #tpu.memory_space<vmem>>, %arg8: memref<1x128xf32, #tpu.memory_space<vmem>>, %arg9: memref<32x128xf32, #tpu.memory_space<vmem>>, %arg10: memref<32x128xf32, #tpu.memory_space<vmem>>) attributes {dimension_semantics = [#tpu.dimension_semantics<parallel>, #tpu.dimension_semantics<parallel>, #tpu.dimension_semantics<arbitrary>], iteration_bounds = array<i64: 1, 1, 1>, scalar_prefetch = 0 : i64, scratch_operands = 1 : i64, tpu.core_type = #tpu.core_type<tc>, window_params = [{transform_indices = @transform_0, window_bounds = array<i64: 32, 128>}, {transform_indices = @transform_1, window_bounds = array<i64: 128, 128>}, {transform_indices = @transform_2, window_bounds = array<i64: 1, 128>}, {transform_indices = @transform_3, window_bounds = array<i64: 1, 128>}, {transform_indices = @transform_4, window_bounds = array<i64: 1, 128>}, {transform_indices = @transform_5, window_bounds = array<i64: 1, 128>}, {transform_indices = @transform_6, window_bounds = array<i64: 32, 128>}]} {
    %c0_i32 = arith.constant 0 : i32
    %0 = arith.cmpi eq, %arg2, %c0_i32 : i32
    %1 = arith.extui %0 : i1 to i32
    %c0_i32_0 = arith.constant 0 : i32
    %2 = arith.cmpi ne, %1, %c0_i32_0 : i32
    scf.if %2 {
      %cst_10 = arith.constant 0.000000e+00 : f32
      %13 = vector.broadcast %cst_10 : f32 to vector<32x128xf32>
      %c0_11 = arith.constant 0 : index
      %c0_12 = arith.constant 0 : index
      %14 = vector.load %arg10[%c0_11, %c0_12] : memref<32x128xf32, #tpu.memory_space<vmem>>, vector<32x128xf32>
      tpu.vector_store %arg10[%c0_11, %c0_12], %13 {strides = array<i32>} : memref<32x128xf32, #tpu.memory_space<vmem>>, vector<32x128xf32>,
    } else {
    }
    %c0 = arith.constant 0 : index
    %c0_1 = arith.constant 0 : index
    %3 = vector.load %arg3[%c0, %c0_1] : memref<32x128xf32, #tpu.memory_space<vmem>>, vector<32x128xf32>
    %c0_2 = arith.constant 0 : index
    %c0_3 = arith.constant 0 : index
    %4 = vector.load %arg10[%c0_2, %c0_3] : memref<32x128xf32, #tpu.memory_space<vmem>>, vector<32x128xf32>
    %5 = arith.truncf %3 : vector<32x128xf32> to vector<32x128xbf16>
    %c0_4 = arith.constant 0 : index
    %c0_5 = arith.constant 0 : index
    %6 = vector.load %arg4[%c0_4, %c0_5] : memref<128x128xbf16, #tpu.memory_space<vmem>>, vector<128x128xbf16>
    %cst = arith.constant dense<0.000000e+00> : vector<32x128xf32>
    %7 = tpu.matmul %5, %6, %cst {dimension_numbers = #tpu.dot_dimension_numbers<[1], [0], [0], [1], [0, 0, 1, 1], [], []>} : vector<32x128xbf16>, vector<128x128xbf16>, vector<32x128xf32> -> vector<32x128xf32>
    %8 = arith.addf %4, %7 : vector<32x128xf32>
    %c0_6 = arith.constant 0 : index
    %c0_7 = arith.constant 0 : index
    %9 = vector.load %arg10[%c0_6, %c0_7] : memref<32x128xf32, #tpu.memory_space<vmem>>, vector<32x128xf32>
    tpu.vector_store %arg10[%c0_6, %c0_7], %8 {strides = array<i32>} : memref<32x128xf32, #tpu.memory_space<vmem>>, vector<32x128xf32>,
    %c0_i32_8 = arith.constant 0 : i32
    %10 = arith.cmpi eq, %arg2, %c0_i32_8 : i32
    %11 = arith.extui %10 : i1 to i32
    %c0_i32_9 = arith.constant 0 : i32
    %12 = arith.cmpi ne, %11, %c0_i32_9 : i32
    scf.if %12 {
      %c0_10 = arith.constant 0 : index
      %c0_11 = arith.constant 0 : index
      %13 = vector.load %arg10[%c0_10, %c0_11] : memref<32x128xf32, #tpu.memory_space<vmem>>, vector<32x128xf32>
      %c0_12 = arith.constant 0 : index
      %c0_13 = arith.constant 0 : index
      %14 = vector.load %arg9[%c0_12, %c0_13] : memref<32x128xf32, #tpu.memory_space<vmem>>, vector<32x128xf32>
      tpu.vector_store %arg9[%c0_12, %c0_13], %13 {strides = array<i32>} : memref<32x128xf32, #tpu.memory_space<vmem>>, vector<32x128xf32>,
    } else {
    }
    return
  }
  func.func @transform_0(%arg0: i32, %arg1: i32, %arg2: i32) -> (i32, i32) {
    %c0_i32 = arith.constant 0 : i32
    return %arg0, %arg2 : i32, i32
  }
  func.func @transform_1(%arg0: i32, %arg1: i32, %arg2: i32) -> (i32, i32) {
    %c0_i32 = arith.constant 0 : i32
    return %arg2, %arg1 : i32, i32
  }
  func.func @transform_2(%arg0: i32, %arg1: i32, %arg2: i32) -> (i32, i32) {
    %c0_i32 = arith.constant 0 : i32
    %c0_i32_0 = arith.constant 0 : i32
    return %c0_i32, %arg2 : i32, i32
  }
  func.func @transform_3(%arg0: i32, %arg1: i32, %arg2: i32) -> (i32, i32) {
    %c0_i32 = arith.constant 0 : i32
    %c0_i32_0 = arith.constant 0 : i32
    return %c0_i32, %arg2 : i32, i32
  }
  func.func @transform_4(%arg0: i32, %arg1: i32, %arg2: i32) -> (i32, i32) {
    %c0_i32 = arith.constant 0 : i32
    %c0_i32_0 = arith.constant 0 : i32
    return %c0_i32, %arg1 : i32, i32
  }
  func.func @transform_5(%arg0: i32, %arg1: i32, %arg2: i32) -> (i32, i32) {
    %c0_i32 = arith.constant 0 : i32
    %c0_i32_0 = arith.constant 0 : i32
    return %c0_i32, %arg1 : i32, i32
  }
  func.func @transform_6(%arg0: i32, %arg1: i32, %arg2: i32) -> (i32, i32) {
    %c0_i32 = arith.constant 0 : i32
    return %arg0, %arg1 : i32, i32
  }
}

module attributes {stable_mosaic.version = 11 : i64} {
  func.func @_gemm_fused_kernel(%arg0: i32, %arg1: i32, %arg2: i32, %arg3: memref<32x128xf32, #tpu.memory_space<vmem>>, %arg4: memref<128x128xbf16, #tpu.memory_space<vmem>>, %arg5: memref<1x128xf32, #tpu.memory_space<vmem>>, %arg6: memref<1x128xf32, #tpu.memory_space<vmem>>, %arg7: memref<1x128xf32, #tpu.memory_space<vmem>>, %arg8: memref<1x128xf32, #tpu.memory_space<vmem>>, %arg9: memref<32x128xbf16, #tpu.memory_space<vmem>>, %arg10: memref<32x128xf32, #tpu.memory_space<vmem>>) attributes {dimension_semantics = [#tpu.dimension_semantics<parallel>, #tpu.dimension_semantics<parallel>, #tpu.dimension_semantics<arbitrary>], iteration_bounds = array<i64: 1, 1, 1>, scalar_prefetch = 0 : i64, scratch_operands = 1 : i64, tpu.core_type = #tpu.core_type<tc>, window_params = [{transform_indices = @transform_0, window_bounds = array<i64: 32, 128>}, {transform_indices = @transform_1, window_bounds = array<i64: 128, 128>}, {transform_indices = @transform_2, window_bounds = array<i64: 1, 128>}, {transform_indices = @transform_3, window_bounds = array<i64: 1, 128>}, {transform_indices = @transform_4, window_bounds = array<i64: 1, 128>}, {transform_indices = @transform_5, window_bounds = array<i64: 1, 128>}, {transform_indices = @transform_6, window_bounds = array<i64: 32, 128>}]} {
    %c0_i32 = arith.constant 0 : i32
    %0 = arith.cmpi eq, %arg2, %c0_i32 : i32
    %1 = arith.extui %0 : i1 to i32
    %c0_i32_0 = arith.constant 0 : i32
    %2 = arith.cmpi ne, %1, %c0_i32_0 : i32
    scf.if %2 {
      %cst_15 = arith.constant 0.000000e+00 : f32
      %21 = vector.broadcast %cst_15 : f32 to vector<32x128xf32>
      %c0_16 = arith.constant 0 : index
      %c0_17 = arith.constant 0 : index
      %22 = vector.load %arg10[%c0_16, %c0_17] : memref<32x128xf32, #tpu.memory_space<vmem>>, vector<32x128xf32>
      tpu.vector_store %arg10[%c0_16, %c0_17], %21 {strides = array<i32>} : memref<32x128xf32, #tpu.memory_space<vmem>>, vector<32x128xf32>,
    } else {
    }
    %c0 = arith.constant 0 : index
    %c0_1 = arith.constant 0 : index
    %3 = vector.load %arg3[%c0, %c0_1] : memref<32x128xf32, #tpu.memory_space<vmem>>, vector<32x128xf32>
    %c0_2 = arith.constant 0 : index
    %c0_3 = arith.constant 0 : index
    %4 = vector.load %arg5[%c0_2, %c0_3] : memref<1x128xf32, #tpu.memory_space<vmem>>, vector<1x128xf32>
    %5 = vector.broadcast %4 : vector<1x128xf32> to vector<32x128xf32>
    %6 = arith.mulf %3, %5 : vector<32x128xf32>
    %c0_4 = arith.constant 0 : index
    %c0_5 = arith.constant 0 : index
    %7 = vector.load %arg6[%c0_4, %c0_5] : memref<1x128xf32, #tpu.memory_space<vmem>>, vector<1x128xf32>
    %8 = vector.broadcast %7 : vector<1x128xf32> to vector<32x128xf32>
    %9 = arith.addf %6, %8 : vector<32x128xf32>
    %cst = arith.constant 0.000000e+00 : f32
    %10 = vector.broadcast %cst : f32 to vector<32x128xf32>
    %11 = arith.maximumf %9, %10 : vector<32x128xf32>
    %c0_6 = arith.constant 0 : index
    %c0_7 = arith.constant 0 : index
    %12 = vector.load %arg10[%c0_6, %c0_7] : memref<32x128xf32, #tpu.memory_space<vmem>>, vector<32x128xf32>
    %13 = arith.truncf %11 : vector<32x128xf32> to vector<32x128xbf16>
    %c0_8 = arith.constant 0 : index
    %c0_9 = arith.constant 0 : index
    %14 = vector.load %arg4[%c0_8, %c0_9] : memref<128x128xbf16, #tpu.memory_space<vmem>>, vector<128x128xbf16>
    %cst_10 = arith.constant dense<0.000000e+00> : vector<32x128xf32>
    %15 = tpu.matmul %13, %14, %cst_10 {dimension_numbers = #tpu.dot_dimension_numbers<[1], [0], [0], [1], [0, 0, 1, 1], [], []>} : vector<32x128xbf16>, vector<128x128xbf16>, vector<32x128xf32> -> vector<32x128xf32>
    %16 = arith.addf %12, %15 : vector<32x128xf32>
    %c0_11 = arith.constant 0 : index
    %c0_12 = arith.constant 0 : index
    %17 = vector.load %arg10[%c0_11, %c0_12] : memref<32x128xf32, #tpu.memory_space<vmem>>, vector<32x128xf32>
    tpu.vector_store %arg10[%c0_11, %c0_12], %16 {strides = array<i32>} : memref<32x128xf32, #tpu.memory_space<vmem>>, vector<32x128xf32>,
    %c0_i32_13 = arith.constant 0 : i32
    %18 = arith.cmpi eq, %arg2, %c0_i32_13 : i32
    %19 = arith.extui %18 : i1 to i32
    %c0_i32_14 = arith.constant 0 : i32
    %20 = arith.cmpi ne, %19, %c0_i32_14 : i32
    scf.if %20 {
      %c0_15 = arith.constant 0 : index
      %c0_16 = arith.constant 0 : index
      %21 = vector.load %arg10[%c0_15, %c0_16] : memref<32x128xf32, #tpu.memory_space<vmem>>, vector<32x128xf32>
      %c0_17 = arith.constant 0 : index
      %c0_18 = arith.constant 0 : index
      %22 = vector.load %arg7[%c0_17, %c0_18] : memref<1x128xf32, #tpu.memory_space<vmem>>, vector<1x128xf32>
      %23 = vector.broadcast %22 : vector<1x128xf32> to vector<32x128xf32>
      %24 = arith.mulf %21, %23 : vector<32x128xf32>
      %c0_19 = arith.constant 0 : index
      %c0_20 = arith.constant 0 : index
      %25 = vector.load %arg8[%c0_19, %c0_20] : memref<1x128xf32, #tpu.memory_space<vmem>>, vector<1x128xf32>
      %26 = vector.broadcast %25 : vector<1x128xf32> to vector<32x128xf32>
      %27 = arith.addf %24, %26 : vector<32x128xf32>
      %cst_21 = arith.constant 0.000000e+00 : f32
      %28 = vector.broadcast %cst_21 : f32 to vector<32x128xf32>
      %29 = arith.maximumf %27, %28 : vector<32x128xf32>
      %30 = arith.truncf %29 : vector<32x128xf32> to vector<32x128xbf16>
      %c0_22 = arith.constant 0 : index
      %c0_23 = arith.constant 0 : index
      %31 = vector.load %arg9[%c0_22, %c0_23] : memref<32x128xbf16, #tpu.memory_space<vmem>>, vector<32x128xbf16>
      tpu.vector_store %arg9[%c0_22, %c0_23], %30 {strides = array<i32>} : memref<32x128xbf16, #tpu.memory_space<vmem>>, vector<32x128xbf16>,
    } else {
    }
    return
  }
  func.func @transform_0(%arg0: i32, %arg1: i32, %arg2: i32) -> (i32, i32) {
    %c0_i32 = arith.constant 0 : i32
    return %arg0, %arg2 : i32, i32
  }
  func.func @transform_1(%arg0: i32, %arg1: i32, %arg2: i32) -> (i32, i32) {
    %c0_i32 = arith.constant 0 : i32
    return %arg2, %arg1 : i32, i32
  }
  func.func @transform_2(%arg0: i32, %arg1: i32, %arg2: i32) -> (i32, i32) {
    %c0_i32 = arith.constant 0 : i32
    %c0_i32_0 = arith.constant 0 : i32
    return %c0_i32, %arg2 : i32, i32
  }
  func.func @transform_3(%arg0: i32, %arg1: i32, %arg2: i32) -> (i32, i32) {
    %c0_i32 = arith.constant 0 : i32
    %c0_i32_0 = arith.constant 0 : i32
    return %c0_i32, %arg2 : i32, i32
  }
  func.func @transform_4(%arg0: i32, %arg1: i32, %arg2: i32) -> (i32, i32) {
    %c0_i32 = arith.constant 0 : i32
    %c0_i32_0 = arith.constant 0 : i32
    return %c0_i32, %arg1 : i32, i32
  }
  func.func @transform_5(%arg0: i32, %arg1: i32, %arg2: i32) -> (i32, i32) {
    %c0_i32 = arith.constant 0 : i32
    %c0_i32_0 = arith.constant 0 : i32
    return %c0_i32, %arg1 : i32, i32
  }
  func.func @transform_6(%arg0: i32, %arg1: i32, %arg2: i32) -> (i32, i32) {
    %c0_i32 = arith.constant 0 : i32
    return %arg0, %arg1 : i32, i32
  }
}

module attributes {stable_mosaic.version = 11 : i64} {
  func.func @_conv3x3_kernel(%arg0: i32, %arg1: memref<1x6x6x128xbf16, #tpu.memory_space<vmem>>, %arg2: memref<9x128x128xbf16, #tpu.memory_space<vmem>>, %arg3: memref<1x4x4x128xf32, #tpu.memory_space<vmem>>) attributes {dimension_semantics = [#tpu.dimension_semantics<parallel>], iteration_bounds = array<i64: 2>, scalar_prefetch = 0 : i64, scratch_operands = 0 : i64, tpu.core_type = #tpu.core_type<tc>, window_params = [{transform_indices = @transform_0, window_bounds = array<i64: 1, 6, 6, 128>}, {pipeline_mode = #tpu.pipeline_mode<synchronous>, transform_indices = @transform_1, window_bounds = array<i64: 9, 128, 128>}, {transform_indices = @transform_2, window_bounds = array<i64: 1, 4, 4, 128>}]} {
    %c0_i32 = arith.constant 0 : i32
    %c4_i32 = arith.constant 4 : i32
    %0 = arith.addi %c0_i32, %c4_i32 : i32
    %c1_i32 = arith.constant 1 : i32
    scf.for %arg4 = %c0_i32 to %0 step %c1_i32  : i32 {
      %cst = arith.constant 0.000000e+00 : f32
      %1 = vector.broadcast %cst : f32 to vector<4x128xf32>
      %c0_i32_1 = arith.constant 0 : i32
      %2 = arith.addi %arg4, %c0_i32_1 : i32
      %c0 = arith.constant 0 : index
      %3 = arith.index_cast %2 : i32 to index
      %c0_2 = arith.constant 0 : index
      %c0_3 = arith.constant 0 : index
      %4 = vector.load %arg1[%c0, %3, %c0_2, %c0_3] : memref<1x6x6x128xbf16, #tpu.memory_space<vmem>>, vector<1x1x6x128xbf16>
      %5 = vector.shape_cast %4 : vector<1x1x6x128xbf16> to vector<6x128xbf16>
      %6 = vector.extract_strided_slice %5 {offsets = [0, 0], sizes = [4, 128], strides = [1, 1]} : vector<6x128xbf16> to vector<4x128xbf16>
      %c0_4 = arith.constant 0 : index
      %c0_5 = arith.constant 0 : index
      %c0_6 = arith.constant 0 : index
      %7 = vector.load %arg2[%c0_4, %c0_5, %c0_6] : memref<9x128x128xbf16, #tpu.memory_space<vmem>>, vector<1x128x128xbf16>
      %8 = vector.shape_cast %7 : vector<1x128x128xbf16> to vector<128x128xbf16>
      %cst_7 = arith.constant dense<0.000000e+00> : vector<4x128xf32>
      %9 = tpu.matmul %6, %8, %cst_7 {dimension_numbers = #tpu.dot_dimension_numbers<[1], [0], [0], [1], [0, 0, 1, 1], [], []>} : vector<4x128xbf16>, vector<128x128xbf16>, vector<4x128xf32> -> vector<4x128xf32>
      %10 = arith.addf %1, %9 : vector<4x128xf32>
      %11 = vector.extract_strided_slice %5 {offsets = [1, 0], sizes = [4, 128], strides = [1, 1]} : vector<6x128xbf16> to vector<4x128xbf16>
      %c1 = arith.constant 1 : index
      %c0_8 = arith.constant 0 : index
      %c0_9 = arith.constant 0 : index
      %12 = vector.load %arg2[%c1, %c0_8, %c0_9] : memref<9x128x128xbf16, #tpu.memory_space<vmem>>, vector<1x128x128xbf16>
      %13 = vector.shape_cast %12 : vector<1x128x128xbf16> to vector<128x128xbf16>
      %cst_10 = arith.constant dense<0.000000e+00> : vector<4x128xf32>
      %14 = tpu.matmul %11, %13, %cst_10 {dimension_numbers = #tpu.dot_dimension_numbers<[1], [0], [0], [1], [0, 0, 1, 1], [], []>} : vector<4x128xbf16>, vector<128x128xbf16>, vector<4x128xf32> -> vector<4x128xf32>
      %15 = arith.addf %10, %14 : vector<4x128xf32>
      %16 = vector.extract_strided_slice %5 {offsets = [2, 0], sizes = [4, 128], strides = [1, 1]} : vector<6x128xbf16> to vector<4x128xbf16>
      %c2 = arith.constant 2 : index
      %c0_11 = arith.constant 0 : index
      %c0_12 = arith.constant 0 : index
      %17 = vector.load %arg2[%c2, %c0_11, %c0_12] : memref<9x128x128xbf16, #tpu.memory_space<vmem>>, vector<1x128x128xbf16>
      %18 = vector.shape_cast %17 : vector<1x128x128xbf16> to vector<128x128xbf16>
      %cst_13 = arith.constant dense<0.000000e+00> : vector<4x128xf32>
      %19 = tpu.matmul %16, %18, %cst_13 {dimension_numbers = #tpu.dot_dimension_numbers<[1], [0], [0], [1], [0, 0, 1, 1], [], []>} : vector<4x128xbf16>, vector<128x128xbf16>, vector<4x128xf32> -> vector<4x128xf32>
      %20 = arith.addf %15, %19 : vector<4x128xf32>
      %c1_i32_14 = arith.constant 1 : i32
      %21 = arith.addi %arg4, %c1_i32_14 : i32
      %c0_15 = arith.constant 0 : index
      %22 = arith.index_cast %21 : i32 to index
      %c0_16 = arith.constant 0 : index
      %c0_17 = arith.constant 0 : index
      %23 = vector.load %arg1[%c0_15, %22, %c0_16, %c0_17] : memref<1x6x6x128xbf16, #tpu.memory_space<vmem>>, vector<1x1x6x128xbf16>
      %24 = vector.shape_cast %23 : vector<1x1x6x128xbf16> to vector<6x128xbf16>
      %25 = vector.extract_strided_slice %24 {offsets = [0, 0], sizes = [4, 128], strides = [1, 1]} : vector<6x128xbf16> to vector<4x128xbf16>
      %c3 = arith.constant 3 : index
      %c0_18 = arith.constant 0 : index
      %c0_19 = arith.constant 0 : index
      %26 = vector.load %arg2[%c3, %c0_18, %c0_19] : memref<9x128x128xbf16, #tpu.memory_space<vmem>>, vector<1x128x128xbf16>
      %27 = vector.shape_cast %26 : vector<1x128x128xbf16> to vector<128x128xbf16>
      %cst_20 = arith.constant dense<0.000000e+00> : vector<4x128xf32>
      %28 = tpu.matmul %25, %27, %cst_20 {dimension_numbers = #tpu.dot_dimension_numbers<[1], [0], [0], [1], [0, 0, 1, 1], [], []>} : vector<4x128xbf16>, vector<128x128xbf16>, vector<4x128xf32> -> vector<4x128xf32>
      %29 = arith.addf %20, %28 : vector<4x128xf32>
      %30 = vector.extract_strided_slice %24 {offsets = [1, 0], sizes = [4, 128], strides = [1, 1]} : vector<6x128xbf16> to vector<4x128xbf16>
      %c4 = arith.constant 4 : index
      %c0_21 = arith.constant 0 : index
      %c0_22 = arith.constant 0 : index
      %31 = vector.load %arg2[%c4, %c0_21, %c0_22] : memref<9x128x128xbf16, #tpu.memory_space<vmem>>, vector<1x128x128xbf16>
      %32 = vector.shape_cast %31 : vector<1x128x128xbf16> to vector<128x128xbf16>
      %cst_23 = arith.constant dense<0.000000e+00> : vector<4x128xf32>
      %33 = tpu.matmul %30, %32, %cst_23 {dimension_numbers = #tpu.dot_dimension_numbers<[1], [0], [0], [1], [0, 0, 1, 1], [], []>} : vector<4x128xbf16>, vector<128x128xbf16>, vector<4x128xf32> -> vector<4x128xf32>
      %34 = arith.addf %29, %33 : vector<4x128xf32>
      %35 = vector.extract_strided_slice %24 {offsets = [2, 0], sizes = [4, 128], strides = [1, 1]} : vector<6x128xbf16> to vector<4x128xbf16>
      %c5 = arith.constant 5 : index
      %c0_24 = arith.constant 0 : index
      %c0_25 = arith.constant 0 : index
      %36 = vector.load %arg2[%c5, %c0_24, %c0_25] : memref<9x128x128xbf16, #tpu.memory_space<vmem>>, vector<1x128x128xbf16>
      %37 = vector.shape_cast %36 : vector<1x128x128xbf16> to vector<128x128xbf16>
      %cst_26 = arith.constant dense<0.000000e+00> : vector<4x128xf32>
      %38 = tpu.matmul %35, %37, %cst_26 {dimension_numbers = #tpu.dot_dimension_numbers<[1], [0], [0], [1], [0, 0, 1, 1], [], []>} : vector<4x128xbf16>, vector<128x128xbf16>, vector<4x128xf32> -> vector<4x128xf32>
      %39 = arith.addf %34, %38 : vector<4x128xf32>
      %c2_i32 = arith.constant 2 : i32
      %40 = arith.addi %arg4, %c2_i32 : i32
      %c0_27 = arith.constant 0 : index
      %41 = arith.index_cast %40 : i32 to index
      %c0_28 = arith.constant 0 : index
      %c0_29 = arith.constant 0 : index
      %42 = vector.load %arg1[%c0_27, %41, %c0_28, %c0_29] : memref<1x6x6x128xbf16, #tpu.memory_space<vmem>>, vector<1x1x6x128xbf16>
      %43 = vector.shape_cast %42 : vector<1x1x6x128xbf16> to vector<6x128xbf16>
      %44 = vector.extract_strided_slice %43 {offsets = [0, 0], sizes = [4, 128], strides = [1, 1]} : vector<6x128xbf16> to vector<4x128xbf16>
      %c6 = arith.constant 6 : index
      %c0_30 = arith.constant 0 : index
      %c0_31 = arith.constant 0 : index
      %45 = vector.load %arg2[%c6, %c0_30, %c0_31] : memref<9x128x128xbf16, #tpu.memory_space<vmem>>, vector<1x128x128xbf16>
      %46 = vector.shape_cast %45 : vector<1x128x128xbf16> to vector<128x128xbf16>
      %cst_32 = arith.constant dense<0.000000e+00> : vector<4x128xf32>
      %47 = tpu.matmul %44, %46, %cst_32 {dimension_numbers = #tpu.dot_dimension_numbers<[1], [0], [0], [1], [0, 0, 1, 1], [], []>} : vector<4x128xbf16>, vector<128x128xbf16>, vector<4x128xf32> -> vector<4x128xf32>
      %48 = arith.addf %39, %47 : vector<4x128xf32>
      %49 = vector.extract_strided_slice %43 {offsets = [1, 0], sizes = [4, 128], strides = [1, 1]} : vector<6x128xbf16> to vector<4x128xbf16>
      %c7 = arith.constant 7 : index
      %c0_33 = arith.constant 0 : index
      %c0_34 = arith.constant 0 : index
      %50 = vector.load %arg2[%c7, %c0_33, %c0_34] : memref<9x128x128xbf16, #tpu.memory_space<vmem>>, vector<1x128x128xbf16>
      %51 = vector.shape_cast %50 : vector<1x128x128xbf16> to vector<128x128xbf16>
      %cst_35 = arith.constant dense<0.000000e+00> : vector<4x128xf32>
      %52 = tpu.matmul %49, %51, %cst_35 {dimension_numbers = #tpu.dot_dimension_numbers<[1], [0], [0], [1], [0, 0, 1, 1], [], []>} : vector<4x128xbf16>, vector<128x128xbf16>, vector<4x128xf32> -> vector<4x128xf32>
      %53 = arith.addf %48, %52 : vector<4x128xf32>
      %54 = vector.extract_strided_slice %43 {offsets = [2, 0], sizes = [4, 128], strides = [1, 1]} : vector<6x128xbf16> to vector<4x128xbf16>
      %c8 = arith.constant 8 : index
      %c0_36 = arith.constant 0 : index
      %c0_37 = arith.constant 0 : index
      %55 = vector.load %arg2[%c8, %c0_36, %c0_37] : memref<9x128x128xbf16, #tpu.memory_space<vmem>>, vector<1x128x128xbf16>
      %56 = vector.shape_cast %55 : vector<1x128x128xbf16> to vector<128x128xbf16>
      %cst_38 = arith.constant dense<0.000000e+00> : vector<4x128xf32>
      %57 = tpu.matmul %54, %56, %cst_38 {dimension_numbers = #tpu.dot_dimension_numbers<[1], [0], [0], [1], [0, 0, 1, 1], [], []>} : vector<4x128xbf16>, vector<128x128xbf16>, vector<4x128xf32> -> vector<4x128xf32>
      %58 = arith.addf %53, %57 : vector<4x128xf32>
      %c0_39 = arith.constant 0 : index
      %59 = arith.index_cast %arg4 : i32 to index
      %c0_40 = arith.constant 0 : index
      %c0_41 = arith.constant 0 : index
      %60 = vector.load %arg3[%c0_39, %59, %c0_40, %c0_41] : memref<1x4x4x128xf32, #tpu.memory_space<vmem>>, vector<1x1x4x128xf32>
      %61 = vector.shape_cast %60 : vector<1x1x4x128xf32> to vector<4x128xf32>
      %62 = vector.shape_cast %58 : vector<4x128xf32> to vector<1x1x4x128xf32>
      tpu.vector_store %arg3[%c0_39, %59, %c0_40, %c0_41], %62 {strides = array<i32>} : memref<1x4x4x128xf32, #tpu.memory_space<vmem>>, vector<1x1x4x128xf32>,
    }
    %c4_i32_0 = arith.constant 4 : i32
    return
  }
  func.func @transform_0(%arg0: i32) -> (i32, i32, i32, i32) {
    %c0_i32 = arith.constant 0 : i32
    %c0_i32_0 = arith.constant 0 : i32
    %c0_i32_1 = arith.constant 0 : i32
    %c0_i32_2 = arith.constant 0 : i32
    return %arg0, %c0_i32, %c0_i32_0, %c0_i32_1 : i32, i32, i32, i32
  }
  func.func @transform_1(%arg0: i32) -> (i32, i32, i32) {
    %c0_i32 = arith.constant 0 : i32
    %c0_i32_0 = arith.constant 0 : i32
    %c0_i32_1 = arith.constant 0 : i32
    %c0_i32_2 = arith.constant 0 : i32
    return %c0_i32, %c0_i32_0, %c0_i32_1 : i32, i32, i32
  }
  func.func @transform_2(%arg0: i32) -> (i32, i32, i32, i32) {
    %c0_i32 = arith.constant 0 : i32
    %c0_i32_0 = arith.constant 0 : i32
    %c0_i32_1 = arith.constant 0 : i32
    %c0_i32_2 = arith.constant 0 : i32
    return %arg0, %c0_i32, %c0_i32_0, %c0_i32_1 : i32, i32, i32, i32
  }
}

module attributes {stable_mosaic.version = 11 : i64} {
  func.func @_gemm_fused_kernel(%arg0: i32, %arg1: i32, %arg2: i32, %arg3: memref<8x128xf32, #tpu.memory_space<vmem>>, %arg4: memref<128x128xbf16, #tpu.memory_space<vmem>>, %arg5: memref<1x128xf32, #tpu.memory_space<vmem>>, %arg6: memref<1x128xf32, #tpu.memory_space<vmem>>, %arg7: memref<1x128xf32, #tpu.memory_space<vmem>>, %arg8: memref<1x128xf32, #tpu.memory_space<vmem>>, %arg9: memref<8x128xf32, #tpu.memory_space<vmem>>, %arg10: memref<8x128xf32, #tpu.memory_space<vmem>>) attributes {dimension_semantics = [#tpu.dimension_semantics<parallel>, #tpu.dimension_semantics<parallel>, #tpu.dimension_semantics<arbitrary>], iteration_bounds = array<i64: 1, 1, 1>, scalar_prefetch = 0 : i64, scratch_operands = 1 : i64, tpu.core_type = #tpu.core_type<tc>, window_params = [{transform_indices = @transform_0, window_bounds = array<i64: 8, 128>}, {transform_indices = @transform_1, window_bounds = array<i64: 128, 128>}, {transform_indices = @transform_2, window_bounds = array<i64: 1, 128>}, {transform_indices = @transform_3, window_bounds = array<i64: 1, 128>}, {transform_indices = @transform_4, window_bounds = array<i64: 1, 128>}, {transform_indices = @transform_5, window_bounds = array<i64: 1, 128>}, {transform_indices = @transform_6, window_bounds = array<i64: 8, 128>}]} {
    %c0_i32 = arith.constant 0 : i32
    %0 = arith.cmpi eq, %arg2, %c0_i32 : i32
    %1 = arith.extui %0 : i1 to i32
    %c0_i32_0 = arith.constant 0 : i32
    %2 = arith.cmpi ne, %1, %c0_i32_0 : i32
    scf.if %2 {
      %cst_10 = arith.constant 0.000000e+00 : f32
      %13 = vector.broadcast %cst_10 : f32 to vector<8x128xf32>
      %c0_11 = arith.constant 0 : index
      %c0_12 = arith.constant 0 : index
      %14 = vector.load %arg10[%c0_11, %c0_12] : memref<8x128xf32, #tpu.memory_space<vmem>>, vector<8x128xf32>
      tpu.vector_store %arg10[%c0_11, %c0_12], %13 {strides = array<i32>} : memref<8x128xf32, #tpu.memory_space<vmem>>, vector<8x128xf32>,
    } else {
    }
    %c0 = arith.constant 0 : index
    %c0_1 = arith.constant 0 : index
    %3 = vector.load %arg3[%c0, %c0_1] : memref<8x128xf32, #tpu.memory_space<vmem>>, vector<8x128xf32>
    %c0_2 = arith.constant 0 : index
    %c0_3 = arith.constant 0 : index
    %4 = vector.load %arg10[%c0_2, %c0_3] : memref<8x128xf32, #tpu.memory_space<vmem>>, vector<8x128xf32>
    %5 = arith.truncf %3 : vector<8x128xf32> to vector<8x128xbf16>
    %c0_4 = arith.constant 0 : index
    %c0_5 = arith.constant 0 : index
    %6 = vector.load %arg4[%c0_4, %c0_5] : memref<128x128xbf16, #tpu.memory_space<vmem>>, vector<128x128xbf16>
    %cst = arith.constant dense<0.000000e+00> : vector<8x128xf32>
    %7 = tpu.matmul %5, %6, %cst {dimension_numbers = #tpu.dot_dimension_numbers<[1], [0], [0], [1], [0, 0, 1, 1], [], []>} : vector<8x128xbf16>, vector<128x128xbf16>, vector<8x128xf32> -> vector<8x128xf32>
    %8 = arith.addf %4, %7 : vector<8x128xf32>
    %c0_6 = arith.constant 0 : index
    %c0_7 = arith.constant 0 : index
    %9 = vector.load %arg10[%c0_6, %c0_7] : memref<8x128xf32, #tpu.memory_space<vmem>>, vector<8x128xf32>
    tpu.vector_store %arg10[%c0_6, %c0_7], %8 {strides = array<i32>} : memref<8x128xf32, #tpu.memory_space<vmem>>, vector<8x128xf32>,
    %c0_i32_8 = arith.constant 0 : i32
    %10 = arith.cmpi eq, %arg2, %c0_i32_8 : i32
    %11 = arith.extui %10 : i1 to i32
    %c0_i32_9 = arith.constant 0 : i32
    %12 = arith.cmpi ne, %11, %c0_i32_9 : i32
    scf.if %12 {
      %c0_10 = arith.constant 0 : index
      %c0_11 = arith.constant 0 : index
      %13 = vector.load %arg10[%c0_10, %c0_11] : memref<8x128xf32, #tpu.memory_space<vmem>>, vector<8x128xf32>
      %c0_12 = arith.constant 0 : index
      %c0_13 = arith.constant 0 : index
      %14 = vector.load %arg9[%c0_12, %c0_13] : memref<8x128xf32, #tpu.memory_space<vmem>>, vector<8x128xf32>
      tpu.vector_store %arg9[%c0_12, %c0_13], %13 {strides = array<i32>} : memref<8x128xf32, #tpu.memory_space<vmem>>, vector<8x128xf32>,
    } else {
    }
    return
  }
  func.func @transform_0(%arg0: i32, %arg1: i32, %arg2: i32) -> (i32, i32) {
    %c0_i32 = arith.constant 0 : i32
    return %arg0, %arg2 : i32, i32
  }
  func.func @transform_1(%arg0: i32, %arg1: i32, %arg2: i32) -> (i32, i32) {
    %c0_i32 = arith.constant 0 : i32
    return %arg2, %arg1 : i32, i32
  }
  func.func @transform_2(%arg0: i32, %arg1: i32, %arg2: i32) -> (i32, i32) {
    %c0_i32 = arith.constant 0 : i32
    %c0_i32_0 = arith.constant 0 : i32
    return %c0_i32, %arg2 : i32, i32
  }
  func.func @transform_3(%arg0: i32, %arg1: i32, %arg2: i32) -> (i32, i32) {
    %c0_i32 = arith.constant 0 : i32
    %c0_i32_0 = arith.constant 0 : i32
    return %c0_i32, %arg2 : i32, i32
  }
  func.func @transform_4(%arg0: i32, %arg1: i32, %arg2: i32) -> (i32, i32) {
    %c0_i32 = arith.constant 0 : i32
    %c0_i32_0 = arith.constant 0 : i32
    return %c0_i32, %arg1 : i32, i32
  }
  func.func @transform_5(%arg0: i32, %arg1: i32, %arg2: i32) -> (i32, i32) {
    %c0_i32 = arith.constant 0 : i32
    %c0_i32_0 = arith.constant 0 : i32
    return %c0_i32, %arg1 : i32, i32
  }
  func.func @transform_6(%arg0: i32, %arg1: i32, %arg2: i32) -> (i32, i32) {
    %c0_i32 = arith.constant 0 : i32
    return %arg0, %arg1 : i32, i32
  }
}

module attributes {stable_mosaic.version = 11 : i64} {
  func.func @_bn_relu_avgpool_kernel(%arg0: i32, %arg1: memref<2x1x2x2x32xf32, #tpu.memory_space<vmem>>, %arg2: memref<2x1x2x2x32xf32, #tpu.memory_space<vmem>>, %arg3: memref<1x1x1x32xf32, #tpu.memory_space<vmem>>, %arg4: memref<1x1x1x32xf32, #tpu.memory_space<vmem>>, %arg5: memref<2x2x32xf32, #tpu.memory_space<vmem>>) attributes {dimension_semantics = [#tpu.dimension_semantics<parallel>], iteration_bounds = array<i64: 2>, scalar_prefetch = 0 : i64, scratch_operands = 0 : i64, tpu.core_type = #tpu.core_type<tc>, window_params = [{transform_indices = @transform_0, window_bounds = array<i64: 2, 1, 2, 2, 32>}, {transform_indices = @transform_1, window_bounds = array<i64: 2, 1, 2, 2, 32>}, {pipeline_mode = #tpu.pipeline_mode<synchronous>, transform_indices = @transform_2, window_bounds = array<i64: 1, 1, 1, 32>}, {pipeline_mode = #tpu.pipeline_mode<synchronous>, transform_indices = @transform_3, window_bounds = array<i64: 1, 1, 1, 32>}, {transform_indices = @transform_4, window_bounds = array<i64: 2, 2, 32>}]} {
    %c0 = arith.constant 0 : index
    %c0_0 = arith.constant 0 : index
    %c0_1 = arith.constant 0 : index
    %c0_2 = arith.constant 0 : index
    %0 = vector.load %arg3[%c0, %c0_0, %c0_1, %c0_2] : memref<1x1x1x32xf32, #tpu.memory_space<vmem>>, vector<1x1x1x32xf32>
    %c0_3 = arith.constant 0 : index
    %c0_4 = arith.constant 0 : index
    %c0_5 = arith.constant 0 : index
    %c0_6 = arith.constant 0 : index
    %1 = vector.load %arg4[%c0_3, %c0_4, %c0_5, %c0_6] : memref<1x1x1x32xf32, #tpu.memory_space<vmem>>, vector<1x1x1x32xf32>
    %c0_7 = arith.constant 0 : index
    %c0_8 = arith.constant 0 : index
    %c0_9 = arith.constant 0 : index
    %c0_10 = arith.constant 0 : index
    %c0_11 = arith.constant 0 : index
    %2 = vector.load %arg1[%c0_7, %c0_8, %c0_9, %c0_10, %c0_11] : memref<2x1x2x2x32xf32, #tpu.memory_space<vmem>>, vector<2x1x2x2x32xf32>
    %3 = vector.shape_cast %2 : vector<2x1x2x2x32xf32> to vector<2x2x2x32xf32>
    %4 = vector.broadcast %0 : vector<1x1x1x32xf32> to vector<2x2x2x32xf32>
    %5 = arith.mulf %3, %4 : vector<2x2x2x32xf32>
    %6 = vector.broadcast %1 : vector<1x1x1x32xf32> to vector<2x2x2x32xf32>
    %7 = arith.addf %5, %6 : vector<2x2x2x32xf32>
    %cst = arith.constant 0.000000e+00 : f32
    %8 = vector.broadcast %cst : f32 to vector<2x2x2x32xf32>
    %9 = arith.maximumf %7, %8 : vector<2x2x2x32xf32>
    %c0_12 = arith.constant 0 : index
    %c0_13 = arith.constant 0 : index
    %c0_14 = arith.constant 0 : index
    %c0_15 = arith.constant 0 : index
    %c0_16 = arith.constant 0 : index
    %10 = vector.load %arg2[%c0_12, %c0_13, %c0_14, %c0_15, %c0_16] : memref<2x1x2x2x32xf32, #tpu.memory_space<vmem>>, vector<2x1x2x2x32xf32>
    %11 = vector.shape_cast %10 : vector<2x1x2x2x32xf32> to vector<2x2x2x32xf32>
    %12 = vector.broadcast %0 : vector<1x1x1x32xf32> to vector<2x2x2x32xf32>
    %13 = arith.mulf %11, %12 : vector<2x2x2x32xf32>
    %14 = vector.broadcast %1 : vector<1x1x1x32xf32> to vector<2x2x2x32xf32>
    %15 = arith.addf %13, %14 : vector<2x2x2x32xf32>
    %cst_17 = arith.constant 0.000000e+00 : f32
    %16 = vector.broadcast %cst_17 : f32 to vector<2x2x2x32xf32>
    %17 = arith.maximumf %15, %16 : vector<2x2x2x32xf32>
    %18 = arith.addf %9, %17 : vector<2x2x2x32xf32>
    %cst_18 = arith.constant dense<0.000000e+00> : vector<2x2x32xf32>
    %19 = vector.multi_reduction <add>, %18, %cst_18 [2] : vector<2x2x2x32xf32> to vector<2x2x32xf32>
    %cst_19 = arith.constant 2.500000e-01 : f32
    %20 = vector.broadcast %cst_19 : f32 to vector<2x2x32xf32>
    %21 = arith.mulf %20, %19 : vector<2x2x32xf32>
    %c0_20 = arith.constant 0 : index
    %c0_21 = arith.constant 0 : index
    %c0_22 = arith.constant 0 : index
    %22 = vector.load %arg5[%c0_20, %c0_21, %c0_22] : memref<2x2x32xf32, #tpu.memory_space<vmem>>, vector<2x2x32xf32>
    tpu.vector_store %arg5[%c0_20, %c0_21, %c0_22], %21 {strides = array<i32>} : memref<2x2x32xf32, #tpu.memory_space<vmem>>, vector<2x2x32xf32>,
    return
  }
  func.func @transform_0(%arg0: i32) -> (i32, i32, i32, i32, i32) {
    %c0_i32 = arith.constant 0 : i32
    %c0_i32_0 = arith.constant 0 : i32
    %c0_i32_1 = arith.constant 0 : i32
    %c0_i32_2 = arith.constant 0 : i32
    %c0_i32_3 = arith.constant 0 : i32
    return %arg0, %c0_i32, %c0_i32_0, %c0_i32_1, %c0_i32_2 : i32, i32, i32, i32, i32
  }
  func.func @transform_1(%arg0: i32) -> (i32, i32, i32, i32, i32) {
    %c1_i32 = arith.constant 1 : i32
    %c0_i32 = arith.constant 0 : i32
    %c0_i32_0 = arith.constant 0 : i32
    %c0_i32_1 = arith.constant 0 : i32
    %c0_i32_2 = arith.constant 0 : i32
    return %arg0, %c1_i32, %c0_i32, %c0_i32_0, %c0_i32_1 : i32, i32, i32, i32, i32
  }
  func.func @transform_2(%arg0: i32) -> (i32, i32, i32, i32) {
    %c0_i32 = arith.constant 0 : i32
    %c0_i32_0 = arith.constant 0 : i32
    %c0_i32_1 = arith.constant 0 : i32
    %c0_i32_2 = arith.constant 0 : i32
    %c0_i32_3 = arith.constant 0 : i32
    return %c0_i32, %c0_i32_0, %c0_i32_1, %c0_i32_2 : i32, i32, i32, i32
  }
  func.func @transform_3(%arg0: i32) -> (i32, i32, i32, i32) {
    %c0_i32 = arith.constant 0 : i32
    %c0_i32_0 = arith.constant 0 : i32
    %c0_i32_1 = arith.constant 0 : i32
    %c0_i32_2 = arith.constant 0 : i32
    %c0_i32_3 = arith.constant 0 : i32
    return %c0_i32, %c0_i32_0, %c0_i32_1, %c0_i32_2 : i32, i32, i32, i32
  }
  func.func @transform_4(%arg0: i32) -> (i32, i32, i32) {
    %c0_i32 = arith.constant 0 : i32
    %c0_i32_0 = arith.constant 0 : i32
    %c0_i32_1 = arith.constant 0 : i32
    return %arg0, %c0_i32, %c0_i32_0 : i32, i32, i32
  }
}

module attributes {stable_mosaic.version = 11 : i64} {
  func.func @_gemm_fused_kernel(%arg0: i32, %arg1: i32, %arg2: i32, %arg3: memref<8x128xf32, #tpu.memory_space<vmem>>, %arg4: memref<128x128xbf16, #tpu.memory_space<vmem>>, %arg5: memref<1x128xf32, #tpu.memory_space<vmem>>, %arg6: memref<1x128xf32, #tpu.memory_space<vmem>>, %arg7: memref<1x128xf32, #tpu.memory_space<vmem>>, %arg8: memref<1x128xf32, #tpu.memory_space<vmem>>, %arg9: memref<8x128xbf16, #tpu.memory_space<vmem>>, %arg10: memref<8x128xf32, #tpu.memory_space<vmem>>) attributes {dimension_semantics = [#tpu.dimension_semantics<parallel>, #tpu.dimension_semantics<parallel>, #tpu.dimension_semantics<arbitrary>], iteration_bounds = array<i64: 1, 1, 1>, scalar_prefetch = 0 : i64, scratch_operands = 1 : i64, tpu.core_type = #tpu.core_type<tc>, window_params = [{transform_indices = @transform_0, window_bounds = array<i64: 8, 128>}, {transform_indices = @transform_1, window_bounds = array<i64: 128, 128>}, {transform_indices = @transform_2, window_bounds = array<i64: 1, 128>}, {transform_indices = @transform_3, window_bounds = array<i64: 1, 128>}, {transform_indices = @transform_4, window_bounds = array<i64: 1, 128>}, {transform_indices = @transform_5, window_bounds = array<i64: 1, 128>}, {transform_indices = @transform_6, window_bounds = array<i64: 8, 128>}]} {
    %c0_i32 = arith.constant 0 : i32
    %0 = arith.cmpi eq, %arg2, %c0_i32 : i32
    %1 = arith.extui %0 : i1 to i32
    %c0_i32_0 = arith.constant 0 : i32
    %2 = arith.cmpi ne, %1, %c0_i32_0 : i32
    scf.if %2 {
      %cst_15 = arith.constant 0.000000e+00 : f32
      %21 = vector.broadcast %cst_15 : f32 to vector<8x128xf32>
      %c0_16 = arith.constant 0 : index
      %c0_17 = arith.constant 0 : index
      %22 = vector.load %arg10[%c0_16, %c0_17] : memref<8x128xf32, #tpu.memory_space<vmem>>, vector<8x128xf32>
      tpu.vector_store %arg10[%c0_16, %c0_17], %21 {strides = array<i32>} : memref<8x128xf32, #tpu.memory_space<vmem>>, vector<8x128xf32>,
    } else {
    }
    %c0 = arith.constant 0 : index
    %c0_1 = arith.constant 0 : index
    %3 = vector.load %arg3[%c0, %c0_1] : memref<8x128xf32, #tpu.memory_space<vmem>>, vector<8x128xf32>
    %c0_2 = arith.constant 0 : index
    %c0_3 = arith.constant 0 : index
    %4 = vector.load %arg5[%c0_2, %c0_3] : memref<1x128xf32, #tpu.memory_space<vmem>>, vector<1x128xf32>
    %5 = vector.broadcast %4 : vector<1x128xf32> to vector<8x128xf32>
    %6 = arith.mulf %3, %5 : vector<8x128xf32>
    %c0_4 = arith.constant 0 : index
    %c0_5 = arith.constant 0 : index
    %7 = vector.load %arg6[%c0_4, %c0_5] : memref<1x128xf32, #tpu.memory_space<vmem>>, vector<1x128xf32>
    %8 = vector.broadcast %7 : vector<1x128xf32> to vector<8x128xf32>
    %9 = arith.addf %6, %8 : vector<8x128xf32>
    %cst = arith.constant 0.000000e+00 : f32
    %10 = vector.broadcast %cst : f32 to vector<8x128xf32>
    %11 = arith.maximumf %9, %10 : vector<8x128xf32>
    %c0_6 = arith.constant 0 : index
    %c0_7 = arith.constant 0 : index
    %12 = vector.load %arg10[%c0_6, %c0_7] : memref<8x128xf32, #tpu.memory_space<vmem>>, vector<8x128xf32>
    %13 = arith.truncf %11 : vector<8x128xf32> to vector<8x128xbf16>
    %c0_8 = arith.constant 0 : index
    %c0_9 = arith.constant 0 : index
    %14 = vector.load %arg4[%c0_8, %c0_9] : memref<128x128xbf16, #tpu.memory_space<vmem>>, vector<128x128xbf16>
    %cst_10 = arith.constant dense<0.000000e+00> : vector<8x128xf32>
    %15 = tpu.matmul %13, %14, %cst_10 {dimension_numbers = #tpu.dot_dimension_numbers<[1], [0], [0], [1], [0, 0, 1, 1], [], []>} : vector<8x128xbf16>, vector<128x128xbf16>, vector<8x128xf32> -> vector<8x128xf32>
    %16 = arith.addf %12, %15 : vector<8x128xf32>
    %c0_11 = arith.constant 0 : index
    %c0_12 = arith.constant 0 : index
    %17 = vector.load %arg10[%c0_11, %c0_12] : memref<8x128xf32, #tpu.memory_space<vmem>>, vector<8x128xf32>
    tpu.vector_store %arg10[%c0_11, %c0_12], %16 {strides = array<i32>} : memref<8x128xf32, #tpu.memory_space<vmem>>, vector<8x128xf32>,
    %c0_i32_13 = arith.constant 0 : i32
    %18 = arith.cmpi eq, %arg2, %c0_i32_13 : i32
    %19 = arith.extui %18 : i1 to i32
    %c0_i32_14 = arith.constant 0 : i32
    %20 = arith.cmpi ne, %19, %c0_i32_14 : i32
    scf.if %20 {
      %c0_15 = arith.constant 0 : index
      %c0_16 = arith.constant 0 : index
      %21 = vector.load %arg10[%c0_15, %c0_16] : memref<8x128xf32, #tpu.memory_space<vmem>>, vector<8x128xf32>
      %c0_17 = arith.constant 0 : index
      %c0_18 = arith.constant 0 : index
      %22 = vector.load %arg7[%c0_17, %c0_18] : memref<1x128xf32, #tpu.memory_space<vmem>>, vector<1x128xf32>
      %23 = vector.broadcast %22 : vector<1x128xf32> to vector<8x128xf32>
      %24 = arith.mulf %21, %23 : vector<8x128xf32>
      %c0_19 = arith.constant 0 : index
      %c0_20 = arith.constant 0 : index
      %25 = vector.load %arg8[%c0_19, %c0_20] : memref<1x128xf32, #tpu.memory_space<vmem>>, vector<1x128xf32>
      %26 = vector.broadcast %25 : vector<1x128xf32> to vector<8x128xf32>
      %27 = arith.addf %24, %26 : vector<8x128xf32>
      %cst_21 = arith.constant 0.000000e+00 : f32
      %28 = vector.broadcast %cst_21 : f32 to vector<8x128xf32>
      %29 = arith.maximumf %27, %28 : vector<8x128xf32>
      %30 = arith.truncf %29 : vector<8x128xf32> to vector<8x128xbf16>
      %c0_22 = arith.constant 0 : index
      %c0_23 = arith.constant 0 : index
      %31 = vector.load %arg9[%c0_22, %c0_23] : memref<8x128xbf16, #tpu.memory_space<vmem>>, vector<8x128xbf16>
      tpu.vector_store %arg9[%c0_22, %c0_23], %30 {strides = array<i32>} : memref<8x128xbf16, #tpu.memory_space<vmem>>, vector<8x128xbf16>,
    } else {
    }
    return
  }
  func.func @transform_0(%arg0: i32, %arg1: i32, %arg2: i32) -> (i32, i32) {
    %c0_i32 = arith.constant 0 : i32
    return %arg0, %arg2 : i32, i32
  }
  func.func @transform_1(%arg0: i32, %arg1: i32, %arg2: i32) -> (i32, i32) {
    %c0_i32 = arith.constant 0 : i32
    return %arg2, %arg1 : i32, i32
  }
  func.func @transform_2(%arg0: i32, %arg1: i32, %arg2: i32) -> (i32, i32) {
    %c0_i32 = arith.constant 0 : i32
    %c0_i32_0 = arith.constant 0 : i32
    return %c0_i32, %arg2 : i32, i32
  }
  func.func @transform_3(%arg0: i32, %arg1: i32, %arg2: i32) -> (i32, i32) {
    %c0_i32 = arith.constant 0 : i32
    %c0_i32_0 = arith.constant 0 : i32
    return %c0_i32, %arg2 : i32, i32
  }
  func.func @transform_4(%arg0: i32, %arg1: i32, %arg2: i32) -> (i32, i32) {
    %c0_i32 = arith.constant 0 : i32
    %c0_i32_0 = arith.constant 0 : i32
    return %c0_i32, %arg1 : i32, i32
  }
  func.func @transform_5(%arg0: i32, %arg1: i32, %arg2: i32) -> (i32, i32) {
    %c0_i32 = arith.constant 0 : i32
    %c0_i32_0 = arith.constant 0 : i32
    return %c0_i32, %arg1 : i32, i32
  }
  func.func @transform_6(%arg0: i32, %arg1: i32, %arg2: i32) -> (i32, i32) {
    %c0_i32 = arith.constant 0 : i32
    return %arg0, %arg1 : i32, i32
  }
}

module attributes {stable_mosaic.version = 11 : i64} {
  func.func @_conv3x3_kernel(%arg0: i32, %arg1: memref<1x4x4x128xbf16, #tpu.memory_space<vmem>>, %arg2: memref<9x128x128xbf16, #tpu.memory_space<vmem>>, %arg3: memref<1x2x2x128xf32, #tpu.memory_space<vmem>>) attributes {dimension_semantics = [#tpu.dimension_semantics<parallel>], iteration_bounds = array<i64: 2>, scalar_prefetch = 0 : i64, scratch_operands = 0 : i64, tpu.core_type = #tpu.core_type<tc>, window_params = [{transform_indices = @transform_0, window_bounds = array<i64: 1, 4, 4, 128>}, {pipeline_mode = #tpu.pipeline_mode<synchronous>, transform_indices = @transform_1, window_bounds = array<i64: 9, 128, 128>}, {transform_indices = @transform_2, window_bounds = array<i64: 1, 2, 2, 128>}]} {
    %c0_i32 = arith.constant 0 : i32
    %c2_i32 = arith.constant 2 : i32
    %0 = arith.addi %c0_i32, %c2_i32 : i32
    %c1_i32 = arith.constant 1 : i32
    scf.for %arg4 = %c0_i32 to %0 step %c1_i32  : i32 {
      %cst = arith.constant 0.000000e+00 : f32
      %1 = vector.broadcast %cst : f32 to vector<2x128xf32>
      %c0_i32_1 = arith.constant 0 : i32
      %2 = arith.addi %arg4, %c0_i32_1 : i32
      %c0 = arith.constant 0 : index
      %3 = arith.index_cast %2 : i32 to index
      %c0_2 = arith.constant 0 : index
      %c0_3 = arith.constant 0 : index
      %4 = vector.load %arg1[%c0, %3, %c0_2, %c0_3] : memref<1x4x4x128xbf16, #tpu.memory_space<vmem>>, vector<1x1x4x128xbf16>
      %5 = vector.shape_cast %4 : vector<1x1x4x128xbf16> to vector<4x128xbf16>
      %6 = vector.extract_strided_slice %5 {offsets = [0, 0], sizes = [2, 128], strides = [1, 1]} : vector<4x128xbf16> to vector<2x128xbf16>
      %c0_4 = arith.constant 0 : index
      %c0_5 = arith.constant 0 : index
      %c0_6 = arith.constant 0 : index
      %7 = vector.load %arg2[%c0_4, %c0_5, %c0_6] : memref<9x128x128xbf16, #tpu.memory_space<vmem>>, vector<1x128x128xbf16>
      %8 = vector.shape_cast %7 : vector<1x128x128xbf16> to vector<128x128xbf16>
      %cst_7 = arith.constant dense<0.000000e+00> : vector<2x128xf32>
      %9 = tpu.matmul %6, %8, %cst_7 {dimension_numbers = #tpu.dot_dimension_numbers<[1], [0], [0], [1], [0, 0, 1, 1], [], []>} : vector<2x128xbf16>, vector<128x128xbf16>, vector<2x128xf32> -> vector<2x128xf32>
      %10 = arith.addf %1, %9 : vector<2x128xf32>
      %11 = vector.extract_strided_slice %5 {offsets = [1, 0], sizes = [2, 128], strides = [1, 1]} : vector<4x128xbf16> to vector<2x128xbf16>
      %c1 = arith.constant 1 : index
      %c0_8 = arith.constant 0 : index
      %c0_9 = arith.constant 0 : index
      %12 = vector.load %arg2[%c1, %c0_8, %c0_9] : memref<9x128x128xbf16, #tpu.memory_space<vmem>>, vector<1x128x128xbf16>
      %13 = vector.shape_cast %12 : vector<1x128x128xbf16> to vector<128x128xbf16>
      %cst_10 = arith.constant dense<0.000000e+00> : vector<2x128xf32>
      %14 = tpu.matmul %11, %13, %cst_10 {dimension_numbers = #tpu.dot_dimension_numbers<[1], [0], [0], [1], [0, 0, 1, 1], [], []>} : vector<2x128xbf16>, vector<128x128xbf16>, vector<2x128xf32> -> vector<2x128xf32>
      %15 = arith.addf %10, %14 : vector<2x128xf32>
      %16 = vector.extract_strided_slice %5 {offsets = [2, 0], sizes = [2, 128], strides = [1, 1]} : vector<4x128xbf16> to vector<2x128xbf16>
      %c2 = arith.constant 2 : index
      %c0_11 = arith.constant 0 : index
      %c0_12 = arith.constant 0 : index
      %17 = vector.load %arg2[%c2, %c0_11, %c0_12] : memref<9x128x128xbf16, #tpu.memory_space<vmem>>, vector<1x128x128xbf16>
      %18 = vector.shape_cast %17 : vector<1x128x128xbf16> to vector<128x128xbf16>
      %cst_13 = arith.constant dense<0.000000e+00> : vector<2x128xf32>
      %19 = tpu.matmul %16, %18, %cst_13 {dimension_numbers = #tpu.dot_dimension_numbers<[1], [0], [0], [1], [0, 0, 1, 1], [], []>} : vector<2x128xbf16>, vector<128x128xbf16>, vector<2x128xf32> -> vector<2x128xf32>
      %20 = arith.addf %15, %19 : vector<2x128xf32>
      %c1_i32_14 = arith.constant 1 : i32
      %21 = arith.addi %arg4, %c1_i32_14 : i32
      %c0_15 = arith.constant 0 : index
      %22 = arith.index_cast %21 : i32 to index
      %c0_16 = arith.constant 0 : index
      %c0_17 = arith.constant 0 : index
      %23 = vector.load %arg1[%c0_15, %22, %c0_16, %c0_17] : memref<1x4x4x128xbf16, #tpu.memory_space<vmem>>, vector<1x1x4x128xbf16>
      %24 = vector.shape_cast %23 : vector<1x1x4x128xbf16> to vector<4x128xbf16>
      %25 = vector.extract_strided_slice %24 {offsets = [0, 0], sizes = [2, 128], strides = [1, 1]} : vector<4x128xbf16> to vector<2x128xbf16>
      %c3 = arith.constant 3 : index
      %c0_18 = arith.constant 0 : index
      %c0_19 = arith.constant 0 : index
      %26 = vector.load %arg2[%c3, %c0_18, %c0_19] : memref<9x128x128xbf16, #tpu.memory_space<vmem>>, vector<1x128x128xbf16>
      %27 = vector.shape_cast %26 : vector<1x128x128xbf16> to vector<128x128xbf16>
      %cst_20 = arith.constant dense<0.000000e+00> : vector<2x128xf32>
      %28 = tpu.matmul %25, %27, %cst_20 {dimension_numbers = #tpu.dot_dimension_numbers<[1], [0], [0], [1], [0, 0, 1, 1], [], []>} : vector<2x128xbf16>, vector<128x128xbf16>, vector<2x128xf32> -> vector<2x128xf32>
      %29 = arith.addf %20, %28 : vector<2x128xf32>
      %30 = vector.extract_strided_slice %24 {offsets = [1, 0], sizes = [2, 128], strides = [1, 1]} : vector<4x128xbf16> to vector<2x128xbf16>
      %c4 = arith.constant 4 : index
      %c0_21 = arith.constant 0 : index
      %c0_22 = arith.constant 0 : index
      %31 = vector.load %arg2[%c4, %c0_21, %c0_22] : memref<9x128x128xbf16, #tpu.memory_space<vmem>>, vector<1x128x128xbf16>
      %32 = vector.shape_cast %31 : vector<1x128x128xbf16> to vector<128x128xbf16>
      %cst_23 = arith.constant dense<0.000000e+00> : vector<2x128xf32>
      %33 = tpu.matmul %30, %32, %cst_23 {dimension_numbers = #tpu.dot_dimension_numbers<[1], [0], [0], [1], [0, 0, 1, 1], [], []>} : vector<2x128xbf16>, vector<128x128xbf16>, vector<2x128xf32> -> vector<2x128xf32>
      %34 = arith.addf %29, %33 : vector<2x128xf32>
      %35 = vector.extract_strided_slice %24 {offsets = [2, 0], sizes = [2, 128], strides = [1, 1]} : vector<4x128xbf16> to vector<2x128xbf16>
      %c5 = arith.constant 5 : index
      %c0_24 = arith.constant 0 : index
      %c0_25 = arith.constant 0 : index
      %36 = vector.load %arg2[%c5, %c0_24, %c0_25] : memref<9x128x128xbf16, #tpu.memory_space<vmem>>, vector<1x128x128xbf16>
      %37 = vector.shape_cast %36 : vector<1x128x128xbf16> to vector<128x128xbf16>
      %cst_26 = arith.constant dense<0.000000e+00> : vector<2x128xf32>
      %38 = tpu.matmul %35, %37, %cst_26 {dimension_numbers = #tpu.dot_dimension_numbers<[1], [0], [0], [1], [0, 0, 1, 1], [], []>} : vector<2x128xbf16>, vector<128x128xbf16>, vector<2x128xf32> -> vector<2x128xf32>
      %39 = arith.addf %34, %38 : vector<2x128xf32>
      %c2_i32_27 = arith.constant 2 : i32
      %40 = arith.addi %arg4, %c2_i32_27 : i32
      %c0_28 = arith.constant 0 : index
      %41 = arith.index_cast %40 : i32 to index
      %c0_29 = arith.constant 0 : index
      %c0_30 = arith.constant 0 : index
      %42 = vector.load %arg1[%c0_28, %41, %c0_29, %c0_30] : memref<1x4x4x128xbf16, #tpu.memory_space<vmem>>, vector<1x1x4x128xbf16>
      %43 = vector.shape_cast %42 : vector<1x1x4x128xbf16> to vector<4x128xbf16>
      %44 = vector.extract_strided_slice %43 {offsets = [0, 0], sizes = [2, 128], strides = [1, 1]} : vector<4x128xbf16> to vector<2x128xbf16>
      %c6 = arith.constant 6 : index
      %c0_31 = arith.constant 0 : index
      %c0_32 = arith.constant 0 : index
      %45 = vector.load %arg2[%c6, %c0_31, %c0_32] : memref<9x128x128xbf16, #tpu.memory_space<vmem>>, vector<1x128x128xbf16>
      %46 = vector.shape_cast %45 : vector<1x128x128xbf16> to vector<128x128xbf16>
      %cst_33 = arith.constant dense<0.000000e+00> : vector<2x128xf32>
      %47 = tpu.matmul %44, %46, %cst_33 {dimension_numbers = #tpu.dot_dimension_numbers<[1], [0], [0], [1], [0, 0, 1, 1], [], []>} : vector<2x128xbf16>, vector<128x128xbf16>, vector<2x128xf32> -> vector<2x128xf32>
      %48 = arith.addf %39, %47 : vector<2x128xf32>
      %49 = vector.extract_strided_slice %43 {offsets = [1, 0], sizes = [2, 128], strides = [1, 1]} : vector<4x128xbf16> to vector<2x128xbf16>
      %c7 = arith.constant 7 : index
      %c0_34 = arith.constant 0 : index
      %c0_35 = arith.constant 0 : index
      %50 = vector.load %arg2[%c7, %c0_34, %c0_35] : memref<9x128x128xbf16, #tpu.memory_space<vmem>>, vector<1x128x128xbf16>
      %51 = vector.shape_cast %50 : vector<1x128x128xbf16> to vector<128x128xbf16>
      %cst_36 = arith.constant dense<0.000000e+00> : vector<2x128xf32>
      %52 = tpu.matmul %49, %51, %cst_36 {dimension_numbers = #tpu.dot_dimension_numbers<[1], [0], [0], [1], [0, 0, 1, 1], [], []>} : vector<2x128xbf16>, vector<128x128xbf16>, vector<2x128xf32> -> vector<2x128xf32>
      %53 = arith.addf %48, %52 : vector<2x128xf32>
      %54 = vector.extract_strided_slice %43 {offsets = [2, 0], sizes = [2, 128], strides = [1, 1]} : vector<4x128xbf16> to vector<2x128xbf16>
      %c8 = arith.constant 8 : index
      %c0_37 = arith.constant 0 : index
      %c0_38 = arith.constant 0 : index
      %55 = vector.load %arg2[%c8, %c0_37, %c0_38] : memref<9x128x128xbf16, #tpu.memory_space<vmem>>, vector<1x128x128xbf16>
      %56 = vector.shape_cast %55 : vector<1x128x128xbf16> to vector<128x128xbf16>
      %cst_39 = arith.constant dense<0.000000e+00> : vector<2x128xf32>
      %57 = tpu.matmul %54, %56, %cst_39 {dimension_numbers = #tpu.dot_dimension_numbers<[1], [0], [0], [1], [0, 0, 1, 1], [], []>} : vector<2x128xbf16>, vector<128x128xbf16>, vector<2x128xf32> -> vector<2x128xf32>
      %58 = arith.addf %53, %57 : vector<2x128xf32>
      %c0_40 = arith.constant 0 : index
      %59 = arith.index_cast %arg4 : i32 to index
      %c0_41 = arith.constant 0 : index
      %c0_42 = arith.constant 0 : index
      %60 = vector.load %arg3[%c0_40, %59, %c0_41, %c0_42] : memref<1x2x2x128xf32, #tpu.memory_space<vmem>>, vector<1x1x2x128xf32>
      %61 = vector.shape_cast %60 : vector<1x1x2x128xf32> to vector<2x128xf32>
      %62 = vector.shape_cast %58 : vector<2x128xf32> to vector<1x1x2x128xf32>
      tpu.vector_store %arg3[%c0_40, %59, %c0_41, %c0_42], %62 {strides = array<i32>} : memref<1x2x2x128xf32, #tpu.memory_space<vmem>>, vector<1x1x2x128xf32>,
    }
    %c2_i32_0 = arith.constant 2 : i32
    return
  }
  func.func @transform_0(%arg0: i32) -> (i32, i32, i32, i32) {
    %c0_i32 = arith.constant 0 : i32
    %c0_i32_0 = arith.constant 0 : i32
    %c0_i32_1 = arith.constant 0 : i32
    %c0_i32_2 = arith.constant 0 : i32
    return %arg0, %c0_i32, %c0_i32_0, %c0_i32_1 : i32, i32, i32, i32
  }
  func.func @transform_1(%arg0: i32) -> (i32, i32, i32) {
    %c0_i32 = arith.constant 0 : i32
    %c0_i32_0 = arith.constant 0 : i32
    %c0_i32_1 = arith.constant 0 : i32
    %c0_i32_2 = arith.constant 0 : i32
    return %c0_i32, %c0_i32_0, %c0_i32_1 : i32, i32, i32
  }
  func.func @transform_2(%arg0: i32) -> (i32, i32, i32, i32) {
    %c0_i32 = arith.constant 0 : i32
    %c0_i32_0 = arith.constant 0 : i32
    %c0_i32_1 = arith.constant 0 : i32
    %c0_i32_2 = arith.constant 0 : i32
    return %arg0, %c0_i32, %c0_i32_0, %c0_i32_1 : i32, i32, i32, i32
  }
}

module attributes {stable_mosaic.version = 11 : i64} {
  func.func @_bn_relu_kernel(%arg0: i32, %arg1: memref<8x32xf32, #tpu.memory_space<vmem>>, %arg2: memref<1x32xf32, #tpu.memory_space<vmem>>, %arg3: memref<1x32xf32, #tpu.memory_space<vmem>>, %arg4: memref<8x32xf32, #tpu.memory_space<vmem>>) attributes {dimension_semantics = [#tpu.dimension_semantics<parallel>], iteration_bounds = array<i64: 1>, scalar_prefetch = 0 : i64, scratch_operands = 0 : i64, tpu.core_type = #tpu.core_type<tc>, window_params = [{transform_indices = @transform_0, window_bounds = array<i64: 8, 32>}, {pipeline_mode = #tpu.pipeline_mode<synchronous>, transform_indices = @transform_1, window_bounds = array<i64: 1, 32>}, {pipeline_mode = #tpu.pipeline_mode<synchronous>, transform_indices = @transform_2, window_bounds = array<i64: 1, 32>}, {transform_indices = @transform_3, window_bounds = array<i64: 8, 32>}]} {
    %c0 = arith.constant 0 : index
    %c0_0 = arith.constant 0 : index
    %0 = vector.load %arg1[%c0, %c0_0] : memref<8x32xf32, #tpu.memory_space<vmem>>, vector<8x32xf32>
    %c0_1 = arith.constant 0 : index
    %c0_2 = arith.constant 0 : index
    %1 = vector.load %arg2[%c0_1, %c0_2] : memref<1x32xf32, #tpu.memory_space<vmem>>, vector<1x32xf32>
    %2 = vector.broadcast %1 : vector<1x32xf32> to vector<8x32xf32>
    %3 = arith.mulf %0, %2 : vector<8x32xf32>
    %c0_3 = arith.constant 0 : index
    %c0_4 = arith.constant 0 : index
    %4 = vector.load %arg3[%c0_3, %c0_4] : memref<1x32xf32, #tpu.memory_space<vmem>>, vector<1x32xf32>
    %5 = vector.broadcast %4 : vector<1x32xf32> to vector<8x32xf32>
    %6 = arith.addf %3, %5 : vector<8x32xf32>
    %cst = arith.constant 0.000000e+00 : f32
    %7 = vector.broadcast %cst : f32 to vector<8x32xf32>
    %8 = arith.maximumf %6, %7 : vector<8x32xf32>
    %c0_5 = arith.constant 0 : index
    %c0_6 = arith.constant 0 : index
    %9 = vector.load %arg4[%c0_5, %c0_6] : memref<8x32xf32, #tpu.memory_space<vmem>>, vector<8x32xf32>
    tpu.vector_store %arg4[%c0_5, %c0_6], %8 {strides = array<i32>} : memref<8x32xf32, #tpu.memory_space<vmem>>, vector<8x32xf32>,
    return
  }
  func.func @transform_0(%arg0: i32) -> (i32, i32) {
    %c0_i32 = arith.constant 0 : i32
    %c0_i32_0 = arith.constant 0 : i32
    return %arg0, %c0_i32 : i32, i32
  }
  func.func @transform_1(%arg0: i32) -> (i32, i32) {
    %c0_i32 = arith.constant 0 : i32
    %c0_i32_0 = arith.constant 0 : i32
    %c0_i32_1 = arith.constant 0 : i32
    return %c0_i32, %c0_i32_0 : i32, i32
  }
  func.func @transform_2(%arg0: i32) -> (i32, i32) {
    %c0_i32 = arith.constant 0 : i32
    %c0_i32_0 = arith.constant 0 : i32
    %c0_i32_1 = arith.constant 0 : i32
    return %c0_i32, %c0_i32_0 : i32, i32
  }
  func.func @transform_3(%arg0: i32) -> (i32, i32) {
    %c0_i32 = arith.constant 0 : i32
    %c0_i32_0 = arith.constant 0 : i32
    return %arg0, %c0_i32 : i32, i32
  }
}

</mosaic_0001>

<bundles_post_ra>
// kernel: _lambda_.21
= control target key start
LH: loop header
LB: loop body
LE: loop exit
PB: predicated region body
PF: predicated region fallthrough
CT: control target
= control target key end

     0   :  { %s864_s1 = inlined_call_operand.vmem [shape: bf16[128,128], index: 1, kind: input, shape index: {}]   ;;  %s865_s0 = inlined_call_operand.vmem [shape: f32[128,128], index: 0, kind: input, shape index: {}]   ;;  %s866_s2 = inlined_call_operand.vmem [shape: f32[1,128], index: 2, kind: input, shape index: {}]   ;;  %s867_s3 = inlined_call_operand.vmem [shape: f32[1,128], index: 3, kind: input, shape index: {}]   ;;  %s868_s4 = inlined_call_operand.vmem [shape: f32[1,128], index: 4, kind: input, shape index: {}]   ;;  %s869_s5 = inlined_call_operand.vmem [shape: f32[1,128], index: 5, kind: input, shape index: {}]   ;;  %s870_s6 = inlined_call_operand.vmem [shape: bf16[128,128], index: 6, kind: output, shape index: {}]  }
   0x1   :  { %v659_v0 = vld [vmem:[%s864_s1] sm:$0xff]   ;;  %v660_v1 = vld [vmem:[%s864_s1 + $0x8] sm:$0xff]   ;;  %v661_v2 = vld [vmem:[%s864_s1 + $0x10] sm:$0xff]  }
   0x2   :  { %611 = vmatprep.subr.bf16.mxu0 %v659_v0  ;;  %643 = vmatprep.subr.bf16.mxu1 %v659_v0  ;;  %v662_v3 = vld [vmem:[%s864_s1 + $0x18] sm:$0xff]   ;;  %v44_v4 = vld [vmem:[%s865_s0] sm:$0xff]  ;;  %v45_v5 = vld [vmem:[%s865_s0 + $0x8] sm:$0xff] }
   0x3   :  { %612 = vmatpush3.bf16.msra.mxu0 %v659_v0  ;;  %651 = vmatpush3.bf16.msra.mxu1 %v659_v0  ;;  %v723_v6 = vld [vmem:[%s866_s2] ss:$0 sm:$0xff]  ;;  %v53_v11 = vld [vmem:[%s865_s0 + $0x48] sm:$0xff]  ;;  %v46_v21 = vld [vmem:[%s865_s0 + $0x10] sm:$0xff] }
   0x4   :  { %613 = vmatprep.subr.bf16.mxu0 %v660_v1  ;;  %644 = vmatprep.subr.bf16.mxu1 %v660_v1  ;;  %v67_v7 = vmul.f32 %v723_v6, %v44_v4  ;;  %v68_v8 = vmul.f32 %v723_v6, %v45_v5  ;;  %v730_v9 = vld [vmem:[%s867_s3] ss:$0 sm:$0xff]  ;;  %v76_v13 = vmul.f32 %v723_v6, %v53_v11  ;;  %v47_v24 = vld [vmem:[%s865_s0 + $0x18] sm:$0xff]  ;;  %v54_v25 = vld [vmem:[%s865_s0 + $0x50] sm:$0xff] }
   0x5   :  { %v52_v10 = vld [vmem:[%s865_s0 + $0x40] sm:$0xff]  ;;  %v55_v26 = vld [vmem:[%s865_s0 + $0x58] sm:$0xff]  ;;  %v664_v27 = vld [vmem:[%s864_s1 + $0x28] sm:$0xff]   ;;  %v69_v34 = vmul.f32 %v723_v6, %v46_v21  ;;  %v70_v35 = vmul.f32 %v723_v6, %v47_v24  ;;  %v77_v36 = vmul.f32 %v723_v6, %v54_v25 }
   0x6   :  { %v75_v12 = vmul.f32 %v723_v6, %v52_v10  ;;  %v90_v14 = vadd.f32 %v730_v9, %v67_v7  ;;  %v91_v15 = vadd.f32 %v730_v9, %v68_v8  ;;  %v663_v16 = vld [vmem:[%s864_s1 + $0x20] sm:$0xff]   ;;  %v99_v18 = vadd.f32 %v730_v9, %v76_v13  ;;  %v49_v31 = vld [vmem:[%s865_s0 + $0x28] sm:$0xff]  ;;  %v665_v42 = vld [vmem:[%s864_s1 + $0x30] sm:$0xff]  }
   0x7   :  { %614 = vmatpush3.bf16.msra.mxu0 %v660_v1  ;;  %652 = vmatpush3.bf16.msra.mxu1 %v660_v1  ;;  %v48_v29 = vld [vmem:[%s865_s0 + $0x20] sm:$0xff]  ;;  %v57_v33 = vld [vmem:[%s865_s0 + $0x68] sm:$0xff]  ;;  %v78_v37 = vmul.f32 %v723_v6, %v55_v26  ;;  %v72_v39 = vmul.f32 %v723_v6, %v49_v31  ;;  %v92_v43 = vadd.f32 %v730_v9, %v69_v34  ;;  %v50_v48 = vld [vmem:[%s865_s0 + $0x30] sm:$0xff] }
   0x8   :  { %615 = vmatprep.subr.bf16.mxu0 %v661_v2  ;;  %645 = vmatprep.subr.bf16.mxu1 %v661_v2  ;;  %v98_v17 = vadd.f32 %v730_v9, %v75_v12  ;;  %v106_v19 = vmax.f32 %v90_v14, 0.0  ;;  %v107_v20 = vmax.f32 %v91_v15, 0.0  ;;  %v115_v23 = vmax.f32 %v99_v18, 0.0  ;;  %v56_v32 = vld [vmem:[%s865_s0 + $0x60] sm:$0xff]  ;;  %v51_v52 = vld [vmem:[%s865_s0 + $0x38] sm:$0xff]  ;;  %v58_v53 = vld [vmem:[%s865_s0 + $0x70] sm:$0xff] }
   0x9   :  { %v71_v38 = vmul.f32 %v723_v6, %v48_v29  ;;  %v79_v40 = vmul.f32 %v723_v6, %v56_v32  ;;  %v80_v41 = vmul.f32 %v723_v6, %v57_v33  ;;  %v93_v44 = vadd.f32 %v730_v9, %v70_v35  ;;  %v59_v54 = vld [vmem:[%s865_s0 + $0x78] sm:$0xff] }
   0xa   :  { %v114_v22 = vmax.f32 %v98_v17, 0.0  ;;  %v138_v28 = vpack.c.bf16 %v107_v20, %v106_v19  ;;  %v100_v45 = vadd.f32 %v730_v9, %v77_v36  ;;  %v101_v46 = vadd.f32 %v730_v9, %v78_v37  ;;  %v666_v55 = vld [vmem:[%s864_s1 + $0x38] sm:$0xff]   ;;  %v822_v20 = vld [vmem:[%s869_s5] ss:$0 sm:$0xff] }
   0xb   :  { %616 = vmatpush3.bf16.msra.mxu0 %v661_v2  ;;  %653 = vmatpush3.bf16.msra.mxu1 %v661_v2  ;;  %v94_v47 = vadd.f32 %v730_v9, %v71_v38  ;;  %v95_v49 = vadd.f32 %v730_v9, %v72_v39  ;;  %v102_v50 = vadd.f32 %v730_v9, %v79_v40  ;;  %v108_v56 = vmax.f32 %v92_v43, 0.0 }
   0xc   :  { %617 = vmatprep.subr.bf16.mxu0 %v662_v3  ;;  %646 = vmatprep.subr.bf16.mxu1 %v662_v3  ;;  %v142_v30 = vpack.c.bf16 %v115_v23, %v114_v22  ;;  %v103_v51 = vadd.f32 %v730_v9, %v80_v41  ;;  %v109_v57 = vmax.f32 %v93_v44, 0.0  ;;  %v116_v58 = vmax.f32 %v100_v45, 0.0 }
   0xd   :  { %627 = vmatprep.mubr.bf16.mxu0 %v138_v28  ;;  %v117_v59 = vmax.f32 %v101_v46, 0.0  ;;  %v73_v60 = vmul.f32 %v723_v6, %v50_v48  ;;  %v74_v61 = vmul.f32 %v723_v6, %v51_v52  ;;  %v81_v62 = vmul.f32 %v723_v6, %v58_v53 }
   0xe   :  { %635 = vmatprep.mubr.bf16.mxu1 %v142_v30  ;;  %v82_v63 = vmul.f32 %v723_v6, %v59_v54  ;;  %v110_v0 = vmax.f32 %v94_v47, 0.0  ;;  %v111_v1 = vmax.f32 %v95_v49, 0.0  ;;  %v118_v2 = vmax.f32 %v102_v50, 0.0 }
   0xf   :  { %618 = vmatpush3.bf16.msra.mxu0 %v662_v3  ;;  %654 = vmatpush3.bf16.msra.mxu1 %v662_v3  ;;  %v119_v3 = vmax.f32 %v103_v51, 0.0  ;;  %v139_v4 = vpack.c.bf16 %v109_v57, %v108_v56  ;;  %v143_v5 = vpack.c.bf16 %v117_v59, %v116_v58  ;;  %v96_v7 = vadd.f32 %v730_v9, %v73_v60 }
  0x10   :  { %619 = vmatprep.subr.bf16.mxu0 %v663_v16  ;;  %647 = vmatprep.subr.bf16.mxu1 %v663_v16  ;;  %v97_v8 = vadd.f32 %v730_v9, %v74_v61  ;;  %v104_v10 = vadd.f32 %v730_v9, %v81_v62  ;;  %v105_v11 = vadd.f32 %v730_v9, %v82_v63  ;;  %v514_v9 = vld [vmem:[%s868_s4] ss:$0 sm:$0xff] }
  0x11   :  { %v140_v6 = vpack.c.bf16 %v111_v1, %v110_v0  ;;  %v144_v12 = vpack.c.bf16 %v119_v3, %v118_v2  ;;  %v112_v13 = vmax.f32 %v96_v7, 0.0 }
  0x12   :  { %v113_v14 = vmax.f32 %v97_v8, 0.0  ;;  %v120_v15 = vmax.f32 %v104_v10, 0.0 }
  0x13   :  { %620 = vmatpush3.bf16.msra.mxu0 %v663_v16  ;;  %655 = vmatpush3.bf16.msra.mxu1 %v663_v16  ;;  %v121_v16 = vmax.f32 %v105_v11, 0.0 }
  0x14   :  { %621 = vmatprep.subr.bf16.mxu0 %v664_v27  ;;  %648 = vmatprep.subr.bf16.mxu1 %v664_v27  ;;  %v141_v17 = vpack.c.bf16 %v113_v14, %v112_v13 }
  0x15   :  { %v145_v18 = vpack.c.bf16 %v121_v16, %v120_v15 }
  0x17   :  { %622 = vmatpush3.bf16.msra.mxu0 %v664_v27  ;;  %656 = vmatpush3.bf16.msra.mxu1 %v664_v27 }
  0x18   :  { %623 = vmatprep.subr.bf16.mxu0 %v665_v42  ;;  %649 = vmatprep.subr.bf16.mxu1 %v665_v42 }
  0x1b   :  { %624 = vmatpush3.bf16.msra.mxu0 %v665_v42  ;;  %657 = vmatpush3.bf16.msra.mxu1 %v665_v42 }
  0x1c   :  { %625 = vmatprep.subr.bf16.mxu0 %v666_v55  ;;  %650 = vmatprep.subr.bf16.mxu1 %v666_v55 }
  0x1f   :  { %626 = vmatpush3.bf16.msra.mxu0 %v666_v55  ;;  %658 = vmatpush3.bf16.msra.mxu1 %v666_v55 }
  0x22   :  { %628 = vmatmul.mubr.bf16.vlgmr.msra.gmra.mrb[0].mxu0 %v139_v4  ;;  %636 = vmatmul.mubr.bf16.vlgmr.msra.gmra.mrb[0].mxu1 %v143_v5 }
  0x23   :  { %631 = vmatprep.mubr.bf16.mxu0 %v140_v6  ;;  %639 = vmatprep.mubr.bf16.mxu1 %v144_v12 }
  0x2a   :  { %632 = vmatmul.mubr.bf16.gmra.mrb[4].mxu0 %v141_v17  ;;  %640 = vmatmul.mubr.bf16.gmra.mrb[4].mxu1 %v145_v18 }
  0xf5   :  { %v629_v19 = vpop.f32.mrb[0].mxu0  ;;  %v637_v21 = vpop.f32.mrb[0].mxu1 }
  0xf6   :  { %v367_v22 = vmul.f32 %v629_v19, %v514_v9  ;;  %v375_v23 = vmul.f32 %v637_v21, %v514_v9  ;;  %v244_v24 = vpop.f32.mrb[1].mxu0  ;;  %v276_v25 = vpop.f32.mrb[1].mxu1 }
  0xf7   :  { %v365_v26 = vmul.f32 %v514_v9, %v244_v24  ;;  %v373_v27 = vmul.f32 %v514_v9, %v276_v25  ;;  %v630_v28 = vpop.f32.mrb[2].mxu0  ;;  %v638_v29 = vpop.f32.mrb[2].mxu1 }
  0xf8   :  { %v390_v30 = vadd.f32 %v822_v20, %v367_v22  ;;  %v398_v31 = vadd.f32 %v822_v20, %v375_v23  ;;  %v368_v32 = vmul.f32 %v630_v28, %v514_v9  ;;  %v376_v33 = vmul.f32 %v638_v29, %v514_v9  ;;  %v247_v34 = vpop.f32.mrb[3].mxu0  ;;  %v279_v35 = vpop.f32.mrb[3].mxu1 }
  0xf9   :  { %v388_v36 = vadd.f32 %v822_v20, %v365_v26  ;;  %v396_v37 = vadd.f32 %v822_v20, %v373_v27  ;;  %v366_v38 = vmul.f32 %v514_v9, %v247_v34  ;;  %v374_v39 = vmul.f32 %v514_v9, %v279_v35 }
  0xfa   :  { %v391_v40 = vadd.f32 %v822_v20, %v368_v32  ;;  %v399_v41 = vadd.f32 %v822_v20, %v376_v33  ;;  %v406_v44 = vmax.f32 %v390_v30, 0.0  ;;  %v414_v45 = vmax.f32 %v398_v31, 0.0 }
  0xfb   :  { %v389_v42 = vadd.f32 %v822_v20, %v366_v38  ;;  %v397_v43 = vadd.f32 %v822_v20, %v374_v39  ;;  %v404_v48 = vmax.f32 %v388_v36, 0.0  ;;  %v412_v49 = vmax.f32 %v396_v37, 0.0 }
  0xfc   :  { %v407_v46 = vmax.f32 %v391_v40, 0.0  ;;  %v415_v47 = vmax.f32 %v399_v41, 0.0 }
  0xfd   :  { %v405_v50 = vmax.f32 %v389_v42, 0.0  ;;  %v413_v51 = vmax.f32 %v397_v43, 0.0  ;;  %v633_v52 = vpop.f32.mrb[4].mxu0  ;;  %v641_v53 = vpop.f32.mrb[4].mxu1 }
  0xfe   :  { %v556_v54 = vpack.c.bf16 %v407_v46, %v406_v44  ;;  %v576_v55 = vpack.c.bf16 %v415_v47, %v414_v45  ;;  %v371_v56 = vmul.f32 %v633_v52, %v514_v9  ;;  %v379_v57 = vmul.f32 %v641_v53, %v514_v9  ;;  %v260_v58 = vpop.f32.mrb[5].mxu0  ;;  %v292_v59 = vpop.f32.mrb[5].mxu1 }
  0xff   :  { %v551_v60 = vpack.c.bf16 %v405_v50, %v404_v48  ;;  %v571_v61 = vpack.c.bf16 %v413_v51, %v412_v49  ;;  %v369_v62 = vmul.f32 %v514_v9, %v260_v58  ;;  %v377_v63 = vmul.f32 %v514_v9, %v292_v59  ;;  %v634_v0 = vpop.f32.mrb[6].mxu0  ;;  %v642_v1 = vpop.f32.mrb[6].mxu1 }
 0x100   :  { %588 = vst [vmem:[%s870_s6 + $0x8] sm:$0xff] %v556_v54   ;;  %592 = vst [vmem:[%s870_s6 + $0x28] sm:$0xff] %v576_v55   ;;  %v394_v2 = vadd.f32 %v822_v20, %v371_v56  ;;  %v402_v3 = vadd.f32 %v822_v20, %v379_v57  ;;  %v372_v4 = vmul.f32 %v634_v0, %v514_v9  ;;  %v263_v7 = vpop.f32.mrb[7].mxu0  ;;  %v295_v8 = vpop.f32.mrb[7].mxu1 }
 0x101   :  { %v380_v5 = vmul.f32 %v642_v1, %v514_v9  ;;  %552 = vst [vmem:[%s870_s6] sm:$0xff] %v551_v60   ;;  %591 = vst [vmem:[%s870_s6 + $0x20] sm:$0xff] %v571_v61   ;;  %v392_v10 = vadd.f32 %v822_v20, %v369_v62  ;;  %v400_v11 = vadd.f32 %v822_v20, %v377_v63 }
 0x102   :  { %v370_v6 = vmul.f32 %v514_v9, %v263_v7  ;;  %v378_v12 = vmul.f32 %v514_v9, %v295_v8  ;;  %v395_v13 = vadd.f32 %v822_v20, %v372_v4  ;;  %v410_v17 = vmax.f32 %v394_v2, 0.0 }
 0x103   :  { %v403_v14 = vadd.f32 %v822_v20, %v380_v5  ;;  %v418_v18 = vmax.f32 %v402_v3, 0.0  ;;  %v408_v22 = vmax.f32 %v392_v10, 0.0  ;;  %v416_v23 = vmax.f32 %v400_v11, 0.0 }
 0x104   :  { %v393_v15 = vadd.f32 %v822_v20, %v370_v6  ;;  %v401_v16 = vadd.f32 %v822_v20, %v378_v12  ;;  %v411_v19 = vmax.f32 %v395_v13, 0.0 }
 0x105   :  { %v419_v21 = vmax.f32 %v403_v14, 0.0 }
 0x106   :  { %v409_v24 = vmax.f32 %v393_v15, 0.0  ;;  %v417_v25 = vmax.f32 %v401_v16, 0.0  ;;  %v566_v26 = vpack.c.bf16 %v411_v19, %v410_v17 }
 0x107   :  { %v586_v27 = vpack.c.bf16 %v419_v21, %v418_v18 }
 0x108   :  { %v561_v28 = vpack.c.bf16 %v409_v24, %v408_v22  ;;  %v581_v9 = vpack.c.bf16 %v417_v25, %v416_v23  ;;  %590 = vst [vmem:[%s870_s6 + $0x18] sm:$0xff] %v566_v26  }
 0x109   :  { %594 = vst [vmem:[%s870_s6 + $0x38] sm:$0xff] %v586_v27  }
 0x10a   :  { %589 = vst [vmem:[%s870_s6 + $0x10] sm:$0xff] %v561_v28   ;;  %593 = vst [vmem:[%s870_s6 + $0x30] sm:$0xff] %v581_v9  }

// kernel: _lambda_.19
= control target key start
LH: loop header
LB: loop body
LE: loop exit
PB: predicated region body
PF: predicated region fallthrough
CT: control target
= control target key end

     0   :  { %s1809_s1 = inlined_call_operand.vmem [shape: bf16[128,128], index: 1, kind: input, shape index: {}]   ;;  %s1810_s2 = inlined_call_operand.vmem [shape: f32[1,128], index: 2, kind: input, shape index: {}]   ;;  %s1811_s3 = inlined_call_operand.vmem [shape: f32[1,128], index: 3, kind: input, shape index: {}]   ;;  %s1812_s0 = inlined_call_operand.vmem [shape: f32[512,128], index: 0, kind: input, shape index: {}]   ;;  %s1813_s4 = inlined_call_operand.vmem [shape: f32[1,128], index: 4, kind: input, shape index: {}]   ;;  %s1814_s5 = inlined_call_operand.vmem [shape: f32[1,128], index: 5, kind: input, shape index: {}]   ;;  %s1815_s6 = inlined_call_operand.vmem [shape: f32[512,128], index: 6, kind: output, shape index: {}]  }
   0x1   :  { %v1220_v0 = vld [vmem:[%s1809_s1] sm:$0xff]   ;;  %v1221_v1 = vld [vmem:[%s1809_s1 + $0x8] sm:$0xff]   ;;  %v1222_v2 = vld [vmem:[%s1809_s1 + $0x10] sm:$0xff]  }
   0x2   :  { %1124 = vmatprep.subr.bf16.mxu0 %v1220_v0  ;;  %1204 = vmatprep.subr.bf16.mxu1 %v1220_v0  ;;  %v1223_v3 = vld [vmem:[%s1809_s1 + $0x18] sm:$0xff]   ;;  %v92_v4 = vld [vmem:[%s1812_s0] sm:$0xff]  ;;  %v93_v5 = vld [vmem:[%s1812_s0 + $0x8] sm:$0xff] }
   0x3   :  { %1125 = vmatpush3.bf16.msra.mxu0 %v1220_v0  ;;  %1212 = vmatpush3.bf16.msra.mxu1 %v1220_v0  ;;  %v124_v6 = vld [vmem:[%s1812_s0 + $0x100] sm:$0xff]  ;;  %v220_v7 = vpack.c.bf16 %v93_v5, %v92_v4  ;;  %v125_v8 = vld [vmem:[%s1812_s0 + $0x108] sm:$0xff]  ;;  %v1226_v12 = vld [vmem:[%s1809_s1 + $0x30] sm:$0xff]  }
   0x4   :  { %1126 = vmatprep.subr.bf16.mxu0 %v1221_v1  ;;  %1205 = vmatprep.subr.bf16.mxu1 %v1221_v1  ;;  %v236_v9 = vpack.c.bf16 %v125_v8, %v124_v6  ;;  %v1224_v10 = vld [vmem:[%s1809_s1 + $0x20] sm:$0xff]   ;;  %v1225_v11 = vld [vmem:[%s1809_s1 + $0x28] sm:$0xff]   ;;  %v1227_v13 = vld [vmem:[%s1809_s1 + $0x38] sm:$0xff]  }
   0x5   :  { %1140 = vmatprep.mubr.bf16.mxu0 %v220_v7  ;;  %v94_v14 = vld [vmem:[%s1812_s0 + $0x10] sm:$0xff]  ;;  %v95_v15 = vld [vmem:[%s1812_s0 + $0x18] sm:$0xff]  ;;  %v96_v18 = vld [vmem:[%s1812_s0 + $0x20] sm:$0xff] }
   0x6   :  { %1172 = vmatprep.mubr.bf16.mxu1 %v236_v9  ;;  %v126_v16 = vld [vmem:[%s1812_s0 + $0x110] sm:$0xff]  ;;  %v127_v17 = vld [vmem:[%s1812_s0 + $0x118] sm:$0xff]  ;;  %v97_v19 = vld [vmem:[%s1812_s0 + $0x28] sm:$0xff]  ;;  %v221_v22 = vpack.c.bf16 %v95_v15, %v94_v14 }
   0x7   :  { %1127 = vmatpush3.bf16.msra.mxu0 %v1221_v1  ;;  %1213 = vmatpush3.bf16.msra.mxu1 %v1221_v1  ;;  %v128_v20 = vld [vmem:[%s1812_s0 + $0x120] sm:$0xff]  ;;  %v129_v21 = vld [vmem:[%s1812_s0 + $0x128] sm:$0xff]  ;;  %v237_v23 = vpack.c.bf16 %v127_v17, %v126_v16  ;;  %v222_v24 = vpack.c.bf16 %v97_v19, %v96_v18  ;;  %v98_v26 = vld [vmem:[%s1812_s0 + $0x30] sm:$0xff] }
   0x8   :  { %1128 = vmatprep.subr.bf16.mxu0 %v1222_v2  ;;  %1206 = vmatprep.subr.bf16.mxu1 %v1222_v2  ;;  %v238_v25 = vpack.c.bf16 %v129_v21, %v128_v20  ;;  %v99_v27 = vld [vmem:[%s1812_s0 + $0x38] sm:$0xff]  ;;  %v130_v28 = vld [vmem:[%s1812_s0 + $0x130] sm:$0xff]  ;;  %v100_v30 = vld [vmem:[%s1812_s0 + $0x40] sm:$0xff] }
   0x9   :  { %v131_v29 = vld [vmem:[%s1812_s0 + $0x138] sm:$0xff]  ;;  %v101_v31 = vld [vmem:[%s1812_s0 + $0x48] sm:$0xff]  ;;  %v132_v32 = vld [vmem:[%s1812_s0 + $0x140] sm:$0xff]  ;;  %v223_v34 = vpack.c.bf16 %v99_v27, %v98_v26 }
   0xa   :  { %v133_v33 = vld [vmem:[%s1812_s0 + $0x148] sm:$0xff]  ;;  %v239_v35 = vpack.c.bf16 %v131_v29, %v130_v28  ;;  %v224_v36 = vpack.c.bf16 %v101_v31, %v100_v30  ;;  %v102_v38 = vld [vmem:[%s1812_s0 + $0x50] sm:$0xff]  ;;  %v103_v39 = vld [vmem:[%s1812_s0 + $0x58] sm:$0xff] }
   0xb   :  { %1129 = vmatpush3.bf16.msra.mxu0 %v1222_v2  ;;  %1214 = vmatpush3.bf16.msra.mxu1 %v1222_v2  ;;  %v240_v37 = vpack.c.bf16 %v133_v33, %v132_v32  ;;  %v134_v40 = vld [vmem:[%s1812_s0 + $0x150] sm:$0xff]  ;;  %v135_v41 = vld [vmem:[%s1812_s0 + $0x158] sm:$0xff]  ;;  %v104_v42 = vld [vmem:[%s1812_s0 + $0x60] sm:$0xff]  ;;  %v225_v46 = vpack.c.bf16 %v103_v39, %v102_v38 }
   0xc   :  { %1130 = vmatprep.subr.bf16.mxu0 %v1223_v3  ;;  %1207 = vmatprep.subr.bf16.mxu1 %v1223_v3  ;;  %v105_v43 = vld [vmem:[%s1812_s0 + $0x68] sm:$0xff]  ;;  %v136_v44 = vld [vmem:[%s1812_s0 + $0x160] sm:$0xff]  ;;  %v241_v47 = vpack.c.bf16 %v135_v41, %v134_v40  ;;  %v106_v50 = vld [vmem:[%s1812_s0 + $0x70] sm:$0xff] }
   0xd   :  { %v137_v45 = vld [vmem:[%s1812_s0 + $0x168] sm:$0xff]  ;;  %v226_v48 = vpack.c.bf16 %v105_v43, %v104_v42  ;;  %v107_v51 = vld [vmem:[%s1812_s0 + $0x78] sm:$0xff]  ;;  %v138_v52 = vld [vmem:[%s1812_s0 + $0x170] sm:$0xff] }
   0xe   :  { %v242_v49 = vpack.c.bf16 %v137_v45, %v136_v44  ;;  %v139_v53 = vld [vmem:[%s1812_s0 + $0x178] sm:$0xff]  ;;  %v108_v54 = vld [vmem:[%s1812_s0 + $0x80] sm:$0xff]  ;;  %v109_v55 = vld [vmem:[%s1812_s0 + $0x88] sm:$0xff]  ;;  %v227_v58 = vpack.c.bf16 %v107_v51, %v106_v50 }
   0xf   :  { %1131 = vmatpush3.bf16.msra.mxu0 %v1223_v3  ;;  %1215 = vmatpush3.bf16.msra.mxu1 %v1223_v3  ;;  %v140_v56 = vld [vmem:[%s1812_s0 + $0x180] sm:$0xff]  ;;  %v141_v57 = vld [vmem:[%s1812_s0 + $0x188] sm:$0xff]  ;;  %v243_v59 = vpack.c.bf16 %v139_v53, %v138_v52  ;;  %v228_v60 = vpack.c.bf16 %v109_v55, %v108_v54  ;;  %v110_v62 = vld [vmem:[%s1812_s0 + $0x90] sm:$0xff] }
  0x10   :  { %1132 = vmatprep.subr.bf16.mxu0 %v1224_v10  ;;  %1208 = vmatprep.subr.bf16.mxu1 %v1224_v10  ;;  %v244_v61 = vpack.c.bf16 %v141_v57, %v140_v56  ;;  %v111_v63 = vld [vmem:[%s1812_s0 + $0x98] sm:$0xff]  ;;  %v142_v0 = vld [vmem:[%s1812_s0 + $0x190] sm:$0xff]  ;;  %v112_v2 = vld [vmem:[%s1812_s0 + $0xa0] sm:$0xff] }
  0x11   :  { %v143_v1 = vld [vmem:[%s1812_s0 + $0x198] sm:$0xff]  ;;  %v113_v3 = vld [vmem:[%s1812_s0 + $0xa8] sm:$0xff]  ;;  %v144_v4 = vld [vmem:[%s1812_s0 + $0x1a0] sm:$0xff]  ;;  %v229_v6 = vpack.c.bf16 %v111_v63, %v110_v62 }
  0x12   :  { %v145_v5 = vld [vmem:[%s1812_s0 + $0x1a8] sm:$0xff]  ;;  %v245_v7 = vpack.c.bf16 %v143_v1, %v142_v0  ;;  %v230_v8 = vpack.c.bf16 %v113_v3, %v112_v2  ;;  %v116_v14 = vld [vmem:[%s1812_s0 + $0xc0] sm:$0xff] }
  0x13   :  { %1133 = vmatpush3.bf16.msra.mxu0 %v1224_v10  ;;  %1216 = vmatpush3.bf16.msra.mxu1 %v1224_v10  ;;  %v246_v9 = vpack.c.bf16 %v145_v5, %v144_v4  ;;  %v114_v10 = vld [vmem:[%s1812_s0 + $0xb0] sm:$0xff]  ;;  %v117_v15 = vld [vmem:[%s1812_s0 + $0xc8] sm:$0xff]  ;;  %v148_v16 = vld [vmem:[%s1812_s0 + $0x1c0] sm:$0xff] }
  0x14   :  { %1134 = vmatprep.subr.bf16.mxu0 %v1225_v11  ;;  %1209 = vmatprep.subr.bf16.mxu1 %v1225_v11  ;;  %v149_v17 = vld [vmem:[%s1812_s0 + $0x1c8] sm:$0xff]  ;;  %v232_v20 = vpack.c.bf16 %v117_v15, %v116_v14  ;;  %v120_v26 = vld [vmem:[%s1812_s0 + $0xe0] sm:$0xff] }
  0x15   :  { %v248_v21 = vpack.c.bf16 %v149_v17, %v148_v16  ;;  %v121_v27 = vld [vmem:[%s1812_s0 + $0xe8] sm:$0xff]  ;;  %v152_v28 = vld [vmem:[%s1812_s0 + $0x1e0] sm:$0xff] }
  0x16   :  { %v153_v29 = vld [vmem:[%s1812_s0 + $0x1e8] sm:$0xff]  ;;  %v234_v32 = vpack.c.bf16 %v121_v27, %v120_v26  ;;  %v1482_v40 = vld [vmem:[%s1813_s4] ss:$0 sm:$0xff] }
  0x17   :  { %1135 = vmatpush3.bf16.msra.mxu0 %v1225_v11  ;;  %1217 = vmatpush3.bf16.msra.mxu1 %v1225_v11  ;;  %v115_v11 = vld [vmem:[%s1812_s0 + $0xb8] sm:$0xff]  ;;  %v250_v33 = vpack.c.bf16 %v153_v29, %v152_v28  ;;  %v1487_v42 = vld [vmem:[%s1814_s5] ss:$0 sm:$0xff] }
  0x18   :  { %1136 = vmatprep.subr.bf16.mxu0 %v1226_v12  ;;  %1210 = vmatprep.subr.bf16.mxu1 %v1226_v12  ;;  %v231_v18 = vpack.c.bf16 %v115_v11, %v114_v10 }
  0x1b   :  { %1137 = vmatpush3.bf16.msra.mxu0 %v1226_v12  ;;  %1218 = vmatpush3.bf16.msra.mxu1 %v1226_v12  ;;  %v146_v12 = vld [vmem:[%s1812_s0 + $0x1b0] sm:$0xff] }
  0x1c   :  { %1138 = vmatprep.subr.bf16.mxu0 %v1227_v13  ;;  %1211 = vmatprep.subr.bf16.mxu1 %v1227_v13 }
  0x1f   :  { %1139 = vmatpush3.bf16.msra.mxu0 %v1227_v13  ;;  %1219 = vmatpush3.bf16.msra.mxu1 %v1227_v13  ;;  %v147_v13 = vld [vmem:[%s1812_s0 + $0x1b8] sm:$0xff] }
  0x20   :  { %v247_v19 = vpack.c.bf16 %v147_v13, %v146_v12 }
  0x22   :  { %1141 = vmatmul.mubr.bf16.vlgmr.msra.gmra.mrb[0].mxu0 %v221_v22  ;;  %1173 = vmatmul.mubr.bf16.vlgmr.msra.gmra.mrb[0].mxu1 %v237_v23  ;;  %v118_v22 = vld [vmem:[%s1812_s0 + $0xd0] sm:$0xff]  ;;  %v119_v23 = vld [vmem:[%s1812_s0 + $0xd8] sm:$0xff] }
  0x23   :  { %1144 = vmatprep.mubr.bf16.mxu0 %v222_v24  ;;  %1176 = vmatprep.mubr.bf16.mxu1 %v238_v25  ;;  %v150_v24 = vld [vmem:[%s1812_s0 + $0x1d0] sm:$0xff]  ;;  %v151_v25 = vld [vmem:[%s1812_s0 + $0x1d8] sm:$0xff]  ;;  %v233_v30 = vpack.c.bf16 %v119_v23, %v118_v22 }
  0x24   :  { %v249_v31 = vpack.c.bf16 %v151_v25, %v150_v24 }
  0x2a   :  { %1145 = vmatmul.mubr.bf16.gmra.mrb[4].mxu0 %v223_v34  ;;  %1177 = vmatmul.mubr.bf16.gmra.mrb[4].mxu1 %v239_v35  ;;  %v122_v34 = vld [vmem:[%s1812_s0 + $0xf0] sm:$0xff]  ;;  %v123_v35 = vld [vmem:[%s1812_s0 + $0xf8] sm:$0xff] }
  0x2b   :  { %1148 = vmatprep.mubr.bf16.mxu0 %v224_v36  ;;  %1180 = vmatprep.mubr.bf16.mxu1 %v240_v37  ;;  %v154_v36 = vld [vmem:[%s1812_s0 + $0x1f0] sm:$0xff]  ;;  %v155_v37 = vld [vmem:[%s1812_s0 + $0x1f8] sm:$0xff]  ;;  %v235_v38 = vpack.c.bf16 %v123_v35, %v122_v34 }
  0x2c   :  { %v251_v39 = vpack.c.bf16 %v155_v37, %v154_v36 }
  0x32   :  { %1149 = vmatmul.mubr.bf16.gmra.mrb[8].mxu0 %v225_v46  ;;  %1181 = vmatmul.mubr.bf16.gmra.mrb[8].mxu1 %v241_v47 }
  0x33   :  { %1152 = vmatprep.mubr.bf16.mxu0 %v226_v48  ;;  %1184 = vmatprep.mubr.bf16.mxu1 %v242_v49 }
  0x3a   :  { %1153 = vmatmul.mubr.bf16.gmra.mrb[12].mxu0 %v227_v58  ;;  %1185 = vmatmul.mubr.bf16.gmra.mrb[12].mxu1 %v243_v59 }
  0x3b   :  { %1156 = vmatprep.mubr.bf16.mxu0 %v228_v60  ;;  %1188 = vmatprep.mubr.bf16.mxu1 %v244_v61 }
  0x42   :  { %1157 = vmatmul.mubr.bf16.gmra.mrb[16].mxu0 %v229_v6  ;;  %1189 = vmatmul.mubr.bf16.gmra.mrb[16].mxu1 %v245_v7 }
  0x43   :  { %1160 = vmatprep.mubr.bf16.mxu0 %v230_v8  ;;  %1192 = vmatprep.mubr.bf16.mxu1 %v246_v9 }
  0x4a   :  { %1161 = vmatmul.mubr.bf16.gmra.mrb[20].mxu0 %v231_v18  ;;  %1193 = vmatmul.mubr.bf16.gmra.mrb[20].mxu1 %v247_v19 }
  0x4b   :  { %1164 = vmatprep.mubr.bf16.mxu0 %v232_v20  ;;  %1196 = vmatprep.mubr.bf16.mxu1 %v248_v21 }
  0x52   :  { %1165 = vmatmul.mubr.bf16.gmra.mrb[24].mxu0 %v233_v30  ;;  %1197 = vmatmul.mubr.bf16.gmra.mrb[24].mxu1 %v249_v31 }
  0x53   :  { %1168 = vmatprep.mubr.bf16.mxu0 %v234_v32  ;;  %1200 = vmatprep.mubr.bf16.mxu1 %v250_v33 }
  0x5a   :  { %1169 = vmatmul.mubr.bf16.gmra.mrb[28].mxu0 %v235_v38  ;;  %1201 = vmatmul.mubr.bf16.gmra.mrb[28].mxu1 %v251_v39 }
  0xf5   :  { %v1142_v41 = vpop.f32.mrb[0].mxu0  ;;  %v1174_v43 = vpop.f32.mrb[0].mxu1 }
  0xf6   :  { %v809_v44 = vmul.f32 %v1142_v41, %v1482_v40  ;;  %v841_v45 = vmul.f32 %v1174_v43, %v1482_v40  ;;  %v350_v46 = vpop.f32.mrb[1].mxu0  ;;  %v478_v47 = vpop.f32.mrb[1].mxu1 }
  0xf7   :  { %v807_v48 = vmul.f32 %v1482_v40, %v350_v46  ;;  %v839_v49 = vmul.f32 %v1482_v40, %v478_v47  ;;  %v1143_v50 = vpop.f32.mrb[2].mxu0  ;;  %v1175_v51 = vpop.f32.mrb[2].mxu1 }
  0xf8   :  { %v880_v52 = vadd.f32 %v1487_v42, %v809_v44  ;;  %v912_v53 = vadd.f32 %v1487_v42, %v841_v45  ;;  %v810_v54 = vmul.f32 %v1143_v50, %v1482_v40  ;;  %v842_v55 = vmul.f32 %v1175_v51, %v1482_v40  ;;  %v353_v56 = vpop.f32.mrb[3].mxu0  ;;  %v481_v57 = vpop.f32.mrb[3].mxu1 }
  0xf9   :  { %v878_v58 = vadd.f32 %v1487_v42, %v807_v48  ;;  %v910_v59 = vadd.f32 %v1487_v42, %v839_v49  ;;  %v808_v60 = vmul.f32 %v1482_v40, %v353_v56  ;;  %v840_v61 = vmul.f32 %v1482_v40, %v481_v57 }
  0xfa   :  { %v944_v62 = vmax.f32 %v880_v52, 0.0  ;;  %v976_v63 = vmax.f32 %v912_v53, 0.0  ;;  %v881_v0 = vadd.f32 %v1487_v42, %v810_v54  ;;  %v913_v1 = vadd.f32 %v1487_v42, %v842_v55 }
  0xfb   :  { %v942_v2 = vmax.f32 %v878_v58, 0.0  ;;  %v974_v3 = vmax.f32 %v910_v59, 0.0  ;;  %v879_v4 = vadd.f32 %v1487_v42, %v808_v60  ;;  %v911_v5 = vadd.f32 %v1487_v42, %v840_v61 }
  0xfc   :  { %1008 = vst [vmem:[%s1815_s6 + $0x10] sm:$0xff] %v944_v62  ;;  %1040 = vst [vmem:[%s1815_s6 + $0x110] sm:$0xff] %v976_v63  ;;  %v945_v6 = vmax.f32 %v881_v0, 0.0  ;;  %v977_v7 = vmax.f32 %v913_v1, 0.0 }
  0xfd   :  { %1006 = vst [vmem:[%s1815_s6] sm:$0xff] %v942_v2  ;;  %1038 = vst [vmem:[%s1815_s6 + $0x100] sm:$0xff] %v974_v3  ;;  %v943_v8 = vmax.f32 %v879_v4, 0.0  ;;  %v975_v9 = vmax.f32 %v911_v5, 0.0  ;;  %v1146_v10 = vpop.f32.mrb[4].mxu0  ;;  %v1178_v11 = vpop.f32.mrb[4].mxu1 }
  0xfe   :  { %1009 = vst [vmem:[%s1815_s6 + $0x18] sm:$0xff] %v945_v6  ;;  %1041 = vst [vmem:[%s1815_s6 + $0x118] sm:$0xff] %v977_v7  ;;  %v813_v12 = vmul.f32 %v1146_v10, %v1482_v40  ;;  %v845_v13 = vmul.f32 %v1178_v11, %v1482_v40  ;;  %v366_v14 = vpop.f32.mrb[5].mxu0  ;;  %v494_v15 = vpop.f32.mrb[5].mxu1 }
  0xff   :  { %1007 = vst [vmem:[%s1815_s6 + $0x8] sm:$0xff] %v943_v8  ;;  %1039 = vst [vmem:[%s1815_s6 + $0x108] sm:$0xff] %v975_v9  ;;  %v811_v16 = vmul.f32 %v1482_v40, %v366_v14  ;;  %v843_v17 = vmul.f32 %v1482_v40, %v494_v15  ;;  %v1147_v18 = vpop.f32.mrb[6].mxu0  ;;  %v1179_v19 = vpop.f32.mrb[6].mxu1 }
 0x100   :  { %v884_v20 = vadd.f32 %v1487_v42, %v813_v12  ;;  %v916_v21 = vadd.f32 %v1487_v42, %v845_v13  ;;  %v814_v22 = vmul.f32 %v1147_v18, %v1482_v40  ;;  %v846_v23 = vmul.f32 %v1179_v19, %v1482_v40  ;;  %v369_v24 = vpop.f32.mrb[7].mxu0  ;;  %v497_v25 = vpop.f32.mrb[7].mxu1 }
 0x101   :  { %v882_v26 = vadd.f32 %v1487_v42, %v811_v16  ;;  %v914_v27 = vadd.f32 %v1487_v42, %v843_v17  ;;  %v812_v28 = vmul.f32 %v1482_v40, %v369_v24  ;;  %v844_v29 = vmul.f32 %v1482_v40, %v497_v25 }
 0x102   :  { %v948_v30 = vmax.f32 %v884_v20, 0.0  ;;  %v980_v31 = vmax.f32 %v916_v21, 0.0  ;;  %v885_v32 = vadd.f32 %v1487_v42, %v814_v22  ;;  %v917_v33 = vadd.f32 %v1487_v42, %v846_v23 }
 0x103   :  { %v946_v34 = vmax.f32 %v882_v26, 0.0  ;;  %v978_v35 = vmax.f32 %v914_v27, 0.0  ;;  %v883_v36 = vadd.f32 %v1487_v42, %v812_v28  ;;  %v915_v37 = vadd.f32 %v1487_v42, %v844_v29 }
 0x104   :  { %1012 = vst [vmem:[%s1815_s6 + $0x30] sm:$0xff] %v948_v30  ;;  %1044 = vst [vmem:[%s1815_s6 + $0x130] sm:$0xff] %v980_v31  ;;  %v949_v38 = vmax.f32 %v885_v32, 0.0  ;;  %v981_v39 = vmax.f32 %v917_v33, 0.0 }
 0x105   :  { %1010 = vst [vmem:[%s1815_s6 + $0x20] sm:$0xff] %v946_v34  ;;  %1042 = vst [vmem:[%s1815_s6 + $0x120] sm:$0xff] %v978_v35  ;;  %v947_v41 = vmax.f32 %v883_v36, 0.0  ;;  %v979_v43 = vmax.f32 %v915_v37, 0.0  ;;  %v1150_v44 = vpop.f32.mrb[8].mxu0  ;;  %v1182_v45 = vpop.f32.mrb[8].mxu1 }
 0x106   :  { %1013 = vst [vmem:[%s1815_s6 + $0x38] sm:$0xff] %v949_v38  ;;  %1045 = vst [vmem:[%s1815_s6 + $0x138] sm:$0xff] %v981_v39  ;;  %v817_v46 = vmul.f32 %v1150_v44, %v1482_v40  ;;  %v849_v47 = vmul.f32 %v1182_v45, %v1482_v40  ;;  %v382_v48 = vpop.f32.mrb[9].mxu0  ;;  %v510_v49 = vpop.f32.mrb[9].mxu1 }
 0x107   :  { %1011 = vst [vmem:[%s1815_s6 + $0x28] sm:$0xff] %v947_v41  ;;  %1043 = vst [vmem:[%s1815_s6 + $0x128] sm:$0xff] %v979_v43  ;;  %v815_v50 = vmul.f32 %v1482_v40, %v382_v48  ;;  %v847_v51 = vmul.f32 %v1482_v40, %v510_v49  ;;  %v1151_v52 = vpop.f32.mrb[10].mxu0  ;;  %v1183_v53 = vpop.f32.mrb[10].mxu1 }
 0x108   :  { %v888_v54 = vadd.f32 %v1487_v42, %v817_v46  ;;  %v920_v55 = vadd.f32 %v1487_v42, %v849_v47  ;;  %v818_v56 = vmul.f32 %v1151_v52, %v1482_v40  ;;  %v850_v57 = vmul.f32 %v1183_v53, %v1482_v40  ;;  %v385_v58 = vpop.f32.mrb[11].mxu0  ;;  %v513_v59 = vpop.f32.mrb[11].mxu1 }
 0x109   :  { %v886_v60 = vadd.f32 %v1487_v42, %v815_v50  ;;  %v918_v61 = vadd.f32 %v1487_v42, %v847_v51  ;;  %v816_v62 = vmul.f32 %v1482_v40, %v385_v58  ;;  %v848_v63 = vmul.f32 %v1482_v40, %v513_v59 }
 0x10a   :  { %v952_v0 = vmax.f32 %v888_v54, 0.0  ;;  %v984_v1 = vmax.f32 %v920_v55, 0.0  ;;  %v889_v2 = vadd.f32 %v1487_v42, %v818_v56  ;;  %v921_v3 = vadd.f32 %v1487_v42, %v850_v57 }
 0x10b   :  { %v950_v4 = vmax.f32 %v886_v60, 0.0  ;;  %v982_v5 = vmax.f32 %v918_v61, 0.0  ;;  %v887_v6 = vadd.f32 %v1487_v42, %v816_v62  ;;  %v919_v7 = vadd.f32 %v1487_v42, %v848_v63 }
 0x10c   :  { %1016 = vst [vmem:[%s1815_s6 + $0x50] sm:$0xff] %v952_v0  ;;  %1048 = vst [vmem:[%s1815_s6 + $0x150] sm:$0xff] %v984_v1  ;;  %v953_v8 = vmax.f32 %v889_v2, 0.0  ;;  %v985_v9 = vmax.f32 %v921_v3, 0.0 }
 0x10d   :  { %1014 = vst [vmem:[%s1815_s6 + $0x40] sm:$0xff] %v950_v4  ;;  %1046 = vst [vmem:[%s1815_s6 + $0x140] sm:$0xff] %v982_v5  ;;  %v951_v10 = vmax.f32 %v887_v6, 0.0  ;;  %v983_v11 = vmax.f32 %v919_v7, 0.0  ;;  %v1154_v12 = vpop.f32.mrb[12].mxu0  ;;  %v1186_v13 = vpop.f32.mrb[12].mxu1 }
 0x10e   :  { %1017 = vst [vmem:[%s1815_s6 + $0x58] sm:$0xff] %v953_v8  ;;  %1049 = vst [vmem:[%s1815_s6 + $0x158] sm:$0xff] %v985_v9  ;;  %v821_v14 = vmul.f32 %v1154_v12, %v1482_v40  ;;  %v853_v15 = vmul.f32 %v1186_v13, %v1482_v40  ;;  %v398_v16 = vpop.f32.mrb[13].mxu0  ;;  %v526_v17 = vpop.f32.mrb[13].mxu1 }
 0x10f   :  { %1015 = vst [vmem:[%s1815_s6 + $0x48] sm:$0xff] %v951_v10  ;;  %1047 = vst [vmem:[%s1815_s6 + $0x148] sm:$0xff] %v983_v11  ;;  %v819_v18 = vmul.f32 %v1482_v40, %v398_v16  ;;  %v851_v19 = vmul.f32 %v1482_v40, %v526_v17  ;;  %v1155_v20 = vpop.f32.mrb[14].mxu0  ;;  %v1187_v21 = vpop.f32.mrb[14].mxu1 }
 0x110   :  { %v892_v22 = vadd.f32 %v1487_v42, %v821_v14  ;;  %v924_v23 = vadd.f32 %v1487_v42, %v853_v15  ;;  %v822_v24 = vmul.f32 %v1155_v20, %v1482_v40  ;;  %v854_v25 = vmul.f32 %v1187_v21, %v1482_v40  ;;  %v401_v26 = vpop.f32.mrb[15].mxu0  ;;  %v529_v27 = vpop.f32.mrb[15].mxu1 }
 0x111   :  { %v890_v28 = vadd.f32 %v1487_v42, %v819_v18  ;;  %v922_v29 = vadd.f32 %v1487_v42, %v851_v19  ;;  %v820_v30 = vmul.f32 %v1482_v40, %v401_v26  ;;  %v852_v31 = vmul.f32 %v1482_v40, %v529_v27 }
 0x112   :  { %v956_v32 = vmax.f32 %v892_v22, 0.0  ;;  %v988_v33 = vmax.f32 %v924_v23, 0.0  ;;  %v893_v34 = vadd.f32 %v1487_v42, %v822_v24  ;;  %v925_v35 = vadd.f32 %v1487_v42, %v854_v25 }
 0x113   :  { %v954_v36 = vmax.f32 %v890_v28, 0.0  ;;  %v986_v37 = vmax.f32 %v922_v29, 0.0  ;;  %v891_v38 = vadd.f32 %v1487_v42, %v820_v30  ;;  %v923_v39 = vadd.f32 %v1487_v42, %v852_v31 }
 0x114   :  { %1020 = vst [vmem:[%s1815_s6 + $0x70] sm:$0xff] %v956_v32  ;;  %1052 = vst [vmem:[%s1815_s6 + $0x170] sm:$0xff] %v988_v33  ;;  %v957_v41 = vmax.f32 %v893_v34, 0.0  ;;  %v989_v43 = vmax.f32 %v925_v35, 0.0 }
 0x115   :  { %1018 = vst [vmem:[%s1815_s6 + $0x60] sm:$0xff] %v954_v36  ;;  %1050 = vst [vmem:[%s1815_s6 + $0x160] sm:$0xff] %v986_v37  ;;  %v955_v44 = vmax.f32 %v891_v38, 0.0  ;;  %v987_v45 = vmax.f32 %v923_v39, 0.0  ;;  %v1158_v46 = vpop.f32.mrb[16].mxu0  ;;  %v1190_v47 = vpop.f32.mrb[16].mxu1 }
 0x116   :  { %1021 = vst [vmem:[%s1815_s6 + $0x78] sm:$0xff] %v957_v41  ;;  %1053 = vst [vmem:[%s1815_s6 + $0x178] sm:$0xff] %v989_v43  ;;  %v825_v48 = vmul.f32 %v1158_v46, %v1482_v40  ;;  %v857_v49 = vmul.f32 %v1190_v47, %v1482_v40  ;;  %v414_v50 = vpop.f32.mrb[17].mxu0  ;;  %v542_v51 = vpop.f32.mrb[17].mxu1 }
 0x117   :  { %1019 = vst [vmem:[%s1815_s6 + $0x68] sm:$0xff] %v955_v44  ;;  %1051 = vst [vmem:[%s1815_s6 + $0x168] sm:$0xff] %v987_v45  ;;  %v823_v52 = vmul.f32 %v1482_v40, %v414_v50  ;;  %v855_v53 = vmul.f32 %v1482_v40, %v542_v51  ;;  %v1159_v54 = vpop.f32.mrb[18].mxu0  ;;  %v1191_v55 = vpop.f32.mrb[18].mxu1 }
 0x118   :  { %v896_v56 = vadd.f32 %v1487_v42, %v825_v48  ;;  %v928_v57 = vadd.f32 %v1487_v42, %v857_v49  ;;  %v826_v58 = vmul.f32 %v1159_v54, %v1482_v40  ;;  %v858_v59 = vmul.f32 %v1191_v55, %v1482_v40  ;;  %v417_v60 = vpop.f32.mrb[19].mxu0  ;;  %v545_v61 = vpop.f32.mrb[19].mxu1 }
 0x119   :  { %v894_v62 = vadd.f32 %v1487_v42, %v823_v52  ;;  %v926_v63 = vadd.f32 %v1487_v42, %v855_v53  ;;  %v824_v0 = vmul.f32 %v1482_v40, %v417_v60  ;;  %v856_v1 = vmul.f32 %v1482_v40, %v545_v61 }
 0x11a   :  { %v960_v2 = vmax.f32 %v896_v56, 0.0  ;;  %v992_v3 = vmax.f32 %v928_v57, 0.0  ;;  %v897_v4 = vadd.f32 %v1487_v42, %v826_v58  ;;  %v929_v5 = vadd.f32 %v1487_v42, %v858_v59 }
 0x11b   :  { %v958_v6 = vmax.f32 %v894_v62, 0.0  ;;  %v990_v7 = vmax.f32 %v926_v63, 0.0  ;;  %v895_v8 = vadd.f32 %v1487_v42, %v824_v0  ;;  %v927_v9 = vadd.f32 %v1487_v42, %v856_v1 }
 0x11c   :  { %1024 = vst [vmem:[%s1815_s6 + $0x90] sm:$0xff] %v960_v2  ;;  %1056 = vst [vmem:[%s1815_s6 + $0x190] sm:$0xff] %v992_v3  ;;  %v961_v10 = vmax.f32 %v897_v4, 0.0  ;;  %v993_v11 = vmax.f32 %v929_v5, 0.0 }
 0x11d   :  { %1022 = vst [vmem:[%s1815_s6 + $0x80] sm:$0xff] %v958_v6  ;;  %1054 = vst [vmem:[%s1815_s6 + $0x180] sm:$0xff] %v990_v7  ;;  %v959_v12 = vmax.f32 %v895_v8, 0.0  ;;  %v991_v13 = vmax.f32 %v927_v9, 0.0  ;;  %v1162_v14 = vpop.f32.mrb[20].mxu0  ;;  %v1194_v15 = vpop.f32.mrb[20].mxu1 }
 0x11e   :  { %1025 = vst [vmem:[%s1815_s6 + $0x98] sm:$0xff] %v961_v10  ;;  %1057 = vst [vmem:[%s1815_s6 + $0x198] sm:$0xff] %v993_v11  ;;  %v829_v16 = vmul.f32 %v1162_v14, %v1482_v40  ;;  %v861_v17 = vmul.f32 %v1194_v15, %v1482_v40  ;;  %v430_v18 = vpop.f32.mrb[21].mxu0  ;;  %v558_v19 = vpop.f32.mrb[21].mxu1 }
 0x11f   :  { %1023 = vst [vmem:[%s1815_s6 + $0x88] sm:$0xff] %v959_v12  ;;  %1055 = vst [vmem:[%s1815_s6 + $0x188] sm:$0xff] %v991_v13  ;;  %v827_v20 = vmul.f32 %v1482_v40, %v430_v18  ;;  %v859_v21 = vmul.f32 %v1482_v40, %v558_v19  ;;  %v1163_v22 = vpop.f32.mrb[22].mxu0  ;;  %v1195_v23 = vpop.f32.mrb[22].mxu1 }
 0x120   :  { %v900_v24 = vadd.f32 %v1487_v42, %v829_v16  ;;  %v932_v25 = vadd.f32 %v1487_v42, %v861_v17  ;;  %v830_v26 = vmul.f32 %v1163_v22, %v1482_v40  ;;  %v862_v27 = vmul.f32 %v1195_v23, %v1482_v40  ;;  %v433_v28 = vpop.f32.mrb[23].mxu0  ;;  %v561_v29 = vpop.f32.mrb[23].mxu1 }
 0x121   :  { %v898_v30 = vadd.f32 %v1487_v42, %v827_v20  ;;  %v930_v31 = vadd.f32 %v1487_v42, %v859_v21  ;;  %v828_v32 = vmul.f32 %v1482_v40, %v433_v28  ;;  %v860_v33 = vmul.f32 %v1482_v40, %v561_v29 }
 0x122   :  { %v964_v34 = vmax.f32 %v900_v24, 0.0  ;;  %v996_v35 = vmax.f32 %v932_v25, 0.0  ;;  %v901_v36 = vadd.f32 %v1487_v42, %v830_v26  ;;  %v933_v37 = vadd.f32 %v1487_v42, %v862_v27 }
 0x123   :  { %v962_v38 = vmax.f32 %v898_v30, 0.0  ;;  %v994_v39 = vmax.f32 %v930_v31, 0.0  ;;  %v899_v41 = vadd.f32 %v1487_v42, %v828_v32  ;;  %v931_v43 = vadd.f32 %v1487_v42, %v860_v33 }
 0x124   :  { %1028 = vst [vmem:[%s1815_s6 + $0xb0] sm:$0xff] %v964_v34  ;;  %1060 = vst [vmem:[%s1815_s6 + $0x1b0] sm:$0xff] %v996_v35  ;;  %v965_v44 = vmax.f32 %v901_v36, 0.0  ;;  %v997_v45 = vmax.f32 %v933_v37, 0.0 }
 0x125   :  { %1026 = vst [vmem:[%s1815_s6 + $0xa0] sm:$0xff] %v962_v38  ;;  %1058 = vst [vmem:[%s1815_s6 + $0x1a0] sm:$0xff] %v994_v39  ;;  %v963_v46 = vmax.f32 %v899_v41, 0.0  ;;  %v995_v47 = vmax.f32 %v931_v43, 0.0  ;;  %v1166_v48 = vpop.f32.mrb[24].mxu0  ;;  %v1198_v49 = vpop.f32.mrb[24].mxu1 }
 0x126   :  { %1029 = vst [vmem:[%s1815_s6 + $0xb8] sm:$0xff] %v965_v44  ;;  %1061 = vst [vmem:[%s1815_s6 + $0x1b8] sm:$0xff] %v997_v45  ;;  %v833_v50 = vmul.f32 %v1166_v48, %v1482_v40  ;;  %v865_v51 = vmul.f32 %v1198_v49, %v1482_v40  ;;  %v446_v52 = vpop.f32.mrb[25].mxu0  ;;  %v574_v53 = vpop.f32.mrb[25].mxu1 }
 0x127   :  { %1027 = vst [vmem:[%s1815_s6 + $0xa8] sm:$0xff] %v963_v46  ;;  %1059 = vst [vmem:[%s1815_s6 + $0x1a8] sm:$0xff] %v995_v47  ;;  %v831_v54 = vmul.f32 %v1482_v40, %v446_v52  ;;  %v863_v55 = vmul.f32 %v1482_v40, %v574_v53  ;;  %v1167_v56 = vpop.f32.mrb[26].mxu0  ;;  %v1199_v57 = vpop.f32.mrb[26].mxu1 }
 0x128   :  { %v904_v58 = vadd.f32 %v1487_v42, %v833_v50  ;;  %v936_v59 = vadd.f32 %v1487_v42, %v865_v51  ;;  %v834_v60 = vmul.f32 %v1167_v56, %v1482_v40  ;;  %v866_v61 = vmul.f32 %v1199_v57, %v1482_v40  ;;  %v449_v62 = vpop.f32.mrb[27].mxu0  ;;  %v577_v63 = vpop.f32.mrb[27].mxu1 }
 0x129   :  { %v902_v0 = vadd.f32 %v1487_v42, %v831_v54  ;;  %v934_v1 = vadd.f32 %v1487_v42, %v863_v55  ;;  %v832_v2 = vmul.f32 %v1482_v40, %v449_v62  ;;  %v864_v3 = vmul.f32 %v1482_v40, %v577_v63 }
 0x12a   :  { %v968_v4 = vmax.f32 %v904_v58, 0.0  ;;  %v1000_v5 = vmax.f32 %v936_v59, 0.0  ;;  %v905_v6 = vadd.f32 %v1487_v42, %v834_v60  ;;  %v937_v7 = vadd.f32 %v1487_v42, %v866_v61 }
 0x12b   :  { %v966_v8 = vmax.f32 %v902_v0, 0.0  ;;  %v998_v9 = vmax.f32 %v934_v1, 0.0  ;;  %v903_v10 = vadd.f32 %v1487_v42, %v832_v2  ;;  %v935_v11 = vadd.f32 %v1487_v42, %v864_v3 }
 0x12c   :  { %1032 = vst [vmem:[%s1815_s6 + $0xd0] sm:$0xff] %v968_v4  ;;  %1064 = vst [vmem:[%s1815_s6 + $0x1d0] sm:$0xff] %v1000_v5  ;;  %v969_v12 = vmax.f32 %v905_v6, 0.0  ;;  %v1001_v13 = vmax.f32 %v937_v7, 0.0 }
 0x12d   :  { %1030 = vst [vmem:[%s1815_s6 + $0xc0] sm:$0xff] %v966_v8  ;;  %1062 = vst [vmem:[%s1815_s6 + $0x1c0] sm:$0xff] %v998_v9  ;;  %v967_v14 = vmax.f32 %v903_v10, 0.0  ;;  %v999_v15 = vmax.f32 %v935_v11, 0.0  ;;  %v1170_v16 = vpop.f32.mrb[28].mxu0  ;;  %v1202_v17 = vpop.f32.mrb[28].mxu1 }
 0x12e   :  { %1033 = vst [vmem:[%s1815_s6 + $0xd8] sm:$0xff] %v969_v12  ;;  %1065 = vst [vmem:[%s1815_s6 + $0x1d8] sm:$0xff] %v1001_v13  ;;  %v837_v18 = vmul.f32 %v1170_v16, %v1482_v40  ;;  %v869_v19 = vmul.f32 %v1202_v17, %v1482_v40  ;;  %v462_v20 = vpop.f32.mrb[29].mxu0  ;;  %v590_v21 = vpop.f32.mrb[29].mxu1 }
 0x12f   :  { %1031 = vst [vmem:[%s1815_s6 + $0xc8] sm:$0xff] %v967_v14  ;;  %1063 = vst [vmem:[%s1815_s6 + $0x1c8] sm:$0xff] %v999_v15  ;;  %v835_v22 = vmul.f32 %v1482_v40, %v462_v20  ;;  %v867_v23 = vmul.f32 %v1482_v40, %v590_v21  ;;  %v1171_v24 = vpop.f32.mrb[30].mxu0  ;;  %v1203_v25 = vpop.f32.mrb[30].mxu1 }
 0x130   :  { %v908_v26 = vadd.f32 %v1487_v42, %v837_v18  ;;  %v940_v27 = vadd.f32 %v1487_v42, %v869_v19  ;;  %v838_v28 = vmul.f32 %v1171_v24, %v1482_v40  ;;  %v870_v29 = vmul.f32 %v1203_v25, %v1482_v40  ;;  %v465_v30 = vpop.f32.mrb[31].mxu0  ;;  %v593_v31 = vpop.f32.mrb[31].mxu1 }
 0x131   :  { %v906_v32 = vadd.f32 %v1487_v42, %v835_v22  ;;  %v938_v33 = vadd.f32 %v1487_v42, %v867_v23  ;;  %v836_v34 = vmul.f32 %v1482_v40, %v465_v30  ;;  %v868_v35 = vmul.f32 %v1482_v40, %v593_v31 }
 0x132   :  { %v972_v36 = vmax.f32 %v908_v26, 0.0  ;;  %v1004_v37 = vmax.f32 %v940_v27, 0.0  ;;  %v909_v38 = vadd.f32 %v1487_v42, %v838_v28  ;;  %v941_v39 = vadd.f32 %v1487_v42, %v870_v29 }
 0x133   :  { %v970_v41 = vmax.f32 %v906_v32, 0.0  ;;  %v1002_v43 = vmax.f32 %v938_v33, 0.0  ;;  %v907_v44 = vadd.f32 %v1487_v42, %v836_v34  ;;  %v939_v45 = vadd.f32 %v1487_v42, %v868_v35 }
 0x134   :  { %1036 = vst [vmem:[%s1815_s6 + $0xf0] sm:$0xff] %v972_v36  ;;  %1068 = vst [vmem:[%s1815_s6 + $0x1f0] sm:$0xff] %v1004_v37  ;;  %v973_v40 = vmax.f32 %v909_v38, 0.0  ;;  %v1005_v46 = vmax.f32 %v941_v39, 0.0 }
 0x135   :  { %1034 = vst [vmem:[%s1815_s6 + $0xe0] sm:$0xff] %v970_v41  ;;  %1066 = vst [vmem:[%s1815_s6 + $0x1e0] sm:$0xff] %v1002_v43  ;;  %v971_v47 = vmax.f32 %v907_v44, 0.0  ;;  %v1003_v42 = vmax.f32 %v939_v45, 0.0 }
 0x136   :  { %1037 = vst [vmem:[%s1815_s6 + $0xf8] sm:$0xff] %v973_v40  ;;  %1069 = vst [vmem:[%s1815_s6 + $0x1f8] sm:$0xff] %v1005_v46 }
 0x137   :  { %1035 = vst [vmem:[%s1815_s6 + $0xe8] sm:$0xff] %v971_v47  ;;  %1067 = vst [vmem:[%s1815_s6 + $0x1e8] sm:$0xff] %v1003_v42 }

// kernel: _lambda_.20
= control target key start
LH: loop header
LB: loop body
LE: loop exit
PB: predicated region body
PF: predicated region fallthrough
CT: control target
= control target key end

     0   :  { %vm264_vm0 = vcmask 130048   ;;  %vm266_vm1 = vcmask 122880   ;;  %vm1546_vm2 = vcmask 1041409   ;;  %vm1548_vm3 = vcmask 1042434   ;;  %s3295_s0 = inlined_call_operand.vmem [shape: f32[128,9,16], index: 0, kind: input, shape index: {}]   ;;  %s3296_s1 = inlined_call_operand.vmem [shape: f32[128,16], index: 1, kind: output, shape index: {}]  }
   0x1   :  { %v8_v0 = vld [vmem:[%s3295_s0] sm:$0xff]  ;;  %v9_v1 = vld [vmem:[%s3295_s0 + $0x8] sm:$0x1]  ;;  %v10_v2 = vld [vmem:[%s3295_s0 + $0x10] sm:$0xff]  ;;  %vm1550_vm4 = vcmask 1043459   ;;  %vm1552_vm5 = vcmask 1044484  }
   0x2   :  { %v11_v3 = vld [vmem:[%s3295_s0 + $0x18] sm:$0x1]  ;;  %v12_v4 = vld [vmem:[%s3295_s0 + $0x20] sm:$0xff]  ;;  %v13_v5 = vld [vmem:[%s3295_s0 + $0x28] sm:$0x1]  ;;  %v265_v6 = vsel %vm264_vm0, %v8_v0, -inf }
   0x3   :  { %v267_v7 = vsel %vm266_vm1, %v9_v1, -inf  ;;  %v14_v8 = vld [vmem:[%s3295_s0 + $0x30] sm:$0xff]  ;;  %v275_v9 = vsel %vm264_vm0, %v10_v2, -inf  ;;  %v276_v10 = vsel %vm266_vm1, %v11_v3, -inf  ;;  %v284_v11 = vsel %vm264_vm0, %v12_v4, -inf  ;;  %v16_v14 = vld [vmem:[%s3295_s0 + $0x40] sm:$0xff] }
   0x4   :  { %v285_v12 = vsel %vm266_vm1, %v13_v5, -inf  ;;  %v15_v13 = vld [vmem:[%s3295_s0 + $0x38] sm:$0x1]  ;;  %v17_v15 = vld [vmem:[%s3295_s0 + $0x48] sm:$0x1]  ;;  %v268_v16 = vmax.f32 %v265_v6, %v267_v7  ;;  %v18_v17 = vld [vmem:[%s3295_s0 + $0x50] sm:$0xff]  ;;  %v277_v19 = vmax.f32 %v275_v9, %v276_v10 }
   0x5   :  { %v19_v18 = vld [vmem:[%s3295_s0 + $0x58] sm:$0x1]  ;;  %v286_v20 = vmax.f32 %v284_v11, %v285_v12  ;;  %v293_v21 = vsel %vm264_vm0, %v14_v8, -inf  ;;  %v294_v22 = vsel %vm266_vm1, %v15_v13, -inf  ;;  %v302_v23 = vsel %vm264_vm0, %v16_v14, -inf  ;;  %v20_v28 = vld [vmem:[%s3295_s0 + $0x60] sm:$0xff] }
   0x6   :  { %v303_v24 = vsel %vm266_vm1, %v17_v15, -inf  ;;  %v269_v25 = vrot.slane %v268_v16, 4  ;;  %v311_v26 = vsel %vm264_vm0, %v18_v17, -inf  ;;  %v312_v27 = vsel %vm266_vm1, %v19_v18, -inf  ;;  %v21_v29 = vld [vmem:[%s3295_s0 + $0x68] sm:$0x1] }
   0x7   :  { %v278_v30 = vrot.slane %v277_v19, 4  ;;  %v287_v31 = vrot.slane %v286_v20, 4  ;;  %v295_v32 = vmax.f32 %v293_v21, %v294_v22  ;;  %v304_v33 = vmax.f32 %v302_v23, %v303_v24  ;;  %v22_v38 = vld [vmem:[%s3295_s0 + $0x70] sm:$0xff]  ;;  %v23_v39 = vld [vmem:[%s3295_s0 + $0x78] sm:$0x1]  ;;  %v24_v44 = vld [vmem:[%s3295_s0 + $0x80] sm:$0xff] }
   0x8   :  { %v313_v34 = vmax.f32 %v311_v26, %v312_v27  ;;  %v270_v35 = vmax.f32 %v268_v16, %v269_v25  ;;  %v320_v36 = vsel %vm264_vm0, %v20_v28, -inf  ;;  %v321_v37 = vsel %vm266_vm1, %v21_v29, -inf  ;;  %v25_v45 = vld [vmem:[%s3295_s0 + $0x88] sm:$0x1]  ;;  %v26_v46 = vld [vmem:[%s3295_s0 + $0x90] sm:$0xff]  ;;  %v28_v0 = vld [vmem:[%s3295_s0 + $0xa0] sm:$0xff] }
   0x9   :  { %v279_v40 = vmax.f32 %v277_v19, %v278_v30  ;;  %v288_v41 = vmax.f32 %v286_v20, %v287_v31  ;;  %v296_v42 = vrot.slane %v295_v32, 4  ;;  %v305_v43 = vrot.slane %v304_v33, 4  ;;  %v27_v47 = vld [vmem:[%s3295_s0 + $0x98] sm:$0x1]  ;;  %v29_v1 = vld [vmem:[%s3295_s0 + $0xa8] sm:$0x1] }
   0xa   :  { %v314_v48 = vrot.slane %v313_v34, 4  ;;  %v322_v49 = vmax.f32 %v320_v36, %v321_v37  ;;  %v271_v50 = vrot.slane %v270_v35, 2  ;;  %v329_v51 = vsel %vm264_vm0, %v22_v38, -inf  ;;  %v30_v12 = vld [vmem:[%s3295_s0 + $0xb0] sm:$0xff]  ;;  %v31_v13 = vld [vmem:[%s3295_s0 + $0xb8] sm:$0x1] }
   0xb   :  { %v330_v52 = vsel %vm266_vm1, %v23_v39, -inf  ;;  %v280_v53 = vrot.slane %v279_v40, 2  ;;  %v289_v54 = vrot.slane %v288_v41, 2  ;;  %v297_v55 = vmax.f32 %v295_v32, %v296_v42  ;;  %v32_v16 = vld [vmem:[%s3295_s0 + $0xc0] sm:$0xff]  ;;  %v33_v17 = vld [vmem:[%s3295_s0 + $0xc8] sm:$0x1] }
   0xc   :  { %v306_v56 = vmax.f32 %v304_v33, %v305_v43  ;;  %v338_v57 = vsel %vm264_vm0, %v24_v44, -inf  ;;  %v339_v58 = vsel %vm266_vm1, %v25_v45, -inf  ;;  %v347_v59 = vsel %vm264_vm0, %v26_v46, -inf  ;;  %v34_v21 = vld [vmem:[%s3295_s0 + $0xd0] sm:$0xff]  ;;  %v35_v22 = vld [vmem:[%s3295_s0 + $0xd8] sm:$0x1] }
   0xd   :  { %v348_v60 = vsel %vm266_vm1, %v27_v47, -inf  ;;  %v315_v61 = vmax.f32 %v313_v34, %v314_v48  ;;  %v323_v62 = vrot.slane %v322_v49, 4  ;;  %v331_v63 = vmax.f32 %v329_v51, %v330_v52  ;;  %v36_v39 = vld [vmem:[%s3295_s0 + $0xe0] sm:$0xff]  ;;  %v38_v46 = vld [vmem:[%s3295_s0 + $0xf0] sm:$0xff]  ;;  %v41_v48 = vld [vmem:[%s3295_s0 + $0x108] sm:$0x1] }
   0xe   :  { %v272_v2 = vmax.f32 %v270_v35, %v271_v50  ;;  %v340_v3 = vmax.f32 %v338_v57, %v339_v58  ;;  %v349_v4 = vmax.f32 %v347_v59, %v348_v60  ;;  %v281_v5 = vmax.f32 %v279_v40, %v280_v53  ;;  %v37_v40 = vld [vmem:[%s3295_s0 + $0xe8] sm:$0x1]  ;;  %v40_v47 = vld [vmem:[%s3295_s0 + $0x100] sm:$0xff]  ;;  %v42_v53 = vld [vmem:[%s3295_s0 + $0x110] sm:$0xff] }
   0xf   :  { %v290_v6 = vmax.f32 %v288_v41, %v289_v54  ;;  %v298_v7 = vrot.slane %v297_v55, 2  ;;  %v307_v8 = vrot.slane %v306_v56, 2  ;;  %v316_v9 = vrot.slane %v315_v61, 2  ;;  %v39_v41 = vld [vmem:[%s3295_s0 + $0xf8] sm:$0x1] }
  0x10   :  { %v324_v10 = vmax.f32 %v322_v49, %v323_v62  ;;  %v332_v11 = vrot.slane %v331_v63, 4  ;;  %v356_v14 = vsel %vm264_vm0, %v28_v0, -inf  ;;  %v357_v15 = vsel %vm266_vm1, %v29_v1, -inf  ;;  %v43_v58 = vld [vmem:[%s3295_s0 + $0x118] sm:$0x1] }
  0x11   :  { %v273_v18 = vrot.slane %v272_v2, 1  ;;  %v341_v19 = vrot.slane %v340_v3, 4  ;;  %v350_v20 = vrot.slane %v349_v4, 4  ;;  %v282_v23 = vrot.slane %v281_v5, 1 }
  0x12   :  { %v291_v24 = vrot.slane %v290_v6, 1  ;;  %v299_v25 = vmax.f32 %v297_v55, %v298_v7  ;;  %v308_v26 = vmax.f32 %v306_v56, %v307_v8  ;;  %v317_v27 = vmax.f32 %v315_v61, %v316_v9 }
  0x13   :  { %v325_v28 = vrot.slane %v324_v10, 2  ;;  %v333_v29 = vmax.f32 %v331_v63, %v332_v11  ;;  %v358_v30 = vmax.f32 %v356_v14, %v357_v15  ;;  %v365_v31 = vsel %vm264_vm0, %v30_v12, -inf  ;;  %v44_v11 = vld [vmem:[%s3295_s0 + $0x120] sm:$0xff]  ;;  %v45_v12 = vld [vmem:[%s3295_s0 + $0x128] sm:$0x1] }
  0x14   :  { %v366_v32 = vsel %vm266_vm1, %v31_v13, -inf  ;;  %v374_v33 = vsel %vm264_vm0, %v32_v16, -inf  ;;  %v375_v34 = vsel %vm266_vm1, %v33_v17, -inf  ;;  %v342_v35 = vmax.f32 %v340_v3, %v341_v19 }
  0x15   :  { %v351_v36 = vmax.f32 %v349_v4, %v350_v20  ;;  %v383_v37 = vsel %vm264_vm0, %v34_v21, -inf  ;;  %v384_v38 = vsel %vm266_vm1, %v35_v22, -inf  ;;  %v1832_v42 = vmax.f32 %v272_v2, %v273_v18  ;;  %v46_v21 = vld [vmem:[%s3295_s0 + $0x130] sm:$0xff] }
  0x16   :  { %v1834_v43 = vmax.f32 %v281_v5, %v282_v23  ;;  %v1836_v44 = vmax.f32 %v290_v6, %v291_v24  ;;  %v300_v45 = vrot.slane %v299_v25, 1  ;;  %v309_v49 = vrot.slane %v308_v26, 1 }
  0x17   :  { %v359_v50 = vrot.slane %v358_v30, 4  ;;  %v367_v51 = vmax.f32 %v365_v31, %v366_v32  ;;  %v376_v52 = vmax.f32 %v374_v33, %v375_v34  ;;  %v318_v54 = vrot.slane %v317_v27, 1 }
  0x18   :  { %v326_v55 = vmax.f32 %v324_v10, %v325_v28  ;;  %v334_v56 = vrot.slane %v333_v29, 2  ;;  %v385_v57 = vmax.f32 %v383_v37, %v384_v38  ;;  %v343_v59 = vrot.slane %v342_v35, 2 }
  0x19   :  { %v352_v60 = vrot.slane %v351_v36, 2  ;;  %v392_v61 = vsel %vm264_vm0, %v36_v39, -inf  ;;  %v393_v62 = vsel %vm266_vm1, %v37_v40, -inf  ;;  %v401_v63 = vsel %vm264_vm0, %v38_v46, -inf  ;;  %v49_v40 = vld [vmem:[%s3295_s0 + $0x148] sm:$0x1] }
  0x1a   :  { %v402_v0 = vsel %vm266_vm1, %v39_v41, -inf  ;;  %v410_v1 = vsel %vm264_vm0, %v40_v47, -inf  ;;  %v411_v2 = vsel %vm266_vm1, %v41_v48, -inf  ;;  %v360_v3 = vmax.f32 %v358_v30, %v359_v50 }
  0x1b   :  { %v368_v4 = vrot.slane %v367_v51, 4  ;;  %v377_v5 = vrot.slane %v376_v52, 4  ;;  %v419_v6 = vsel %vm264_vm0, %v42_v53, -inf  ;;  %v1860_v7 = vmax.f32 %v299_v25, %v300_v45 }
  0x1c   :  { %v386_v8 = vrot.slane %v385_v57, 4  ;;  %v394_v9 = vmax.f32 %v392_v61, %v393_v62  ;;  %v420_v10 = vsel %vm266_vm1, %v43_v58, -inf  ;;  %v1869_v13 = vmax.f32 %v308_v26, %v309_v49  ;;  %v51_v61 = vld [vmem:[%s3295_s0 + $0x158] sm:$0x1] }
  0x1d   :  { %v327_v14 = vrot.slane %v326_v55, 1  ;;  %v403_v15 = vmax.f32 %v401_v63, %v402_v0  ;;  %v412_v16 = vmax.f32 %v410_v1, %v411_v2  ;;  %v1871_v17 = vmax.f32 %v317_v27, %v318_v54  ;;  %v47_v27 = vld [vmem:[%s3295_s0 + $0x138] sm:$0x1] }
  0x1e   :  { %v335_v18 = vmax.f32 %v333_v29, %v334_v56  ;;  %v344_v19 = vmax.f32 %v342_v35, %v343_v59  ;;  %v421_v20 = vmax.f32 %v419_v6, %v420_v10  ;;  %v353_v22 = vmax.f32 %v351_v36, %v352_v60  ;;  %v48_v35 = vld [vmem:[%s3295_s0 + $0x140] sm:$0xff]  ;;  %v50_v60 = vld [vmem:[%s3295_s0 + $0x150] sm:$0xff] }
  0x1f   :  { %v361_v23 = vrot.slane %v360_v3, 2  ;;  %v369_v24 = vmax.f32 %v367_v51, %v368_v4  ;;  %v378_v25 = vmax.f32 %v376_v52, %v377_v5  ;;  %v387_v28 = vmax.f32 %v385_v57, %v386_v8  ;;  %v52_v6 = vld [vmem:[%s3295_s0 + $0x160] sm:$0xff] }
  0x20   :  { %v395_v30 = vrot.slane %v394_v9, 4  ;;  %v428_v26 = vsel %vm264_vm0, %v44_v11, -inf  ;;  %v429_v31 = vsel %vm266_vm1, %v45_v12, -inf  ;;  %v1881_v29 = vmax.f32 %v326_v55, %v327_v14 }
  0x21   :  { %v404_v32 = vrot.slane %v403_v15, 4  ;;  %v413_v33 = vrot.slane %v412_v16, 4  ;;  %v430_v34 = vmax.f32 %v428_v26, %v429_v31  ;;  %v336_v36 = vrot.slane %v335_v18, 1  ;;  %v55_v26 = vld [vmem:[%s3295_s0 + $0x178] sm:$0x1] }
  0x22   :  { %v345_v37 = vrot.slane %v344_v19, 1  ;;  %v422_v38 = vrot.slane %v421_v20, 4  ;;  %v437_v39 = vsel %vm264_vm0, %v46_v21, -inf  ;;  %v354_v41 = vrot.slane %v353_v22, 1 }
  0x23   :  { %v362_v45 = vmax.f32 %v360_v3, %v361_v23  ;;  %v370_v46 = vrot.slane %v369_v24, 2  ;;  %v379_v47 = vrot.slane %v378_v25, 2  ;;  %v388_v48 = vrot.slane %v387_v28, 2  ;;  %v54_v23 = vld [vmem:[%s3295_s0 + $0x170] sm:$0xff] }
  0x24   :  { %v396_v49 = vmax.f32 %v394_v9, %v395_v30  ;;  %v431_v50 = vrot.slane %v430_v34, 4  ;;  %v438_v51 = vsel %vm266_vm1, %v47_v27, -inf  ;;  %v405_v52 = vmax.f32 %v403_v15, %v404_v32 }
  0x25   :  { %v414_v53 = vmax.f32 %v412_v16, %v413_v33  ;;  %v439_v54 = vmax.f32 %v437_v39, %v438_v51  ;;  %v446_v55 = vsel %vm264_vm0, %v48_v35, -inf  ;;  %v1892_v56 = vmax.f32 %v335_v18, %v336_v36  ;;  %v53_v18 = vld [vmem:[%s3295_s0 + $0x168] sm:$0x1] }
  0x26   :  { %v1894_v57 = vmax.f32 %v344_v19, %v345_v37  ;;  %v423_v58 = vmax.f32 %v421_v20, %v422_v38  ;;  %v447_v59 = vsel %vm266_vm1, %v49_v40, -inf  ;;  %v1903_v62 = vmax.f32 %v353_v22, %v354_v41 }
  0x27   :  { %v371_v63 = vmax.f32 %v369_v24, %v370_v46  ;;  %v432_v0 = vmax.f32 %v430_v34, %v431_v50  ;;  %v448_v1 = vmax.f32 %v446_v55, %v447_v59  ;;  %v363_v2 = vrot.slane %v362_v45, 1  ;;  %v57_v50 = vld [vmem:[%s3295_s0 + $0x188] sm:$0x1] }
  0x28   :  { %v380_v3 = vmax.f32 %v378_v25, %v379_v47  ;;  %v397_v4 = vrot.slane %v396_v49, 2  ;;  %v440_v5 = vrot.slane %v439_v54, 4  ;;  %v389_v8 = vmax.f32 %v387_v28, %v388_v48 }
  0x29   :  { %v406_v9 = vrot.slane %v405_v52, 2  ;;  %v415_v10 = vrot.slane %v414_v53, 2  ;;  %v449_v11 = vrot.slane %v448_v1, 4  ;;  %v424_v12 = vrot.slane %v423_v58, 2 }
  0x2a   :  { %v441_v14 = vmax.f32 %v439_v54, %v440_v5  ;;  %v455_v15 = vsel %vm264_vm0, %v50_v60, -inf  ;;  %v456_v16 = vsel %vm266_vm1, %v51_v61, -inf  ;;  %v372_v19 = vrot.slane %v371_v63, 1  ;;  %v58_v61 = vld [vmem:[%s3295_s0 + $0x190] sm:$0xff] }
  0x2b   :  { %v433_v20 = vrot.slane %v432_v0, 2  ;;  %v450_v21 = vmax.f32 %v448_v1, %v449_v11  ;;  %v457_v22 = vmax.f32 %v455_v15, %v456_v16  ;;  %v1916_v24 = vmax.f32 %v362_v45, %v363_v2 }
  0x2c   :  { %v381_v25 = vrot.slane %v380_v3, 1  ;;  %v442_v28 = vrot.slane %v441_v14, 2  ;;  %v464_v30 = vsel %vm264_vm0, %v52_v6, -inf  ;;  %v390_v31 = vrot.slane %v389_v8, 1 }
  0x2d   :  { %v398_v27 = vmax.f32 %v396_v49, %v397_v4  ;;  %v407_v32 = vmax.f32 %v405_v52, %v406_v9  ;;  %v451_v33 = vrot.slane %v450_v21, 2  ;;  %v416_v34 = vmax.f32 %v414_v53, %v415_v10  ;;  %v56_v49 = vld [vmem:[%s3295_s0 + $0x180] sm:$0xff] }
  0x2e   :  { %v425_v35 = vmax.f32 %v423_v58, %v424_v12  ;;  %v458_v36 = vrot.slane %v457_v22, 4  ;;  %v465_v37 = vsel %vm266_vm1, %v53_v18, -inf  ;;  %v434_v38 = vmax.f32 %v432_v0, %v433_v20  ;;  %v61_v20 = vld [vmem:[%s3295_s0 + $0x1a8] sm:$0x1] }
  0x2f   :  { %v443_v39 = vmax.f32 %v441_v14, %v442_v28  ;;  %v466_v40 = vmax.f32 %v464_v30, %v465_v37  ;;  %v473_v41 = vsel %vm264_vm0, %v54_v23, -inf  ;;  %v1924_v45 = vmax.f32 %v371_v63, %v372_v19  ;;  %v60_v14 = vld [vmem:[%s3295_s0 + $0x1a0] sm:$0xff]  ;;  %v62_v28 = vld [vmem:[%s3295_s0 + $0x1b0] sm:$0xff] }
  0x30   :  { %v1926_v46 = vmax.f32 %v380_v3, %v381_v25  ;;  %v459_v47 = vmax.f32 %v457_v22, %v458_v36  ;;  %v474_v48 = vsel %vm266_vm1, %v55_v26, -inf  ;;  %v1935_v51 = vmax.f32 %v389_v8, %v390_v31  ;;  %v59_v8 = vld [vmem:[%s3295_s0 + $0x198] sm:$0x1] }
  0x31   :  { %v399_v52 = vrot.slane %v398_v27, 1  ;;  %v452_v53 = vmax.f32 %v450_v21, %v451_v33  ;;  %v475_v54 = vmax.f32 %v473_v41, %v474_v48  ;;  %v408_v55 = vrot.slane %v407_v32, 1  ;;  %v64_v33 = vld [vmem:[%s3295_s0 + $0x1c0] sm:$0xff]  ;;  %v66_v48 = vld [vmem:[%s3295_s0 + $0x1d0] sm:$0xff] }
  0x32   :  { %v417_v58 = vrot.slane %v416_v34, 1  ;;  %v460_v59 = vrot.slane %v459_v47, 2  ;;  %v467_v60 = vrot.slane %v466_v40, 4  ;;  %v426_v63 = vrot.slane %v425_v35, 1 }
  0x33   :  { %v435_v0 = vrot.slane %v434_v38, 1  ;;  %v444_v1 = vrot.slane %v443_v39, 1  ;;  %v476_v2 = vrot.slane %v475_v54, 4  ;;  %v482_v5 = vsel %vm264_vm0, %v56_v49, -inf  ;;  %v67_v49 = vld [vmem:[%s3295_s0 + $0x1d8] sm:$0x1] }
  0x34   :  { %v461_v3 = vmax.f32 %v459_v47, %v460_v59  ;;  %v468_v4 = vmax.f32 %v466_v40, %v467_v60  ;;  %v483_v6 = vsel %vm266_vm1, %v57_v50, -inf  ;;  %v1945_v9 = vmax.f32 %v398_v27, %v399_v52 }
  0x35   :  { %v453_v10 = vrot.slane %v452_v53, 1  ;;  %v477_v11 = vmax.f32 %v475_v54, %v476_v2  ;;  %v484_v12 = vmax.f32 %v482_v5, %v483_v6  ;;  %v1950_v15 = vmax.f32 %v407_v32, %v408_v55  ;;  %v63_v32 = vld [vmem:[%s3295_s0 + $0x1b8] sm:$0x1] }
  0x36   :  { %v462_v16 = vrot.slane %v461_v3, 1  ;;  %v469_v18 = vrot.slane %v468_v4, 2  ;;  %v491_v19 = vsel %vm264_vm0, %v58_v61, -inf  ;;  %v1956_v21 = vmax.f32 %v416_v34, %v417_v58  ;;  %v68_v61 = vld [vmem:[%s3295_s0 + $0x1e0] sm:$0xff] }
  0x37   :  { %v1958_v22 = vmax.f32 %v425_v35, %v426_v63  ;;  %v1960_v23 = vmax.f32 %v434_v38, %v435_v0  ;;  %v478_v25 = vrot.slane %v477_v11, 2  ;;  %v1965_v30 = vmax.f32 %v443_v39, %v444_v1  ;;  %v65_v38 = vld [vmem:[%s3295_s0 + $0x1c8] sm:$0x1] }
  0x38   :  { %v470_v26 = vmax.f32 %v468_v4, %v469_v18  ;;  %v485_v31 = vrot.slane %v484_v12, 4  ;;  %v492_v27 = vsel %vm266_vm1, %v59_v8, -inf  ;;  %v1974_v34 = vmax.f32 %v452_v53, %v453_v10  ;;  %v69_v63 = vld [vmem:[%s3295_s0 + $0x1e8] sm:$0x1]  ;;  %v70_v10 = vld [vmem:[%s3295_s0 + $0x1f0] sm:$0xff] }
  0x39   :  { %v479_v35 = vmax.f32 %v477_v11, %v478_v25  ;;  %v493_v36 = vmax.f32 %v491_v19, %v492_v27  ;;  %v500_v37 = vsel %vm264_vm0, %v60_v14, -inf  ;;  %v1980_v39 = vmax.f32 %v461_v3, %v462_v16 }
  0x3a   :  { %v471_v40 = vrot.slane %v470_v26, 1  ;;  %v486_v41 = vmax.f32 %v484_v12, %v485_v31  ;;  %v501_v47 = vsel %vm266_vm1, %v61_v20, -inf  ;;  %v509_v54 = vsel %vm264_vm0, %v62_v28, -inf  ;;  %v71_v28 = vld [vmem:[%s3295_s0 + $0x1f8] sm:$0x1] }
  0x3b   :  { %v480_v50 = vrot.slane %v479_v35, 1  ;;  %v494_v52 = vrot.slane %v493_v36, 4  ;;  %v502_v53 = vmax.f32 %v500_v37, %v501_v47  ;;  %v510_v59 = vsel %vm266_vm1, %v63_v32, -inf }
  0x3c   :  { %v1990_v55 = vmax.f32 %v470_v26, %v471_v40  ;;  %v487_v58 = vrot.slane %v486_v41, 2  ;;  %v518_v60 = vsel %vm264_vm0, %v64_v33, -inf  ;;  %v511_v3 = vmax.f32 %v509_v54, %v510_v59  ;;  %v72_v26 = vld [vmem:[%s3295_s0 + $0x200] sm:$0xff]  ;;  %v73_v40 = vld [vmem:[%s3295_s0 + $0x208] sm:$0x1] }
  0x3d   :  { %v2000_v0 = vmax.f32 %v479_v35, %v480_v50  ;;  %v495_v1 = vmax.f32 %v493_v36, %v494_v52  ;;  %v503_v2 = vrot.slane %v502_v53, 4  ;;  %v519_v5 = vsel %vm266_vm1, %v65_v38, -inf }
  0x3e   :  { %v488_v4 = vmax.f32 %v486_v41, %v487_v58  ;;  %v527_v6 = vsel %vm264_vm0, %v66_v48, -inf  ;;  %v528_v8 = vsel %vm266_vm1, %v67_v49, -inf  ;;  %v512_v14 = vrot.slane %v511_v3, 4  ;;  %v74_v58 = vld [vmem:[%s3295_s0 + $0x210] sm:$0xff] }
  0x3f   :  { %v496_v11 = vrot.slane %v495_v1, 2  ;;  %v504_v12 = vmax.f32 %v502_v53, %v503_v2  ;;  %v520_v16 = vmax.f32 %v518_v60, %v519_v5  ;;  %v529_v19 = vmax.f32 %v527_v6, %v528_v8 }
  0x40   :  { %v489_v18 = vrot.slane %v488_v4, 1  ;;  %v536_v20 = vsel %vm264_vm0, %v68_v61, -inf  ;;  %v537_v25 = vsel %vm266_vm1, %v69_v63, -inf  ;;  %v513_v32 = vmax.f32 %v511_v3, %v512_v14  ;;  %v77_v14 = vld [vmem:[%s3295_s0 + $0x228] sm:$0x1] }
  0x41   :  { %v497_v31 = vmax.f32 %v495_v1, %v496_v11  ;;  %v505_v27 = vrot.slane %v504_v12, 2  ;;  %v521_v33 = vrot.slane %v520_v16, 4  ;;  %v530_v36 = vrot.slane %v529_v19, 4  ;;  %v75_v1 = vld [vmem:[%s3295_s0 + $0x218] sm:$0x1] }
  0x42   :  { %v2016_v35 = vmax.f32 %v488_v4, %v489_v18  ;;  %v538_v37 = vmax.f32 %v536_v20, %v537_v25  ;;  %v545_v38 = vsel %vm264_vm0, %v70_v10, -inf  ;;  %v514_v48 = vrot.slane %v513_v32, 2 }
  0x43   :  { %v498_v41 = vrot.slane %v497_v31, 1  ;;  %v506_v47 = vmax.f32 %v504_v12, %v505_v27  ;;  %v522_v49 = vmax.f32 %v520_v16, %v521_v33  ;;  %v531_v50 = vmax.f32 %v529_v19, %v530_v36  ;;  %v76_v12 = vld [vmem:[%s3295_s0 + $0x220] sm:$0xff]  ;;  %v78_v27 = vld [vmem:[%s3295_s0 + $0x230] sm:$0xff] }
  0x44   :  { %v539_v52 = vrot.slane %v538_v37, 4  ;;  %v546_v53 = vsel %vm266_vm1, %v71_v28, -inf  ;;  %v554_v54 = vsel %vm264_vm0, %v72_v26, -inf  ;;  %v515_v61 = vmax.f32 %v513_v32, %v514_v48  ;;  %v79_v32 = vld [vmem:[%s3295_s0 + $0x238] sm:$0x1] }
  0x45   :  { %v2027_v59 = vmax.f32 %v497_v31, %v498_v41  ;;  %v507_v60 = vrot.slane %v506_v47, 1  ;;  %v523_v63 = vrot.slane %v522_v49, 2  ;;  %v532_v2 = vrot.slane %v531_v50, 2 }
  0x46   :  { %v540_v3 = vmax.f32 %v538_v37, %v539_v52  ;;  %v547_v4 = vmax.f32 %v545_v38, %v546_v53  ;;  %v555_v5 = vsel %vm266_vm1, %v73_v40, -inf  ;;  %v516_v8 = vrot.slane %v515_v61, 1 }
  0x47   :  { %v2033_v6 = vmax.f32 %v506_v47, %v507_v60  ;;  %v524_v10 = vmax.f32 %v522_v49, %v523_v63  ;;  %v556_v11 = vmax.f32 %v554_v54, %v555_v5  ;;  %v533_v16 = vmax.f32 %v531_v50, %v532_v2  ;;  %v80_v49 = vld [vmem:[%s3295_s0 + $0x240] sm:$0xff]  ;;  %v81_v50 = vld [vmem:[%s3295_s0 + $0x248] sm:$0x1]  ;;  %v82_v2 = vld [vmem:[%s3295_s0 + $0x250] sm:$0xff] }
  0x48   :  { %v541_v18 = vrot.slane %v540_v3, 2  ;;  %v548_v19 = vrot.slane %v547_v4, 4  ;;  %v563_v20 = vsel %vm264_vm0, %v74_v58, -inf  ;;  %v2042_v25 = vmax.f32 %v515_v61, %v516_v8 }
  0x49   :  { %v525_v28 = vrot.slane %v524_v10, 1  ;;  %v557_v26 = vrot.slane %v556_v11, 4  ;;  %v564_v31 = vsel %vm266_vm1, %v75_v1, -inf  ;;  %v534_v33 = vrot.slane %v533_v16, 1 }
  0x4a   :  { %v542_v36 = vmax.f32 %v540_v3, %v541_v18  ;;  %v549_v37 = vmax.f32 %v547_v4, %v548_v19  ;;  %v565_v38 = vmax.f32 %v563_v20, %v564_v31  ;;  %v572_v47 = vsel %vm264_vm0, %v76_v12, -inf  ;;  %v83_v3 = vld [vmem:[%s3295_s0 + $0x258] sm:$0x1]  ;;  %v84_v18 = vld [vmem:[%s3295_s0 + $0x260] sm:$0xff]  ;;  %v85_v31 = vld [vmem:[%s3295_s0 + $0x268] sm:$0x1] }
  0x4b   :  { %v2051_v40 = vmax.f32 %v524_v10, %v525_v28  ;;  %v558_v41 = vmax.f32 %v556_v11, %v557_v26  ;;  %v573_v48 = vsel %vm266_vm1, %v77_v14, -inf  ;;  %v2061_v52 = vmax.f32 %v533_v16, %v534_v33 }
  0x4c   :  { %v543_v53 = vrot.slane %v542_v36, 1  ;;  %v550_v54 = vrot.slane %v549_v37, 2  ;;  %v566_v58 = vrot.slane %v565_v38, 4  ;;  %v574_v61 = vmax.f32 %v572_v47, %v573_v48 }
  0x4d   :  { %v559_v60 = vrot.slane %v558_v41, 2  ;;  %v581_v63 = vsel %vm264_vm0, %v78_v27, -inf  ;;  %v582_v1 = vsel %vm266_vm1, %v79_v32, -inf  ;;  %v590_v14 = vsel %vm264_vm0, %v80_v49, -inf  ;;  %v87_v49 = vld [vmem:[%s3295_s0 + $0x278] sm:$0x1] }
  0x4e   :  { %v2071_v4 = vmax.f32 %v542_v36, %v543_v53  ;;  %v551_v5 = vmax.f32 %v549_v37, %v550_v54  ;;  %v567_v8 = vmax.f32 %v565_v38, %v566_v58  ;;  %v583_v10 = vmax.f32 %v581_v63, %v582_v1  ;;  %v86_v37 = vld [vmem:[%s3295_s0 + $0x270] sm:$0xff] }
  0x4f   :  { %v560_v11 = vmax.f32 %v558_v41, %v559_v60  ;;  %v575_v12 = vrot.slane %v574_v61, 4  ;;  %v591_v16 = vsel %vm266_vm1, %v81_v50, -inf  ;;  %v599_v33 = vsel %vm264_vm0, %v82_v2, -inf  ;;  %v88_v2 = vld [vmem:[%s3295_s0 + $0x280] sm:$0xff] }
  0x50   :  { %v552_v19 = vrot.slane %v551_v5, 1  ;;  %v568_v20 = vrot.slane %v567_v8, 2  ;;  %v584_v28 = vrot.slane %v583_v10, 4  ;;  %v592_v26 = vmax.f32 %v590_v14, %v591_v16 }
  0x51   :  { %v561_v27 = vrot.slane %v560_v11, 1  ;;  %v576_v32 = vmax.f32 %v574_v61, %v575_v12  ;;  %v600_v36 = vsel %vm266_vm1, %v83_v3, -inf  ;;  %v608_v58 = vsel %vm264_vm0, %v84_v18, -inf  ;;  %v89_v3 = vld [vmem:[%s3295_s0 + $0x288] sm:$0x1] }
  0x52   :  { %v2086_v38 = vmax.f32 %v551_v5, %v552_v19  ;;  %v569_v41 = vmax.f32 %v567_v8, %v568_v20  ;;  %v585_v47 = vmax.f32 %v583_v10, %v584_v28  ;;  %v593_v48 = vrot.slane %v592_v26, 4  ;;  %v90_v19 = vld [vmem:[%s3295_s0 + $0x290] sm:$0xff] }
  0x53   :  { %v2091_v50 = vmax.f32 %v560_v11, %v561_v27  ;;  %v577_v53 = vrot.slane %v576_v32, 2  ;;  %v601_v54 = vmax.f32 %v599_v33, %v600_v36  ;;  %v609_v1 = vsel %vm266_vm1, %v85_v31, -inf  ;;  %v91_v27 = vld [vmem:[%s3295_s0 + $0x298] sm:$0x1] }
  0x54   :  { %v570_v60 = vrot.slane %v569_v41, 1  ;;  %v586_v61 = vrot.slane %v585_v47, 2  ;;  %v594_v63 = vmax.f32 %v592_v26, %v593_v48  ;;  %v610_v10 = vmax.f32 %v608_v58, %v609_v1  ;;  %v94_v1 = vld [vmem:[%s3295_s0 + $0x2b0] sm:$0xff] }
  0x55   :  { %v578_v5 = vmax.f32 %v576_v32, %v577_v53  ;;  %v602_v8 = vrot.slane %v601_v54, 4  ;;  %v617_v11 = vsel %vm264_vm0, %v86_v37, -inf  ;;  %v618_v18 = vsel %vm266_vm1, %v87_v49, -inf }
  0x56   :  { %v2102_v12 = vmax.f32 %v569_v41, %v570_v60  ;;  %v587_v14 = vmax.f32 %v585_v47, %v586_v61  ;;  %v595_v16 = vrot.slane %v594_v63, 2  ;;  %v611_v26 = vrot.slane %v610_v10, 4  ;;  %v92_v41 = vld [vmem:[%s3295_s0 + $0x2a0] sm:$0xff] }
  0x57   :  { %v579_v20 = vrot.slane %v578_v5, 1  ;;  %v603_v28 = vmax.f32 %v601_v54, %v602_v8  ;;  %v619_v31 = vmax.f32 %v617_v11, %v618_v18  ;;  %v626_v36 = vsel %vm264_vm0, %v88_v2, -inf  ;;  %v93_v54 = vld [vmem:[%s3295_s0 + $0x2a8] sm:$0x1] }
  0x58   :  { %v588_v32 = vrot.slane %v587_v14, 1  ;;  %v596_v33 = vmax.f32 %v594_v63, %v595_v16  ;;  %v627_v37 = vsel %vm266_vm1, %v89_v3, -inf  ;;  %v612_v49 = vmax.f32 %v610_v10, %v611_v26  ;;  %v95_v10 = vld [vmem:[%s3295_s0 + $0x2b8] sm:$0x1] }
  0x59   :  { %v2116_v47 = vmax.f32 %v578_v5, %v579_v20  ;;  %v604_v48 = vrot.slane %v603_v28, 2  ;;  %v620_v53 = vrot.slane %v619_v31, 4  ;;  %v628_v61 = vmax.f32 %v626_v36, %v627_v37 }
  0x5a   :  { %v2121_v58 = vmax.f32 %v587_v14, %v588_v32  ;;  %v597_v60 = vrot.slane %v596_v33, 1  ;;  %v635_v63 = vsel %vm264_vm0, %v90_v19, -inf  ;;  %v613_v3 = vrot.slane %v612_v49, 2 }
  0x5b   :  { %v605_v2 = vmax.f32 %v603_v28, %v604_v48  ;;  %v621_v5 = vmax.f32 %v619_v31, %v620_v53  ;;  %v636_v8 = vsel %vm266_vm1, %v91_v27, -inf  ;;  %v629_v14 = vrot.slane %v628_v61, 4  ;;  %v96_v28 = vld [vmem:[%s3295_s0 + $0x2c0] sm:$0xff]  ;;  %v97_v31 = vld [vmem:[%s3295_s0 + $0x2c8] sm:$0x1] }
  0x5c   :  { %3297 = vst [vmem:[#allocation2_spill] sm:$0xff] %v2121_v58  ;;  %v2131_v11 = vmax.f32 %v596_v33, %v597_v60  ;;  %v637_v16 = vmax.f32 %v635_v63, %v636_v8  ;;  %v644_v18 = vsel %vm264_vm0, %v92_v41, -inf  ;;  %v614_v20 = vmax.f32 %v612_v49, %v613_v3  ;;  %v99_v60 = vld [vmem:[%s3295_s0 + $0x2d8] sm:$0x1] }
  0x5d   :  { %v606_v19 = vrot.slane %v605_v2, 1  ;;  %v622_v26 = vrot.slane %v621_v5, 2  ;;  %v645_v32 = vsel %vm266_vm1, %v93_v54, -inf  ;;  %v630_v27 = vmax.f32 %v628_v61, %v629_v14  ;;  %v98_v54 = vld [vmem:[%s3295_s0 + $0x2d0] sm:$0xff] }
  0x5e   :  { %3298 = vst [vmem:[#allocation3_spill] sm:$0xff] %v2131_v11  ;;  %v638_v33 = vrot.slane %v637_v16, 4  ;;  %v646_v36 = vmax.f32 %v644_v18, %v645_v32  ;;  %v653_v37 = vsel %vm264_vm0, %v94_v1, -inf  ;;  %v615_v41 = vrot.slane %v614_v20, 1  ;;  %v101_v18 = vld [vmem:[%s3295_s0 + $0x2e8] sm:$0x1] }
  0x5f   :  { %v2142_v48 = vmax.f32 %v605_v2, %v606_v19  ;;  %v623_v49 = vmax.f32 %v621_v5, %v622_v26  ;;  %v654_v53 = vsel %vm266_vm1, %v95_v10, -inf  ;;  %v631_v63 = vrot.slane %v630_v27, 2  ;;  %v100_v10 = vld [vmem:[%s3295_s0 + $0x2e0] sm:$0xff] }
  0x60   :  { %v639_v61 = vmax.f32 %v637_v16, %v638_v33  ;;  %v647_v3 = vrot.slane %v646_v36, 4  ;;  %v655_v8 = vmax.f32 %v653_v37, %v654_v53  ;;  %v2151_v14 = vmax.f32 %v614_v20, %v615_v41 }
  0x61   :  { %3299 = vst [vmem:[#allocation4_spill] sm:$0xff] %v2142_v48  ;;  %v624_v1 = vrot.slane %v623_v49, 1  ;;  %v662_v2 = vsel %vm264_vm0, %v96_v28, -inf  ;;  %v663_v5 = vsel %vm266_vm1, %v97_v31, -inf  ;;  %v632_v19 = vmax.f32 %v630_v27, %v631_v63  ;;  %v102_v31 = vld [vmem:[%s3295_s0 + $0x2f0] sm:$0xff] }
  0x62   :  { %3300 = vst [vmem:[#allocation5_spill] sm:$0xff] %v2151_v14  ;;  %v640_v26 = vrot.slane %v639_v61, 2  ;;  %v648_v16 = vmax.f32 %v646_v36, %v647_v3  ;;  %v656_v32 = vrot.slane %v655_v8, 4  ;;  %v664_v20 = vmax.f32 %v662_v2, %v663_v5  ;;  %v103_v27 = vld [vmem:[%s3295_s0 + $0x2f8] sm:$0x1] }
  0x63   :  { %v2161_v33 = vmax.f32 %v623_v49, %v624_v1  ;;  %v671_v37 = vsel %vm264_vm0, %v98_v54, -inf  ;;  %v672_v28 = vsel %vm266_vm1, %v99_v60, -inf  ;;  %v633_v41 = vrot.slane %v632_v19, 1 }
  0x64   :  { %v641_v53 = vmax.f32 %v639_v61, %v640_v26  ;;  %v649_v14 = vrot.slane %v648_v16, 2  ;;  %v657_v48 = vmax.f32 %v655_v8, %v656_v32  ;;  %v665_v36 = vrot.slane %v664_v20, 4  ;;  %v104_v61 = vld [vmem:[%s3295_s0 + $0x300] sm:$0xff]  ;;  %v105_v8 = vld [vmem:[%s3295_s0 + $0x308] sm:$0x1] }
  0x65   :  { %3301 = vst [vmem:[#allocation6_spill] sm:$0xff] %v2161_v33  ;;  %v673_v49 = vmax.f32 %v671_v37, %v672_v28  ;;  %v680_v63 = vsel %vm264_vm0, %v100_v10, -inf  ;;  %v681_v54 = vsel %vm266_vm1, %v101_v18, -inf  ;;  %v2173_v3 = vmax.f32 %v632_v19, %v633_v41  ;;  %v107_v28 = vld [vmem:[%s3295_s0 + $0x318] sm:$0x1] }
  0x66   :  { %v642_v60 = vrot.slane %v641_v53, 1  ;;  %v650_v1 = vmax.f32 %v648_v16, %v649_v14  ;;  %v658_v2 = vrot.slane %v657_v48, 2  ;;  %v666_v5 = vmax.f32 %v664_v20, %v665_v36  ;;  %v106_v16 = vld [vmem:[%s3295_s0 + $0x310] sm:$0xff] }
  0x67   :  { %3302 = vst [vmem:[#allocation7_spill] sm:$0xff] %v2173_v3  ;;  %v674_v26 = vrot.slane %v673_v49, 4  ;;  %v682_v32 = vmax.f32 %v680_v63, %v681_v54  ;;  %v689_v10 = vsel %vm264_vm0, %v102_v31, -inf  ;;  %v690_v14 = vsel %vm266_vm1, %v103_v27, -inf  ;;  %v108_v27 = vld [vmem:[%s3295_s0 + $0x320] sm:$0xff] }
  0x68   :  { %v2182_v37 = vmax.f32 %v641_v53, %v642_v60  ;;  %v651_v18 = vrot.slane %v650_v1, 1  ;;  %v659_v19 = vmax.f32 %v657_v48, %v658_v2  ;;  %v667_v41 = vrot.slane %v666_v5, 2  ;;  %v109_v60 = vld [vmem:[%s3295_s0 + $0x328] sm:$0x1] }
  0x69   :  { %v675_v20 = vmax.f32 %v673_v49, %v674_v26  ;;  %v683_v36 = vrot.slane %v682_v32, 4  ;;  %v691_v63 = vmax.f32 %v689_v10, %v690_v14  ;;  %v698_v53 = vsel %vm264_vm0, %v104_v61, -inf }
  0x6a   :  { %3303 = vst [vmem:[#allocation8_spill] sm:$0xff] %v2182_v37  ;;  %v2191_v54 = vmax.f32 %v650_v1, %v651_v18  ;;  %v660_v31 = vrot.slane %v659_v19, 1  ;;  %v699_v48 = vsel %vm266_vm1, %v105_v8, -inf  ;;  %v668_v2 = vmax.f32 %v666_v5, %v667_v41  ;;  %v110_v8 = vld [vmem:[%s3295_s0 + $0x330] sm:$0xff]  ;;  %v111_v5 = vld [vmem:[%s3295_s0 + $0x338] sm:$0x1] }
  0x6b   :  { %v676_v33 = vrot.slane %v675_v20, 2  ;;  %v684_v49 = vmax.f32 %v682_v32, %v683_v36  ;;  %v692_v26 = vrot.slane %v691_v63, 4  ;;  %v700_v1 = vmax.f32 %v698_v53, %v699_v48 }
  0x6c   :  { %3304 = vst [vmem:[#allocation9_spill] sm:$0xff] %v2191_v54  ;;  %v2201_v10 = vmax.f32 %v659_v19, %v660_v31  ;;  %v707_v18 = vsel %vm264_vm0, %v106_v16, -inf  ;;  %v708_v61 = vsel %vm266_vm1, %v107_v28, -inf  ;;  %v669_v14 = vrot.slane %v668_v2, 1 }
  0x6d   :  { %v677_v54 = vmax.f32 %v675_v20, %v676_v33  ;;  %v685_v11 = vrot.slane %v684_v49, 2  ;;  %v693_v37 = vmax.f32 %v691_v63, %v692_v26  ;;  %v701_v32 = vrot.slane %v700_v1, 4  ;;  %v112_v33 = vld [vmem:[%s3295_s0 + $0x340] sm:$0xff]  ;;  %v113_v20 = vld [vmem:[%s3295_s0 + $0x348] sm:$0x1] }
  0x6e   :  { %3305 = vst [vmem:[#allocation10_spill] sm:$0xff] %v2201_v10  ;;  %v709_v19 = vmax.f32 %v707_v18, %v708_v61  ;;  %v716_v41 = vsel %vm264_vm0, %v108_v27, -inf  ;;  %v717_v16 = vsel %vm266_vm1, %v109_v60, -inf  ;;  %v2213_v36 = vmax.f32 %v668_v2, %v669_v14  ;;  %v115_v61 = vld [vmem:[%s3295_s0 + $0x358] sm:$0x1] }
  0x6f   :  { %v678_v28 = vrot.slane %v677_v54, 1  ;;  %v686_v31 = vmax.f32 %v684_v49, %v685_v11  ;;  %v694_v53 = vrot.slane %v693_v37, 2  ;;  %v702_v63 = vmax.f32 %v700_v1, %v701_v32  ;;  %v114_v49 = vld [vmem:[%s3295_s0 + $0x350] sm:$0xff] }
  0x70   :  { %3306 = vst [vmem:[#allocation11_spill] sm:$0xff] %v2213_v36  ;;  %v710_v48 = vrot.slane %v709_v19, 4  ;;  %v718_v26 = vmax.f32 %v716_v41, %v717_v16  ;;  %v725_v27 = vsel %vm264_vm0, %v110_v8, -inf  ;;  %v726_v11 = vsel %vm266_vm1, %v111_v5, -inf  ;;  %v116_v5 = vld [vmem:[%s3295_s0 + $0x360] sm:$0xff] }
  0x71   :  { %v2222_v18 = vmax.f32 %v677_v54, %v678_v28  ;;  %v687_v60 = vrot.slane %v686_v31, 1  ;;  %v695_v2 = vmax.f32 %v693_v37, %v694_v53  ;;  %v703_v14 = vrot.slane %v702_v63, 2  ;;  %v117_v28 = vld [vmem:[%s3295_s0 + $0x368] sm:$0x1] }
  0x72   :  { %v711_v1 = vmax.f32 %v709_v19, %v710_v48  ;;  %v719_v32 = vrot.slane %v718_v26, 4  ;;  %v727_v41 = vmax.f32 %v725_v27, %v726_v11  ;;  %v734_v8 = vsel %vm264_vm0, %v112_v33, -inf }
  0x73   :  { %3307 = vst [vmem:[#allocation12_spill] sm:$0xff] %v2222_v18  ;;  %v2231_v16 = vmax.f32 %v686_v31, %v687_v60  ;;  %v696_v54 = vrot.slane %v695_v2, 1  ;;  %v735_v37 = vsel %vm266_vm1, %v113_v20, -inf  ;;  %v704_v53 = vmax.f32 %v702_v63, %v703_v14  ;;  %v118_v20 = vld [vmem:[%s3295_s0 + $0x370] sm:$0xff]  ;;  %v119_v63 = vld [vmem:[%s3295_s0 + $0x378] sm:$0x1] }
  0x74   :  { %v712_v18 = vrot.slane %v711_v1, 2  ;;  %v720_v19 = vmax.f32 %v718_v26, %v719_v32  ;;  %v728_v48 = vrot.slane %v727_v41, 4  ;;  %v736_v31 = vmax.f32 %v734_v8, %v735_v37 }
  0x75   :  { %3308 = vst [vmem:[#allocation13_spill] sm:$0xff] %v2231_v16  ;;  %v2241_v27 = vmax.f32 %v695_v2, %v696_v54  ;;  %v743_v60 = vsel %vm264_vm0, %v114_v49, -inf  ;;  %v744_v33 = vsel %vm266_vm1, %v115_v61, -inf  ;;  %v705_v11 = vrot.slane %v704_v53, 1 }
  0x76   :  { %v713_v16 = vmax.f32 %v711_v1, %v712_v18  ;;  %v721_v36 = vrot.slane %v720_v19, 2  ;;  %v729_v10 = vmax.f32 %v727_v41, %v728_v48  ;;  %v737_v26 = vrot.slane %v736_v31, 4  ;;  %v120_v18 = vld [vmem:[%s3295_s0 + $0x380] sm:$0xff]  ;;  %v121_v1 = vld [vmem:[%s3295_s0 + $0x388] sm:$0x1] }
  0x77   :  { %3309 = vst [vmem:[#allocation14_spill] sm:$0xff] %v2241_v27  ;;  %v745_v2 = vmax.f32 %v743_v60, %v744_v33  ;;  %v752_v14 = vsel %vm264_vm0, %v116_v5, -inf  ;;  %v753_v49 = vsel %vm266_vm1, %v117_v28, -inf  ;;  %v2253_v32 = vmax.f32 %v704_v53, %v705_v11  ;;  %v123_v33 = vld [vmem:[%s3295_s0 + $0x398] sm:$0x1] }
  0x78   :  { %v714_v61 = vrot.slane %v713_v16, 1  ;;  %v722_v54 = vmax.f32 %v720_v19, %v721_v36  ;;  %v730_v8 = vrot.slane %v729_v10, 2  ;;  %v738_v41 = vmax.f32 %v736_v31, %v737_v26  ;;  %v122_v19 = vld [vmem:[%s3295_s0 + $0x390] sm:$0xff] }
  0x79   :  { %3310 = vst [vmem:[#allocation15_spill] sm:$0xff] %v2253_v32  ;;  %v746_v37 = vrot.slane %v745_v2, 4  ;;  %v754_v48 = vmax.f32 %v752_v14, %v753_v49  ;;  %v761_v5 = vsel %vm264_vm0, %v118_v20, -inf  ;;  %v762_v36 = vsel %vm266_vm1, %v119_v63, -inf  ;;  %v124_v63 = vld [vmem:[%s3295_s0 + $0x3a0] sm:$0xff] }
  0x7a   :  { %v2262_v60 = vmax.f32 %v713_v16, %v714_v61  ;;  %v723_v28 = vrot.slane %v722_v54, 1  ;;  %v731_v53 = vmax.f32 %v729_v10, %v730_v8  ;;  %v739_v11 = vrot.slane %v738_v41, 2  ;;  %v125_v61 = vld [vmem:[%s3295_s0 + $0x3a8] sm:$0x1] }
  0x7b   :  { %v747_v31 = vmax.f32 %v745_v2, %v746_v37  ;;  %v755_v26 = vrot.slane %v754_v48, 4  ;;  %v763_v14 = vmax.f32 %v761_v5, %v762_v36  ;;  %v770_v20 = vsel %vm264_vm0, %v120_v18, -inf }
  0x7c   :  { %3311 = vst [vmem:[#allocation16_spill] sm:$0xff] %v2262_v60  ;;  %v2271_v49 = vmax.f32 %v722_v54, %v723_v28  ;;  %v732_v16 = vrot.slane %v731_v53, 1  ;;  %v771_v10 = vsel %vm266_vm1, %v121_v1, -inf  ;;  %v740_v8 = vmax.f32 %v738_v41, %v739_v11  ;;  %v126_v1 = vld [vmem:[%s3295_s0 + $0x3b0] sm:$0xff]  ;;  %v127_v41 = vld [vmem:[%s3295_s0 + $0x3b8] sm:$0x1] }
  0x7d   :  { %v748_v27 = vrot.slane %v747_v31, 2  ;;  %v756_v2 = vmax.f32 %v754_v48, %v755_v26  ;;  %v764_v37 = vrot.slane %v763_v14, 4  ;;  %v772_v54 = vmax.f32 %v770_v20, %v771_v10 }
  0x7e   :  { %3312 = vst [vmem:[#allocation17_spill] sm:$0xff] %v2271_v49  ;;  %v2281_v5 = vmax.f32 %v731_v53, %v732_v16  ;;  %v779_v28 = vsel %vm264_vm0, %v122_v19, -inf  ;;  %v780_v18 = vsel %vm266_vm1, %v123_v33, -inf  ;;  %v741_v36 = vrot.slane %v740_v8, 1 }
  0x7f   :  { %v749_v49 = vmax.f32 %v747_v31, %v748_v27  ;;  %v757_v60 = vrot.slane %v756_v2, 2  ;;  %v765_v32 = vmax.f32 %v763_v14, %v764_v37  ;;  %v773_v48 = vrot.slane %v772_v54, 4  ;;  %v128_v27 = vld [vmem:[%s3295_s0 + $0x3c0] sm:$0xff]  ;;  %v129_v31 = vld [vmem:[%s3295_s0 + $0x3c8] sm:$0x1] }
  0x80   :  { %3313 = vst [vmem:[#allocation18_spill] sm:$0xff] %v2281_v5  ;;  %v781_v53 = vmax.f32 %v779_v28, %v780_v18  ;;  %v788_v11 = vsel %vm264_vm0, %v124_v63, -inf  ;;  %v789_v19 = vsel %vm266_vm1, %v125_v61, -inf  ;;  %v2293_v26 = vmax.f32 %v740_v8, %v741_v36  ;;  %v131_v18 = vld [vmem:[%s3295_s0 + $0x3d8] sm:$0x1] }
  0x81   :  { %v750_v33 = vrot.slane %v749_v49, 1  ;;  %v758_v16 = vmax.f32 %v756_v2, %v757_v60  ;;  %v766_v20 = vrot.slane %v765_v32, 2  ;;  %v774_v14 = vmax.f32 %v772_v54, %v773_v48  ;;  %v130_v2 = vld [vmem:[%s3295_s0 + $0x3d0] sm:$0xff] }
  0x82   :  { %3314 = vst [vmem:[#allocation19_spill] sm:$0xff] %v2293_v26  ;;  %v782_v10 = vrot.slane %v781_v53, 4  ;;  %v790_v37 = vmax.f32 %v788_v11, %v789_v19  ;;  %v797_v63 = vsel %vm264_vm0, %v126_v1, -inf  ;;  %v798_v60 = vsel %vm266_vm1, %v127_v41, -inf  ;;  %v132_v41 = vld [vmem:[%s3295_s0 + $0x3e0] sm:$0xff] }
  0x83   :  { %v2302_v28 = vmax.f32 %v749_v49, %v750_v33  ;;  %v759_v61 = vrot.slane %v758_v16, 1  ;;  %v767_v8 = vmax.f32 %v765_v32, %v766_v20  ;;  %v775_v36 = vrot.slane %v774_v14, 2  ;;  %v133_v33 = vld [vmem:[%s3295_s0 + $0x3e8] sm:$0x1] }
  0x84   :  { %v783_v54 = vmax.f32 %v781_v53, %v782_v10  ;;  %v791_v48 = vrot.slane %v790_v37, 4  ;;  %v799_v11 = vmax.f32 %v797_v63, %v798_v60  ;;  %v806_v1 = vsel %vm264_vm0, %v128_v27, -inf }
  0x85   :  { %3315 = vst [vmem:[#allocation20_spill] sm:$0xff] %v2302_v28  ;;  %v2311_v19 = vmax.f32 %v758_v16, %v759_v61  ;;  %v768_v49 = vrot.slane %v767_v8, 1  ;;  %v807_v32 = vsel %vm266_vm1, %v129_v31, -inf  ;;  %v776_v20 = vmax.f32 %v774_v14, %v775_v36  ;;  %v134_v31 = vld [vmem:[%s3295_s0 + $0x3f0] sm:$0xff]  ;;  %v135_v14 = vld [vmem:[%s3295_s0 + $0x3f8] sm:$0x1] }
  0x86   :  { %v784_v28 = vrot.slane %v783_v54, 2  ;;  %v792_v53 = vmax.f32 %v790_v37, %v791_v48  ;;  %v800_v10 = vrot.slane %v799_v11, 4  ;;  %v808_v16 = vmax.f32 %v806_v1, %v807_v32 }
  0x87   :  { %3316 = vst [vmem:[#allocation21_spill] sm:$0xff] %v2311_v19  ;;  %v2321_v63 = vmax.f32 %v767_v8, %v768_v49  ;;  %v815_v61 = vsel %vm264_vm0, %v130_v2, -inf  ;;  %v816_v27 = vsel %vm266_vm1, %v131_v18, -inf  ;;  %v777_v60 = vrot.slane %v776_v20, 1 }
  0x88   :  { %v785_v19 = vmax.f32 %v783_v54, %v784_v28  ;;  %v793_v26 = vrot.slane %v792_v53, 2  ;;  %v801_v5 = vmax.f32 %v799_v11, %v800_v10  ;;  %v809_v37 = vrot.slane %v808_v16, 4  ;;  %v136_v28 = vld [vmem:[%s3295_s0 + $0x400] sm:$0xff]  ;;  %v137_v54 = vld [vmem:[%s3295_s0 + $0x408] sm:$0x1] }
  0x89   :  { %3317 = vst [vmem:[#allocation22_spill] sm:$0xff] %v2321_v63  ;;  %v817_v8 = vmax.f32 %v815_v61, %v816_v27  ;;  %v824_v36 = vsel %vm264_vm0, %v132_v41, -inf  ;;  %v825_v2 = vsel %vm266_vm1, %v133_v33, -inf  ;;  %v2333_v48 = vmax.f32 %v776_v20, %v777_v60  ;;  %v139_v27 = vld [vmem:[%s3295_s0 + $0x418] sm:$0x1] }
  0x8a   :  { %v786_v18 = vrot.slane %v785_v19, 1  ;;  %v794_v49 = vmax.f32 %v792_v53, %v793_v26  ;;  %v802_v1 = vrot.slane %v801_v5, 2  ;;  %v810_v11 = vmax.f32 %v808_v16, %v809_v37  ;;  %v138_v53 = vld [vmem:[%s3295_s0 + $0x410] sm:$0xff] }
  0x8b   :  { %3318 = vst [vmem:[#allocation23_spill] sm:$0xff] %v2333_v48  ;;  %v818_v32 = vrot.slane %v817_v8, 4  ;;  %v826_v10 = vmax.f32 %v824_v36, %v825_v2  ;;  %v833_v41 = vsel %vm264_vm0, %v134_v31, -inf  ;;  %v834_v26 = vsel %vm266_vm1, %v135_v14, -inf  ;;  %v140_v14 = vld [vmem:[%s3295_s0 + $0x420] sm:$0xff] }
  0x8c   :  { %v2342_v61 = vmax.f32 %v785_v19, %v786_v18  ;;  %v795_v33 = vrot.slane %v794_v49, 1  ;;  %v803_v20 = vmax.f32 %v801_v5, %v802_v1  ;;  %v811_v60 = vrot.slane %v810_v11, 2  ;;  %v141_v18 = vld [vmem:[%s3295_s0 + $0x428] sm:$0x1] }
  0x8d   :  { %v819_v16 = vmax.f32 %v817_v8, %v818_v32  ;;  %v827_v37 = vrot.slane %v826_v10, 4  ;;  %v835_v36 = vmax.f32 %v833_v41, %v834_v26  ;;  %v842_v31 = vsel %vm264_vm0, %v136_v28, -inf }
  0x8e   :  { %3319 = vst [vmem:[#allocation24_spill] sm:$0xff] %v2342_v61  ;;  %v2351_v2 = vmax.f32 %v794_v49, %v795_v33  ;;  %v804_v19 = vrot.slane %v803_v20, 1  ;;  %v843_v5 = vsel %vm266_vm1, %v137_v54, -inf  ;;  %v812_v1 = vmax.f32 %v810_v11, %v811_v60  ;;  %v142_v54 = vld [vmem:[%s3295_s0 + $0x430] sm:$0xff]  ;;  %v143_v11 = vld [vmem:[%s3295_s0 + $0x438] sm:$0x1] }
  0x8f   :  { %v820_v63 = vrot.slane %v819_v16, 2  ;;  %v828_v8 = vmax.f32 %v826_v10, %v827_v37  ;;  %v836_v32 = vrot.slane %v835_v36, 4  ;;  %v844_v49 = vmax.f32 %v842_v31, %v843_v5 }
  0x90   :  { %3320 = vst [vmem:[#allocation25_spill] sm:$0xff] %v2351_v2  ;;  %v2361_v41 = vmax.f32 %v803_v20, %v804_v19  ;;  %v851_v33 = vsel %vm264_vm0, %v138_v53, -inf  ;;  %v852_v28 = vsel %vm266_vm1, %v139_v27, -inf  ;;  %v813_v26 = vrot.slane %v812_v1, 1 }
  0x91   :  { %v821_v2 = vmax.f32 %v819_v16, %v820_v63  ;;  %v829_v61 = vrot.slane %v828_v8, 2  ;;  %v837_v48 = vmax.f32 %v835_v36, %v836_v32  ;;  %v845_v10 = vrot.slane %v844_v49, 4  ;;  %v144_v63 = vld [vmem:[%s3295_s0 + $0x440] sm:$0xff]  ;;  %v145_v16 = vld [vmem:[%s3295_s0 + $0x448] sm:$0x1] }
  0x92   :  { %3321 = vst [vmem:[#allocation26_spill] sm:$0xff] %v2361_v41  ;;  %v853_v20 = vmax.f32 %v851_v33, %v852_v28  ;;  %v860_v60 = vsel %vm264_vm0, %v140_v14, -inf  ;;  %v861_v53 = vsel %vm266_vm1, %v141_v18, -inf  ;;  %v2373_v37 = vmax.f32 %v812_v1, %v813_v26  ;;  %v147_v28 = vld [vmem:[%s3295_s0 + $0x458] sm:$0x1] }
  0x93   :  { %v822_v27 = vrot.slane %v821_v2, 1  ;;  %v830_v19 = vmax.f32 %v828_v8, %v829_v61  ;;  %v838_v31 = vrot.slane %v837_v48, 2  ;;  %v846_v36 = vmax.f32 %v844_v49, %v845_v10  ;;  %v146_v8 = vld [vmem:[%s3295_s0 + $0x450] sm:$0xff] }
  0x94   :  { %3322 = vst [vmem:[#allocation27_spill] sm:$0xff] %v2373_v37  ;;  %v854_v5 = vrot.slane %v853_v20, 4  ;;  %v862_v32 = vmax.f32 %v860_v60, %v861_v53  ;;  %v869_v14 = vsel %vm264_vm0, %v142_v54, -inf  ;;  %v870_v61 = vsel %vm266_vm1, %v143_v11, -inf  ;;  %v148_v11 = vld [vmem:[%s3295_s0 + $0x460] sm:$0xff] }
  0x95   :  { %v2382_v33 = vmax.f32 %v821_v2, %v822_v27  ;;  %v831_v18 = vrot.slane %v830_v19, 1  ;;  %v839_v1 = vmax.f32 %v837_v48, %v838_v31  ;;  %v847_v26 = vrot.slane %v846_v36, 2  ;;  %v149_v27 = vld [vmem:[%s3295_s0 + $0x468] sm:$0x1] }
  0x96   :  { %v855_v49 = vmax.f32 %v853_v20, %v854_v5  ;;  %v863_v10 = vrot.slane %v862_v32, 4  ;;  %v871_v60 = vmax.f32 %v869_v14, %v870_v61  ;;  %v878_v54 = vsel %vm264_vm0, %v144_v63, -inf }
  0x97   :  { %3323 = vst [vmem:[#allocation28_spill] sm:$0xff] %v2382_v33  ;;  %v2391_v53 = vmax.f32 %v830_v19, %v831_v18  ;;  %v840_v2 = vrot.slane %v839_v1, 1  ;;  %v879_v48 = vsel %vm266_vm1, %v145_v16, -inf  ;;  %v848_v31 = vmax.f32 %v846_v36, %v847_v26  ;;  %v150_v16 = vld [vmem:[%s3295_s0 + $0x470] sm:$0xff]  ;;  %v151_v36 = vld [vmem:[%s3295_s0 + $0x478] sm:$0x1] }
  0x98   :  { %v856_v33 = vrot.slane %v855_v49, 2  ;;  %v864_v20 = vmax.f32 %v862_v32, %v863_v10  ;;  %v872_v5 = vrot.slane %v871_v60, 4  ;;  %v880_v19 = vmax.f32 %v878_v54, %v879_v48 }
  0x99   :  { %3324 = vst [vmem:[#allocation29_spill] sm:$0xff] %v2391_v53  ;;  %v2401_v14 = vmax.f32 %v839_v1, %v840_v2  ;;  %v887_v18 = vsel %vm264_vm0, %v146_v8, -inf  ;;  %v888_v63 = vsel %vm266_vm1, %v147_v28, -inf  ;;  %v849_v61 = vrot.slane %v848_v31, 1 }
  0x9a   :  { %v857_v53 = vmax.f32 %v855_v49, %v856_v33  ;;  %v865_v37 = vrot.slane %v864_v20, 2  ;;  %v873_v41 = vmax.f32 %v871_v60, %v872_v5  ;;  %v881_v32 = vrot.slane %v880_v19, 4  ;;  %v152_v33 = vld [vmem:[%s3295_s0 + $0x480] sm:$0xff]  ;;  %v153_v49 = vld [vmem:[%s3295_s0 + $0x488] sm:$0x1] }
  0x9b   :  { %3325 = vst [vmem:[#allocation30_spill] sm:$0xff] %v2401_v14  ;;  %v889_v1 = vmax.f32 %v887_v18, %v888_v63  ;;  %v896_v26 = vsel %vm264_vm0, %v148_v11, -inf  ;;  %v897_v8 = vsel %vm266_vm1, %v149_v27, -inf  ;;  %v2413_v10 = vmax.f32 %v848_v31, %v849_v61  ;;  %v155_v63 = vld [vmem:[%s3295_s0 + $0x498] sm:$0x1] }
  0x9c   :  { %v858_v28 = vrot.slane %v857_v53, 1  ;;  %v866_v2 = vmax.f32 %v864_v20, %v865_v37  ;;  %v874_v54 = vrot.slane %v873_v41, 2  ;;  %v882_v60 = vmax.f32 %v880_v19, %v881_v32  ;;  %v154_v20 = vld [vmem:[%s3295_s0 + $0x490] sm:$0xff] }
  0x9d   :  { %3326 = vst [vmem:[#allocation31_spill] sm:$0xff] %v2413_v10  ;;  %v890_v48 = vrot.slane %v889_v1, 4  ;;  %v898_v5 = vmax.f32 %v896_v26, %v897_v8  ;;  %v905_v11 = vsel %vm264_vm0, %v150_v16, -inf  ;;  %v906_v37 = vsel %vm266_vm1, %v151_v36, -inf  ;;  %v156_v36 = vld [vmem:[%s3295_s0 + $0x4a0] sm:$0xff] }
  0x9e   :  { %v2422_v18 = vmax.f32 %v857_v53, %v858_v28  ;;  %v867_v27 = vrot.slane %v866_v2, 1  ;;  %v875_v31 = vmax.f32 %v873_v41, %v874_v54  ;;  %v883_v61 = vrot.slane %v882_v60, 2  ;;  %v157_v28 = vld [vmem:[%s3295_s0 + $0x4a8] sm:$0x1] }
  0x9f   :  { %v891_v19 = vmax.f32 %v889_v1, %v890_v48  ;;  %v899_v32 = vrot.slane %v898_v5, 4  ;;  %v907_v26 = vmax.f32 %v905_v11, %v906_v37  ;;  %v914_v16 = vsel %vm264_vm0, %v152_v33, -inf }
  0xa0   :  { %3327 = vst [vmem:[#allocation32_spill] sm:$0xff] %v2422_v18  ;;  %v2431_v8 = vmax.f32 %v866_v2, %v867_v27  ;;  %v876_v53 = vrot.slane %v875_v31, 1  ;;  %v915_v41 = vsel %vm266_vm1, %v153_v49, -inf  ;;  %v884_v54 = vmax.f32 %v882_v60, %v883_v61  ;;  %v158_v49 = vld [vmem:[%s3295_s0 + $0x4b0] sm:$0xff]  ;;  %v159_v60 = vld [vmem:[%s3295_s0 + $0x4b8] sm:$0x1] }
  0xa1   :  { %v892_v14 = vrot.slane %v891_v19, 2  ;;  %v900_v1 = vmax.f32 %v898_v5, %v899_v32  ;;  %v908_v48 = vrot.slane %v907_v26, 4  ;;  %v916_v2 = vmax.f32 %v914_v16, %v915_v41 }
  0xa2   :  { %3328 = vst [vmem:[#allocation33_spill] sm:$0xff] %v2431_v8  ;;  %v2441_v11 = vmax.f32 %v875_v31, %v876_v53  ;;  %v923_v27 = vsel %vm264_vm0, %v154_v20, -inf  ;;  %v924_v33 = vsel %vm266_vm1, %v155_v63, -inf  ;;  %v885_v37 = vrot.slane %v884_v54, 1 }
  0xa3   :  { %v893_v8 = vmax.f32 %v891_v19, %v892_v14  ;;  %v901_v18 = vrot.slane %v900_v1, 2  ;;  %v909_v10 = vmax.f32 %v907_v26, %v908_v48  ;;  %v917_v5 = vrot.slane %v916_v2, 4  ;;  %v160_v14 = vld [vmem:[%s3295_s0 + $0x4c0] sm:$0xff]  ;;  %v161_v19 = vld [vmem:[%s3295_s0 + $0x4c8] sm:$0x1] }
  0xa4   :  { %3329 = vst [vmem:[#allocation34_spill] sm:$0xff] %v2441_v11  ;;  %v925_v31 = vmax.f32 %v923_v27, %v924_v33  ;;  %v932_v61 = vsel %vm264_vm0, %v156_v36, -inf  ;;  %v933_v20 = vsel %vm266_vm1, %v157_v28, -inf  ;;  %v2453_v32 = vmax.f32 %v884_v54, %v885_v37  ;;  %v163_v33 = vld [vmem:[%s3295_s0 + $0x4d8] sm:$0x1] }
  0xa5   :  { %v894_v63 = vrot.slane %v893_v8, 1  ;;  %v902_v53 = vmax.f32 %v900_v1, %v901_v18  ;;  %v910_v16 = vrot.slane %v909_v10, 2  ;;  %v918_v26 = vmax.f32 %v916_v2, %v917_v5  ;;  %v162_v1 = vld [vmem:[%s3295_s0 + $0x4d0] sm:$0xff] }
  0xa6   :  { %3330 = vst [vmem:[#allocation35_spill] sm:$0xff] %v2453_v32  ;;  %v926_v41 = vrot.slane %v925_v31, 4  ;;  %v934_v48 = vmax.f32 %v932_v61, %v933_v20  ;;  %v941_v36 = vsel %vm264_vm0, %v158_v49, -inf  ;;  %v942_v18 = vsel %vm266_vm1, %v159_v60, -inf  ;;  %v164_v60 = vld [vmem:[%s3295_s0 + $0x4e0] sm:$0xff] }
  0xa7   :  { %v2462_v27 = vmax.f32 %v893_v8, %v894_v63  ;;  %v903_v28 = vrot.slane %v902_v53, 1  ;;  %v911_v54 = vmax.f32 %v909_v10, %v910_v16  ;;  %v919_v37 = vrot.slane %v918_v26, 2  ;;  %v165_v63 = vld [vmem:[%s3295_s0 + $0x4e8] sm:$0x1] }
  0xa8   :  { %v927_v2 = vmax.f32 %v925_v31, %v926_v41  ;;  %v935_v5 = vrot.slane %v934_v48, 4  ;;  %v943_v61 = vmax.f32 %v941_v36, %v942_v18  ;;  %v950_v49 = vsel %vm264_vm0, %v160_v14, -inf }
  0xa9   :  { %3331 = vst [vmem:[#allocation36_spill] sm:$0xff] %v2462_v27  ;;  %v2471_v20 = vmax.f32 %v902_v53, %v903_v28  ;;  %v912_v8 = vrot.slane %v911_v54, 1  ;;  %v951_v10 = vsel %vm266_vm1, %v161_v19, -inf  ;;  %v920_v16 = vmax.f32 %v918_v26, %v919_v37  ;;  %v166_v19 = vld [vmem:[%s3295_s0 + $0x4f0] sm:$0xff]  ;;  %v167_v26 = vld [vmem:[%s3295_s0 + $0x4f8] sm:$0x1] }
  0xaa   :  { %v928_v27 = vrot.slane %v927_v2, 2  ;;  %v936_v31 = vmax.f32 %v934_v48, %v935_v5  ;;  %v944_v41 = vrot.slane %v943_v61, 4  ;;  %v952_v53 = vmax.f32 %v950_v49, %v951_v10 }
  0xab   :  { %3332 = vst [vmem:[#allocation37_spill] sm:$0xff] %v2471_v20  ;;  %v2481_v36 = vmax.f32 %v911_v54, %v912_v8  ;;  %v959_v28 = vsel %vm264_vm0, %v162_v1, -inf  ;;  %v960_v14 = vsel %vm266_vm1, %v163_v33, -inf  ;;  %v921_v18 = vrot.slane %v920_v16, 1 }
  0xac   :  { %v929_v20 = vmax.f32 %v927_v2, %v928_v27  ;;  %v937_v32 = vrot.slane %v936_v31, 2  ;;  %v945_v11 = vmax.f32 %v943_v61, %v944_v41  ;;  %v953_v48 = vrot.slane %v952_v53, 4  ;;  %v168_v27 = vld [vmem:[%s3295_s0 + $0x500] sm:$0xff]  ;;  %v169_v2 = vld [vmem:[%s3295_s0 + $0x508] sm:$0x1] }
  0xad   :  { %3333 = vst [vmem:[#allocation38_spill] sm:$0xff] %v2481_v36  ;;  %v961_v54 = vmax.f32 %v959_v28, %v960_v14  ;;  %v968_v37 = vsel %vm264_vm0, %v164_v60, -inf  ;;  %v969_v1 = vsel %vm266_vm1, %v165_v63, -inf  ;;  %v2493_v5 = vmax.f32 %v920_v16, %v921_v18  ;;  %v171_v14 = vld [vmem:[%s3295_s0 + $0x518] sm:$0x1] }
  0xae   :  { %v930_v33 = vrot.slane %v929_v20, 1  ;;  %v938_v8 = vmax.f32 %v936_v31, %v937_v32  ;;  %v946_v49 = vrot.slane %v945_v11, 2  ;;  %v954_v61 = vmax.f32 %v952_v53, %v953_v48  ;;  %v170_v31 = vld [vmem:[%s3295_s0 + $0x510] sm:$0xff] }
  0xaf   :  { %3334 = vst [vmem:[#allocation39_spill] sm:$0xff] %v2493_v5  ;;  %v962_v10 = vrot.slane %v961_v54, 4  ;;  %v970_v41 = vmax.f32 %v968_v37, %v969_v1  ;;  %v977_v60 = vsel %vm264_vm0, %v166_v19, -inf  ;;  %v978_v32 = vsel %vm266_vm1, %v167_v26, -inf  ;;  %v172_v26 = vld [vmem:[%s3295_s0 + $0x520] sm:$0xff] }
  0xb0   :  { %v2502_v28 = vmax.f32 %v929_v20, %v930_v33  ;;  %v939_v63 = vrot.slane %v938_v8, 1  ;;  %v947_v16 = vmax.f32 %v945_v11, %v946_v49  ;;  %v955_v18 = vrot.slane %v954_v61, 2  ;;  %v173_v33 = vld [vmem:[%s3295_s0 + $0x528] sm:$0x1] }
  0xb1   :  { %v963_v53 = vmax.f32 %v961_v54, %v962_v10  ;;  %v971_v48 = vrot.slane %v970_v41, 4  ;;  %v979_v37 = vmax.f32 %v977_v60, %v978_v32  ;;  %v986_v19 = vsel %vm264_vm0, %v168_v27, -inf }
  0xb2   :  { %3335 = vst [vmem:[#allocation40_spill] sm:$0xff] %v2502_v28  ;;  %v2511_v1 = vmax.f32 %v938_v8, %v939_v63  ;;  %v948_v20 = vrot.slane %v947_v16, 1  ;;  %v987_v11 = vsel %vm266_vm1, %v169_v2, -inf  ;;  %v956_v49 = vmax.f32 %v954_v61, %v955_v18  ;;  %v174_v2 = vld [vmem:[%s3295_s0 + $0x530] sm:$0xff]  ;;  %v175_v61 = vld [vmem:[%s3295_s0 + $0x538] sm:$0x1] }
  0xb3   :  { %v964_v36 = vrot.slane %v963_v53, 2  ;;  %v972_v54 = vmax.f32 %v970_v41, %v971_v48  ;;  %v980_v10 = vrot.slane %v979_v37, 4  ;;  %v988_v8 = vmax.f32 %v986_v19, %v987_v11 }
  0xb4   :  { %3336 = vst [vmem:[#allocation41_spill] sm:$0xff] %v2511_v1  ;;  %v2521_v60 = vmax.f32 %v947_v16, %v948_v20  ;;  %v995_v63 = vsel %vm264_vm0, %v170_v31, -inf  ;;  %v996_v27 = vsel %vm266_vm1, %v171_v14, -inf  ;;  %v957_v32 = vrot.slane %v956_v49, 1 }
  0xb5   :  { %v965_v1 = vmax.f32 %v963_v53, %v964_v36  ;;  %v973_v28 = vrot.slane %v972_v54, 2  ;;  %v981_v5 = vmax.f32 %v979_v37, %v980_v10  ;;  %v989_v41 = vrot.slane %v988_v8, 4  ;;  %v176_v36 = vld [vmem:[%s3295_s0 + $0x540] sm:$0xff]  ;;  %v177_v53 = vld [vmem:[%s3295_s0 + $0x548] sm:$0x1] }
  0xb6   :  { %3337 = vst [vmem:[#allocation42_spill] sm:$0xff] %v2521_v60  ;;  %v997_v16 = vmax.f32 %v995_v63, %v996_v27  ;;  %v1004_v18 = vsel %vm264_vm0, %v172_v26, -inf  ;;  %v1005_v31 = vsel %vm266_vm1, %v173_v33, -inf  ;;  %v2533_v48 = vmax.f32 %v956_v49, %v957_v32  ;;  %v179_v27 = vld [vmem:[%s3295_s0 + $0x558] sm:$0x1] }
  0xb7   :  { %v966_v14 = vrot.slane %v965_v1, 1  ;;  %v974_v20 = vmax.f32 %v972_v54, %v973_v28  ;;  %v982_v19 = vrot.slane %v981_v5, 2  ;;  %v990_v37 = vmax.f32 %v988_v8, %v989_v41  ;;  %v178_v54 = vld [vmem:[%s3295_s0 + $0x550] sm:$0xff] }
  0xb8   :  { %3338 = vst [vmem:[#allocation43_spill] sm:$0xff] %v2533_v48  ;;  %v998_v11 = vrot.slane %v997_v16, 4  ;;  %v1006_v10 = vmax.f32 %v1004_v18, %v1005_v31  ;;  %v1013_v26 = vsel %vm264_vm0, %v174_v2, -inf  ;;  %v1014_v28 = vsel %vm266_vm1, %v175_v61, -inf  ;;  %v180_v61 = vld [vmem:[%s3295_s0 + $0x560] sm:$0xff] }
  0xb9   :  { %v2542_v63 = vmax.f32 %v965_v1, %v966_v14  ;;  %v975_v33 = vrot.slane %v974_v20, 1  ;;  %v983_v49 = vmax.f32 %v981_v5, %v982_v19  ;;  %v991_v32 = vrot.slane %v990_v37, 2  ;;  %v181_v14 = vld [vmem:[%s3295_s0 + $0x568] sm:$0x1] }
  0xba   :  { %v999_v8 = vmax.f32 %v997_v16, %v998_v11  ;;  %v1007_v41 = vrot.slane %v1006_v10, 4  ;;  %v1015_v18 = vmax.f32 %v1013_v26, %v1014_v28  ;;  %v1022_v2 = vsel %vm264_vm0, %v176_v36, -inf }
  0xbb   :  { %3339 = vst [vmem:[#allocation44_spill] sm:$0xff] %v2542_v63  ;;  %v2551_v31 = vmax.f32 %v974_v20, %v975_v33  ;;  %v984_v1 = vrot.slane %v983_v49, 1  ;;  %v1023_v5 = vsel %vm266_vm1, %v177_v53, -inf  ;;  %v992_v19 = vmax.f32 %v990_v37, %v991_v32  ;;  %v182_v53 = vld [vmem:[%s3295_s0 + $0x570] sm:$0xff]  ;;  %v183_v37 = vld [vmem:[%s3295_s0 + $0x578] sm:$0x1] }
  0xbc   :  { %v1000_v63 = vrot.slane %v999_v8, 2  ;;  %v1008_v16 = vmax.f32 %v1006_v10, %v1007_v41  ;;  %v1016_v11 = vrot.slane %v1015_v18, 4  ;;  %v1024_v20 = vmax.f32 %v1022_v2, %v1023_v5 }
  0xbd   :  { %3340 = vst [vmem:[#allocation45_spill] sm:$0xff] %v2551_v31  ;;  %v2561_v26 = vmax.f32 %v983_v49, %v984_v1  ;;  %v1031_v33 = vsel %vm264_vm0, %v178_v54, -inf  ;;  %v1032_v36 = vsel %vm266_vm1, %v179_v27, -inf  ;;  %v993_v28 = vrot.slane %v992_v19, 1 }
  0xbe   :  { %v1001_v31 = vmax.f32 %v999_v8, %v1000_v63  ;;  %v1009_v48 = vrot.slane %v1008_v16, 2  ;;  %v1017_v60 = vmax.f32 %v1015_v18, %v1016_v11  ;;  %v1025_v10 = vrot.slane %v1024_v20, 4  ;;  %v184_v63 = vld [vmem:[%s3295_s0 + $0x580] sm:$0xff]  ;;  %v185_v8 = vld [vmem:[%s3295_s0 + $0x588] sm:$0x1] }
  0xbf   :  { %3341 = vst [vmem:[#allocation46_spill] sm:$0xff] %v2561_v26  ;;  %v1033_v49 = vmax.f32 %v1031_v33, %v1032_v36  ;;  %v1040_v32 = vsel %vm264_vm0, %v180_v61, -inf  ;;  %v1041_v54 = vsel %vm266_vm1, %v181_v14, -inf  ;;  %v2573_v41 = vmax.f32 %v992_v19, %v993_v28  ;;  %v187_v36 = vld [vmem:[%s3295_s0 + $0x598] sm:$0x1] }
  0xc0   :  { %v1002_v27 = vrot.slane %v1001_v31, 1  ;;  %v1010_v1 = vmax.f32 %v1008_v16, %v1009_v48  ;;  %v1018_v2 = vrot.slane %v1017_v60, 2  ;;  %v1026_v18 = vmax.f32 %v1024_v20, %v1025_v10  ;;  %v186_v16 = vld [vmem:[%s3295_s0 + $0x590] sm:$0xff] }
  0xc1   :  { %3342 = vst [vmem:[#allocation47_spill] sm:$0xff] %v2573_v41  ;;  %v1034_v5 = vrot.slane %v1033_v49, 4  ;;  %v1042_v11 = vmax.f32 %v1040_v32, %v1041_v54  ;;  %v1049_v61 = vsel %vm264_vm0, %v182_v53, -inf  ;;  %v1050_v48 = vsel %vm266_vm1, %v183_v37, -inf  ;;  %v188_v37 = vld [vmem:[%s3295_s0 + $0x5a0] sm:$0xff] }
  0xc2   :  { %v2582_v33 = vmax.f32 %v1001_v31, %v1002_v27  ;;  %v1011_v14 = vrot.slane %v1010_v1, 1  ;;  %v1019_v19 = vmax.f32 %v1017_v60, %v1018_v2  ;;  %v1027_v28 = vrot.slane %v1026_v18, 2  ;;  %v189_v27 = vld [vmem:[%s3295_s0 + $0x5a8] sm:$0x1] }
  0xc3   :  { %v1035_v20 = vmax.f32 %v1033_v49, %v1034_v5  ;;  %v1043_v10 = vrot.slane %v1042_v11, 4  ;;  %v1051_v32 = vmax.f32 %v1049_v61, %v1050_v48  ;;  %v1058_v53 = vsel %vm264_vm0, %v184_v63, -inf }
  0xc4   :  { %3343 = vst [vmem:[#allocation48_spill] sm:$0xff] %v2582_v33  ;;  %v2591_v54 = vmax.f32 %v1010_v1, %v1011_v14  ;;  %v1020_v31 = vrot.slane %v1019_v19, 1  ;;  %v1059_v60 = vsel %vm266_vm1, %v185_v8, -inf  ;;  %v1028_v2 = vmax.f32 %v1026_v18, %v1027_v28  ;;  %v190_v8 = vld [vmem:[%s3295_s0 + $0x5b0] sm:$0xff]  ;;  %v191_v18 = vld [vmem:[%s3295_s0 + $0x5b8] sm:$0x1] }
  0xc5   :  { %v1036_v26 = vrot.slane %v1035_v20, 2  ;;  %v1044_v49 = vmax.f32 %v1042_v11, %v1043_v10  ;;  %v1052_v5 = vrot.slane %v1051_v32, 4  ;;  %v1060_v1 = vmax.f32 %v1058_v53, %v1059_v60 }
  0xc6   :  { %3344 = vst [vmem:[#allocation49_spill] sm:$0xff] %v2591_v54  ;;  %v2601_v61 = vmax.f32 %v1019_v19, %v1020_v31  ;;  %v1067_v14 = vsel %vm264_vm0, %v186_v16, -inf  ;;  %v1068_v63 = vsel %vm266_vm1, %v187_v36, -inf  ;;  %v1029_v48 = vrot.slane %v1028_v2, 1 }
  0xc7   :  { %v1037_v54 = vmax.f32 %v1035_v20, %v1036_v26  ;;  %v1045_v33 = vrot.slane %v1044_v49, 2  ;;  %v1053_v41 = vmax.f32 %v1051_v32, %v1052_v5  ;;  %v1061_v11 = vrot.slane %v1060_v1, 4  ;;  %v192_v26 = vld [vmem:[%s3295_s0 + $0x5c0] sm:$0xff]  ;;  %v193_v20 = vld [vmem:[%s3295_s0 + $0x5c8] sm:$0x1] }
  0xc8   :  { %3345 = vst [vmem:[#allocation50_spill] sm:$0xff] %v2601_v61  ;;  %v1069_v19 = vmax.f32 %v1067_v14, %v1068_v63  ;;  %v1076_v28 = vsel %vm264_vm0, %v188_v37, -inf  ;;  %v1077_v16 = vsel %vm266_vm1, %v189_v27, -inf  ;;  %v2613_v10 = vmax.f32 %v1028_v2, %v1029_v48  ;;  %v195_v63 = vld [vmem:[%s3295_s0 + $0x5d8] sm:$0x1] }
  0xc9   :  { %v1038_v36 = vrot.slane %v1037_v54, 1  ;;  %v1046_v31 = vmax.f32 %v1044_v49, %v1045_v33  ;;  %v1054_v53 = vrot.slane %v1053_v41, 2  ;;  %v1062_v32 = vmax.f32 %v1060_v1, %v1061_v11  ;;  %v194_v49 = vld [vmem:[%s3295_s0 + $0x5d0] sm:$0xff] }
  0xca   :  { %3346 = vst [vmem:[#allocation51_spill] sm:$0xff] %v2613_v10  ;;  %v1070_v60 = vrot.slane %v1069_v19, 4  ;;  %v1078_v5 = vmax.f32 %v1076_v28, %v1077_v16  ;;  %v1085_v37 = vsel %vm264_vm0, %v190_v8, -inf  ;;  %v1086_v33 = vsel %vm266_vm1, %v191_v18, -inf  ;;  %v196_v18 = vld [vmem:[%s3295_s0 + $0x5e0] sm:$0xff] }
  0xcb   :  { %v2622_v14 = vmax.f32 %v1037_v54, %v1038_v36  ;;  %v1047_v27 = vrot.slane %v1046_v31, 1  ;;  %v1055_v2 = vmax.f32 %v1053_v41, %v1054_v53  ;;  %v1063_v48 = vrot.slane %v1062_v32, 2  ;;  %v197_v36 = vld [vmem:[%s3295_s0 + $0x5e8] sm:$0x1] }
  0xcc   :  { %v1071_v1 = vmax.f32 %v1069_v19, %v1070_v60  ;;  %v1079_v11 = vrot.slane %v1078_v5, 4  ;;  %v1087_v28 = vmax.f32 %v1085_v37, %v1086_v33  ;;  %v1094_v8 = vsel %vm264_vm0, %v192_v26, -inf }
  0xcd   :  { %3347 = vst [vmem:[#allocation52_spill] sm:$0xff] %v2622_v14  ;;  %v2631_v16 = vmax.f32 %v1046_v31, %v1047_v27  ;;  %v1056_v54 = vrot.slane %v1055_v2, 1  ;;  %v1095_v41 = vsel %vm266_vm1, %v193_v20, -inf  ;;  %v1064_v53 = vmax.f32 %v1062_v32, %v1063_v48  ;;  %v198_v20 = vld [vmem:[%s3295_s0 + $0x5f0] sm:$0xff]  ;;  %v199_v32 = vld [vmem:[%s3295_s0 + $0x5f8] sm:$0x1] }
  0xce   :  { %v1072_v14 = vrot.slane %v1071_v1, 2  ;;  %v1080_v19 = vmax.f32 %v1078_v5, %v1079_v11  ;;  %v1088_v60 = vrot.slane %v1087_v28, 4  ;;  %v1096_v31 = vmax.f32 %v1094_v8, %v1095_v41 }
  0xcf   :  { %3348 = vst [vmem:[#allocation53_spill] sm:$0xff] %v2631_v16  ;;  %v2641_v37 = vmax.f32 %v1055_v2, %v1056_v54  ;;  %v1103_v27 = vsel %vm264_vm0, %v194_v49, -inf  ;;  %v1104_v26 = vsel %vm266_vm1, %v195_v63, -inf  ;;  %v1065_v33 = vrot.slane %v1064_v53, 1 }
  0xd0   :  { %v1073_v16 = vmax.f32 %v1071_v1, %v1072_v14  ;;  %v1081_v10 = vrot.slane %v1080_v19, 2  ;;  %v1089_v61 = vmax.f32 %v1087_v28, %v1088_v60  ;;  %v1097_v5 = vrot.slane %v1096_v31, 4  ;;  %v200_v14 = vld [vmem:[%s3295_s0 + $0x600] sm:$0xff]  ;;  %v201_v1 = vld [vmem:[%s3295_s0 + $0x608] sm:$0x1] }
  0xd1   :  { %3349 = vst [vmem:[#allocation54_spill] sm:$0xff] %v2641_v37  ;;  %v1105_v2 = vmax.f32 %v1103_v27, %v1104_v26  ;;  %v1112_v48 = vsel %vm264_vm0, %v196_v18, -inf  ;;  %v1113_v49 = vsel %vm266_vm1, %v197_v36, -inf  ;;  %v2653_v11 = vmax.f32 %v1064_v53, %v1065_v33  ;;  %v203_v26 = vld [vmem:[%s3295_s0 + $0x618] sm:$0x1] }
  0xd2   :  { %v1074_v63 = vrot.slane %v1073_v16, 1  ;;  %v1082_v54 = vmax.f32 %v1080_v19, %v1081_v10  ;;  %v1090_v8 = vrot.slane %v1089_v61, 2  ;;  %v1098_v28 = vmax.f32 %v1096_v31, %v1097_v5  ;;  %v202_v19 = vld [vmem:[%s3295_s0 + $0x610] sm:$0xff] }
  0xd3   :  { %3350 = vst [vmem:[#allocation55_spill] sm:$0xff] %v2653_v11  ;;  %v1106_v41 = vrot.slane %v1105_v2, 4  ;;  %v1114_v60 = vmax.f32 %v1112_v48, %v1113_v49  ;;  %v1121_v18 = vsel %vm264_vm0, %v198_v20, -inf  ;;  %v1122_v10 = vsel %vm266_vm1, %v199_v32, -inf  ;;  %v204_v32 = vld [vmem:[%s3295_s0 + $0x620] sm:$0xff] }
  0xd4   :  { %v2662_v27 = vmax.f32 %v1073_v16, %v1074_v63  ;;  %v1083_v36 = vrot.slane %v1082_v54, 1  ;;  %v1091_v53 = vmax.f32 %v1089_v61, %v1090_v8  ;;  %v1099_v33 = vrot.slane %v1098_v28, 2  ;;  %v205_v63 = vld [vmem:[%s3295_s0 + $0x628] sm:$0x1] }
  0xd5   :  { %v1107_v31 = vmax.f32 %v1105_v2, %v1106_v41  ;;  %v1115_v5 = vrot.slane %v1114_v60, 4  ;;  %v1123_v48 = vmax.f32 %v1121_v18, %v1122_v10  ;;  %v1130_v20 = vsel %vm264_vm0, %v200_v14, -inf }
  0xd6   :  { %3351 = vst [vmem:[#allocation56_spill] sm:$0xff] %v2662_v27  ;;  %v2671_v49 = vmax.f32 %v1082_v54, %v1083_v36  ;;  %v1092_v16 = vrot.slane %v1091_v53, 1  ;;  %v1131_v61 = vsel %vm266_vm1, %v201_v1, -inf  ;;  %v1100_v8 = vmax.f32 %v1098_v28, %v1099_v33  ;;  %v206_v1 = vld [vmem:[%s3295_s0 + $0x630] sm:$0xff]  ;;  %v207_v28 = vld [vmem:[%s3295_s0 + $0x638] sm:$0x1] }
  0xd7   :  { %v1108_v37 = vrot.slane %v1107_v31, 2  ;;  %v1116_v2 = vmax.f32 %v1114_v60, %v1115_v5  ;;  %v1124_v41 = vrot.slane %v1123_v48, 4  ;;  %v1132_v54 = vmax.f32 %v1130_v20, %v1131_v61 }
  0xd8   :  { %3352 = vst [vmem:[#allocation57_spill] sm:$0xff] %v2671_v49  ;;  %v2681_v18 = vmax.f32 %v1091_v53, %v1092_v16  ;;  %v1139_v36 = vsel %vm264_vm0, %v202_v19, -inf  ;;  %v1140_v14 = vsel %vm266_vm1, %v203_v26, -inf  ;;  %v1101_v10 = vrot.slane %v1100_v8, 1 }
  0xd9   :  { %v1109_v49 = vmax.f32 %v1107_v31, %v1108_v37  ;;  %v1117_v27 = vrot.slane %v1116_v2, 2  ;;  %v1125_v11 = vmax.f32 %v1123_v48, %v1124_v41  ;;  %v1133_v60 = vrot.slane %v1132_v54, 4  ;;  %v208_v37 = vld [vmem:[%s3295_s0 + $0x640] sm:$0xff]  ;;  %v209_v31 = vld [vmem:[%s3295_s0 + $0x648] sm:$0x1] }
  0xda   :  { %3353 = vst [vmem:[#allocation58_spill] sm:$0xff] %v2681_v18  ;;  %v1141_v53 = vmax.f32 %v1139_v36, %v1140_v14  ;;  %v1148_v33 = vsel %vm264_vm0, %v204_v32, -inf  ;;  %v1149_v19 = vsel %vm266_vm1, %v205_v63, -inf  ;;  %v2693_v5 = vmax.f32 %v1100_v8, %v1101_v10  ;;  %v211_v14 = vld [vmem:[%s3295_s0 + $0x658] sm:$0x1] }
  0xdb   :  { %v1110_v26 = vrot.slane %v1109_v49, 1  ;;  %v1118_v16 = vmax.f32 %v1116_v2, %v1117_v27  ;;  %v1126_v20 = vrot.slane %v1125_v11, 2  ;;  %v1134_v48 = vmax.f32 %v1132_v54, %v1133_v60  ;;  %v210_v2 = vld [vmem:[%s3295_s0 + $0x650] sm:$0xff] }
  0xdc   :  { %3354 = vst [vmem:[#allocation59_spill] sm:$0xff] %v2693_v5  ;;  %v1142_v61 = vrot.slane %v1141_v53, 4  ;;  %v1150_v41 = vmax.f32 %v1148_v33, %v1149_v19  ;;  %v1157_v32 = vsel %vm264_vm0, %v206_v1, -inf  ;;  %v1158_v27 = vsel %vm266_vm1, %v207_v28, -inf  ;;  %v212_v28 = vld [vmem:[%s3295_s0 + $0x660] sm:$0xff] }
  0xdd   :  { %v2702_v36 = vmax.f32 %v1109_v49, %v1110_v26  ;;  %v1119_v63 = vrot.slane %v1118_v16, 1  ;;  %v1127_v8 = vmax.f32 %v1125_v11, %v1126_v20  ;;  %v1135_v10 = vrot.slane %v1134_v48, 2  ;;  %v213_v26 = vld [vmem:[%s3295_s0 + $0x668] sm:$0x1] }
  0xde   :  { %v1143_v54 = vmax.f32 %v1141_v53, %v1142_v61  ;;  %v1151_v60 = vrot.slane %v1150_v41, 4  ;;  %v1159_v33 = vmax.f32 %v1157_v32, %v1158_v27  ;;  %v1166_v1 = vsel %vm264_vm0, %v208_v37, -inf }
  0xdf   :  { %3355 = vst [vmem:[#allocation60_spill] sm:$0xff] %v2702_v36  ;;  %v2711_v19 = vmax.f32 %v1118_v16, %v1119_v63  ;;  %v1128_v49 = vrot.slane %v1127_v8, 1  ;;  %v1167_v11 = vsel %vm266_vm1, %v209_v31, -inf  ;;  %v1136_v20 = vmax.f32 %v1134_v48, %v1135_v10  ;;  %v214_v31 = vld [vmem:[%s3295_s0 + $0x670] sm:$0xff]  ;;  %v215_v48 = vld [vmem:[%s3295_s0 + $0x678] sm:$0x1] }
  0xe0   :  { %v1144_v36 = vrot.slane %v1143_v54, 2  ;;  %v1152_v53 = vmax.f32 %v1150_v41, %v1151_v60  ;;  %v1160_v61 = vrot.slane %v1159_v33, 4  ;;  %v1168_v16 = vmax.f32 %v1166_v1, %v1167_v11 }
  0xe1   :  { %3356 = vst [vmem:[#allocation61_spill] sm:$0xff] %v2711_v19  ;;  %v2721_v32 = vmax.f32 %v1127_v8, %v1128_v49  ;;  %v1175_v63 = vsel %vm264_vm0, %v210_v2, -inf  ;;  %v1176_v37 = vsel %vm266_vm1, %v211_v14, -inf  ;;  %v1137_v27 = vrot.slane %v1136_v20, 1 }
  0xe2   :  { %v1145_v19 = vmax.f32 %v1143_v54, %v1144_v36  ;;  %v1153_v5 = vrot.slane %v1152_v53, 2  ;;  %v1161_v18 = vmax.f32 %v1159_v33, %v1160_v61  ;;  %v1169_v41 = vrot.slane %v1168_v16, 4  ;;  %v216_v36 = vld [vmem:[%s3295_s0 + $0x680] sm:$0xff]  ;;  %v217_v54 = vld [vmem:[%s3295_s0 + $0x688] sm:$0x1] }
  0xe3   :  { %3357 = vst [vmem:[#allocation62_spill] sm:$0xff] %v2721_v32  ;;  %v1177_v8 = vmax.f32 %v1175_v63, %v1176_v37  ;;  %v1184_v10 = vsel %vm264_vm0, %v212_v28, -inf  ;;  %v1185_v2 = vsel %vm266_vm1, %v213_v26, -inf  ;;  %v2733_v60 = vmax.f32 %v1136_v20, %v1137_v27  ;;  %v219_v37 = vld [vmem:[%s3295_s0 + $0x698] sm:$0x1] }
  0xe4   :  { %v1146_v14 = vrot.slane %v1145_v19, 1  ;;  %v1154_v49 = vmax.f32 %v1152_v53, %v1153_v5  ;;  %v1162_v1 = vrot.slane %v1161_v18, 2  ;;  %v1170_v33 = vmax.f32 %v1168_v16, %v1169_v41  ;;  %v218_v53 = vld [vmem:[%s3295_s0 + $0x690] sm:$0xff] }
  0xe5   :  { %3358 = vst [vmem:[#allocation63_spill] sm:$0xff] %v2733_v60  ;;  %v1178_v11 = vrot.slane %v1177_v8, 4  ;;  %v1186_v61 = vmax.f32 %v1184_v10, %v1185_v2  ;;  %v1193_v28 = vsel %vm264_vm0, %v214_v31, -inf  ;;  %v1194_v5 = vsel %vm266_vm1, %v215_v48, -inf  ;;  %v220_v48 = vld [vmem:[%s3295_s0 + $0x6a0] sm:$0xff] }
  0xe6   :  { %v2742_v63 = vmax.f32 %v1145_v19, %v1146_v14  ;;  %v1155_v26 = vrot.slane %v1154_v49, 1  ;;  %v1163_v20 = vmax.f32 %v1161_v18, %v1162_v1  ;;  %v1171_v27 = vrot.slane %v1170_v33, 2  ;;  %v221_v14 = vld [vmem:[%s3295_s0 + $0x6a8] sm:$0x1] }
  0xe7   :  { %v1179_v16 = vmax.f32 %v1177_v8, %v1178_v11  ;;  %v1187_v41 = vrot.slane %v1186_v61, 4  ;;  %v1195_v10 = vmax.f32 %v1193_v28, %v1194_v5  ;;  %v1202_v31 = vsel %vm264_vm0, %v216_v36, -inf }
  0xe8   :  { %3359 = vst [vmem:[#allocation64_spill] sm:$0xff] %v2742_v63  ;;  %v2751_v2 = vmax.f32 %v1154_v49, %v1155_v26  ;;  %v1164_v19 = vrot.slane %v1163_v20, 1  ;;  %v1203_v18 = vsel %vm266_vm1, %v217_v54, -inf  ;;  %v1172_v1 = vmax.f32 %v1170_v33, %v1171_v27  ;;  %v222_v54 = vld [vmem:[%s3295_s0 + $0x6b0] sm:$0xff]  ;;  %v223_v33 = vld [vmem:[%s3295_s0 + $0x6b8] sm:$0x1] }
  0xe9   :  { %v1180_v32 = vrot.slane %v1179_v16, 2  ;;  %v1188_v8 = vmax.f32 %v1186_v61, %v1187_v41  ;;  %v1196_v11 = vrot.slane %v1195_v10, 4  ;;  %v1204_v49 = vmax.f32 %v1202_v31, %v1203_v18 }
  0xea   :  { %3360 = vst [vmem:[#allocation65_spill] sm:$0xff] %v2751_v2  ;;  %v2761_v28 = vmax.f32 %v1163_v20, %v1164_v19  ;;  %v1211_v26 = vsel %vm264_vm0, %v218_v53, -inf  ;;  %v1212_v36 = vsel %vm266_vm1, %v219_v37, -inf  ;;  %v1173_v5 = vrot.slane %v1172_v1, 1 }
  0xeb   :  { %v1181_v2 = vmax.f32 %v1179_v16, %v1180_v32  ;;  %v1189_v63 = vrot.slane %v1188_v8, 2  ;;  %v1197_v60 = vmax.f32 %v1195_v10, %v1196_v11  ;;  %v1205_v61 = vrot.slane %v1204_v49, 4  ;;  %v224_v32 = vld [vmem:[%s3295_s0 + $0x6c0] sm:$0xff]  ;;  %v225_v16 = vld [vmem:[%s3295_s0 + $0x6c8] sm:$0x1] }
  0xec   :  { %3361 = vst [vmem:[#allocation66_spill] sm:$0xff] %v2761_v28  ;;  %v1213_v20 = vmax.f32 %v1211_v26, %v1212_v36  ;;  %v1220_v27 = vsel %vm264_vm0, %v220_v48, -inf  ;;  %v1221_v53 = vsel %vm266_vm1, %v221_v14, -inf  ;;  %v2773_v41 = vmax.f32 %v1172_v1, %v1173_v5  ;;  %v227_v36 = vld [vmem:[%s3295_s0 + $0x6d8] sm:$0x1] }
  0xed   :  { %v1182_v37 = vrot.slane %v1181_v2, 1  ;;  %v1190_v19 = vmax.f32 %v1188_v8, %v1189_v63  ;;  %v1198_v31 = vrot.slane %v1197_v60, 2  ;;  %v1206_v10 = vmax.f32 %v1204_v49, %v1205_v61  ;;  %v226_v8 = vld [vmem:[%s3295_s0 + $0x6d0] sm:$0xff] }
  0xee   :  { %3362 = vst [vmem:[#allocation67_spill] sm:$0xff] %v2773_v41  ;;  %v1214_v18 = vrot.slane %v1213_v20, 4  ;;  %v1222_v11 = vmax.f32 %v1220_v27, %v1221_v53  ;;  %v1229_v48 = vsel %vm264_vm0, %v222_v54, -inf  ;;  %v1230_v63 = vsel %vm266_vm1, %v223_v33, -inf  ;;  %v228_v33 = vld [vmem:[%s3295_s0 + $0x6e0] sm:$0xff] }
  0xef   :  { %v2782_v26 = vmax.f32 %v1181_v2, %v1182_v37  ;;  %v1191_v14 = vrot.slane %v1190_v19, 1  ;;  %v1199_v1 = vmax.f32 %v1197_v60, %v1198_v31  ;;  %v1207_v5 = vrot.slane %v1206_v10, 2  ;;  %v229_v37 = vld [vmem:[%s3295_s0 + $0x6e8] sm:$0x1] }
  0xf0   :  { %v1215_v49 = vmax.f32 %v1213_v20, %v1214_v18  ;;  %v1223_v61 = vrot.slane %v1222_v11, 4  ;;  %v1231_v27 = vmax.f32 %v1229_v48, %v1230_v63  ;;  %v1238_v54 = vsel %vm264_vm0, %v224_v32, -inf }
  0xf1   :  { %3363 = vst [vmem:[#allocation68_spill] sm:$0xff] %v2782_v26  ;;  %v2791_v53 = vmax.f32 %v1190_v19, %v1191_v14  ;;  %v1200_v2 = vrot.slane %v1199_v1, 1  ;;  %v1239_v60 = vsel %vm266_vm1, %v225_v16, -inf  ;;  %v1208_v31 = vmax.f32 %v1206_v10, %v1207_v5  ;;  %v230_v16 = vld [vmem:[%s3295_s0 + $0x6f0] sm:$0xff]  ;;  %v231_v10 = vld [vmem:[%s3295_s0 + $0x6f8] sm:$0x1] }
  0xf2   :  { %v1216_v26 = vrot.slane %v1215_v49, 2  ;;  %v1224_v20 = vmax.f32 %v1222_v11, %v1223_v61  ;;  %v1232_v18 = vrot.slane %v1231_v27, 4  ;;  %v1240_v19 = vmax.f32 %v1238_v54, %v1239_v60 }
  0xf3   :  { %3364 = vst [vmem:[#allocation69_spill] sm:$0xff] %v2791_v53  ;;  %v2801_v48 = vmax.f32 %v1199_v1, %v1200_v2  ;;  %v1247_v14 = vsel %vm264_vm0, %v226_v8, -inf  ;;  %v1248_v32 = vsel %vm266_vm1, %v227_v36, -inf  ;;  %v1209_v63 = vrot.slane %v1208_v31, 1 }
  0xf4   :  { %v1217_v53 = vmax.f32 %v1215_v49, %v1216_v26  ;;  %v1225_v41 = vrot.slane %v1224_v20, 2  ;;  %v1233_v28 = vmax.f32 %v1231_v27, %v1232_v18  ;;  %v1241_v11 = vrot.slane %v1240_v19, 4  ;;  %v232_v26 = vld [vmem:[%s3295_s0 + $0x700] sm:$0xff]  ;;  %v233_v49 = vld [vmem:[%s3295_s0 + $0x708] sm:$0x1] }
  0xf5   :  { %3365 = vst [vmem:[#allocation70_spill] sm:$0xff] %v2801_v48  ;;  %v1249_v1 = vmax.f32 %v1247_v14, %v1248_v32  ;;  %v1256_v5 = vsel %vm264_vm0, %v228_v33, -inf  ;;  %v1257_v8 = vsel %vm266_vm1, %v229_v37, -inf  ;;  %v2813_v61 = vmax.f32 %v1208_v31, %v1209_v63  ;;  %v235_v32 = vld [vmem:[%s3295_s0 + $0x718] sm:$0x1] }
  0xf6   :  { %v1218_v36 = vrot.slane %v1217_v53, 1  ;;  %v1226_v2 = vmax.f32 %v1224_v20, %v1225_v41  ;;  %v1234_v54 = vrot.slane %v1233_v28, 2  ;;  %v1242_v27 = vmax.f32 %v1240_v19, %v1241_v11  ;;  %v234_v20 = vld [vmem:[%s3295_s0 + $0x710] sm:$0xff] }
  0xf7   :  { %3366 = vst [vmem:[#allocation71_spill] sm:$0xff] %v2813_v61  ;;  %v1250_v60 = vrot.slane %v1249_v1, 4  ;;  %v1258_v18 = vmax.f32 %v1256_v5, %v1257_v8  ;;  %v1265_v33 = vsel %vm264_vm0, %v230_v16, -inf  ;;  %v1266_v41 = vsel %vm266_vm1, %v231_v10, -inf  ;;  %v236_v10 = vld [vmem:[%s3295_s0 + $0x720] sm:$0xff] }
  0xf8   :  { %v2822_v14 = vmax.f32 %v1217_v53, %v1218_v36  ;;  %v1227_v37 = vrot.slane %v1226_v2, 1  ;;  %v1235_v31 = vmax.f32 %v1233_v28, %v1234_v54  ;;  %v1243_v63 = vrot.slane %v1242_v27, 2  ;;  %v237_v36 = vld [vmem:[%s3295_s0 + $0x728] sm:$0x1] }
  0xf9   :  { %v1251_v19 = vmax.f32 %v1249_v1, %v1250_v60  ;;  %v1259_v11 = vrot.slane %v1258_v18, 4  ;;  %v1267_v5 = vmax.f32 %v1265_v33, %v1266_v41  ;;  %v1274_v16 = vsel %vm264_vm0, %v232_v26, -inf }
  0xfa   :  { %3367 = vst [vmem:[#allocation72_spill] sm:$0xff] %v2822_v14  ;;  %v2831_v8 = vmax.f32 %v1226_v2, %v1227_v37  ;;  %v1236_v53 = vrot.slane %v1235_v31, 1  ;;  %v1275_v28 = vsel %vm266_vm1, %v233_v49, -inf  ;;  %v1244_v54 = vmax.f32 %v1242_v27, %v1243_v63  ;;  %v238_v49 = vld [vmem:[%s3295_s0 + $0x730] sm:$0xff]  ;;  %v239_v27 = vld [vmem:[%s3295_s0 + $0x738] sm:$0x1] }
  0xfb   :  { %v1252_v48 = vrot.slane %v1251_v19, 2  ;;  %v1260_v1 = vmax.f32 %v1258_v18, %v1259_v11  ;;  %v1268_v60 = vrot.slane %v1267_v5, 4  ;;  %v1276_v2 = vmax.f32 %v1274_v16, %v1275_v28 }
  0xfc   :  { %3368 = vst [vmem:[#allocation73_spill] sm:$0xff] %v2831_v8  ;;  %v2841_v33 = vmax.f32 %v1235_v31, %v1236_v53  ;;  %v1283_v37 = vsel %vm264_vm0, %v234_v20, -inf  ;;  %v1284_v26 = vsel %vm266_vm1, %v235_v32, -inf  ;;  %v1245_v41 = vrot.slane %v1244_v54, 1 }
  0xfd   :  { %v1253_v8 = vmax.f32 %v1251_v19, %v1252_v48  ;;  %v1261_v14 = vrot.slane %v1260_v1, 2  ;;  %v1269_v61 = vmax.f32 %v1267_v5, %v1268_v60  ;;  %v1277_v18 = vrot.slane %v1276_v2, 4  ;;  %v240_v48 = vld [vmem:[%s3295_s0 + $0x740] sm:$0xff]  ;;  %v241_v19 = vld [vmem:[%s3295_s0 + $0x748] sm:$0x1] }
  0xfe   :  { %3369 = vst [vmem:[#allocation74_spill] sm:$0xff] %v2841_v33  ;;  %v1285_v31 = vmax.f32 %v1283_v37, %v1284_v26  ;;  %v1292_v63 = vsel %vm264_vm0, %v236_v10, -inf  ;;  %v1293_v20 = vsel %vm266_vm1, %v237_v36, -inf  ;;  %v2853_v11 = vmax.f32 %v1244_v54, %v1245_v41  ;;  %v243_v26 = vld [vmem:[%s3295_s0 + $0x758] sm:$0x1] }
  0xff   :  { %v1254_v32 = vrot.slane %v1253_v8, 1  ;;  %v1262_v53 = vmax.f32 %v1260_v1, %v1261_v14  ;;  %v1270_v16 = vrot.slane %v1269_v61, 2  ;;  %v1278_v5 = vmax.f32 %v1276_v2, %v1277_v18  ;;  %v242_v1 = vld [vmem:[%s3295_s0 + $0x750] sm:$0xff] }
 0x100   :  { %3370 = vst [vmem:[#allocation75_spill] sm:$0xff] %v2853_v11  ;;  %v1286_v28 = vrot.slane %v1285_v31, 4  ;;  %v1294_v60 = vmax.f32 %v1292_v63, %v1293_v20  ;;  %v1301_v10 = vsel %vm264_vm0, %v238_v49, -inf  ;;  %v1302_v14 = vsel %vm266_vm1, %v239_v27, -inf  ;;  %v244_v27 = vld [vmem:[%s3295_s0 + $0x760] sm:$0xff] }
 0x101   :  { %v2862_v37 = vmax.f32 %v1253_v8, %v1254_v32  ;;  %v1263_v36 = vrot.slane %v1262_v53, 1  ;;  %v1271_v54 = vmax.f32 %v1269_v61, %v1270_v16  ;;  %v1279_v41 = vrot.slane %v1278_v5, 2  ;;  %v245_v32 = vld [vmem:[%s3295_s0 + $0x768] sm:$0x1] }
 0x102   :  { %v1287_v2 = vmax.f32 %v1285_v31, %v1286_v28  ;;  %v1295_v18 = vrot.slane %v1294_v60, 4  ;;  %v1303_v63 = vmax.f32 %v1301_v10, %v1302_v14  ;;  %v1310_v49 = vsel %vm264_vm0, %v240_v48, -inf }
 0x103   :  { %3371 = vst [vmem:[#allocation76_spill] sm:$0xff] %v2862_v37  ;;  %v2871_v20 = vmax.f32 %v1262_v53, %v1263_v36  ;;  %v1272_v8 = vrot.slane %v1271_v54, 1  ;;  %v1311_v61 = vsel %vm266_vm1, %v241_v19, -inf  ;;  %v1280_v16 = vmax.f32 %v1278_v5, %v1279_v41  ;;  %v246_v19 = vld [vmem:[%s3295_s0 + $0x770] sm:$0xff]  ;;  %v247_v5 = vld [vmem:[%s3295_s0 + $0x778] sm:$0x1] }
 0x104   :  { %v1288_v37 = vrot.slane %v1287_v2, 2  ;;  %v1296_v31 = vmax.f32 %v1294_v60, %v1295_v18  ;;  %v1304_v28 = vrot.slane %v1303_v63, 4  ;;  %v1312_v53 = vmax.f32 %v1310_v49, %v1311_v61 }
 0x105   :  { %3372 = vst [vmem:[#allocation77_spill] sm:$0xff] %v2871_v20  ;;  %v2881_v10 = vmax.f32 %v1271_v54, %v1272_v8  ;;  %v1319_v36 = vsel %vm264_vm0, %v242_v1, -inf  ;;  %v1320_v48 = vsel %vm266_vm1, %v243_v26, -inf  ;;  %v1281_v14 = vrot.slane %v1280_v16, 1 }
 0x106   :  { %v1289_v20 = vmax.f32 %v1287_v2, %v1288_v37  ;;  %v1297_v11 = vrot.slane %v1296_v31, 2  ;;  %v1305_v33 = vmax.f32 %v1303_v63, %v1304_v28  ;;  %v1313_v60 = vrot.slane %v1312_v53, 4  ;;  %v248_v37 = vld [vmem:[%s3295_s0 + $0x780] sm:$0xff]  ;;  %v249_v2 = vld [vmem:[%s3295_s0 + $0x788] sm:$0x1] }
 0x107   :  { %3373 = vst [vmem:[#allocation78_spill] sm:$0xff] %v2881_v10  ;;  %v1321_v54 = vmax.f32 %v1319_v36, %v1320_v48  ;;  %v1328_v41 = vsel %vm264_vm0, %v244_v27, -inf  ;;  %v1329_v1 = vsel %vm266_vm1, %v245_v32, -inf  ;;  %v2893_v18 = vmax.f32 %v1280_v16, %v1281_v14  ;;  %v251_v48 = vld [vmem:[%s3295_s0 + $0x798] sm:$0x1] }
 0x108   :  { %v1290_v26 = vrot.slane %v1289_v20, 1  ;;  %v1298_v8 = vmax.f32 %v1296_v31, %v1297_v11  ;;  %v1306_v49 = vrot.slane %v1305_v33, 2  ;;  %v1314_v63 = vmax.f32 %v1312_v53, %v1313_v60  ;;  %v250_v31 = vld [vmem:[%s3295_s0 + $0x790] sm:$0xff] }
 0x109   :  { %3374 = vst [vmem:[#allocation79_spill] sm:$0xff] %v2893_v18  ;;  %v1322_v61 = vrot.slane %v1321_v54, 4  ;;  %v1330_v28 = vmax.f32 %v1328_v41, %v1329_v1  ;;  %v1337_v27 = vsel %vm264_vm0, %v246_v19, -inf  ;;  %v1338_v11 = vsel %vm266_vm1, %v247_v5, -inf  ;;  %v252_v5 = vld [vmem:[%s3295_s0 + $0x7a0] sm:$0xff] }
 0x10a   :  { %v2902_v36 = vmax.f32 %v1289_v20, %v1290_v26  ;;  %v1299_v32 = vrot.slane %v1298_v8, 1  ;;  %v1307_v16 = vmax.f32 %v1305_v33, %v1306_v49  ;;  %v1315_v14 = vrot.slane %v1314_v63, 2  ;;  %v253_v26 = vld [vmem:[%s3295_s0 + $0x7a8] sm:$0x1] }
 0x10b   :  { %v1323_v53 = vmax.f32 %v1321_v54, %v1322_v61  ;;  %v1331_v60 = vrot.slane %v1330_v28, 4  ;;  %v1339_v41 = vmax.f32 %v1337_v27, %v1338_v11  ;;  %v1346_v19 = vsel %vm264_vm0, %v248_v37, -inf }
 0x10c   :  { %3375 = vst [vmem:[#allocation80_spill] sm:$0xff] %v2902_v36  ;;  %v2911_v1 = vmax.f32 %v1298_v8, %v1299_v32  ;;  %v1308_v20 = vrot.slane %v1307_v16, 1  ;;  %v1347_v33 = vsel %vm266_vm1, %v249_v2, -inf  ;;  %v1316_v49 = vmax.f32 %v1314_v63, %v1315_v14  ;;  %v254_v2 = vld [vmem:[%s3295_s0 + $0x7b0] sm:$0xff]  ;;  %v255_v63 = vld [vmem:[%s3295_s0 + $0x7b8] sm:$0x1] }
 0x10d   :  { %v1324_v10 = vrot.slane %v1323_v53, 2  ;;  %v1332_v54 = vmax.f32 %v1330_v28, %v1331_v60  ;;  %v1340_v61 = vrot.slane %v1339_v41, 4  ;;  %v1348_v8 = vmax.f32 %v1346_v19, %v1347_v33 }
 0x10e   :  { %3376 = vst [vmem:[#allocation81_spill] sm:$0xff] %v2911_v1  ;;  %v2921_v27 = vmax.f32 %v1307_v16, %v1308_v20  ;;  %v1355_v32 = vsel %vm264_vm0, %v250_v31, -inf  ;;  %v1356_v37 = vsel %vm266_vm1, %v251_v48, -inf  ;;  %v1317_v11 = vrot.slane %v1316_v49, 1 }
 0x10f   :  { %v1325_v1 = vmax.f32 %v1323_v53, %v1324_v10  ;;  %v1333_v36 = vrot.slane %v1332_v54, 2  ;;  %v1341_v18 = vmax.f32 %v1339_v41, %v1340_v61  ;;  %v1349_v28 = vrot.slane %v1348_v8, 4  ;;  %v256_v10 = vld [vmem:[%s3295_s0 + $0x7c0] sm:$0xff]  ;;  %v257_v53 = vld [vmem:[%s3295_s0 + $0x7c8] sm:$0x1] }
 0x110   :  { %3377 = vst [vmem:[#allocation82_spill] sm:$0xff] %v2921_v27  ;;  %v1357_v16 = vmax.f32 %v1355_v32, %v1356_v37  ;;  %v1364_v14 = vsel %vm264_vm0, %v252_v5, -inf  ;;  %v1365_v31 = vsel %vm266_vm1, %v253_v26, -inf  ;;  %v2933_v60 = vmax.f32 %v1316_v49, %v1317_v11  ;;  %v259_v37 = vld [vmem:[%s3295_s0 + $0x7d8] sm:$0x1] }
 0x111   :  { %v1326_v48 = vrot.slane %v1325_v1, 1  ;;  %v1334_v20 = vmax.f32 %v1332_v54, %v1333_v36  ;;  %v1342_v19 = vrot.slane %v1341_v18, 2  ;;  %v1350_v41 = vmax.f32 %v1348_v8, %v1349_v28  ;;  %v258_v54 = vld [vmem:[%s3295_s0 + $0x7d0] sm:$0xff] }
 0x112   :  { %3378 = vst [vmem:[#allocation83_spill] sm:$0xff] %v2933_v60  ;;  %v1358_v33 = vrot.slane %v1357_v16, 4  ;;  %v1366_v61 = vmax.f32 %v1364_v14, %v1365_v31  ;;  %v1373_v5 = vsel %vm264_vm0, %v254_v2, -inf  ;;  %v1374_v36 = vsel %vm266_vm1, %v255_v63, -inf  ;;  %v260_v63 = vld [vmem:[%s3295_s0 + $0x7e0] sm:$0xff] }
 0x113   :  { %v2942_v32 = vmax.f32 %v1325_v1, %v1326_v48  ;;  %v1335_v26 = vrot.slane %v1334_v20, 1  ;;  %v1343_v49 = vmax.f32 %v1341_v18, %v1342_v19  ;;  %v1351_v11 = vrot.slane %v1350_v41, 2  ;;  %v261_v48 = vld [vmem:[%s3295_s0 + $0x7e8] sm:$0x1] }
 0x114   :  { %v1359_v8 = vmax.f32 %v1357_v16, %v1358_v33  ;;  %v1367_v28 = vrot.slane %v1366_v61, 4  ;;  %v1375_v14 = vmax.f32 %v1373_v5, %v1374_v36  ;;  %v1382_v2 = vsel %vm264_vm0, %v256_v10, -inf }
 0x115   :  { %3379 = vst [vmem:[#allocation84_spill] sm:$0xff] %v2942_v32  ;;  %v2951_v31 = vmax.f32 %v1334_v20, %v1335_v26  ;;  %v1344_v1 = vrot.slane %v1343_v49, 1  ;;  %v1383_v18 = vsel %vm266_vm1, %v257_v53, -inf  ;;  %v1352_v19 = vmax.f32 %v1350_v41, %v1351_v11  ;;  %v262_v53 = vld [vmem:[%s3295_s0 + $0x7f0] sm:$0xff]  ;;  %v263_v41 = vld [vmem:[%s3295_s0 + $0x7f8] sm:$0x1] }
 0x116   :  { %v1360_v32 = vrot.slane %v1359_v8, 2  ;;  %v1368_v16 = vmax.f32 %v1366_v61, %v1367_v28  ;;  %v1376_v33 = vrot.slane %v1375_v14, 4  ;;  %v1384_v20 = vmax.f32 %v1382_v2, %v1383_v18 }
 0x117   :  { %3380 = vst [vmem:[#allocation85_spill] sm:$0xff] %v2951_v31  ;;  %v2961_v5 = vmax.f32 %v1343_v49, %v1344_v1  ;;  %v1391_v26 = vsel %vm264_vm0, %v258_v54, -inf  ;;  %v1392_v10 = vsel %vm266_vm1, %v259_v37, -inf  ;;  %v1353_v36 = vrot.slane %v1352_v19, 1 }
 0x118   :  { %v1361_v31 = vmax.f32 %v1359_v8, %v1360_v32  ;;  %v1369_v60 = vrot.slane %v1368_v16, 2  ;;  %v1377_v27 = vmax.f32 %v1375_v14, %v1376_v33  ;;  %v1385_v61 = vrot.slane %v1384_v20, 4 }
 0x119   :  { %3381 = vst [vmem:[#allocation86_spill] sm:$0xff] %v2961_v5  ;;  %v1393_v49 = vmax.f32 %v1391_v26, %v1392_v10  ;;  %v1400_v11 = vsel %vm264_vm0, %v260_v63, -inf  ;;  %v1401_v54 = vsel %vm266_vm1, %v261_v48, -inf  ;;  %v2973_v28 = vmax.f32 %v1352_v19, %v1353_v36 }
 0x11a   :  { %v1362_v37 = vrot.slane %v1361_v31, 1  ;;  %v1370_v1 = vmax.f32 %v1368_v16, %v1369_v60  ;;  %v1378_v2 = vrot.slane %v1377_v27, 2  ;;  %v1386_v18 = vmax.f32 %v1384_v20, %v1385_v61 }
 0x11b   :  { %v1394_v5 = vrot.slane %v1393_v49, 4  ;;  %v1402_v32 = vmax.f32 %v1400_v11, %v1401_v54  ;;  %v1409_v8 = vsel %vm264_vm0, %v262_v53, -inf  ;;  %v1410_v26 = vsel %vm266_vm1, %v263_v41, -inf }
 0x11c   :  { %v2976_v14 = vmax.f32 %v1361_v31, %v1362_v37  ;;  %v1371_v33 = vrot.slane %v1370_v1, 1  ;;  %v1379_v3 = vmax.f32 %v1377_v27, %v1378_v2  ;;  %v1387_v10 = vrot.slane %v1386_v18, 2 }
 0x11d   :  { %v1395_v63 = vmax.f32 %v1393_v49, %v1394_v5  ;;  %v1403_v58 = vrot.slane %v1402_v32, 4  ;;  %v1411_v48 = vmax.f32 %v1409_v8, %v1410_v26  ;;  %v1547_v27 = vsel %vm1546_vm2, %v1834_v43, %v1832_v42 }
 0x11e   :  { %v2979_v19 = vmax.f32 %v1370_v1, %v1371_v33  ;;  %v1380_v36 = vrot.slane %v1379_v3, 1  ;;  %v1388_v60 = vmax.f32 %v1386_v18, %v1387_v10  ;;  %v1549_v11 = vsel %vm1548_vm3, %v1836_v44, %v1547_v27  ;;  %v3382_v10 = vld [vmem:[#allocation2_spill] sm:$0xff] }
 0x11f   :  { %v1396_v16 = vrot.slane %v1395_v63, 2  ;;  %v1404_v20 = vmax.f32 %v1402_v32, %v1403_v58  ;;  %v1412_v61 = vrot.slane %v1411_v48, 4  ;;  %vm1554_vm6 = vcmask 1045509  }
 0x120   :  { %v2981_v53 = vmax.f32 %v1379_v3, %v1380_v36  ;;  %v1389_v31 = vrot.slane %v1388_v60, 1  ;;  %vm1556_vm7 = vcmask 1046534   ;;  %vm1558_vm8 = vcmask 1047559  }
 0x121   :  { %v1397_v5 = vmax.f32 %v1395_v63, %v1396_v16  ;;  %v1405_v41 = vrot.slane %v1404_v20, 2  ;;  %v1413_v49 = vmax.f32 %v1411_v48, %v1412_v61  ;;  %v1551_v42 = vsel %vm1550_vm4, %v1860_v7, %v1549_v11  ;;  %v3387_v48 = vld [vmem:[#allocation15_spill] sm:$0xff]  ;;  %v3390_v16 = vld [vmem:[#allocation24_spill] sm:$0xff]  ;;  %v3394_v11 = vld [vmem:[#allocation25_spill] sm:$0xff] }
 0x122   :  { %v2988_v58 = vmax.f32 %v1388_v60, %v1389_v31  ;;  %v1560_v43 = vsel %vm1546_vm2, %v1903_v62, %v1894_v57  ;;  %v1567_v1 = vsel %vm1546_vm2, %v1958_v22, %v1956_v21  ;;  %v1574_v44 = vsel %vm1546_vm2, %v2027_v59, %v2016_v35  ;;  %v3389_v60 = vld [vmem:[#allocation23_spill] sm:$0xff]  ;;  %v3391_v61 = vld [vmem:[#allocation4_spill] sm:$0xff]  ;;  %v3392_v31 = vld [vmem:[#allocation10_spill] sm:$0xff] }
 0x123   :  { %v1398_v3 = vrot.slane %v1397_v5, 1  ;;  %v1406_v54 = vmax.f32 %v1404_v20, %v1405_v41  ;;  %v1414_v37 = vrot.slane %v1413_v49, 2  ;;  %v1553_v8 = vsel %vm1552_vm5, %v1869_v13, %v1551_v42  ;;  %v3393_v41 = vld [vmem:[#allocation17_spill] sm:$0xff]  ;;  %v3396_v42 = vld [vmem:[#allocation11_spill] sm:$0xff] }
 0x124   :  { %v1555_v7 = vsel %vm1554_vm6, %v1871_v17, %v1553_v8  ;;  %v1561_v57 = vsel %vm1548_vm3, %v1916_v24, %v1560_v43  ;;  %v1568_v62 = vsel %vm1548_vm3, %v1960_v23, %v1567_v1  ;;  %v1575_v21 = vsel %vm1548_vm3, %v2033_v6, %v1574_v44  ;;  %v3397_v1 = vld [vmem:[#allocation18_spill] sm:$0xff] }
 0x125   :  { %v3001_v2 = vmax.f32 %v1397_v5, %v1398_v3  ;;  %v1407_v18 = vrot.slane %v1406_v54, 1  ;;  %v1415_v32 = vmax.f32 %v1413_v49, %v1414_v37  ;;  %v1557_v59 = vsel %vm1556_vm7, %v1881_v29, %v1555_v7  ;;  %v3399_v8 = vld [vmem:[#allocation6_spill] sm:$0xff] }
 0x126   :  { %v1562_v13 = vsel %vm1550_vm4, %v1924_v45, %v1561_v57  ;;  %v1559_v17 = vsel %vm1558_vm8, %v1892_v56, %v1557_v59  ;;  %v1569_v23 = vsel %vm1550_vm4, %v1965_v30, %v1568_v62  ;;  %v1576_v6 = vsel %vm1550_vm4, %v2042_v25, %v1575_v21  ;;  %v3400_v57 = vld [vmem:[#allocation12_spill] sm:$0xff]  ;;  %v3401_v21 = vld [vmem:[#allocation19_spill] sm:$0xff] }
 0x127   :  { %v3013_v22 = vmax.f32 %v1406_v54, %v1407_v18  ;;  %v1416_v35 = vrot.slane %v1415_v32, 1  ;;  %v1563_v24 = vsel %vm1552_vm5, %v1926_v46, %v1562_v13  ;;  %v1570_v45 = vsel %vm1552_vm5, %v1974_v34, %v1569_v23  ;;  %1681 = vst.msk [vmem:[%s3296_s1] sm:$0xff] %vm264_vm0, %v1559_v17  ;;  %v3395_v54 = vld [vmem:[#allocation5_spill] sm:$0xff]  ;;  %v3398_v18 = vld [vmem:[#allocation26_spill] sm:$0xff]  ;;  %v3402_v59 = vld [vmem:[#allocation27_spill] sm:$0xff] }
 0x128   :  { %v1564_v29 = vsel %vm1554_vm6, %v1935_v51, %v1563_v24  ;;  %v1577_v56 = vsel %vm1552_vm5, %v2051_v40, %v1576_v6  ;;  %v1571_v30 = vsel %vm1554_vm6, %v1980_v39, %v1570_v45  ;;  %v1581_v34 = vsel %vm1546_vm2, %v2102_v12, %v2091_v50  ;;  %v3383_v12 = vld [vmem:[#allocation7_spill] sm:$0xff]  ;;  %v3403_v17 = vld [vmem:[#allocation13_spill] sm:$0xff]  ;;  %v3404_v23 = vld [vmem:[#allocation20_spill] sm:$0xff] }
 0x129   :  { %v3027_v33 = vmax.f32 %v1415_v32, %v1416_v35  ;;  %v1565_v46 = vsel %vm1556_vm7, %v1945_v9, %v1564_v29  ;;  %v1578_v51 = vsel %vm1554_vm6, %v2061_v52, %v1577_v56  ;;  %v1572_v40 = vsel %vm1556_vm7, %v1990_v55, %v1571_v30  ;;  %v3385_v55 = vld [vmem:[#allocation3_spill] sm:$0xff]  ;;  %v3405_v29 = vld [vmem:[#allocation28_spill] sm:$0xff] }
 0x12a   :  { %v1566_v25 = vsel %vm1558_vm8, %v1950_v15, %v1565_v46  ;;  %v1579_v26 = vsel %vm1556_vm7, %v2071_v4, %v1578_v51  ;;  %v1582_v9 = vsel %vm1548_vm3, %v2116_v47, %v1581_v34  ;;  %v1573_v39 = vsel %vm1558_vm8, %v2000_v0, %v1572_v40  ;;  %v3384_v15 = vld [vmem:[#allocation8_spill] sm:$0xff]  ;;  %v3386_v47 = vld [vmem:[#allocation9_spill] sm:$0xff]  ;;  %v3406_v56 = vld [vmem:[#allocation31_spill] sm:$0xff] }
 0x12b   :  { %v1580_v52 = vsel %vm1558_vm8, %v2086_v38, %v1579_v26  ;;  %v1583_v50 = vsel %vm1550_vm4, %v3382_v10, %v1582_v9  ;;  %v1588_v63 = vsel %vm1546_vm2, %v3384_v15, %v3383_v12  ;;  %1682 = vst.msk [vmem:[%s3296_s1 + $0x8] sm:$0xff] %vm264_vm0, %v1566_v25  ;;  %v3388_v38 = vld [vmem:[#allocation16_spill] sm:$0xff]  ;;  %v1602_v20 = vsel %vm1546_vm2, %v3390_v16, %v3389_v60  ;;  %v3408_v51 = vld [vmem:[#allocation14_spill] sm:$0xff]  ;;  %v3409_v25 = vld [vmem:[#allocation21_spill] sm:$0xff] }
 0x12c   :  { %v1584_v4 = vsel %vm1552_vm5, %v3385_v55, %v1583_v50  ;;  %v1589_v0 = vsel %vm1548_vm3, %v3386_v47, %v1588_v63  ;;  %v1595_v36 = vsel %vm1546_vm2, %v3388_v38, %v3387_v48  ;;  %1683 = vst.msk [vmem:[%s3296_s1 + $0x10] sm:$0xff] %vm264_vm0, %v1573_v39  ;;  %1684 = vst.msk [vmem:[%s3296_s1 + $0x18] sm:$0xff] %vm264_vm0, %v1580_v52  ;;  %v3407_v46 = vld [vmem:[#allocation32_spill] sm:$0xff]  ;;  %v3410_v26 = vld [vmem:[#allocation29_spill] sm:$0xff] }
 0x12d   :  { %v1585_v27 = vsel %vm1554_vm6, %v3391_v61, %v1584_v4  ;;  %v1590_v5 = vsel %vm1550_vm4, %v3392_v31, %v1589_v0  ;;  %v1596_v49 = vsel %vm1548_vm3, %v3393_v41, %v1595_v36  ;;  %v1603_v3 = vsel %vm1548_vm3, %v3394_v11, %v1602_v20  ;;  %v3411_v39 = vld [vmem:[#allocation33_spill] sm:$0xff]  ;;  %v3412_v10 = vld [vmem:[#allocation22_spill] sm:$0xff]  ;;  %v3415_v4 = vld [vmem:[#allocation39_spill] sm:$0xff] }
 0x12e   :  { %v1586_v37 = vsel %vm1556_vm7, %v3395_v54, %v1585_v27  ;;  %v1591_v43 = vsel %vm1552_vm5, %v3396_v42, %v1590_v5  ;;  %v1597_v44 = vsel %vm1550_vm4, %v3397_v1, %v1596_v49  ;;  %v1604_v32 = vsel %vm1550_vm4, %v3398_v18, %v1603_v3  ;;  %v3413_v12 = vld [vmem:[#allocation30_spill] sm:$0xff]  ;;  %v3416_v47 = vld [vmem:[#allocation40_spill] sm:$0xff]  ;;  %v3417_v48 = vld [vmem:[#allocation35_spill] sm:$0xff] }
 0x12f   :  { %v1587_v7 = vsel %vm1558_vm8, %v3399_v8, %v1586_v37  ;;  %v1592_v62 = vsel %vm1554_vm6, %v3400_v57, %v1591_v43  ;;  %v1598_v35 = vsel %vm1552_vm5, %v3401_v21, %v1597_v44  ;;  %v1605_v13 = vsel %vm1552_vm5, %v3402_v59, %v1604_v32  ;;  %v3414_v63 = vld [vmem:[#allocation34_spill] sm:$0xff]  ;;  %v3418_v36 = vld [vmem:[#allocation41_spill] sm:$0xff]  ;;  %v3419_v16 = vld [vmem:[#allocation47_spill] sm:$0xff] }
 0x130   :  { %v1593_v24 = vsel %vm1556_vm7, %v3403_v17, %v1592_v62  ;;  %v1599_v6 = vsel %vm1554_vm6, %v3404_v23, %v1598_v35  ;;  %v1606_v45 = vsel %vm1554_vm6, %v3405_v29, %v1605_v13  ;;  %v1609_v30 = vsel %vm1546_vm2, %v3407_v46, %v3406_v56  ;;  %1685 = vst.msk [vmem:[%s3296_s1 + $0x20] sm:$0xff] %vm264_vm0, %v1587_v7  ;;  %v3420_v20 = vld [vmem:[#allocation48_spill] sm:$0xff]  ;;  %v3421_v27 = vld [vmem:[#allocation55_spill] sm:$0xff]  ;;  %v3424_v11 = vld [vmem:[#allocation42_spill] sm:$0xff] }
 0x131   :  { %v1594_v34 = vsel %vm1558_vm8, %v3408_v51, %v1593_v24  ;;  %v1600_v40 = vsel %vm1556_vm7, %v3409_v25, %v1599_v6  ;;  %v1607_v9 = vsel %vm1556_vm7, %v3410_v26, %v1606_v45  ;;  %v1610_v52 = vsel %vm1548_vm3, %v3411_v39, %v1609_v30  ;;  %v3422_v31 = vld [vmem:[#allocation56_spill] sm:$0xff]  ;;  %v3425_v54 = vld [vmem:[#allocation49_spill] sm:$0xff]  ;;  %v3428_v18 = vld [vmem:[#allocation43_spill] sm:$0xff] }
 0x132   :  { %v1601_v50 = vsel %vm1558_vm8, %v3412_v10, %v1600_v40  ;;  %v1608_v15 = vsel %vm1558_vm8, %v3413_v12, %v1607_v9  ;;  %v1611_v55 = vsel %vm1550_vm4, %v3414_v63, %v1610_v52  ;;  %v1616_v0 = vsel %vm1546_vm2, %v3416_v47, %v3415_v4  ;;  %1686 = vst.msk [vmem:[%s3296_s1 + $0x28] sm:$0xff] %vm264_vm0, %v1594_v34  ;;  %v3423_v41 = vld [vmem:[#allocation36_spill] sm:$0xff]  ;;  %v3426_v42 = vld [vmem:[#allocation57_spill] sm:$0xff]  ;;  %v3429_v8 = vld [vmem:[#allocation50_spill] sm:$0xff] }
 0x133   :  { %v1612_v38 = vsel %vm1552_vm5, %v3417_v48, %v1611_v55  ;;  %v1617_v60 = vsel %vm1548_vm3, %v3418_v36, %v1616_v0  ;;  %v1623_v61 = vsel %vm1546_vm2, %v3420_v20, %v3419_v16  ;;  %v1630_v5 = vsel %vm1546_vm2, %v3422_v31, %v3421_v27  ;;  %1687 = vst.msk [vmem:[%s3296_s1 + $0x30] sm:$0xff] %vm264_vm0, %v1601_v50  ;;  %v3427_v1 = vld [vmem:[#allocation37_spill] sm:$0xff]  ;;  %v3430_v57 = vld [vmem:[#allocation58_spill] sm:$0xff]  ;;  %v3432_v59 = vld [vmem:[#allocation44_spill] sm:$0xff] }
 0x134   :  { %1688 = vst.msk [vmem:[%s3296_s1 + $0x38] sm:$0xff] %vm264_vm0, %v1608_v15  ;;  %v1613_v49 = vsel %vm1554_vm6, %v3423_v41, %v1612_v38  ;;  %v1618_v3 = vsel %vm1550_vm4, %v3424_v11, %v1617_v60  ;;  %v1624_v37 = vsel %vm1548_vm3, %v3425_v54, %v1623_v61  ;;  %v1631_v43 = vsel %vm1548_vm3, %v3426_v42, %v1630_v5  ;;  %v3431_v21 = vld [vmem:[#allocation38_spill] sm:$0xff]  ;;  %v3433_v17 = vld [vmem:[#allocation51_spill] sm:$0xff]  ;;  %v3435_v29 = vld [vmem:[#allocation45_spill] sm:$0xff] }
 0x135   :  { %v1614_v44 = vsel %vm1556_vm7, %v3427_v1, %v1613_v49  ;;  %v1619_v32 = vsel %vm1552_vm5, %v3428_v18, %v1618_v3  ;;  %v1625_v7 = vsel %vm1550_vm4, %v3429_v8, %v1624_v37  ;;  %v1632_v62 = vsel %vm1550_vm4, %v3430_v57, %v1631_v43  ;;  %v3434_v23 = vld [vmem:[#allocation59_spill] sm:$0xff]  ;;  %v3436_v56 = vld [vmem:[#allocation52_spill] sm:$0xff]  ;;  %v3440_v26 = vld [vmem:[#allocation46_spill] sm:$0xff] }
 0x136   :  { %v1615_v35 = vsel %vm1558_vm8, %v3431_v21, %v1614_v44  ;;  %v1620_v13 = vsel %vm1554_vm6, %v3432_v59, %v1619_v32  ;;  %v1626_v24 = vsel %vm1552_vm5, %v3433_v17, %v1625_v7  ;;  %v1633_v6 = vsel %vm1552_vm5, %v3434_v23, %v1632_v62  ;;  %v3437_v30 = vld [vmem:[#allocation60_spill] sm:$0xff]  ;;  %v3438_v34 = vld [vmem:[#allocation63_spill] sm:$0xff]  ;;  %v3441_v39 = vld [vmem:[#allocation53_spill] sm:$0xff] }
 0x137   :  { %v1621_v45 = vsel %vm1556_vm7, %v3435_v29, %v1620_v13  ;;  %v1627_v46 = vsel %vm1554_vm6, %v3436_v56, %v1626_v24  ;;  %v1634_v51 = vsel %vm1554_vm6, %v3437_v30, %v1633_v6  ;;  %v3439_v25 = vld [vmem:[#allocation64_spill] sm:$0xff]  ;;  %1689 = vst.msk [vmem:[%s3296_s1 + $0x40] sm:$0xff] %vm264_vm0, %v1615_v35  ;;  %v3442_v10 = vld [vmem:[#allocation61_spill] sm:$0xff]  ;;  %v3444_v63 = vld [vmem:[#allocation54_spill] sm:$0xff]  ;;  %v1658_v49 = vsel %vm1546_vm2, %v2976_v14, %v2973_v28 }
 0x138   :  { %v1637_v40 = vsel %vm1546_vm2, %v3439_v25, %v3438_v34  ;;  %v1622_v9 = vsel %vm1558_vm8, %v3440_v26, %v1621_v45  ;;  %v1628_v52 = vsel %vm1556_vm7, %v3441_v39, %v1627_v46  ;;  %v1635_v50 = vsel %vm1556_vm7, %v3442_v10, %v1634_v51  ;;  %v3443_v12 = vld [vmem:[#allocation65_spill] sm:$0xff]  ;;  %v3445_v4 = vld [vmem:[#allocation62_spill] sm:$0xff]  ;;  %v3447_v38 = vld [vmem:[#allocation71_spill] sm:$0xff] }
 0x139   :  { %v1638_v15 = vsel %vm1548_vm3, %v3443_v12, %v1637_v40  ;;  %v1629_v55 = vsel %vm1558_vm8, %v3444_v63, %v1628_v52  ;;  %v1636_v47 = vsel %vm1558_vm8, %v3445_v4, %v1635_v50  ;;  %v3446_v0 = vld [vmem:[#allocation66_spill] sm:$0xff]  ;;  %v3448_v36 = vld [vmem:[#allocation72_spill] sm:$0xff]  ;;  %1690 = vst.msk [vmem:[%s3296_s1 + $0x48] sm:$0xff] %vm264_vm0, %v1622_v9  ;;  %v3449_v16 = vld [vmem:[#allocation67_spill] sm:$0xff]  ;;  %v1659_v28 = vsel %vm1548_vm3, %v2979_v19, %v1658_v49 }
 0x13a   :  { %v1639_v48 = vsel %vm1550_vm4, %v3446_v0, %v1638_v15  ;;  %v1644_v60 = vsel %vm1546_vm2, %v3448_v36, %v3447_v38  ;;  %v3450_v61 = vld [vmem:[#allocation73_spill] sm:$0xff]  ;;  %v3451_v31 = vld [vmem:[#allocation79_spill] sm:$0xff]  ;;  %v3452_v5 = vld [vmem:[#allocation80_spill] sm:$0xff]  ;;  %1691 = vst.msk [vmem:[%s3296_s1 + $0x50] sm:$0xff] %vm264_vm0, %v1629_v55  ;;  %v1660_v7 = vsel %vm1550_vm4, %v2981_v53, %v1659_v28 }
 0x13b   :  { %v1640_v20 = vsel %vm1552_vm5, %v3449_v16, %v1639_v48  ;;  %v1645_v27 = vsel %vm1548_vm3, %v3450_v61, %v1644_v60  ;;  %v1651_v41 = vsel %vm1546_vm2, %v3452_v5, %v3451_v31  ;;  %1692 = vst.msk [vmem:[%s3296_s1 + $0x58] sm:$0xff] %vm264_vm0, %v1636_v47  ;;  %v3453_v11 = vld [vmem:[#allocation68_spill] sm:$0xff]  ;;  %v3454_v54 = vld [vmem:[#allocation74_spill] sm:$0xff]  ;;  %v3455_v42 = vld [vmem:[#allocation81_spill] sm:$0xff]  ;;  %v1661_v13 = vsel %vm1552_vm5, %v2988_v58, %v1660_v7 }
 0x13c   :  { %v1641_v3 = vsel %vm1554_vm6, %v3453_v11, %v1640_v20  ;;  %v1646_v37 = vsel %vm1550_vm4, %v3454_v54, %v1645_v27  ;;  %v1652_v43 = vsel %vm1548_vm3, %v3455_v42, %v1651_v41  ;;  %v3456_v14 = vld [vmem:[#allocation69_spill] sm:$0xff]  ;;  %v3457_v44 = vld [vmem:[#allocation75_spill] sm:$0xff]  ;;  %v3458_v32 = vld [vmem:[#allocation82_spill] sm:$0xff]  ;;  %v1662_v53 = vsel %vm1554_vm6, %v3001_v2, %v1661_v13 }
 0x13d   :  { %v1642_v1 = vsel %vm1556_vm7, %v3456_v14, %v1641_v3  ;;  %v1647_v18 = vsel %vm1552_vm5, %v3457_v44, %v1646_v37  ;;  %v1653_v8 = vsel %vm1550_vm4, %v3458_v32, %v1652_v43  ;;  %v3459_v57 = vld [vmem:[#allocation70_spill] sm:$0xff]  ;;  %v3460_v21 = vld [vmem:[#allocation76_spill] sm:$0xff]  ;;  %v3461_v59 = vld [vmem:[#allocation83_spill] sm:$0xff]  ;;  %v1663_v46 = vsel %vm1556_vm7, %v3013_v22, %v1662_v53 }
 0x13e   :  { %v1643_v62 = vsel %vm1558_vm8, %v3459_v57, %v1642_v1  ;;  %v1648_v35 = vsel %vm1554_vm6, %v3460_v21, %v1647_v18  ;;  %v1654_v19 = vsel %vm1552_vm5, %v3461_v59, %v1653_v8  ;;  %v3462_v17 = vld [vmem:[#allocation77_spill] sm:$0xff]  ;;  %v3463_v23 = vld [vmem:[#allocation84_spill] sm:$0xff]  ;;  %v3464_v29 = vld [vmem:[#allocation78_spill] sm:$0xff]  ;;  %v1664_v2 = vsel %vm1558_vm8, %v3027_v33, %v1663_v46 }
 0x13f   :  { %v1649_v24 = vsel %vm1556_vm7, %v3462_v17, %v1648_v35  ;;  %v1655_v6 = vsel %vm1554_vm6, %v3463_v23, %v1654_v19  ;;  %1693 = vst.msk [vmem:[%s3296_s1 + $0x60] sm:$0xff] %vm264_vm0, %v1643_v62  ;;  %v3465_v56 = vld [vmem:[#allocation85_spill] sm:$0xff]  ;;  %v3466_v30 = vld [vmem:[#allocation86_spill] sm:$0xff]  ;;  %1696 = vst.msk [vmem:[%s3296_s1 + $0x78] sm:$0xff] %vm264_vm0, %v1664_v2 }
 0x140   :  { %v1650_v45 = vsel %vm1558_vm8, %v3464_v29, %v1649_v24  ;;  %v1656_v58 = vsel %vm1556_vm7, %v3465_v56, %v1655_v6 }
 0x141   :  { %v1657_v51 = vsel %vm1558_vm8, %v3466_v30, %v1656_v58  ;;  %1694 = vst.msk [vmem:[%s3296_s1 + $0x68] sm:$0xff] %vm264_vm0, %v1650_v45 }
 0x142   :  { %1695 = vst.msk [vmem:[%s3296_s1 + $0x70] sm:$0xff] %vm264_vm0, %v1657_v51 }

// kernel: _lambda_.22
= control target key start
LH: loop header
LB: loop body
LE: loop exit
PB: predicated region body
PF: predicated region fallthrough
CT: control target
= control target key end

     0   :  { %s1878_s9 = smov 0   ;;  %s2246_s0 = inlined_call_operand.vmem [shape: bf16[2,10,10,128], index: 0, kind: input, shape index: {}]   ;;  %s2247_s1 = inlined_call_operand.vmem [shape: bf16[9,128,128], index: 1, kind: input, shape index: {}]   ;;  %s2248_s2 = inlined_call_operand.vmem [shape: f32[2,8,8,128], index: 2, kind: output, shape index: {}]  }
   0x1 LB: > { %s1237_s10 = sadd.s32 4294967295, %s1855_s9   ;;  %p1241_p0 = scmp.ge.s32.totalorder %s1855_s9, 1  ;;  %s1855_s9 = sphi %s1878_s9, %s12_s9  }
   0x2   : > { %p112_p1 = scmp.lt.s32.totalorder %s1855_s9, 3 }
   0x4   : > { %p113_p2 = pnand %p1241_p0, %p112_p1 }
   0x5   : > { %p134_p3 = scmp.lt.s32.totalorder (!%p113_p2), %s1237_s10, 1  ;;  %s1896_s19 = smov (!%p113_p2), 0  }
   0x6   : > { %116 = sbr.rel (%p113_p2) target bundleno = 394 (0x18a), region = 28 }
   0xd   : > { %s2250_s10 = smov (!%p134_p3, %s1237_s10), 1 }
   0xe   : > { %s1751_s11 = smul.u32 80, %s2250_s10  ;;  %s1459_s12 = sshll.u32 %s2250_s10, 6 }
   0xf   : > { %s1889_s15 = scalar_lea.vmem %s2248_s2, %s1459_s12 }
  0x10   : > { %s1894_s18 = scalar_lea.vmem %s2246_s0, %s1751_s11 }
  0x11 LB: >> { %v1770_v0 = vld [vmem:[%s2247_s1 + $0x40] sm:$0xff]   ;;  %v1861_v1 = vmov 0.0   ;;  %v1772_v3 = vld [vmem:[%s2247_s1 + $0x48] sm:$0xff]   ;;  %vm1862_vm0 = vmmov 0   ;;  %v1774_v5 = vld [vmem:[%s2247_s1 + $0x50] sm:$0xff]   ;;  %s1460_s6 = sshll.u32 %s1859_s19, 3  ;;  %s1859_s19 = sphi %s1896_s19, %s150_s19  }
  0x12   : >> { %1542 = vmatprep.subr.bf16.mxu1 %v1861_v1  ;;  %1622 = vmatprep.subr.bf16.mxu0 %v1861_v1  ;;  %v1771_v2 = vld [vmem:[%s2247_s1 + $0x100] sm:$0xff]   ;;  %v1773_v4 = vld [vmem:[%s2247_s1 + $0x108] sm:$0xff]   ;;  %v1775_v6 = vld [vmem:[%s2247_s1 + $0x110] sm:$0xff]   ;;  %s1941_s10 = scalar_lea.vmem %s1894_s18, %s1460_s6  ;;  %s1165_s30 = scalar_lea.vmem %s1889_s15, %s1460_s6 }
  0x13   : >> { %1543 = vmatpush3.bf16.msra.mxu1 %v1770_v0  ;;  %1558 = vmatprep.mubr.msk.bf16.mxu1 %vm1862_vm0, %v1861_v1  ;;  %v1776_v7 = vld [vmem:[%s2247_s1 + $0x58] sm:$0xff]   ;;  %v1778_v9 = vld [vmem:[%s2247_s1 + $0x60] sm:$0xff]   ;;  %v1780_v13 = vld [vmem:[%s2247_s1 + $0x68] sm:$0xff]   ;;  %s150_s19 = sadd.s32 1, %s1859_s19  }
  0x14   : >> { %1623 = vmatpush3.bf16.msra.mxu0 %v1771_v2  ;;  %1544 = vmatprep.subr.bf16.mxu1 %v1861_v1  ;;  %v1777_v8 = vld [vmem:[%s2247_s1 + $0x118] sm:$0xff]   ;;  %v1779_v10 = vld [vmem:[%s2247_s1 + $0x120] sm:$0xff]   ;;  %v1962_v15 = vld [vmem:[%s1941_s10 + $0x8] sm:$0xf]  ;;  %p147_p4 = scmp.ge.s32.totalorder %s150_s19, 8  }
  0x15   : >> { %1624 = vmatprep.subr.bf16.mxu0 %v1861_v1  ;;  %1638 = vmatprep.mubr.msk.bf16.mxu0 %vm1862_vm0, %v1861_v1  ;;  %v1952_v11 = vld [vmem:[%s1941_s10] sm:$0xf]  ;;  %v155_v12 = vld [vmem:[%s1941_s10 + $0x4] sm:$0x1]  ;;  %v1306_v16 = vld [vmem:[%s1941_s10 + $0xc] sm:$0x1] }
  0x16   : >> { %v1959_v14 = vcombine.low %v1952_v11, %v155_v12  ;;  %v1781_v17 = vld [vmem:[%s2247_s1 + $0x128] sm:$0xff]   ;;  %v1970_v18 = vcombine.low %v1962_v15, %v1306_v16  ;;  %v1782_v20 = vld [vmem:[%s2247_s1 + $0x70] sm:$0xff]   ;;  %v1784_v23 = vld [vmem:[%s2247_s1 + $0x78] sm:$0xff]  }
  0x17   : >> { %1545 = vmatpush3.bf16.msra.mxu1 %v1772_v3  ;;  %v1783_v22 = vld [vmem:[%s2247_s1 + $0x130] sm:$0xff]   ;;  %v1785_v28 = vld [vmem:[%s2247_s1 + $0x138] sm:$0xff]   ;;  %v1787_v30 = vld [vmem:[%s2247_s1] sm:$0xff]  }
  0x18   : >> { %1625 = vmatpush3.bf16.msra.mxu0 %v1773_v4  ;;  %1546 = vmatprep.subr.bf16.mxu1 %v1861_v1  ;;  %v197_v19 = vshll.u32 %v1959_v14, 16  ;;  %v623_v21 = vshll.u32 %v1970_v18, 16  ;;  %v195_v24 = vshrl.u32 %v1959_v14, 16  ;;  %v621_v26 = vshrl.u32 %v1970_v18, 16  ;;  %v1789_v32 = vld [vmem:[%s2247_s1 + $0x140] sm:$0xff]   ;;  %v1790_v33 = vld [vmem:[%s2247_s1 + $0x8] sm:$0xff]  }
  0x19   : >> { %1626 = vmatprep.subr.bf16.mxu0 %v1861_v1  ;;  %v1791_v34 = vld [vmem:[%s2247_s1 + $0x148] sm:$0xff]   ;;  %v1792_v35 = vld [vmem:[%s2247_s1 + $0x10] sm:$0xff]   ;;  %v1794_v37 = vld [vmem:[%s2247_s1 + $0x18] sm:$0xff]   ;;  %v734_v48 = vrot.slane %v1970_v18, 1  ;;  %v395_v0 = vrot.slane %v1959_v14, 1 }
  0x1a   : >> { %v199_v25 = vrot.slane %v197_v19, 1  ;;  %v625_v27 = vrot.slane %v623_v21, 1  ;;  %v1793_v36 = vld [vmem:[%s2247_s1 + $0x150] sm:$0xff]   ;;  %v1795_v38 = vld [vmem:[%s2247_s1 + $0x158] sm:$0xff]   ;;  %v1796_v39 = vld [vmem:[%s2247_s1 + $0x20] sm:$0xff]  }
  0x1b   : >> { %1547 = vmatpush3.bf16.msra.mxu1 %v1774_v5  ;;  %v1797_v40 = vld [vmem:[%s2247_s1 + $0x160] sm:$0xff]   ;;  %v1798_v41 = vld [vmem:[%s2247_s1 + $0x28] sm:$0xff]   ;;  %v1800_v43 = vld [vmem:[%s2247_s1 + $0x30] sm:$0xff]  }
  0x1c   : >> { %1627 = vmatpush3.bf16.msra.mxu0 %v1775_v6  ;;  %1548 = vmatprep.subr.bf16.mxu1 %v1861_v1  ;;  %v200_v29 = vor.u32 %v199_v25, %v195_v24  ;;  %v626_v31 = vor.u32 %v625_v27, %v621_v26  ;;  %v1799_v42 = vld [vmem:[%s2247_s1 + $0x168] sm:$0xff]   ;;  %v1801_v44 = vld [vmem:[%s2247_s1 + $0x170] sm:$0xff]   ;;  %v1802_v45 = vld [vmem:[%s2247_s1 + $0x38] sm:$0xff]  }
  0x1d   : >> { %1628 = vmatprep.subr.bf16.mxu0 %v1861_v1  ;;  %v1803_v46 = vld [vmem:[%s2247_s1 + $0x178] sm:$0xff]   ;;  %v1804_v47 = vld [vmem:[%s2247_s1 + $0x80] sm:$0xff]   ;;  %v1806_v50 = vld [vmem:[%s2247_s1 + $0x88] sm:$0xff]  }
  0x1e   : >> { %v1805_v49 = vld [vmem:[%s2247_s1 + $0x180] sm:$0xff]   ;;  %v1807_v51 = vld [vmem:[%s2247_s1 + $0x188] sm:$0xff]   ;;  %v1808_v52 = vld [vmem:[%s2247_s1 + $0x90] sm:$0xff]  }
  0x1f   : >> { %1549 = vmatpush3.bf16.msra.mxu1 %v1776_v7  ;;  %v1809_v53 = vld [vmem:[%s2247_s1 + $0x190] sm:$0xff]   ;;  %v1810_v54 = vld [vmem:[%s2247_s1 + $0x98] sm:$0xff]   ;;  %v1812_v56 = vld [vmem:[%s2247_s1 + $0xa0] sm:$0xff]  }
  0x20   : >> { %1629 = vmatpush3.bf16.msra.mxu0 %v1777_v8  ;;  %1550 = vmatprep.subr.bf16.mxu1 %v1861_v1  ;;  %v1811_v55 = vld [vmem:[%s2247_s1 + $0x198] sm:$0xff]   ;;  %v1813_v57 = vld [vmem:[%s2247_s1 + $0x1a0] sm:$0xff]   ;;  %v1814_v58 = vld [vmem:[%s2247_s1 + $0xa8] sm:$0xff]  }
  0x21   : >> { %1630 = vmatprep.subr.bf16.mxu0 %v1861_v1  ;;  %v1815_v59 = vld [vmem:[%s2247_s1 + $0x1a8] sm:$0xff]   ;;  %v1816_v60 = vld [vmem:[%s2247_s1 + $0xb0] sm:$0xff]   ;;  %v1818_v62 = vld [vmem:[%s2247_s1 + $0xb8] sm:$0xff]  }
  0x22   : >> { %v1817_v61 = vld [vmem:[%s2247_s1 + $0x1b0] sm:$0xff]   ;;  %v1819_v63 = vld [vmem:[%s2247_s1 + $0x1b8] sm:$0xff]   ;;  %v1820_v2 = vld [vmem:[%s2247_s1 + $0xc0] sm:$0xff]  }
  0x23   : >> { %1551 = vmatpush3.bf16.msra.mxu1 %v1778_v9  ;;  %v1381_v3 = vld [vmem:[%s1941_s10 + $0x10] sm:$0xf]  ;;  %v1822_v4 = vld [vmem:[%s2247_s1 + $0x1c0] sm:$0xff]   ;;  %v1823_v5 = vld [vmem:[%s2247_s1 + $0xc8] sm:$0xff]  }
  0x24   : >> { %1631 = vmatpush3.bf16.msra.mxu0 %v1779_v10  ;;  %1552 = vmatprep.subr.bf16.mxu1 %v1861_v1  ;;  %v1824_v6 = vld [vmem:[%s2247_s1 + $0x1c8] sm:$0xff]   ;;  %v1825_v7 = vld [vmem:[%s2247_s1 + $0xd0] sm:$0xff]   ;;  %v1827_v9 = vld [vmem:[%s2247_s1 + $0xd8] sm:$0xff]  }
  0x25   : >> { %1632 = vmatprep.subr.bf16.mxu0 %v1861_v1  ;;  %v1826_v8 = vld [vmem:[%s2247_s1 + $0x1d0] sm:$0xff]   ;;  %v1828_v10 = vld [vmem:[%s2247_s1 + $0x1d8] sm:$0xff]   ;;  %v1831_v16 = vld [vmem:[%s2247_s1 + $0xe8] sm:$0xff]  }
  0x26   : >> { %v1382_v12 = vld [vmem:[%s1941_s10 + $0x14] sm:$0x1]  ;;  %v1836_v24 = vld [vmem:[%s2247_s1 + $0x1f8] sm:$0xff]   ;;  %v1837_v26 = vld [vmem:[%s2247_s1 + $0x200] sm:$0xff]  }
  0x27   : >> { %1553 = vmatpush3.bf16.msra.mxu1 %v1780_v13  ;;  %v1830_v13 = vld [vmem:[%s2247_s1 + $0x1e0] sm:$0xff]   ;;  %v1423_v14 = vcombine.low %v1381_v3, %v1382_v12  ;;  %v1833_v19 = vld [vmem:[%s2247_s1 + $0xf0] sm:$0xff]   ;;  %v1838_v27 = vld [vmem:[%s2247_s1 + $0x208] sm:$0xff]  }
  0x28   : >> { %1633 = vmatpush3.bf16.msra.mxu0 %v1781_v17  ;;  %1554 = vmatprep.subr.bf16.mxu1 %v1861_v1  ;;  %v1832_v17 = vld [vmem:[%s2247_s1 + $0x1e8] sm:$0xff]  }
  0x29   : >> { %1634 = vmatprep.subr.bf16.mxu0 %v1861_v1  ;;  %v962_v18 = vshll.u32 %v1423_v14, 16  ;;  %v960_v21 = vshrl.u32 %v1423_v14, 16 }
  0x2b   : >> { %1555 = vmatpush3.bf16.msra.mxu1 %v1782_v20  ;;  %v1834_v20 = vld [vmem:[%s2247_s1 + $0x1f0] sm:$0xff]  }
  0x2c   : >> { %1635 = vmatpush3.bf16.msra.mxu0 %v1783_v22  ;;  %1556 = vmatprep.subr.bf16.mxu1 %v1861_v1  ;;  %v1835_v22 = vld [vmem:[%s2247_s1 + $0xf8] sm:$0xff]  }
  0x2d   : >> { %1636 = vmatprep.subr.bf16.mxu0 %v1861_v1 }
  0x2f   : >> { %1557 = vmatpush3.bf16.msra.mxu1 %v1784_v23  ;;  %v964_v23 = vrot.slane %v962_v18, 1 }
  0x30   : >> { %1637 = vmatpush3.bf16.msra.mxu0 %v1785_v28  ;;  %1562 = vmatprep.subr.bf16.mxu1 %v1861_v1  ;;  %v1839_v28 = vld [vmem:[%s2247_s1 + $0x210] sm:$0xff]  }
  0x31   : >> { %1642 = vmatprep.subr.bf16.mxu0 %v1861_v1  ;;  %v965_v25 = vor.u32 %v964_v23, %v960_v21 }
  0x32   : >> { %1559 = vmatmul.mubr.bf16.vlgmr.msra.gmra.mrb[0].mxu1 %v200_v29  ;;  %v1841_v29 = vld [vmem:[%s2247_s1 + $0x220] sm:$0xff]  }
  0x33   : >> { %1563 = vmatpush3.bf16.msra.mxu1 %v1787_v30  ;;  %1639 = vmatmul.mubr.bf16.vlgmr.msra.gmra.mrb[0].mxu0 %v626_v31  ;;  %v1842_v30 = vld [vmem:[%s2247_s1 + $0x228] sm:$0xff]   ;;  %v1843_v31 = vld [vmem:[%s2247_s1 + $0x230] sm:$0xff]  }
  0x34   : >> { %1643 = vmatpush3.bf16.msra.mxu0 %v1789_v32  ;;  %1564 = vmatprep.subr.bf16.mxu1 %v1861_v1  ;;  %v1844_v32 = vld [vmem:[%s2247_s1 + $0x238] sm:$0xff]  }
  0x35   : >> { %1644 = vmatprep.subr.bf16.mxu0 %v1861_v1  ;;  %1578 = vmatprep.mubr.msk.bf16.mxu1 %vm1862_vm0, %v1861_v1 }
  0x36   : >> { %1658 = vmatprep.mubr.msk.bf16.mxu0 %vm1862_vm0, %v1861_v1 }
  0x37   : >> { %1565 = vmatpush3.bf16.msra.mxu1 %v1790_v33  ;;  %v1073_v33 = vrot.slane %v1423_v14, 1 }
  0x38   : >> { %1645 = vmatpush3.bf16.msra.mxu0 %v1791_v34  ;;  %1566 = vmatprep.subr.bf16.mxu1 %v1861_v1 }
  0x39   : >> { %1646 = vmatprep.subr.bf16.mxu0 %v1861_v1 }
  0x3b   : >> { %1567 = vmatpush3.bf16.msra.mxu1 %v1792_v35 }
  0x3c   : >> { %1647 = vmatpush3.bf16.msra.mxu0 %v1793_v36  ;;  %1568 = vmatprep.subr.bf16.mxu1 %v1861_v1 }
  0x3d   : >> { %1648 = vmatprep.subr.bf16.mxu0 %v1861_v1 }
  0x3f   : >> { %1569 = vmatpush3.bf16.msra.mxu1 %v1794_v37 }
  0x40   : >> { %1649 = vmatpush3.bf16.msra.mxu0 %v1795_v38  ;;  %1570 = vmatprep.subr.bf16.mxu1 %v1861_v1 }
  0x41   : >> { %1650 = vmatprep.subr.bf16.mxu0 %v1861_v1 }
  0x43   : >> { %1571 = vmatpush3.bf16.msra.mxu1 %v1796_v39 }
  0x44   : >> { %1651 = vmatpush3.bf16.msra.mxu0 %v1797_v40  ;;  %1572 = vmatprep.subr.bf16.mxu1 %v1861_v1 }
  0x45   : >> { %1652 = vmatprep.subr.bf16.mxu0 %v1861_v1 }
  0x47   : >> { %1573 = vmatpush3.bf16.msra.mxu1 %v1798_v41 }
  0x48   : >> { %1653 = vmatpush3.bf16.msra.mxu0 %v1799_v42  ;;  %1574 = vmatprep.subr.bf16.mxu1 %v1861_v1 }
  0x49   : >> { %1654 = vmatprep.subr.bf16.mxu0 %v1861_v1 }
  0x4b   : >> { %1575 = vmatpush3.bf16.msra.mxu1 %v1800_v43 }
  0x4c   : >> { %1655 = vmatpush3.bf16.msra.mxu0 %v1801_v44  ;;  %1576 = vmatprep.subr.bf16.mxu1 %v1861_v1 }
  0x4d   : >> { %1656 = vmatprep.subr.bf16.mxu0 %v1861_v1 }
  0x4f   : >> { %1577 = vmatpush3.bf16.msra.mxu1 %v1802_v45 }
  0x50   : >> { %1657 = vmatpush3.bf16.msra.mxu0 %v1803_v46  ;;  %1582 = vmatprep.subr.bf16.mxu1 %v1861_v1 }
  0x51   : >> { %1662 = vmatprep.subr.bf16.mxu0 %v1861_v1 }
  0x52   : >> { %1579 = vmatmul.mubr.bf16.vlgmr.msra.gmra.mrb[0].mxu1 %v1952_v11  ;;  %v1829_v11 = vld [vmem:[%s2247_s1 + $0xe0] sm:$0xff]  }
  0x53   : >> { %1583 = vmatpush3.bf16.msra.mxu1 %v1804_v47  ;;  %1659 = vmatmul.mubr.bf16.vlgmr.msra.gmra.mrb[0].mxu0 %v734_v48 }
  0x54   : >> { %1663 = vmatpush3.bf16.msra.mxu0 %v1805_v49  ;;  %1584 = vmatprep.subr.bf16.mxu1 %v1861_v1 }
  0x55   : >> { %1664 = vmatprep.subr.bf16.mxu0 %v1861_v1  ;;  %1598 = vmatprep.mubr.msk.bf16.mxu1 %vm1862_vm0, %v1861_v1 }
  0x56   : >> { %1678 = vmatprep.mubr.msk.bf16.mxu0 %vm1862_vm0, %v1861_v1 }
  0x57   : >> { %1585 = vmatpush3.bf16.msra.mxu1 %v1806_v50 }
  0x58   : >> { %1665 = vmatpush3.bf16.msra.mxu0 %v1807_v51  ;;  %1586 = vmatprep.subr.bf16.mxu1 %v1861_v1 }
  0x59   : >> { %1666 = vmatprep.subr.bf16.mxu0 %v1861_v1 }
  0x5b   : >> { %1587 = vmatpush3.bf16.msra.mxu1 %v1808_v52 }
  0x5c   : >> { %1667 = vmatpush3.bf16.msra.mxu0 %v1809_v53  ;;  %1588 = vmatprep.subr.bf16.mxu1 %v1861_v1 }
  0x5d   : >> { %1668 = vmatprep.subr.bf16.mxu0 %v1861_v1 }
  0x5f   : >> { %1589 = vmatpush3.bf16.msra.mxu1 %v1810_v54 }
  0x60   : >> { %1669 = vmatpush3.bf16.msra.mxu0 %v1811_v55  ;;  %1590 = vmatprep.subr.bf16.mxu1 %v1861_v1 }
  0x61   : >> { %1670 = vmatprep.subr.bf16.mxu0 %v1861_v1 }
  0x63   : >> { %1591 = vmatpush3.bf16.msra.mxu1 %v1812_v56 }
  0x64   : >> { %1671 = vmatpush3.bf16.msra.mxu0 %v1813_v57  ;;  %1592 = vmatprep.subr.bf16.mxu1 %v1861_v1 }
  0x65   : >> { %1672 = vmatprep.subr.bf16.mxu0 %v1861_v1 }
  0x67   : >> { %1593 = vmatpush3.bf16.msra.mxu1 %v1814_v58 }
  0x68   : >> { %1673 = vmatpush3.bf16.msra.mxu0 %v1815_v59  ;;  %1594 = vmatprep.subr.bf16.mxu1 %v1861_v1 }
  0x69   : >> { %1674 = vmatprep.subr.bf16.mxu0 %v1861_v1 }
  0x6b   : >> { %1595 = vmatpush3.bf16.msra.mxu1 %v1816_v60 }
  0x6c   : >> { %1675 = vmatpush3.bf16.msra.mxu0 %v1817_v61  ;;  %1596 = vmatprep.subr.bf16.mxu1 %v1861_v1 }
  0x6d   : >> { %1676 = vmatprep.subr.bf16.mxu0 %v1861_v1 }
  0x6f   : >> { %1597 = vmatpush3.bf16.msra.mxu1 %v1818_v62 }
  0x70   : >> { %1677 = vmatpush3.bf16.msra.mxu0 %v1819_v63  ;;  %1602 = vmatprep.subr.bf16.mxu1 %v1861_v1 }
  0x71   : >> { %1682 = vmatprep.subr.bf16.mxu0 %v1861_v1 }
  0x72   : >> { %1599 = vmatmul.mubr.bf16.vlgmr.msra.gmra.mrb[0].mxu1 %v395_v0 }
  0x73   : >> { %1603 = vmatpush3.bf16.msra.mxu1 %v1820_v2  ;;  %1679 = vmatmul.mubr.bf16.vlgmr.msra.gmra.mrb[0].mxu0 %v1381_v3 }
  0x74   : >> { %1683 = vmatpush3.bf16.msra.mxu0 %v1822_v4  ;;  %1604 = vmatprep.subr.bf16.mxu1 %v1861_v1 }
  0x75   : >> { %1684 = vmatprep.subr.bf16.mxu0 %v1861_v1  ;;  %1618 = vmatprep.mubr.msk.bf16.mxu1 %vm1862_vm0, %v1861_v1 }
  0x76   : >> { %1698 = vmatprep.mubr.msk.bf16.mxu0 %vm1862_vm0, %v1861_v1 }
  0x77   : >> { %1605 = vmatpush3.bf16.msra.mxu1 %v1823_v5 }
  0x78   : >> { %1685 = vmatpush3.bf16.msra.mxu0 %v1824_v6  ;;  %1606 = vmatprep.subr.bf16.mxu1 %v1861_v1 }
  0x79   : >> { %1686 = vmatprep.subr.bf16.mxu0 %v1861_v1 }
  0x7b   : >> { %1607 = vmatpush3.bf16.msra.mxu1 %v1825_v7 }
  0x7c   : >> { %1687 = vmatpush3.bf16.msra.mxu0 %v1826_v8  ;;  %1608 = vmatprep.subr.bf16.mxu1 %v1861_v1 }
  0x7d   : >> { %1688 = vmatprep.subr.bf16.mxu0 %v1861_v1 }
  0x7f   : >> { %1609 = vmatpush3.bf16.msra.mxu1 %v1827_v9 }
  0x80   : >> { %1689 = vmatpush3.bf16.msra.mxu0 %v1828_v10  ;;  %1610 = vmatprep.subr.bf16.mxu1 %v1861_v1 }
  0x81   : >> { %1690 = vmatprep.subr.bf16.mxu0 %v1861_v1 }
  0x83   : >> { %1611 = vmatpush3.bf16.msra.mxu1 %v1829_v11 }
  0x84   : >> { %1691 = vmatpush3.bf16.msra.mxu0 %v1830_v13  ;;  %1612 = vmatprep.subr.bf16.mxu1 %v1861_v1 }
  0x85   : >> { %1692 = vmatprep.subr.bf16.mxu0 %v1861_v1 }
  0x87   : >> { %1613 = vmatpush3.bf16.msra.mxu1 %v1831_v16 }
  0x88   : >> { %1693 = vmatpush3.bf16.msra.mxu0 %v1832_v17  ;;  %1614 = vmatprep.subr.bf16.mxu1 %v1861_v1 }
  0x89   : >> { %1694 = vmatprep.subr.bf16.mxu0 %v1861_v1 }
  0x8b   : >> { %1615 = vmatpush3.bf16.msra.mxu1 %v1833_v19 }
  0x8c   : >> { %1695 = vmatpush3.bf16.msra.mxu0 %v1834_v20  ;;  %1616 = vmatprep.subr.bf16.mxu1 %v1861_v1 }
  0x8d   : >> { %1696 = vmatprep.subr.bf16.mxu0 %v1861_v1 }
  0x8f   : >> { %1617 = vmatpush3.bf16.msra.mxu1 %v1835_v22 }
  0x90   : >> { %1697 = vmatpush3.bf16.msra.mxu0 %v1836_v24 }
  0x91   : >> { %1702 = vmatprep.subr.bf16.mxu0 %v1861_v1 }
  0x92   : >> { %1619 = vmatmul.mubr.bf16.vlgmr.msra.gmra.mrb[0].mxu1 %v1962_v15  ;;  %v1840_v15 = vld [vmem:[%s2247_s1 + $0x218] sm:$0xff]  }
  0x93   : >> { %1699 = vmatmul.mubr.bf16.vlgmr.msra.gmra.mrb[0].mxu0 %v965_v25 }
  0x94   : >> { %1703 = vmatpush3.bf16.msra.mxu0 %v1837_v26  ;;  %1718 = vmatprep.mubr.msk.bf16.mxu0 %vm1862_vm0, %v1861_v1 }
  0x95   : >> { %1704 = vmatprep.subr.bf16.mxu0 %v1861_v1 }
  0x98   : >> { %1705 = vmatpush3.bf16.msra.mxu0 %v1838_v27 }
  0x99   : >> { %1706 = vmatprep.subr.bf16.mxu0 %v1861_v1 }
  0x9c   : >> { %1707 = vmatpush3.bf16.msra.mxu0 %v1839_v28 }
  0x9d   : >> { %1708 = vmatprep.subr.bf16.mxu0 %v1861_v1 }
  0xa0   : >> { %1709 = vmatpush3.bf16.msra.mxu0 %v1840_v15 }
  0xa1   : >> { %1710 = vmatprep.subr.bf16.mxu0 %v1861_v1 }
  0xa4   : >> { %1711 = vmatpush3.bf16.msra.mxu0 %v1841_v29 }
  0xa5   : >> { %1712 = vmatprep.subr.bf16.mxu0 %v1861_v1 }
  0xa8   : >> { %1713 = vmatpush3.bf16.msra.mxu0 %v1842_v30 }
  0xa9   : >> { %1714 = vmatprep.subr.bf16.mxu0 %v1861_v1 }
  0xac   : >> { %1715 = vmatpush3.bf16.msra.mxu0 %v1843_v31 }
  0xad   : >> { %1716 = vmatprep.subr.bf16.mxu0 %v1861_v1 }
  0xb0   : >> { %1717 = vmatpush3.bf16.msra.mxu0 %v1844_v32 }
  0xb3   : >> { %1719 = vmatmul.mubr.bf16.vlgmr.msra.gmra.mrb[0].mxu0 %v1073_v33 }
 0x165   : >> { %v591_v34 = vpop.f32.mrb[0].mxu1 }
 0x166   : >> { %v1620_v35 = vpop.f32.mrb[1].mxu1 }
 0x167   : >> { %v594_v36 = vpop.f32.mrb[2].mxu1 }
 0x168   : >> { %v1621_v37 = vpop.f32.mrb[3].mxu1 }
 0x183   : > { %149 = sbr.rel (!%p147_p4) target bundleno = 17 (0x11), region = 77 }
 0x186   : >> { %v1157_v38 = vpop.f32.mrb[0].mxu0 }
 0x187   : >> { %v1722_v39 = vadd.f32 %v1157_v38, %v591_v34  ;;  %v1720_v40 = vpop.f32.mrb[1].mxu0 }
 0x188   : >> { %v1160_v41 = vpop.f32.mrb[2].mxu0 }
 0x189   : >> { %1166 = vst [vmem:[%s1165_s30] sm:$0xff] %v1722_v39  ;;  %v1721_v42 = vpop.f32.mrb[3].mxu0 }
 0x18a PF: > { %s12_s9 = sadd.s32 1, %s1855_s9  }
 0x18b   : > { %p9_p5 = scmp.ge.s32.totalorder %s12_s9, 4  }
 0x18d   :  { %11 = sbr.rel (!%p9_p5) target bundleno = 1 (0x1), region = 88 }

// kernel: _lambda_.25
= control target key start
LH: loop header
LB: loop body
LE: loop exit
PB: predicated region body
PF: predicated region fallthrough
CT: control target
= control target key end

     0   :  { %s949_s15 = smov 0   ;;  %s951_s16 = smov 0   ;;  %s1267_s0 = inlined_call_operand.vmem [shape: f32[8,2,4,2,32], index: 0, kind: input, shape index: {}, may-alias: {0,1}]   ;;  %s1268_s1 = inlined_call_operand.vmem [shape: f32[8,2,4,2,32], index: 1, kind: input, shape index: {}, may-alias: {0,1}]   ;;  %s1269_s2 = inlined_call_operand.vmem [shape: f32[1,1,1,32], index: 2, kind: input, shape index: {}]   ;;  %s1270_s3 = inlined_call_operand.vmem [shape: f32[1,1,1,32], index: 3, kind: input, shape index: {}]   ;;  %s1271_s4 = inlined_call_operand.vmem [shape: f32[8,4,32], index: 4, kind: output, shape index: {}]  }
   0x1   :  { %s953_s17 = smov 0  }
   0x2 LB: > { %s837_s18 = sadd.s32 4294967295, %s922_s17   ;;  %s966_s19 = sadd.s32 1, %s922_s17   ;;  %s922_s17 = sphi %s953_s17, %s1278_s17   ;;  %s918_s16 = sphi %s951_s16, %s1277_s16   ;;  %s914_s15 = sphi %s949_s15, %s1276_s15  }
   0x3   : > { %s18_s20 = ssub.s32 %s922_s17, %s966_s19  ;;  %s21_s21 = sadd.s32 1, %s918_s16 }
   0x4   : > { %p19_p0 = scmp.eq.s32.totalorder %s18_s20, 0  ;;  %p28_p1 = scmp.ne.s32.totalorder %s918_s16, %s914_s15 }
   0x5   : > { %p29_p2 = scmp.eq.s32.totalorder %s922_s17, 0  ;;  %p840_p4 = scmp.ge.s32.totalorder %s922_s17, 2 }
   0x6   : > { %s975_s22 = scalar_select %p19_p0, %s918_s16, %s21_s21  }
   0x7   : > { %p977_p3 = por %p29_p2, %p28_p1  ;;  %154 = sbr.rel (%p840_p4) target bundleno = 28 (0x1c), region = 24 }
   0xe   : > { %157 = sbr.rel (!%p977_p3) target bundleno = 21 (0x15), region = 28  ;;  %s159_s24 = sand.u32 (%p977_p3), 1, %s918_s16  }
   0xf   : > { %s874_s25 = sshll.u32 (%p977_p3), %s922_s17, 6  ;;  %s841_s26 = sshll.u32 (%p977_p3), %s159_s24, 5 }
  0x10   : > { %s165_s29 = scalar_lea.vmem (%p977_p3), %s1267_s0, %s874_s25  ;;  %s161_s30 = scalar_lea.vmem (%p977_p3), [#allocation2], %s841_s26 }
  0x11   : > { %v181_v0 = vld [vmem:[%s165_s29] sm:$0xff] (%p977_p3)   ;;  %v189_v1 = vld [vmem:[%s165_s29 + $0x10] sm:$0xff] (%p977_p3)  }
  0x12   : > { %v197_v2 = vld [vmem:[%s165_s29 + $0x20] sm:$0xff] (%p977_p3)   ;;  %182 = vst [vmem:[%s161_s30] sm:$0xff] (%p977_p3), %v181_v0   ;;  %190 = vst [vmem:[%s161_s30 + $0x8] sm:$0xff] (%p977_p3), %v189_v1   ;;  %v205_v3 = vld [vmem:[%s165_s29 + $0x30] sm:$0xff] (%p977_p3)  }
  0x13   : > { %198 = vst [vmem:[%s161_s30 + $0x10] sm:$0xff] (%p977_p3), %v197_v2   ;;  %206 = vst [vmem:[%s161_s30 + $0x18] sm:$0xff] (%p977_p3), %v205_v3  }
  0x15 PF: > { %267 = sbr.rel (!%p977_p3) target bundleno = 28 (0x1c), region = 69  ;;  %s269_s5 = sand.u32 (%p977_p3), 1, %s918_s16  }
  0x16   : > { %s875_s6 = sshll.u32 (%p977_p3), %s922_s17, 6  ;;  %s845_s7 = sshll.u32 (%p977_p3), %s269_s5, 5 }
  0x17   : > { %s785_s10 = scalar_lea.vmem (%p977_p3), %s1268_s1, %s875_s6  ;;  %s271_s11 = scalar_lea.vmem (%p977_p3), [#allocation3], %s845_s7 }
  0x18   : > { %v848_v4 = vld [vmem:[%s785_s10 + $0x8] sm:$0xff] (%p977_p3)   ;;  %v852_v5 = vld [vmem:[%s785_s10 + $0x18] sm:$0xff] (%p977_p3)  }
  0x19   : > { %v856_v6 = vld [vmem:[%s785_s10 + $0x28] sm:$0xff] (%p977_p3)   ;;  %293 = vst [vmem:[%s271_s11] sm:$0xff] (%p977_p3), %v848_v4   ;;  %301 = vst [vmem:[%s271_s11 + $0x8] sm:$0xff] (%p977_p3), %v852_v5   ;;  %v860_v7 = vld [vmem:[%s785_s10 + $0x38] sm:$0xff] (%p977_p3)  }
  0x1a   : > { %309 = vst [vmem:[%s271_s11 + $0x10] sm:$0xff] (%p977_p3), %v856_v6   ;;  %317 = vst [vmem:[%s271_s11 + $0x18] sm:$0xff] (%p977_p3), %v860_v7  }
  0x1c PF: > { %p864_p5 = scmp.ge.s32.totalorder %s922_s17, 1  ;;  %p377_p6 = scmp.lt.s32.totalorder %s922_s17, 3 }
  0x1e   : > { %p378_p7 = pnand %p864_p5, %p377_p6 }
  0x1f   : > { %s384_s12 = sand.u32 (!%p378_p7), 1, %s914_s15   ;;  %v1004_v8 = vld [vmem:[%s1269_s2] ss:$0 sm:$0xff] (!%p378_p7)  ;;  %vm586_vm0 = vcmask (!%p378_p7), 254976   ;;  %s1218_s25 = sshll.u32 (!%p378_p7), %s837_s18, 2  ;;  %vm731_vm1 = vcmask (!%p378_p7), 1041409  }
  0x20   : > { %381 = sbr.rel (%p378_p7) target bundleno = 101 (0x65), region = 110  ;;  %s999_s13 = sshll.u32 (!%p378_p7), %s384_s12, 5  ;;  %v1009_v9 = vld [vmem:[%s1270_s3] ss:$0 sm:$0xff] (!%p378_p7)  ;;  %vm733_vm2 = vcmask (!%p378_p7), 1042434   ;;  %vm735_vm3 = vcmask (!%p378_p7), 1043459  }
  0x21   : > { %s386_s24 = scalar_lea.vmem (!%p378_p7), [#allocation2], %s999_s13  ;;  %s1068_s15 = scalar_lea.vmem (!%p378_p7), [#allocation3], %s999_s13  ;;  %vm750_vm4 = vcmask (!%p378_p7), 257024  }
  0x22   : > { %v430_v10 = vld [vmem:[%s386_s24] sm:$0x3] (!%p378_p7)  ;;  %v431_v11 = vld [vmem:[%s386_s24 + $0x2] sm:$0x3] (!%p378_p7)  ;;  %v432_v12 = vld [vmem:[%s386_s24 + $0x4] sm:$0x3] (!%p378_p7) }
  0x23   : > { %v433_v13 = vld [vmem:[%s386_s24 + $0x6] sm:$0x3] (!%p378_p7)  ;;  %v434_v14 = vld [vmem:[%s386_s24 + $0x8] sm:$0x3] (!%p378_p7)  ;;  %v452_v15 = vmul.f32 (!%p378_p7), %v1004_v8, %v430_v10  ;;  %v453_v16 = vmul.f32 (!%p378_p7), %v1004_v8, %v431_v11  ;;  %v435_v17 = vld [vmem:[%s386_s24 + $0xa] sm:$0x3] (!%p378_p7)  ;;  %v454_v19 = vmul.f32 (!%p378_p7), %v1004_v8, %v432_v12 }
  0x24   : > { %v436_v18 = vld [vmem:[%s386_s24 + $0xc] sm:$0x3] (!%p378_p7)  ;;  %v455_v20 = vmul.f32 (!%p378_p7), %v1004_v8, %v433_v13  ;;  %v456_v21 = vmul.f32 (!%p378_p7), %v1004_v8, %v434_v14  ;;  %v437_v22 = vld [vmem:[%s386_s24 + $0xe] sm:$0x3] (!%p378_p7)  ;;  %v438_v23 = vld [vmem:[%s386_s24 + $0x10] sm:$0x3] (!%p378_p7)  ;;  %v457_v25 = vmul.f32 (!%p378_p7), %v1004_v8, %v435_v17 }
  0x25   : > { %v439_v24 = vld [vmem:[%s386_s24 + $0x12] sm:$0x3] (!%p378_p7)  ;;  %v458_v26 = vmul.f32 (!%p378_p7), %v1004_v8, %v436_v18  ;;  %v1020_v27 = vadd.f32 (!%p378_p7), %v1009_v9, %v452_v15  ;;  %v1023_v28 = vadd.f32 (!%p378_p7), %v1009_v9, %v453_v16  ;;  %v440_v29 = vld [vmem:[%s386_s24 + $0x14] sm:$0x3] (!%p378_p7)  ;;  %v441_v30 = vld [vmem:[%s386_s24 + $0x16] sm:$0x3] (!%p378_p7)  ;;  %v459_v32 = vmul.f32 (!%p378_p7), %v1004_v8, %v437_v22 }
  0x26   : > { %v442_v31 = vld [vmem:[%s386_s24 + $0x18] sm:$0x3] (!%p378_p7)  ;;  %v460_v33 = vmul.f32 (!%p378_p7), %v1004_v8, %v438_v23  ;;  %v461_v34 = vmul.f32 (!%p378_p7), %v1004_v8, %v439_v24  ;;  %v1029_v35 = vadd.f32 (!%p378_p7), %v1009_v9, %v454_v19  ;;  %v443_v36 = vld [vmem:[%s386_s24 + $0x1a] sm:$0x3] (!%p378_p7)  ;;  %v444_v37 = vld [vmem:[%s386_s24 + $0x1c] sm:$0x3] (!%p378_p7)  ;;  %v462_v39 = vmul.f32 (!%p378_p7), %v1004_v8, %v440_v29 }
  0x27   : > { %v445_v38 = vld [vmem:[%s386_s24 + $0x1e] sm:$0x3]  ;;  %v463_v40 = vmul.f32 %v1004_v8, %v441_v30  ;;  %v464_v41 = vmul.f32 %v1004_v8, %v442_v31  ;;  %v1035_v42 = vadd.f32 %v1009_v9, %v455_v20  ;;  %v465_v43 = vmul.f32 %v1004_v8, %v443_v36  ;;  %v506_v55 = vld [vmem:[%s1068_s15] sm:$0x3]  ;;  %v507_v60 = vld [vmem:[%s1068_s15 + $0x2] sm:$0x3] }
  0x28   : > { %v466_v44 = vmul.f32 %v1004_v8, %v444_v37  ;;  %v467_v45 = vmul.f32 %v1004_v8, %v445_v38  ;;  %v1041_v46 = vadd.f32 %v1009_v9, %v456_v21  ;;  %v1044_v47 = vadd.f32 %v1009_v9, %v457_v25  ;;  %v508_v61 = vld [vmem:[%s1068_s15 + $0x4] sm:$0x3]  ;;  %v509_v62 = vld [vmem:[%s1068_s15 + $0x6] sm:$0x3]  ;;  %v510_v63 = vld [vmem:[%s1068_s15 + $0x8] sm:$0x3] }
  0x29   : > { %v1047_v48 = vadd.f32 %v1009_v9, %v458_v26  ;;  %v1050_v49 = vadd.f32 %v1009_v9, %v459_v32  ;;  %v1053_v50 = vadd.f32 %v1009_v9, %v460_v33  ;;  %v1056_v51 = vadd.f32 %v1009_v9, %v461_v34  ;;  %v511_v4 = vld [vmem:[%s1068_s15 + $0xa] sm:$0x3]  ;;  %v512_v5 = vld [vmem:[%s1068_s15 + $0xc] sm:$0x3]  ;;  %v513_v6 = vld [vmem:[%s1068_s15 + $0xe] sm:$0x3] }
  0x2a   : > { %v1059_v52 = vadd.f32 %v1009_v9, %v462_v39  ;;  %v1062_v53 = vadd.f32 %v1009_v9, %v463_v40  ;;  %v1065_v54 = vadd.f32 %v1009_v9, %v464_v41  ;;  %v1072_v56 = vadd.f32 %v1009_v9, %v465_v43  ;;  %v514_v7 = vld [vmem:[%s1068_s15 + $0x10] sm:$0x3]  ;;  %v515_v14 = vld [vmem:[%s1068_s15 + $0x12] sm:$0x3]  ;;  %v516_v15 = vld [vmem:[%s1068_s15 + $0x14] sm:$0x3] }
  0x2b   : > { %v1075_v57 = vadd.f32 %v1009_v9, %v466_v44  ;;  %v1078_v58 = vadd.f32 %v1009_v9, %v467_v45  ;;  %v490_v59 = vmax.f32 %v1020_v27, 0.0  ;;  %v491_v0 = vmax.f32 %v1023_v28, 0.0  ;;  %v517_v20 = vld [vmem:[%s1068_s15 + $0x16] sm:$0x3]  ;;  %v518_v24 = vld [vmem:[%s1068_s15 + $0x18] sm:$0x3] }
  0x2c   : > { %v492_v1 = vmax.f32 %v1029_v35, 0.0  ;;  %v493_v2 = vmax.f32 %v1035_v42, 0.0  ;;  %v494_v3 = vmax.f32 %v1041_v46, 0.0  ;;  %v495_v10 = vmax.f32 %v1044_v47, 0.0  ;;  %v519_v26 = vld [vmem:[%s1068_s15 + $0x1a] sm:$0x3] }
  0x2d   : > { %v496_v11 = vmax.f32 %v1047_v48, 0.0  ;;  %v497_v12 = vmax.f32 %v1050_v49, 0.0  ;;  %v498_v13 = vmax.f32 %v1053_v50, 0.0  ;;  %v499_v16 = vmax.f32 %v1056_v51, 0.0  ;;  %v520_v29 = vld [vmem:[%s1068_s15 + $0x1c] sm:$0x3] }
  0x2e   : > { %v500_v17 = vmax.f32 %v1059_v52, 0.0  ;;  %v501_v18 = vmax.f32 %v1062_v53, 0.0  ;;  %v502_v19 = vmax.f32 %v1065_v54, 0.0  ;;  %v522_v25 = vmul.f32 %v1004_v8, %v506_v55  ;;  %v521_v30 = vld [vmem:[%s1068_s15 + $0x1e] sm:$0x3]  ;;  %p423_p8 = scmp.lt.s32.totalorder %s1218_s25, 7 }
  0x2f   : > { %v523_v31 = vmul.f32 %v1004_v8, %v507_v60  ;;  %v524_v32 = vmul.f32 %v1004_v8, %v508_v61  ;;  %v525_v33 = vmul.f32 %v1004_v8, %v509_v62  ;;  %v526_v34 = vmul.f32 %v1004_v8, %v510_v63 }
  0x30   : > { %v527_v36 = vmul.f32 %v1004_v8, %v511_v4  ;;  %v528_v37 = vmul.f32 %v1004_v8, %v512_v5  ;;  %v529_v38 = vmul.f32 %v1004_v8, %v513_v6  ;;  %v530_v39 = vmul.f32 %v1004_v8, %v514_v7  ;;  %s1280_s25 = smov (!%p423_p8, %s1218_s25), 7 }
  0x31   : > { %v531_v40 = vmul.f32 %v1004_v8, %v515_v14  ;;  %v532_v41 = vmul.f32 %v1004_v8, %v516_v15  ;;  %v533_v43 = vmul.f32 %v1004_v8, %v517_v20  ;;  %v534_v44 = vmul.f32 %v1004_v8, %v518_v24  ;;  %s868_s17 = sshll.u32 %s1280_s25, 2 }
  0x32   : > { %v535_v45 = vmul.f32 %v1004_v8, %v519_v26  ;;  %v536_v55 = vmul.f32 %v1004_v8, %v520_v29  ;;  %v537_v60 = vmul.f32 %v1004_v8, %v521_v30  ;;  %v538_v61 = vadd.f32 %v1009_v9, %v522_v25  ;;  %s426_s27 = scalar_lea.vmem %s1271_s4, %s868_s17 }
  0x33   : > { %v539_v62 = vadd.f32 %v1009_v9, %v523_v31  ;;  %v540_v63 = vadd.f32 %v1009_v9, %v524_v32  ;;  %v541_v4 = vadd.f32 %v1009_v9, %v525_v33  ;;  %v542_v5 = vadd.f32 %v1009_v9, %v526_v34 }
  0x34   : > { %v543_v6 = vadd.f32 %v1009_v9, %v527_v36  ;;  %v544_v7 = vadd.f32 %v1009_v9, %v528_v37  ;;  %v545_v14 = vadd.f32 %v1009_v9, %v529_v38  ;;  %v546_v15 = vadd.f32 %v1009_v9, %v530_v39 }
  0x35   : > { %v547_v8 = vadd.f32 %v1009_v9, %v531_v40  ;;  %v548_v20 = vadd.f32 %v1009_v9, %v532_v41  ;;  %v549_v24 = vadd.f32 %v1009_v9, %v533_v43  ;;  %v550_v25 = vadd.f32 %v1009_v9, %v534_v44 }
  0x36   : > { %v551_v26 = vadd.f32 %v1009_v9, %v535_v45  ;;  %v552_v29 = vadd.f32 %v1009_v9, %v536_v55  ;;  %v553_v30 = vadd.f32 %v1009_v9, %v537_v60  ;;  %v554_v31 = vmax.f32 %v538_v61, 0.0 }
  0x37   : > { %v555_v32 = vmax.f32 %v539_v62, 0.0  ;;  %v556_v33 = vmax.f32 %v540_v63, 0.0  ;;  %v557_v34 = vmax.f32 %v541_v4, 0.0  ;;  %v558_v36 = vmax.f32 %v542_v5, 0.0 }
  0x38   : > { %v559_v37 = vmax.f32 %v543_v6, 0.0  ;;  %v560_v38 = vmax.f32 %v544_v7, 0.0  ;;  %v561_v39 = vmax.f32 %v545_v14, 0.0  ;;  %v562_v40 = vmax.f32 %v546_v15, 0.0 }
  0x39   : > { %v563_v41 = vmax.f32 %v547_v8, 0.0  ;;  %v564_v23 = vmax.f32 %v548_v20, 0.0  ;;  %v565_v43 = vmax.f32 %v549_v24, 0.0  ;;  %v566_v22 = vmax.f32 %v550_v25, 0.0 }
  0x3a   : > { %v567_v44 = vmax.f32 %v551_v26, 0.0  ;;  %v568_v21 = vmax.f32 %v552_v29, 0.0  ;;  %v569_v45 = vmax.f32 %v553_v30, 0.0  ;;  %v570_v55 = vadd.f32 %v554_v31, %v490_v59 }
  0x3b   : > { %v571_v9 = vadd.f32 %v555_v32, %v491_v0  ;;  %v572_v60 = vadd.f32 %v556_v33, %v492_v1  ;;  %v573_v61 = vadd.f32 %v557_v34, %v493_v2  ;;  %v574_v62 = vadd.f32 %v558_v36, %v494_v3 }
  0x3c   : > { %v575_v63 = vadd.f32 %v559_v37, %v495_v10  ;;  %v576_v4 = vadd.f32 %v560_v38, %v496_v11  ;;  %v577_v27 = vadd.f32 %v561_v39, %v497_v12  ;;  %v578_v28 = vadd.f32 %v562_v40, %v498_v13 }
  0x3d   : > { %v579_v35 = vadd.f32 %v563_v41, %v499_v16  ;;  %v580_v42 = vadd.f32 %v564_v23, %v500_v17  ;;  %v1167_v46 = vadd.f32 %v565_v43, %v501_v18  ;;  %v1171_v47 = vadd.f32 %v566_v22, %v502_v19 }
  0x3e   : > { %v1273_v48 = vmax.f32 %v1072_v56, 0.0  ;;  %v1274_v50 = vmax.f32 %v1075_v57, 0.0  ;;  %v1275_v51 = vmax.f32 %v1078_v58, 0.0  ;;  %v587_v53 = vsel %vm586_vm0, %v570_v55, 0.0 }
  0x3f   : > { %v588_v0 = vrot.slane %v587_v53, 4  ;;  %v594_v1 = vsel %vm586_vm0, %v571_v9, 0.0  ;;  %v601_v54 = vsel %vm586_vm0, %v572_v60, 0.0  ;;  %v608_v2 = vsel %vm586_vm0, %v573_v61, 0.0 }
  0x40   : > { %v1175_v49 = vadd.f32 %v567_v44, %v1273_v48  ;;  %v1179_v59 = vadd.f32 %v568_v21, %v1274_v50  ;;  %v1183_v52 = vadd.f32 %v569_v45, %v1275_v51  ;;  %v595_v56 = vrot.slane %v594_v1, 4 }
  0x41   : > { %v602_v3 = vrot.slane %v601_v54, 4  ;;  %v609_v10 = vrot.slane %v608_v2, 4  ;;  %v615_v57 = vsel %vm586_vm0, %v574_v62, 0.0  ;;  %v589_v11 = vadd.f32 %v588_v0, %v587_v53 }
  0x42   : > { %v616_v12 = vrot.slane %v615_v57, 4  ;;  %v622_v58 = vsel %vm586_vm0, %v575_v63, 0.0  ;;  %v629_v13 = vsel %vm586_vm0, %v576_v4, 0.0  ;;  %v596_v16 = vadd.f32 %v595_v56, %v594_v1 }
  0x43   : > { %v603_v17 = vadd.f32 %v602_v3, %v601_v54  ;;  %v610_v18 = vadd.f32 %v609_v10, %v608_v2  ;;  %v623_v19 = vrot.slane %v622_v58, 4  ;;  %v590_v21 = vrot.slane %v589_v11, 2 }
  0x44   : > { %v617_v22 = vadd.f32 %v616_v12, %v615_v57  ;;  %v630_v23 = vrot.slane %v629_v13, 4  ;;  %v636_v5 = vsel %vm586_vm0, %v577_v27, 0.0  ;;  %v597_v6 = vrot.slane %v596_v16, 2 }
  0x45   : > { %v604_v7 = vrot.slane %v603_v17, 2  ;;  %v611_v14 = vrot.slane %v610_v18, 2  ;;  %v624_v15 = vadd.f32 %v623_v19, %v622_v58  ;;  %v591_v8 = vadd.f32 %v590_v21, %v589_v11 }
  0x46   : > { %v618_v20 = vrot.slane %v617_v22, 2  ;;  %v631_v24 = vadd.f32 %v630_v23, %v629_v13  ;;  %v637_v25 = vrot.slane %v636_v5, 4  ;;  %v598_v26 = vadd.f32 %v597_v6, %v596_v16 }
  0x47   : > { %v605_v29 = vadd.f32 %v604_v7, %v603_v17  ;;  %v612_v30 = vadd.f32 %v611_v14, %v610_v18  ;;  %v625_v31 = vrot.slane %v624_v15, 2  ;;  %v592_v32 = vrot.slane %v591_v8, 1 }
  0x48   : > { %v619_v33 = vadd.f32 %v618_v20, %v617_v22  ;;  %v632_v34 = vrot.slane %v631_v24, 2  ;;  %v638_v36 = vadd.f32 %v637_v25, %v636_v5  ;;  %v599_v37 = vrot.slane %v598_v26, 1 }
  0x49   : > { %v606_v38 = vrot.slane %v605_v29, 1  ;;  %v613_v39 = vrot.slane %v612_v30, 1  ;;  %v626_v40 = vadd.f32 %v625_v31, %v624_v15  ;;  %v1193_v41 = vadd.f32 %v592_v32, %v591_v8 }
  0x4a   : > { %v620_v43 = vrot.slane %v619_v33, 1  ;;  %v633_v44 = vadd.f32 %v632_v34, %v631_v24  ;;  %v639_v45 = vrot.slane %v638_v36, 2  ;;  %v1195_v55 = vadd.f32 %v599_v37, %v598_v26 }
  0x4b   : > { %v1197_v9 = vadd.f32 %v606_v38, %v605_v29  ;;  %v1199_v60 = vadd.f32 %v613_v39, %v612_v30  ;;  %v627_v61 = vrot.slane %v626_v40, 1  ;;  %v643_v27 = vsel %vm586_vm0, %v578_v28, 0.0 }
  0x4c   : > { %v1201_v62 = vadd.f32 %v620_v43, %v619_v33  ;;  %v634_v63 = vrot.slane %v633_v44, 1  ;;  %v640_v4 = vadd.f32 %v639_v45, %v638_v36  ;;  %v644_v50 = vrot.slane %v643_v27, 4 }
  0x4d   : > { %v1204_v48 = vadd.f32 %v627_v61, %v626_v40  ;;  %v650_v51 = vsel %vm586_vm0, %v579_v35, 0.0  ;;  %v657_v53 = vsel %vm586_vm0, %v580_v42, 0.0  ;;  %v664_v3 = vsel %vm586_vm0, %v1167_v46, 0.0 }
  0x4e   : > { %v1208_v0 = vadd.f32 %v634_v63, %v633_v44  ;;  %v641_v1 = vrot.slane %v640_v4, 1  ;;  %v651_v54 = vrot.slane %v650_v51, 4  ;;  %v658_v2 = vrot.slane %v657_v53, 4 }
  0x4f   : > { %v645_v56 = vadd.f32 %v644_v50, %v643_v27  ;;  %v671_v28 = vsel %vm586_vm0, %v1171_v47, 0.0  ;;  %v678_v10 = vsel %vm586_vm0, %v1175_v49, 0.0  ;;  %v665_v12 = vrot.slane %v664_v3, 4 }
  0x50   : > { %v642_v57 = vadd.f32 %v641_v1, %v640_v4  ;;  %v652_v11 = vadd.f32 %v651_v54, %v650_v51  ;;  %v659_v35 = vadd.f32 %v658_v2, %v657_v53  ;;  %v672_v58 = vrot.slane %v671_v28, 4 }
  0x51   : > { %v646_v42 = vrot.slane %v645_v56, 2  ;;  %v679_v13 = vrot.slane %v678_v10, 4  ;;  %v685_v46 = vsel %vm586_vm0, %v1179_v59, 0.0  ;;  %v666_v47 = vadd.f32 %v665_v12, %v664_v3 }
  0x52   : > { %v653_v16 = vrot.slane %v652_v11, 2  ;;  %v660_v17 = vrot.slane %v659_v35, 2  ;;  %v686_v18 = vrot.slane %v685_v46, 4  ;;  %v673_v49 = vadd.f32 %v672_v58, %v671_v28 }
  0x53   : > { %v647_v19 = vadd.f32 %v646_v42, %v645_v56  ;;  %v680_v21 = vadd.f32 %v679_v13, %v678_v10  ;;  %v692_v22 = vsel %vm586_vm0, %v1183_v52, 0.0  ;;  %v667_v6 = vrot.slane %v666_v47, 2 }
  0x54   : > { %v654_v23 = vadd.f32 %v653_v16, %v652_v11  ;;  %v661_v5 = vadd.f32 %v660_v17, %v659_v35  ;;  %v687_v7 = vadd.f32 %v686_v18, %v685_v46  ;;  %v674_v59 = vrot.slane %v673_v49, 2 }
  0x55   : > { %v648_v14 = vrot.slane %v647_v19, 1  ;;  %v681_v15 = vrot.slane %v680_v21, 2  ;;  %v693_v8 = vrot.slane %v692_v22, 4  ;;  %v668_v25 = vadd.f32 %v667_v6, %v666_v47 }
  0x56   : > { %v655_v20 = vrot.slane %v654_v23, 1  ;;  %v662_v24 = vrot.slane %v661_v5, 1  ;;  %v688_v26 = vrot.slane %v687_v7, 2  ;;  %v675_v52 = vadd.f32 %v674_v59, %v673_v49 }
  0x57   : > { %v649_v29 = vadd.f32 %v648_v14, %v647_v19  ;;  %v682_v30 = vadd.f32 %v681_v15, %v680_v21  ;;  %v694_v31 = vadd.f32 %v693_v8, %v692_v22  ;;  %v669_v34 = vrot.slane %v668_v25, 1 }
  0x58   : > { %v656_v32 = vadd.f32 %v655_v20, %v654_v23  ;;  %v663_v33 = vadd.f32 %v662_v24, %v661_v5  ;;  %v689_v36 = vadd.f32 %v688_v26, %v687_v7  ;;  %v676_v37 = vrot.slane %v675_v52, 1 }
  0x59   : > { %v683_v38 = vrot.slane %v682_v30, 1  ;;  %v695_v39 = vrot.slane %v694_v31, 2  ;;  %v699_v40 = vmul.f32 0.25, %v1193_v41  ;;  %v670_v43 = vadd.f32 %v669_v34, %v668_v25 }
  0x5a   : > { %v690_v44 = vrot.slane %v689_v36, 1  ;;  %v700_v45 = vmul.f32 0.25, %v1195_v55  ;;  %v701_v61 = vmul.f32 0.25, %v1197_v9  ;;  %v677_v63 = vadd.f32 %v676_v37, %v675_v52 }
  0x5b   : > { %v684_v4 = vadd.f32 %v683_v38, %v682_v30  ;;  %v696_v27 = vadd.f32 %v695_v39, %v694_v31  ;;  %v702_v50 = vmul.f32 0.25, %v1199_v60  ;;  %v703_v53 = vmul.f32 0.25, %v1201_v62 }
  0x5c   : > { %v691_v51 = vadd.f32 %v690_v44, %v689_v36  ;;  %v704_v1 = vmul.f32 0.25, %v1204_v48  ;;  %v705_v54 = vmul.f32 0.25, %v1208_v0  ;;  %v706_v2 = vmul.f32 0.25, %v642_v57 }
  0x5d   : > { %v697_v41 = vrot.slane %v696_v27, 1  ;;  %v707_v56 = vmul.f32 0.25, %v649_v29  ;;  %v708_v3 = vmul.f32 0.25, %v656_v32  ;;  %v709_v55 = vmul.f32 0.25, %v663_v33 }
  0x5e   : > { %v710_v28 = vmul.f32 0.25, %v670_v43  ;;  %v711_v9 = vmul.f32 0.25, %v677_v63  ;;  %v712_v10 = vmul.f32 0.25, %v684_v4  ;;  %v713_v11 = vmul.f32 0.25, %v691_v51 }
  0x5f   : > { %v698_v60 = vadd.f32 %v697_v41, %v696_v27  ;;  %v732_v62 = vsel %vm731_vm1, %v700_v45, %v699_v40  ;;  %v737_v48 = vsel %vm731_vm1, %v704_v1, %v703_v53  ;;  %v740_v35 = vsel %vm731_vm1, %v708_v3, %v707_v56 }
  0x60   : > { %v734_v0 = vsel %vm733_vm2, %v701_v61, %v732_v62  ;;  %v738_v57 = vsel %vm733_vm2, %v705_v54, %v737_v48  ;;  %v743_v12 = vsel %vm731_vm1, %v712_v10, %v711_v9  ;;  %v741_v46 = vsel %vm733_vm2, %v709_v55, %v740_v35 }
  0x61   : > { %v714_v42 = vmul.f32 0.25, %v698_v60  ;;  %v736_v58 = vsel %vm735_vm3, %v702_v50, %v734_v0  ;;  %v739_v13 = vsel %vm735_vm3, %v706_v2, %v738_v57  ;;  %v742_v16 = vsel %vm735_vm3, %v710_v28, %v741_v46 }
  0x62   : > { %v744_v17 = vsel %vm733_vm2, %v713_v11, %v743_v12  ;;  %751 = vst.msk [vmem:[%s426_s27] sm:$0xf] %vm750_vm4, %v736_v58  ;;  %752 = vst.msk [vmem:[%s426_s27 + $0x4] sm:$0xf] %vm750_vm4, %v739_v13 }
  0x63   : > { %v745_v47 = vsel %vm735_vm3, %v714_v42, %v744_v17  ;;  %753 = vst.msk [vmem:[%s426_s27 + $0x8] sm:$0xf] %vm750_vm4, %v742_v16 }
  0x64   : > { %754 = vst.msk [vmem:[%s426_s27 + $0xc] sm:$0xf] %vm750_vm4, %v745_v47 }
  0x65 PF: > { %p11_p9 = scmp.ge.s32.totalorder %s966_s19, 4   ;;  %s1276_s15 = smov %s918_s16 }
  0x66   : > { %s1277_s16 = smov %s975_s22  ;;  %s1278_s17 = smov %s966_s19 }
  0x67   :  { %13 = sbr.rel (!%p11_p9) target bundleno = 2 (0x2), region = 161 }

// kernel: _lambda_.26
= control target key start
LH: loop header
LB: loop body
LE: loop exit
PB: predicated region body
PF: predicated region fallthrough
CT: control target
= control target key end

     0   :  { %s307_s1 = inlined_call_operand.vmem [shape: bf16[128,128], index: 1, kind: input, shape index: {}]   ;;  %s308_s2 = inlined_call_operand.vmem [shape: f32[1,128], index: 2, kind: input, shape index: {}]   ;;  %s309_s3 = inlined_call_operand.vmem [shape: f32[1,128], index: 3, kind: input, shape index: {}]   ;;  %s310_s4 = inlined_call_operand.vmem [shape: f32[1,128], index: 4, kind: input, shape index: {}]   ;;  %s311_s5 = inlined_call_operand.vmem [shape: f32[1,128], index: 5, kind: input, shape index: {}]   ;;  %s312_s0 = inlined_call_operand.vmem [shape: f32[32,128], index: 0, kind: input, shape index: {}]   ;;  %s313_s6 = inlined_call_operand.vmem [shape: f32[32,128], index: 6, kind: output, shape index: {}]  }
   0x1   :  { %v216_v0 = vld [vmem:[%s307_s1] sm:$0xff]   ;;  %v217_v1 = vld [vmem:[%s307_s1 + $0x8] sm:$0xff]   ;;  %v218_v2 = vld [vmem:[%s307_s1 + $0x10] sm:$0xff]  }
   0x2   :  { %196 = vmatprep.subr.bf16.mxu0 %v216_v0  ;;  %v219_v3 = vld [vmem:[%s307_s1 + $0x18] sm:$0xff]   ;;  %v32_v4 = vld [vmem:[%s312_s0] sm:$0xff]  ;;  %v33_v5 = vld [vmem:[%s312_s0 + $0x8] sm:$0xff] }
   0x3   :  { %197 = vmatpush3.bf16.msra.mxu0 %v216_v0  ;;  %v40_v6 = vpack.c.bf16 %v33_v5, %v32_v4  ;;  %v220_v7 = vld [vmem:[%s307_s1 + $0x20] sm:$0xff]   ;;  %v221_v8 = vld [vmem:[%s307_s1 + $0x28] sm:$0xff]   ;;  %v222_v9 = vld [vmem:[%s307_s1 + $0x30] sm:$0xff]  }
   0x4   :  { %198 = vmatprep.subr.bf16.mxu0 %v217_v1  ;;  %v223_v10 = vld [vmem:[%s307_s1 + $0x38] sm:$0xff]   ;;  %v34_v11 = vld [vmem:[%s312_s0 + $0x10] sm:$0xff] }
   0x5   :  { %212 = vmatprep.mubr.bf16.mxu0 %v40_v6  ;;  %v35_v12 = vld [vmem:[%s312_s0 + $0x18] sm:$0xff] }
   0x6   :  { %v41_v13 = vpack.c.bf16 %v35_v12, %v34_v11 }
   0x7   :  { %199 = vmatpush3.bf16.msra.mxu0 %v217_v1 }
   0x8   :  { %200 = vmatprep.subr.bf16.mxu0 %v218_v2 }
   0xb   :  { %201 = vmatpush3.bf16.msra.mxu0 %v218_v2 }
   0xc   :  { %202 = vmatprep.subr.bf16.mxu0 %v219_v3 }
   0xf   :  { %203 = vmatpush3.bf16.msra.mxu0 %v219_v3 }
  0x10   :  { %204 = vmatprep.subr.bf16.mxu0 %v220_v7 }
  0x13   :  { %205 = vmatpush3.bf16.msra.mxu0 %v220_v7 }
  0x14   :  { %206 = vmatprep.subr.bf16.mxu0 %v221_v8 }
  0x17   :  { %207 = vmatpush3.bf16.msra.mxu0 %v221_v8 }
  0x18   :  { %208 = vmatprep.subr.bf16.mxu0 %v222_v9 }
  0x1b   :  { %209 = vmatpush3.bf16.msra.mxu0 %v222_v9 }
  0x1c   :  { %210 = vmatprep.subr.bf16.mxu0 %v223_v10 }
  0x1f   :  { %211 = vmatpush3.bf16.msra.mxu0 %v223_v10 }
  0x22   :  { %213 = vmatmul.mubr.bf16.vlgmr.msra.gmra.mrb[0].mxu0 %v41_v13 }
  0xf5   :  { %v214_v14 = vpop.f32.mrb[0].mxu0 }
  0xf6   :  { %172 = vst [vmem:[%s313_s6 + $0x10] sm:$0xff] %v214_v14  ;;  %v140_v15 = vpop.f32.mrb[1].mxu0 }
  0xf7   :  { %170 = vst [vmem:[%s313_s6] sm:$0xff] %v140_v15  ;;  %v215_v16 = vpop.f32.mrb[2].mxu0 }
  0xf8   :  { %173 = vst [vmem:[%s313_s6 + $0x18] sm:$0xff] %v215_v16  ;;  %v143_v17 = vpop.f32.mrb[3].mxu0 }
  0xf9   :  { %171 = vst [vmem:[%s313_s6 + $0x8] sm:$0xff] %v143_v17 }

// kernel: _lambda_.27
= control target key start
LH: loop header
LB: loop body
LE: loop exit
PB: predicated region body
PF: predicated region fallthrough
CT: control target
= control target key end

     0   :  { %s404_s1 = inlined_call_operand.vmem [shape: bf16[128,128], index: 1, kind: input, shape index: {}]   ;;  %s405_s0 = inlined_call_operand.vmem [shape: f32[32,128], index: 0, kind: input, shape index: {}]   ;;  %s406_s2 = inlined_call_operand.vmem [shape: f32[1,128], index: 2, kind: input, shape index: {}]   ;;  %s407_s3 = inlined_call_operand.vmem [shape: f32[1,128], index: 3, kind: input, shape index: {}]   ;;  %s408_s4 = inlined_call_operand.vmem [shape: f32[1,128], index: 4, kind: input, shape index: {}]   ;;  %s409_s5 = inlined_call_operand.vmem [shape: f32[1,128], index: 5, kind: input, shape index: {}]   ;;  %s410_s6 = inlined_call_operand.vmem [shape: bf16[32,128], index: 6, kind: output, shape index: {}]  }
   0x1   :  { %v307_v0 = vld [vmem:[%s404_s1] sm:$0xff]   ;;  %v308_v1 = vld [vmem:[%s404_s1 + $0x8] sm:$0xff]   ;;  %v309_v2 = vld [vmem:[%s404_s1 + $0x10] sm:$0xff]  }
   0x2   :  { %287 = vmatprep.subr.bf16.mxu0 %v307_v0  ;;  %v310_v3 = vld [vmem:[%s404_s1 + $0x18] sm:$0xff]   ;;  %v32_v4 = vld [vmem:[%s405_s0] sm:$0xff]  ;;  %v33_v5 = vld [vmem:[%s405_s0 + $0x8] sm:$0xff] }
   0x3   :  { %288 = vmatpush3.bf16.msra.mxu0 %v307_v0  ;;  %v246_v6 = vld [vmem:[%s406_s2] ss:$0 sm:$0xff]  ;;  %v34_v16 = vld [vmem:[%s405_s0 + $0x10] sm:$0xff]  ;;  %v35_v17 = vld [vmem:[%s405_s0 + $0x18] sm:$0xff] }
   0x4   :  { %289 = vmatprep.subr.bf16.mxu0 %v308_v1  ;;  %v43_v7 = vmul.f32 %v246_v6, %v32_v4  ;;  %v44_v8 = vmul.f32 %v246_v6, %v33_v5  ;;  %v247_v9 = vld [vmem:[%s407_s3] ss:$0 sm:$0xff]  ;;  %v312_v18 = vld [vmem:[%s404_s1 + $0x28] sm:$0xff]   ;;  %v45_v19 = vmul.f32 %v246_v6, %v34_v16  ;;  %v46_v20 = vmul.f32 %v246_v6, %v35_v17  ;;  %v313_v21 = vld [vmem:[%s404_s1 + $0x30] sm:$0xff]  }
   0x5   :  { %v311_v12 = vld [vmem:[%s404_s1 + $0x20] sm:$0xff]   ;;  %v314_v24 = vld [vmem:[%s404_s1 + $0x38] sm:$0xff]  }
   0x6   :  { %v54_v10 = vadd.f32 %v247_v9, %v43_v7  ;;  %v55_v11 = vadd.f32 %v247_v9, %v44_v8  ;;  %v56_v22 = vadd.f32 %v247_v9, %v45_v19  ;;  %v57_v23 = vadd.f32 %v247_v9, %v46_v20  ;;  %v256_v28 = vld [vmem:[%s408_s4] ss:$0 sm:$0xff] }
   0x7   :  { %290 = vmatpush3.bf16.msra.mxu0 %v308_v1  ;;  %v257_v30 = vld [vmem:[%s409_s5] ss:$0 sm:$0xff] }
   0x8   :  { %291 = vmatprep.subr.bf16.mxu0 %v309_v2  ;;  %v58_v13 = vmax.f32 %v54_v10, 0.0  ;;  %v59_v14 = vmax.f32 %v55_v11, 0.0  ;;  %v60_v25 = vmax.f32 %v56_v22, 0.0  ;;  %v61_v26 = vmax.f32 %v57_v23, 0.0 }
   0xa   :  { %v66_v15 = vpack.c.bf16 %v59_v14, %v58_v13  ;;  %v67_v27 = vpack.c.bf16 %v61_v26, %v60_v25 }
   0xb   :  { %292 = vmatpush3.bf16.msra.mxu0 %v309_v2 }
   0xc   :  { %293 = vmatprep.subr.bf16.mxu0 %v310_v3  ;;  %303 = vmatprep.mubr.bf16.mxu0 %v66_v15 }
   0xf   :  { %294 = vmatpush3.bf16.msra.mxu0 %v310_v3 }
  0x10   :  { %295 = vmatprep.subr.bf16.mxu0 %v311_v12 }
  0x13   :  { %296 = vmatpush3.bf16.msra.mxu0 %v311_v12 }
  0x14   :  { %297 = vmatprep.subr.bf16.mxu0 %v312_v18 }
  0x17   :  { %298 = vmatpush3.bf16.msra.mxu0 %v312_v18 }
  0x18   :  { %299 = vmatprep.subr.bf16.mxu0 %v313_v21 }
  0x1b   :  { %300 = vmatpush3.bf16.msra.mxu0 %v313_v21 }
  0x1c   :  { %301 = vmatprep.subr.bf16.mxu0 %v314_v24 }
  0x1f   :  { %302 = vmatpush3.bf16.msra.mxu0 %v314_v24 }
  0x22   :  { %304 = vmatmul.mubr.bf16.vlgmr.msra.gmra.mrb[0].mxu0 %v67_v27 }
  0xf5   :  { %v305_v29 = vpop.f32.mrb[0].mxu0 }
  0xf6   :  { %v205_v31 = vmul.f32 %v305_v29, %v256_v28  ;;  %v166_v32 = vpop.f32.mrb[1].mxu0 }
  0xf7   :  { %v203_v33 = vmul.f32 %v256_v28, %v166_v32  ;;  %v306_v34 = vpop.f32.mrb[2].mxu0 }
  0xf8   :  { %v216_v35 = vadd.f32 %v257_v30, %v205_v31  ;;  %v206_v36 = vmul.f32 %v306_v34, %v256_v28  ;;  %v169_v37 = vpop.f32.mrb[3].mxu0 }
  0xf9   :  { %v214_v38 = vadd.f32 %v257_v30, %v203_v33  ;;  %v204_v39 = vmul.f32 %v256_v28, %v169_v37 }
  0xfa   :  { %v217_v40 = vadd.f32 %v257_v30, %v206_v36  ;;  %v220_v42 = vmax.f32 %v216_v35, 0.0 }
  0xfb   :  { %v215_v41 = vadd.f32 %v257_v30, %v204_v39  ;;  %v218_v44 = vmax.f32 %v214_v38, 0.0 }
  0xfc   :  { %v221_v43 = vmax.f32 %v217_v40, 0.0 }
  0xfd   :  { %v219_v45 = vmax.f32 %v215_v41, 0.0 }
  0xfe   :  { %v274_v46 = vpack.c.bf16 %v221_v43, %v220_v42 }
  0xff   :  { %v269_v47 = vpack.c.bf16 %v219_v45, %v218_v44 }
 0x100   :  { %276 = vst [vmem:[%s410_s6 + $0x8] sm:$0xff] %v274_v46  }
 0x101   :  { %270 = vst [vmem:[%s410_s6] sm:$0xff] %v269_v47  }

// kernel: _lambda_.32
= control target key start
LH: loop header
LB: loop body
LE: loop exit
PB: predicated region body
PF: predicated region fallthrough
CT: control target
= control target key end

     0   :  { %v194_v0 = vmov 0.0   ;;  %vm195_vm0 = vmmov 0   ;;  %s261_s2 = inlined_call_operand.vmem [shape: f32[1,128], index: 2, kind: input, shape index: {}]   ;;  %s262_s3 = inlined_call_operand.vmem [shape: f32[1,128], index: 3, kind: input, shape index: {}]   ;;  %s263_s4 = inlined_call_operand.vmem [shape: f32[1,128], index: 4, kind: input, shape index: {}]   ;;  %s264_s5 = inlined_call_operand.vmem [shape: f32[1,128], index: 5, kind: input, shape index: {}]   ;;  %s265_s1 = inlined_call_operand.vmem [shape: bf16[128,128], index: 1, kind: input, shape index: {}]   ;;  %s266_s0 = inlined_call_operand.vmem [shape: f32[8,128], index: 0, kind: input, shape index: {}]   ;;  %s267_s6 = inlined_call_operand.vmem [shape: f32[8,128], index: 6, kind: output, shape index: {}]  }
   0x1   :  { %164 = vmatprep.subr.bf16.mxu0 %v194_v0  ;;  %v186_v1 = vld [vmem:[%s265_s1] sm:$0xff]   ;;  %180 = vmatprep.mubr.msk.bf16.mxu0 %vm195_vm0, %v194_v0  ;;  %v187_v2 = vld [vmem:[%s265_s1 + $0x8] sm:$0xff]   ;;  %v188_v3 = vld [vmem:[%s265_s1 + $0x10] sm:$0xff]  }
   0x2   :  { %165 = vmatpush3.bf16.msra.mxu0 %v186_v1  ;;  %v189_v4 = vld [vmem:[%s265_s1 + $0x18] sm:$0xff]   ;;  %v190_v5 = vld [vmem:[%s265_s1 + $0x20] sm:$0xff]   ;;  %v191_v6 = vld [vmem:[%s265_s1 + $0x28] sm:$0xff]  }
   0x3   :  { %166 = vmatprep.subr.bf16.mxu0 %v194_v0  ;;  %v192_v7 = vld [vmem:[%s265_s1 + $0x30] sm:$0xff]   ;;  %v193_v8 = vld [vmem:[%s265_s1 + $0x38] sm:$0xff]   ;;  %v29_v9 = vld [vmem:[%s266_s0] sm:$0xff] }
   0x4   :  { %v31_v10 = vpack.c.bf16 %v29_v9, %v29_v9 }
   0x6   :  { %167 = vmatpush3.bf16.msra.mxu0 %v187_v2 }
   0x7   :  { %168 = vmatprep.subr.bf16.mxu0 %v194_v0 }
   0xa   :  { %169 = vmatpush3.bf16.msra.mxu0 %v188_v3 }
   0xb   :  { %170 = vmatprep.subr.bf16.mxu0 %v194_v0 }
   0xe   :  { %171 = vmatpush3.bf16.msra.mxu0 %v189_v4 }
   0xf   :  { %172 = vmatprep.subr.bf16.mxu0 %v194_v0 }
  0x12   :  { %173 = vmatpush3.bf16.msra.mxu0 %v190_v5 }
  0x13   :  { %174 = vmatprep.subr.bf16.mxu0 %v194_v0 }
  0x16   :  { %175 = vmatpush3.bf16.msra.mxu0 %v191_v6 }
  0x17   :  { %176 = vmatprep.subr.bf16.mxu0 %v194_v0 }
  0x1a   :  { %177 = vmatpush3.bf16.msra.mxu0 %v192_v7 }
  0x1b   :  { %178 = vmatprep.subr.bf16.mxu0 %v194_v0 }
  0x1e   :  { %179 = vmatpush3.bf16.msra.mxu0 %v193_v8 }
  0x21   :  { %181 = vmatmul.mubr.bf16.vlgmr.msra.gmra.mrb[0].mxu0 %v31_v10 }
  0xf4   :  { %v130_v11 = vpop.f32.mrb[0].mxu0 }
  0xf5   :  { %142 = vst [vmem:[%s267_s6] sm:$0xff] %v130_v11  ;;  %v182_v12 = vpop.f32.mrb[1].mxu0 }
  0xf6   :  { %v133_v13 = vpop.f32.mrb[2].mxu0 }
  0xf7   :  { %v183_v14 = vpop.f32.mrb[3].mxu0 }

// kernel: _lambda_.31
= control target key start
LH: loop header
LB: loop body
LE: loop exit
PB: predicated region body
PF: predicated region fallthrough
CT: control target
= control target key end

     0   :  { %s608_s15 = smov 0   ;;  %s610_s16 = smov 0   ;;  %s685_s0 = inlined_call_operand.vmem [shape: f32[4,2,2,2,32], index: 0, kind: input, shape index: {}, may-alias: {0,1}]   ;;  %s686_s1 = inlined_call_operand.vmem [shape: f32[4,2,2,2,32], index: 1, kind: input, shape index: {}, may-alias: {0,1}]   ;;  %s687_s2 = inlined_call_operand.vmem [shape: f32[1,1,1,32], index: 2, kind: input, shape index: {}]   ;;  %s688_s3 = inlined_call_operand.vmem [shape: f32[1,1,1,32], index: 3, kind: input, shape index: {}]   ;;  %s689_s4 = inlined_call_operand.vmem [shape: f32[4,2,32], index: 4, kind: output, shape index: {}]  }
   0x1   :  { %s612_s17 = smov 0  }
   0x2 LB: > { %s508_s18 = sadd.s32 4294967295, %s581_s17   ;;  %s625_s19 = sadd.s32 1, %s581_s17   ;;  %s581_s17 = sphi %s612_s17, %s693_s17   ;;  %s577_s16 = sphi %s610_s16, %s692_s16   ;;  %s573_s15 = sphi %s608_s15, %s691_s15  }
   0x3   : > { %s18_s20 = ssub.s32 %s581_s17, %s625_s19  ;;  %s21_s21 = sadd.s32 1, %s577_s16 }
   0x4   : > { %p19_p0 = scmp.eq.s32.totalorder %s18_s20, 0  ;;  %p28_p1 = scmp.ne.s32.totalorder %s577_s16, %s573_s15 }
   0x5   : > { %p29_p2 = scmp.eq.s32.totalorder %s581_s17, 0  ;;  %p511_p4 = scmp.ge.s32.totalorder %s581_s17, 2 }
   0x6   : > { %s634_s22 = scalar_select %p19_p0, %s577_s16, %s21_s21  }
   0x7   : > { %p636_p3 = por %p29_p2, %p28_p1  ;;  %154 = sbr.rel (%p511_p4) target bundleno = 28 (0x1c), region = 24 }
   0xe   : > { %157 = sbr.rel (!%p636_p3) target bundleno = 21 (0x15), region = 28  ;;  %s159_s24 = sand.u32 (%p636_p3), 1, %s577_s16  }
   0xf   : > { %s533_s25 = sshll.u32 (%p636_p3), %s581_s17, 4  ;;  %s512_s26 = sshll.u32 (%p636_p3), %s159_s24, 3 }
  0x10   : > { %s165_s29 = scalar_lea.vmem (%p636_p3), %s685_s0, %s533_s25  ;;  %s161_s30 = scalar_lea.vmem (%p636_p3), [#allocation2], %s512_s26 }
  0x11   : > { %v181_v0 = vld [vmem:[%s165_s29] sm:$0xf] (%p636_p3)   ;;  %v185_v1 = vld [vmem:[%s165_s29 + $0x8] sm:$0xf] (%p636_p3)  }
  0x12   : > { %182 = vst [vmem:[%s161_s30] sm:$0xf] (%p636_p3), %v181_v0   ;;  %186 = vst [vmem:[%s161_s30 + $0x4] sm:$0xf] (%p636_p3), %v185_v1  }
  0x15 PF: > { %219 = sbr.rel (!%p636_p3) target bundleno = 28 (0x1c), region = 69  ;;  %s221_s5 = sand.u32 (%p636_p3), 1, %s577_s16  }
  0x16   : > { %s534_s6 = sshll.u32 (%p636_p3), %s581_s17, 4  ;;  %s516_s7 = sshll.u32 (%p636_p3), %s221_s5, 3 }
  0x17   : > { %s456_s10 = scalar_lea.vmem (%p636_p3), %s686_s1, %s534_s6  ;;  %s223_s11 = scalar_lea.vmem (%p636_p3), [#allocation3], %s516_s7 }
  0x18   : > { %v519_v2 = vld [vmem:[%s456_s10 + $0x4] sm:$0xf] (%p636_p3)   ;;  %v521_v3 = vld [vmem:[%s456_s10 + $0xc] sm:$0xf] (%p636_p3)  }
  0x19   : > { %245 = vst [vmem:[%s223_s11] sm:$0xf] (%p636_p3), %v519_v2   ;;  %249 = vst [vmem:[%s223_s11 + $0x4] sm:$0xf] (%p636_p3), %v521_v3  }
  0x1c PF: > { %p523_p5 = scmp.ge.s32.totalorder %s581_s17, 1  ;;  %p281_p6 = scmp.lt.s32.totalorder %s581_s17, 3 }
  0x1e   : > { %p282_p7 = pnand %p523_p5, %p281_p6 }
  0x1f   : > { %s288_s12 = sand.u32 (!%p282_p7), 1, %s573_s15   ;;  %v528_v4 = vld [vmem:[%s687_s2] ss:$0 sm:$0xff] (!%p282_p7)  ;;  %vm382_vm0 = vcmask (!%p282_p7), 254976   ;;  %s526_s15 = sshll.u32 (!%p282_p7), %s508_s18, 1  ;;  %vm419_vm1 = vcmask (!%p282_p7), 1041409  }
  0x20   : > { %285 = sbr.rel (%p282_p7) target bundleno = 63 (0x3f), region = 110  ;;  %s524_s13 = sshll.u32 (!%p282_p7), %s288_s12, 3  ;;  %v529_v5 = vld [vmem:[%s688_s3] ss:$0 sm:$0xff] (!%p282_p7) }
  0x21   : > { %s290_s24 = scalar_lea.vmem (!%p282_p7), [#allocation2], %s524_s13  ;;  %s297_s25 = scalar_lea.vmem (!%p282_p7), [#allocation3], %s524_s13 }
  0x22   : > { %v334_v6 = vld [vmem:[%s290_s24] sm:$0x3] (!%p282_p7)  ;;  %v335_v7 = vld [vmem:[%s290_s24 + $0x2] sm:$0x3] (!%p282_p7)  ;;  %v362_v10 = vld [vmem:[%s297_s25] sm:$0x3] (!%p282_p7) }
  0x23   : > { %v344_v8 = vmul.f32 (!%p282_p7), %v528_v4, %v334_v6  ;;  %v345_v9 = vmul.f32 (!%p282_p7), %v528_v4, %v335_v7  ;;  %v363_v11 = vld [vmem:[%s297_s25 + $0x2] sm:$0x3] (!%p282_p7)  ;;  %v336_v12 = vld [vmem:[%s290_s24 + $0x4] sm:$0x3] (!%p282_p7)  ;;  %v366_v13 = vmul.f32 (!%p282_p7), %v528_v4, %v362_v10  ;;  %v337_v15 = vld [vmem:[%s290_s24 + $0x6] sm:$0x3] (!%p282_p7) }
  0x24   : > { %v367_v14 = vmul.f32 (!%p282_p7), %v528_v4, %v363_v11  ;;  %v346_v16 = vmul.f32 (!%p282_p7), %v528_v4, %v336_v12  ;;  %v364_v17 = vld [vmem:[%s297_s25 + $0x4] sm:$0x3] (!%p282_p7)  ;;  %v347_v20 = vmul.f32 (!%p282_p7), %v528_v4, %v337_v15  ;;  %v365_v21 = vld [vmem:[%s297_s25 + $0x6] sm:$0x3] (!%p282_p7)  ;;  %p327_p8 = scmp.lt.s32.totalorder (!%p282_p7), %s526_s15, 3 }
  0x25   : > { %v354_v18 = vadd.f32 (!%p282_p7), %v529_v5, %v344_v8  ;;  %v355_v19 = vadd.f32 (!%p282_p7), %v529_v5, %v345_v9  ;;  %v368_v22 = vmul.f32 (!%p282_p7), %v528_v4, %v364_v17  ;;  %v370_v23 = vadd.f32 (!%p282_p7), %v529_v5, %v366_v13 }
  0x26   : > { %v371_v24 = vadd.f32 (!%p282_p7), %v529_v5, %v367_v14  ;;  %v356_v25 = vadd.f32 (!%p282_p7), %v529_v5, %v346_v16  ;;  %v369_v26 = vmul.f32 (!%p282_p7), %v528_v4, %v365_v21  ;;  %v357_v29 = vadd.f32 (!%p282_p7), %v529_v5, %v347_v20 }
  0x27   : > { %v358_v27 = vmax.f32 %v354_v18, 0.0  ;;  %v359_v28 = vmax.f32 %v355_v19, 0.0  ;;  %v372_v30 = vadd.f32 %v529_v5, %v368_v22  ;;  %v374_v31 = vmax.f32 %v370_v23, 0.0  ;;  %s695_s15 = smov (!%p327_p8, %s526_s15), 3 }
  0x28   : > { %v375_v32 = vmax.f32 %v371_v24, 0.0  ;;  %v360_v33 = vmax.f32 %v356_v25, 0.0  ;;  %v373_v34 = vadd.f32 %v529_v5, %v369_v26  ;;  %v361_v35 = vmax.f32 %v357_v29, 0.0  ;;  %s527_s17 = sshll.u32 %s695_s15, 1 }
  0x29   : > { %v376_v36 = vmax.f32 %v372_v30, 0.0  ;;  %v378_v37 = vadd.f32 %v374_v31, %v358_v27  ;;  %s330_s27 = scalar_lea.vmem %s689_s4, %s527_s17 }
  0x2a   : > { %v379_v38 = vadd.f32 %v375_v32, %v359_v28  ;;  %v377_v39 = vmax.f32 %v373_v34, 0.0 }
  0x2b   : > { %v380_v40 = vadd.f32 %v376_v36, %v360_v33  ;;  %v383_v41 = vsel %vm382_vm0, %v378_v37, 0.0 }
  0x2c   : > { %v390_v42 = vsel %vm382_vm0, %v379_v38, 0.0  ;;  %v381_v43 = vadd.f32 %v377_v39, %v361_v35  ;;  %v384_v44 = vrot.slane %v383_v41, 4 }
  0x2d   : > { %v391_v45 = vrot.slane %v390_v42, 4  ;;  %v397_v46 = vsel %vm382_vm0, %v380_v40, 0.0 }
  0x2e   : > { %v398_v47 = vrot.slane %v397_v46, 4  ;;  %v404_v48 = vsel %vm382_vm0, %v381_v43, 0.0  ;;  %v385_v49 = vadd.f32 %v384_v44, %v383_v41 }
  0x2f   : > { %v392_v50 = vadd.f32 %v391_v45, %v390_v42  ;;  %v405_v51 = vrot.slane %v404_v48, 4 }
  0x30   : > { %v399_v52 = vadd.f32 %v398_v47, %v397_v46  ;;  %v386_v53 = vrot.slane %v385_v49, 2 }
  0x31   : > { %v393_v54 = vrot.slane %v392_v50, 2  ;;  %v406_v55 = vadd.f32 %v405_v51, %v404_v48 }
  0x32   : > { %v400_v56 = vrot.slane %v399_v52, 2  ;;  %v387_v57 = vadd.f32 %v386_v53, %v385_v49 }
  0x33   : > { %v394_v58 = vadd.f32 %v393_v54, %v392_v50  ;;  %v407_v59 = vrot.slane %v406_v55, 2 }
  0x34   : > { %v401_v60 = vadd.f32 %v400_v56, %v399_v52  ;;  %v388_v61 = vrot.slane %v387_v57, 1 }
  0x35   : > { %v395_v62 = vrot.slane %v394_v58, 1  ;;  %v408_v63 = vadd.f32 %v407_v59, %v406_v55 }
  0x36   : > { %v402_v0 = vrot.slane %v401_v60, 1  ;;  %v389_v1 = vadd.f32 %v388_v61, %v387_v57 }
  0x37   : > { %v396_v2 = vadd.f32 %v395_v62, %v394_v58  ;;  %v409_v3 = vrot.slane %v408_v63, 1 }
  0x38   : > { %v403_v4 = vadd.f32 %v402_v0, %v401_v60  ;;  %v411_v5 = vmul.f32 0.25, %v389_v1 }
  0x39   : > { %v412_v6 = vmul.f32 0.25, %v396_v2  ;;  %v410_v7 = vadd.f32 %v409_v3, %v408_v63 }
  0x3a   : > { %v413_v8 = vmul.f32 0.25, %v403_v4 }
  0x3b   : > { %v420_v9 = vsel %vm419_vm1, %v412_v6, %v411_v5  ;;  %v414_v10 = vmul.f32 0.25, %v410_v7 }
  0x3c   : > { %424 = vst.msk [vmem:[%s330_s27] sm:$0x3] %vm382_vm0, %v420_v9 }
  0x3d   : > { %v421_v11 = vsel %vm419_vm1, %v414_v10, %v413_v8 }
  0x3e   : > { %425 = vst.msk [vmem:[%s330_s27 + $0x2] sm:$0x3] %vm382_vm0, %v421_v11 }
  0x3f PF: > { %p11_p9 = scmp.ge.s32.totalorder %s625_s19, 4   ;;  %s691_s15 = smov %s577_s16 }
  0x40   : > { %s692_s16 = smov %s634_s22  ;;  %s693_s17 = smov %s625_s19 }
  0x41   :  { %13 = sbr.rel (!%p11_p9) target bundleno = 2 (0x2), region = 161 }

// kernel: _lambda_.28
= control target key start
LH: loop header
LB: loop body
LE: loop exit
PB: predicated region body
PF: predicated region fallthrough
CT: control target
= control target key end

     0   :  { %s1862_s9 = smov 0   ;;  %s2229_s0 = inlined_call_operand.vmem [shape: bf16[2,6,6,128], index: 0, kind: input, shape index: {}]   ;;  %s2230_s1 = inlined_call_operand.vmem [shape: bf16[9,128,128], index: 1, kind: input, shape index: {}]   ;;  %s2231_s2 = inlined_call_operand.vmem [shape: f32[2,4,4,128], index: 2, kind: output, shape index: {}]  }
   0x1 LB: > { %s1225_s10 = sadd.s32 4294967295, %s1839_s9   ;;  %p1229_p0 = scmp.ge.s32.totalorder %s1839_s9, 1  ;;  %s1839_s9 = sphi %s1862_s9, %s12_s9  }
   0x2   : > { %p112_p1 = scmp.lt.s32.totalorder %s1839_s9, 3 }
   0x4   : > { %p113_p2 = pnand %p1229_p0, %p112_p1 }
   0x5   : > { %p134_p3 = scmp.lt.s32.totalorder (!%p113_p2), %s1225_s10, 1  ;;  %s1880_s19 = smov (!%p113_p2), 0  }
   0x6   : > { %116 = sbr.rel (%p113_p2) target bundleno = 394 (0x18a), region = 28 }
   0xd   : > { %s2233_s10 = smov (!%p134_p3, %s1225_s10), 1 }
   0xe   : > { %s1735_s11 = smul.u32 24, %s2233_s10  ;;  %s1444_s12 = sshll.u32 %s2233_s10, 4 }
   0xf   : > { %s1873_s15 = scalar_lea.vmem %s2231_s2, %s1444_s12 }
  0x10   : > { %s1878_s18 = scalar_lea.vmem %s2229_s0, %s1735_s11 }
  0x11 LB: >> { %v1754_v0 = vld [vmem:[%s2230_s1 + $0x40] sm:$0xff]   ;;  %v1845_v1 = vmov 0.0   ;;  %v1756_v3 = vld [vmem:[%s2230_s1 + $0x48] sm:$0xff]   ;;  %vm1846_vm0 = vmmov 0   ;;  %v1758_v5 = vld [vmem:[%s2230_s1 + $0x50] sm:$0xff]   ;;  %s1233_s6 = sshll.u32 %s1843_s19, 2  ;;  %s1843_s19 = sphi %s1880_s19, %s150_s19  }
  0x12   : >> { %1526 = vmatprep.subr.bf16.mxu1 %v1845_v1  ;;  %1606 = vmatprep.subr.bf16.mxu0 %v1845_v1  ;;  %v1755_v2 = vld [vmem:[%s2230_s1 + $0x100] sm:$0xff]   ;;  %v1757_v4 = vld [vmem:[%s2230_s1 + $0x108] sm:$0xff]   ;;  %v1759_v6 = vld [vmem:[%s2230_s1 + $0x110] sm:$0xff]   ;;  %s1925_s10 = scalar_lea.vmem %s1878_s18, %s1233_s6  ;;  %s1153_s30 = scalar_lea.vmem %s1873_s15, %s1233_s6 }
  0x13   : >> { %1527 = vmatpush3.bf16.msra.mxu1 %v1754_v0  ;;  %1542 = vmatprep.mubr.msk.bf16.mxu1 %vm1846_vm0, %v1845_v1  ;;  %v1760_v7 = vld [vmem:[%s2230_s1 + $0x58] sm:$0xff]   ;;  %v1762_v9 = vld [vmem:[%s2230_s1 + $0x60] sm:$0xff]   ;;  %v1764_v14 = vld [vmem:[%s2230_s1 + $0x68] sm:$0xff]   ;;  %s150_s19 = sadd.s32 1, %s1843_s19  }
  0x14   : >> { %1607 = vmatpush3.bf16.msra.mxu0 %v1755_v2  ;;  %1528 = vmatprep.subr.bf16.mxu1 %v1845_v1  ;;  %v1761_v8 = vld [vmem:[%s2230_s1 + $0x118] sm:$0xff]   ;;  %v1763_v10 = vld [vmem:[%s2230_s1 + $0x120] sm:$0xff]   ;;  %v1765_v16 = vld [vmem:[%s2230_s1 + $0x128] sm:$0xff]   ;;  %p147_p4 = scmp.ge.s32.totalorder %s150_s19, 4  }
  0x15   : >> { %1608 = vmatprep.subr.bf16.mxu0 %v1845_v1  ;;  %1622 = vmatprep.mubr.msk.bf16.mxu0 %vm1846_vm0, %v1845_v1  ;;  %v1936_v11 = vld [vmem:[%s1925_s10] sm:$0x7]  ;;  %v1943_v13 = vld [vmem:[%s1925_s10 + $0x4] sm:$0x7]  ;;  %v1766_v18 = vld [vmem:[%s2230_s1 + $0x70] sm:$0xff]  }
  0x16   : >> { %v1940_v12 = vcombine.low %v1936_v11, %v1936_v11  ;;  %v1950_v15 = vcombine.low %v1943_v13, %v1943_v13  ;;  %v1767_v20 = vld [vmem:[%s2230_s1 + $0x130] sm:$0xff]   ;;  %v1768_v21 = vld [vmem:[%s2230_s1 + $0x78] sm:$0xff]   ;;  %v1771_v28 = vld [vmem:[%s2230_s1] sm:$0xff]  }
  0x17   : >> { %1529 = vmatpush3.bf16.msra.mxu1 %v1756_v3  ;;  %v1769_v26 = vld [vmem:[%s2230_s1 + $0x138] sm:$0xff]   ;;  %v1773_v30 = vld [vmem:[%s2230_s1 + $0x140] sm:$0xff]   ;;  %v1774_v31 = vld [vmem:[%s2230_s1 + $0x8] sm:$0xff]  }
  0x18   : >> { %1609 = vmatpush3.bf16.msra.mxu0 %v1757_v4  ;;  %1530 = vmatprep.subr.bf16.mxu1 %v1845_v1  ;;  %v193_v17 = vshll.u32 %v1940_v12, 16  ;;  %v615_v19 = vshll.u32 %v1950_v15, 16  ;;  %v191_v22 = vshrl.u32 %v1940_v12, 16  ;;  %v613_v24 = vshrl.u32 %v1950_v15, 16  ;;  %v1775_v32 = vld [vmem:[%s2230_s1 + $0x148] sm:$0xff]   ;;  %v1776_v33 = vld [vmem:[%s2230_s1 + $0x10] sm:$0xff]  }
  0x19   : >> { %1610 = vmatprep.subr.bf16.mxu0 %v1845_v1  ;;  %v1777_v34 = vld [vmem:[%s2230_s1 + $0x150] sm:$0xff]   ;;  %v1778_v35 = vld [vmem:[%s2230_s1 + $0x18] sm:$0xff]   ;;  %v1780_v37 = vld [vmem:[%s2230_s1 + $0x20] sm:$0xff]   ;;  %v726_v46 = vrot.slane %v1950_v15, 1  ;;  %v391_v62 = vrot.slane %v1940_v12, 1 }
  0x1a   : >> { %v195_v23 = vrot.slane %v193_v17, 1  ;;  %v617_v25 = vrot.slane %v615_v19, 1  ;;  %v1779_v36 = vld [vmem:[%s2230_s1 + $0x158] sm:$0xff]   ;;  %v1781_v38 = vld [vmem:[%s2230_s1 + $0x160] sm:$0xff]   ;;  %v1782_v39 = vld [vmem:[%s2230_s1 + $0x28] sm:$0xff]  }
  0x1b   : >> { %1531 = vmatpush3.bf16.msra.mxu1 %v1758_v5  ;;  %v1783_v40 = vld [vmem:[%s2230_s1 + $0x168] sm:$0xff]   ;;  %v1784_v41 = vld [vmem:[%s2230_s1 + $0x30] sm:$0xff]   ;;  %v1786_v43 = vld [vmem:[%s2230_s1 + $0x38] sm:$0xff]  }
  0x1c   : >> { %1611 = vmatpush3.bf16.msra.mxu0 %v1759_v6  ;;  %1532 = vmatprep.subr.bf16.mxu1 %v1845_v1  ;;  %v196_v27 = vor.u32 %v195_v23, %v191_v22  ;;  %v618_v29 = vor.u32 %v617_v25, %v613_v24  ;;  %v1785_v42 = vld [vmem:[%s2230_s1 + $0x170] sm:$0xff]   ;;  %v1787_v44 = vld [vmem:[%s2230_s1 + $0x178] sm:$0xff]   ;;  %v1788_v45 = vld [vmem:[%s2230_s1 + $0x80] sm:$0xff]  }
  0x1d   : >> { %1612 = vmatprep.subr.bf16.mxu0 %v1845_v1  ;;  %v1789_v47 = vld [vmem:[%s2230_s1 + $0x180] sm:$0xff]   ;;  %v1790_v48 = vld [vmem:[%s2230_s1 + $0x88] sm:$0xff]   ;;  %v1792_v50 = vld [vmem:[%s2230_s1 + $0x90] sm:$0xff]  }
  0x1e   : >> { %v1791_v49 = vld [vmem:[%s2230_s1 + $0x188] sm:$0xff]   ;;  %v1793_v51 = vld [vmem:[%s2230_s1 + $0x190] sm:$0xff]   ;;  %v1794_v52 = vld [vmem:[%s2230_s1 + $0x98] sm:$0xff]  }
  0x1f   : >> { %1533 = vmatpush3.bf16.msra.mxu1 %v1760_v7  ;;  %v1795_v53 = vld [vmem:[%s2230_s1 + $0x198] sm:$0xff]   ;;  %v1796_v54 = vld [vmem:[%s2230_s1 + $0xa0] sm:$0xff]   ;;  %v1798_v56 = vld [vmem:[%s2230_s1 + $0xa8] sm:$0xff]  }
  0x20   : >> { %1613 = vmatpush3.bf16.msra.mxu0 %v1761_v8  ;;  %1534 = vmatprep.subr.bf16.mxu1 %v1845_v1  ;;  %v1797_v55 = vld [vmem:[%s2230_s1 + $0x1a0] sm:$0xff]   ;;  %v1799_v57 = vld [vmem:[%s2230_s1 + $0x1a8] sm:$0xff]   ;;  %v1800_v58 = vld [vmem:[%s2230_s1 + $0xb0] sm:$0xff]  }
  0x21   : >> { %1614 = vmatprep.subr.bf16.mxu0 %v1845_v1  ;;  %v1801_v59 = vld [vmem:[%s2230_s1 + $0x1b0] sm:$0xff]   ;;  %v1802_v60 = vld [vmem:[%s2230_s1 + $0xb8] sm:$0xff]   ;;  %v1804_v63 = vld [vmem:[%s2230_s1 + $0xc0] sm:$0xff]  }
  0x22   : >> { %v1803_v61 = vld [vmem:[%s2230_s1 + $0x1b8] sm:$0xff]   ;;  %v1367_v0 = vld [vmem:[%s1925_s10 + $0x8] sm:$0x7]  ;;  %v1806_v2 = vld [vmem:[%s2230_s1 + $0x1c0] sm:$0xff]  }
  0x23   : >> { %1535 = vmatpush3.bf16.msra.mxu1 %v1762_v9  ;;  %v1807_v3 = vld [vmem:[%s2230_s1 + $0xc8] sm:$0xff]   ;;  %v1809_v5 = vld [vmem:[%s2230_s1 + $0xd0] sm:$0xff]   ;;  %v1811_v7 = vld [vmem:[%s2230_s1 + $0xd8] sm:$0xff]  }
  0x24   : >> { %1615 = vmatpush3.bf16.msra.mxu0 %v1763_v10  ;;  %1536 = vmatprep.subr.bf16.mxu1 %v1845_v1  ;;  %v1808_v4 = vld [vmem:[%s2230_s1 + $0x1c8] sm:$0xff]   ;;  %v1810_v6 = vld [vmem:[%s2230_s1 + $0x1d0] sm:$0xff]   ;;  %v1812_v8 = vld [vmem:[%s2230_s1 + $0x1d8] sm:$0xff]  }
  0x25   : >> { %1616 = vmatprep.subr.bf16.mxu0 %v1845_v1  ;;  %v1813_v9 = vld [vmem:[%s2230_s1 + $0xe0] sm:$0xff]   ;;  %v1815_v12 = vld [vmem:[%s2230_s1 + $0xe8] sm:$0xff]   ;;  %v1818_v17 = vld [vmem:[%s2230_s1 + $0x1f0] sm:$0xff]  }
  0x26   : >> { %v1814_v10 = vld [vmem:[%s2230_s1 + $0x1e0] sm:$0xff]   ;;  %v1819_v19 = vld [vmem:[%s2230_s1 + $0xf8] sm:$0xff]   ;;  %v1822_v24 = vld [vmem:[%s2230_s1 + $0x208] sm:$0xff]  }
  0x27   : >> { %1537 = vmatpush3.bf16.msra.mxu1 %v1764_v14  ;;  %v1816_v14 = vld [vmem:[%s2230_s1 + $0x1e8] sm:$0xff]   ;;  %v1821_v23 = vld [vmem:[%s2230_s1 + $0x200] sm:$0xff]   ;;  %v1823_v25 = vld [vmem:[%s2230_s1 + $0x210] sm:$0xff]  }
  0x28   : >> { %1617 = vmatpush3.bf16.msra.mxu0 %v1765_v16  ;;  %1538 = vmatprep.subr.bf16.mxu1 %v1845_v1  ;;  %v1817_v16 = vld [vmem:[%s2230_s1 + $0xf0] sm:$0xff]  }
  0x29   : >> { %1618 = vmatprep.subr.bf16.mxu0 %v1845_v1 }
  0x2b   : >> { %1539 = vmatpush3.bf16.msra.mxu1 %v1766_v18 }
  0x2c   : >> { %1619 = vmatpush3.bf16.msra.mxu0 %v1767_v20  ;;  %1540 = vmatprep.subr.bf16.mxu1 %v1845_v1 }
  0x2d   : >> { %1620 = vmatprep.subr.bf16.mxu0 %v1845_v1 }
  0x2f   : >> { %1541 = vmatpush3.bf16.msra.mxu1 %v1768_v21  ;;  %v1820_v21 = vld [vmem:[%s2230_s1 + $0x1f8] sm:$0xff]  }
  0x30   : >> { %1621 = vmatpush3.bf16.msra.mxu0 %v1769_v26  ;;  %1546 = vmatprep.subr.bf16.mxu1 %v1845_v1  ;;  %v1825_v26 = vld [vmem:[%s2230_s1 + $0x220] sm:$0xff]  }
  0x31   : >> { %1626 = vmatprep.subr.bf16.mxu0 %v1845_v1 }
  0x32   : >> { %1543 = vmatmul.mubr.bf16.vlgmr.msra.gmra.mrb[0].mxu1 %v196_v27  ;;  %v1826_v27 = vld [vmem:[%s2230_s1 + $0x228] sm:$0xff]  }
  0x33   : >> { %1547 = vmatpush3.bf16.msra.mxu1 %v1771_v28  ;;  %1623 = vmatmul.mubr.bf16.vlgmr.msra.gmra.mrb[0].mxu0 %v618_v29  ;;  %v1827_v28 = vld [vmem:[%s2230_s1 + $0x230] sm:$0xff]   ;;  %v1828_v29 = vld [vmem:[%s2230_s1 + $0x238] sm:$0xff]  }
  0x34   : >> { %1627 = vmatpush3.bf16.msra.mxu0 %v1773_v30  ;;  %1548 = vmatprep.subr.bf16.mxu1 %v1845_v1 }
  0x35   : >> { %1628 = vmatprep.subr.bf16.mxu0 %v1845_v1  ;;  %1562 = vmatprep.mubr.msk.bf16.mxu1 %vm1846_vm0, %v1845_v1 }
  0x36   : >> { %1642 = vmatprep.mubr.msk.bf16.mxu0 %vm1846_vm0, %v1845_v1 }
  0x37   : >> { %1549 = vmatpush3.bf16.msra.mxu1 %v1774_v31 }
  0x38   : >> { %1629 = vmatpush3.bf16.msra.mxu0 %v1775_v32  ;;  %1550 = vmatprep.subr.bf16.mxu1 %v1845_v1 }
  0x39   : >> { %1630 = vmatprep.subr.bf16.mxu0 %v1845_v1 }
  0x3b   : >> { %1551 = vmatpush3.bf16.msra.mxu1 %v1776_v33 }
  0x3c   : >> { %1631 = vmatpush3.bf16.msra.mxu0 %v1777_v34  ;;  %1552 = vmatprep.subr.bf16.mxu1 %v1845_v1 }
  0x3d   : >> { %1632 = vmatprep.subr.bf16.mxu0 %v1845_v1 }
  0x3f   : >> { %1553 = vmatpush3.bf16.msra.mxu1 %v1778_v35 }
  0x40   : >> { %1633 = vmatpush3.bf16.msra.mxu0 %v1779_v36  ;;  %1554 = vmatprep.subr.bf16.mxu1 %v1845_v1 }
  0x41   : >> { %1634 = vmatprep.subr.bf16.mxu0 %v1845_v1 }
  0x43   : >> { %1555 = vmatpush3.bf16.msra.mxu1 %v1780_v37 }
  0x44   : >> { %1635 = vmatpush3.bf16.msra.mxu0 %v1781_v38  ;;  %1556 = vmatprep.subr.bf16.mxu1 %v1845_v1 }
  0x45   : >> { %1636 = vmatprep.subr.bf16.mxu0 %v1845_v1 }
  0x47   : >> { %1557 = vmatpush3.bf16.msra.mxu1 %v1782_v39 }
  0x48   : >> { %1637 = vmatpush3.bf16.msra.mxu0 %v1783_v40  ;;  %1558 = vmatprep.subr.bf16.mxu1 %v1845_v1 }
  0x49   : >> { %1638 = vmatprep.subr.bf16.mxu0 %v1845_v1 }
  0x4b   : >> { %1559 = vmatpush3.bf16.msra.mxu1 %v1784_v41 }
  0x4c   : >> { %1639 = vmatpush3.bf16.msra.mxu0 %v1785_v42  ;;  %1560 = vmatprep.subr.bf16.mxu1 %v1845_v1 }
  0x4d   : >> { %1640 = vmatprep.subr.bf16.mxu0 %v1845_v1 }
  0x4f   : >> { %1561 = vmatpush3.bf16.msra.mxu1 %v1786_v43 }
  0x50   : >> { %1641 = vmatpush3.bf16.msra.mxu0 %v1787_v44  ;;  %1566 = vmatprep.subr.bf16.mxu1 %v1845_v1 }
  0x51   : >> { %1646 = vmatprep.subr.bf16.mxu0 %v1845_v1 }
  0x52   : >> { %1563 = vmatmul.mubr.bf16.vlgmr.msra.gmra.mrb[0].mxu1 %v1936_v11  ;;  %v1408_v11 = vcombine.low %v1367_v0, %v1367_v0 }
  0x53   : >> { %1567 = vmatpush3.bf16.msra.mxu1 %v1788_v45  ;;  %1643 = vmatmul.mubr.bf16.vlgmr.msra.gmra.mrb[0].mxu0 %v726_v46 }
  0x54   : >> { %1647 = vmatpush3.bf16.msra.mxu0 %v1789_v47  ;;  %1568 = vmatprep.subr.bf16.mxu1 %v1845_v1  ;;  %v950_v15 = vshll.u32 %v1408_v11, 16  ;;  %v948_v18 = vshrl.u32 %v1408_v11, 16  ;;  %v1061_v30 = vrot.slane %v1408_v11, 1 }
  0x55   : >> { %1648 = vmatprep.subr.bf16.mxu0 %v1845_v1  ;;  %1582 = vmatprep.mubr.msk.bf16.mxu1 %vm1846_vm0, %v1845_v1 }
  0x56   : >> { %1662 = vmatprep.mubr.msk.bf16.mxu0 %vm1846_vm0, %v1845_v1  ;;  %v952_v20 = vrot.slane %v950_v15, 1 }
  0x57   : >> { %1569 = vmatpush3.bf16.msra.mxu1 %v1790_v48 }
  0x58   : >> { %1649 = vmatpush3.bf16.msra.mxu0 %v1791_v49  ;;  %1570 = vmatprep.subr.bf16.mxu1 %v1845_v1  ;;  %v953_v22 = vor.u32 %v952_v20, %v948_v18 }
  0x59   : >> { %1650 = vmatprep.subr.bf16.mxu0 %v1845_v1 }
  0x5b   : >> { %1571 = vmatpush3.bf16.msra.mxu1 %v1792_v50 }
  0x5c   : >> { %1651 = vmatpush3.bf16.msra.mxu0 %v1793_v51  ;;  %1572 = vmatprep.subr.bf16.mxu1 %v1845_v1 }
  0x5d   : >> { %1652 = vmatprep.subr.bf16.mxu0 %v1845_v1 }
  0x5f   : >> { %1573 = vmatpush3.bf16.msra.mxu1 %v1794_v52 }
  0x60   : >> { %1653 = vmatpush3.bf16.msra.mxu0 %v1795_v53  ;;  %1574 = vmatprep.subr.bf16.mxu1 %v1845_v1 }
  0x61   : >> { %1654 = vmatprep.subr.bf16.mxu0 %v1845_v1 }
  0x63   : >> { %1575 = vmatpush3.bf16.msra.mxu1 %v1796_v54 }
  0x64   : >> { %1655 = vmatpush3.bf16.msra.mxu0 %v1797_v55  ;;  %1576 = vmatprep.subr.bf16.mxu1 %v1845_v1 }
  0x65   : >> { %1656 = vmatprep.subr.bf16.mxu0 %v1845_v1 }
  0x67   : >> { %1577 = vmatpush3.bf16.msra.mxu1 %v1798_v56 }
  0x68   : >> { %1657 = vmatpush3.bf16.msra.mxu0 %v1799_v57  ;;  %1578 = vmatprep.subr.bf16.mxu1 %v1845_v1 }
  0x69   : >> { %1658 = vmatprep.subr.bf16.mxu0 %v1845_v1 }
  0x6b   : >> { %1579 = vmatpush3.bf16.msra.mxu1 %v1800_v58 }
  0x6c   : >> { %1659 = vmatpush3.bf16.msra.mxu0 %v1801_v59  ;;  %1580 = vmatprep.subr.bf16.mxu1 %v1845_v1 }
  0x6d   : >> { %1660 = vmatprep.subr.bf16.mxu0 %v1845_v1 }
  0x6f   : >> { %1581 = vmatpush3.bf16.msra.mxu1 %v1802_v60 }
  0x70   : >> { %1661 = vmatpush3.bf16.msra.mxu0 %v1803_v61  ;;  %1586 = vmatprep.subr.bf16.mxu1 %v1845_v1 }
  0x71   : >> { %1666 = vmatprep.subr.bf16.mxu0 %v1845_v1 }
  0x72   : >> { %1583 = vmatmul.mubr.bf16.vlgmr.msra.gmra.mrb[0].mxu1 %v391_v62 }
  0x73   : >> { %1587 = vmatpush3.bf16.msra.mxu1 %v1804_v63  ;;  %1663 = vmatmul.mubr.bf16.vlgmr.msra.gmra.mrb[0].mxu0 %v1367_v0 }
  0x74   : >> { %1667 = vmatpush3.bf16.msra.mxu0 %v1806_v2  ;;  %1588 = vmatprep.subr.bf16.mxu1 %v1845_v1 }
  0x75   : >> { %1668 = vmatprep.subr.bf16.mxu0 %v1845_v1  ;;  %1602 = vmatprep.mubr.msk.bf16.mxu1 %vm1846_vm0, %v1845_v1 }
  0x76   : >> { %1682 = vmatprep.mubr.msk.bf16.mxu0 %vm1846_vm0, %v1845_v1 }
  0x77   : >> { %1589 = vmatpush3.bf16.msra.mxu1 %v1807_v3 }
  0x78   : >> { %1669 = vmatpush3.bf16.msra.mxu0 %v1808_v4  ;;  %1590 = vmatprep.subr.bf16.mxu1 %v1845_v1 }
  0x79   : >> { %1670 = vmatprep.subr.bf16.mxu0 %v1845_v1 }
  0x7b   : >> { %1591 = vmatpush3.bf16.msra.mxu1 %v1809_v5 }
  0x7c   : >> { %1671 = vmatpush3.bf16.msra.mxu0 %v1810_v6  ;;  %1592 = vmatprep.subr.bf16.mxu1 %v1845_v1 }
  0x7d   : >> { %1672 = vmatprep.subr.bf16.mxu0 %v1845_v1 }
  0x7f   : >> { %1593 = vmatpush3.bf16.msra.mxu1 %v1811_v7 }
  0x80   : >> { %1673 = vmatpush3.bf16.msra.mxu0 %v1812_v8  ;;  %1594 = vmatprep.subr.bf16.mxu1 %v1845_v1 }
  0x81   : >> { %1674 = vmatprep.subr.bf16.mxu0 %v1845_v1 }
  0x83   : >> { %1595 = vmatpush3.bf16.msra.mxu1 %v1813_v9 }
  0x84   : >> { %1675 = vmatpush3.bf16.msra.mxu0 %v1814_v10  ;;  %1596 = vmatprep.subr.bf16.mxu1 %v1845_v1 }
  0x85   : >> { %1676 = vmatprep.subr.bf16.mxu0 %v1845_v1 }
  0x87   : >> { %1597 = vmatpush3.bf16.msra.mxu1 %v1815_v12 }
  0x88   : >> { %1677 = vmatpush3.bf16.msra.mxu0 %v1816_v14  ;;  %1598 = vmatprep.subr.bf16.mxu1 %v1845_v1 }
  0x89   : >> { %1678 = vmatprep.subr.bf16.mxu0 %v1845_v1 }
  0x8b   : >> { %1599 = vmatpush3.bf16.msra.mxu1 %v1817_v16 }
  0x8c   : >> { %1679 = vmatpush3.bf16.msra.mxu0 %v1818_v17  ;;  %1600 = vmatprep.subr.bf16.mxu1 %v1845_v1 }
  0x8d   : >> { %1680 = vmatprep.subr.bf16.mxu0 %v1845_v1 }
  0x8f   : >> { %1601 = vmatpush3.bf16.msra.mxu1 %v1819_v19 }
  0x90   : >> { %1681 = vmatpush3.bf16.msra.mxu0 %v1820_v21 }
  0x91   : >> { %1686 = vmatprep.subr.bf16.mxu0 %v1845_v1 }
  0x92   : >> { %1603 = vmatmul.mubr.bf16.vlgmr.msra.gmra.mrb[0].mxu1 %v1943_v13  ;;  %v1824_v13 = vld [vmem:[%s2230_s1 + $0x218] sm:$0xff]  }
  0x93   : >> { %1683 = vmatmul.mubr.bf16.vlgmr.msra.gmra.mrb[0].mxu0 %v953_v22 }
  0x94   : >> { %1687 = vmatpush3.bf16.msra.mxu0 %v1821_v23  ;;  %1702 = vmatprep.mubr.msk.bf16.mxu0 %vm1846_vm0, %v1845_v1 }
  0x95   : >> { %1688 = vmatprep.subr.bf16.mxu0 %v1845_v1 }
  0x98   : >> { %1689 = vmatpush3.bf16.msra.mxu0 %v1822_v24 }
  0x99   : >> { %1690 = vmatprep.subr.bf16.mxu0 %v1845_v1 }
  0x9c   : >> { %1691 = vmatpush3.bf16.msra.mxu0 %v1823_v25 }
  0x9d   : >> { %1692 = vmatprep.subr.bf16.mxu0 %v1845_v1 }
  0xa0   : >> { %1693 = vmatpush3.bf16.msra.mxu0 %v1824_v13 }
  0xa1   : >> { %1694 = vmatprep.subr.bf16.mxu0 %v1845_v1 }
  0xa4   : >> { %1695 = vmatpush3.bf16.msra.mxu0 %v1825_v26 }
  0xa5   : >> { %1696 = vmatprep.subr.bf16.mxu0 %v1845_v1 }
  0xa8   : >> { %1697 = vmatpush3.bf16.msra.mxu0 %v1826_v27 }
  0xa9   : >> { %1698 = vmatprep.subr.bf16.mxu0 %v1845_v1 }
  0xac   : >> { %1699 = vmatpush3.bf16.msra.mxu0 %v1827_v28 }
  0xad   : >> { %1700 = vmatprep.subr.bf16.mxu0 %v1845_v1 }
  0xb0   : >> { %1701 = vmatpush3.bf16.msra.mxu0 %v1828_v29 }
  0xb3   : >> { %1703 = vmatmul.mubr.bf16.vlgmr.msra.gmra.mrb[0].mxu0 %v1061_v30 }
 0x165   : >> { %v585_v31 = vpop.f32.mrb[0].mxu1 }
 0x166   : >> { %v1604_v32 = vpop.f32.mrb[1].mxu1 }
 0x167   : >> { %v588_v33 = vpop.f32.mrb[2].mxu1 }
 0x168   : >> { %v1605_v34 = vpop.f32.mrb[3].mxu1 }
 0x183   : > { %149 = sbr.rel (!%p147_p4) target bundleno = 17 (0x11), region = 77 }
 0x186   : >> { %v1145_v35 = vpop.f32.mrb[0].mxu0 }
 0x187   : >> { %v1706_v36 = vadd.f32 %v1145_v35, %v585_v31  ;;  %v1704_v37 = vpop.f32.mrb[1].mxu0 }
 0x188   : >> { %v1148_v38 = vpop.f32.mrb[2].mxu0 }
 0x189   : >> { %1154 = vst [vmem:[%s1153_s30] sm:$0xf] %v1706_v36  ;;  %v1705_v39 = vpop.f32.mrb[3].mxu0 }
 0x18a PF: > { %s12_s9 = sadd.s32 1, %s1839_s9  }
 0x18b   : > { %p9_p5 = scmp.ge.s32.totalorder %s12_s9, 4  }
 0x18d   :  { %11 = sbr.rel (!%p9_p5) target bundleno = 1 (0x1), region = 88 }

// kernel: _lambda_.33
= control target key start
LH: loop header
LB: loop body
LE: loop exit
PB: predicated region body
PF: predicated region fallthrough
CT: control target
= control target key end

     0   :  { %v233_v0 = vmov 0.0   ;;  %vm234_vm0 = vmmov 0   ;;  %s312_s1 = inlined_call_operand.vmem [shape: bf16[128,128], index: 1, kind: input, shape index: {}]   ;;  %s313_s0 = inlined_call_operand.vmem [shape: f32[8,128], index: 0, kind: input, shape index: {}]   ;;  %s314_s2 = inlined_call_operand.vmem [shape: f32[1,128], index: 2, kind: input, shape index: {}]   ;;  %s315_s3 = inlined_call_operand.vmem [shape: f32[1,128], index: 3, kind: input, shape index: {}]   ;;  %s316_s4 = inlined_call_operand.vmem [shape: f32[1,128], index: 4, kind: input, shape index: {}]   ;;  %s317_s5 = inlined_call_operand.vmem [shape: f32[1,128], index: 5, kind: input, shape index: {}]   ;;  %s318_s6 = inlined_call_operand.vmem [shape: bf16[8,128], index: 6, kind: output, shape index: {}]  }
   0x1   :  { %203 = vmatprep.subr.bf16.mxu0 %v233_v0  ;;  %v225_v1 = vld [vmem:[%s312_s1] sm:$0xff]   ;;  %219 = vmatprep.mubr.msk.bf16.mxu0 %vm234_vm0, %v233_v0  ;;  %v226_v2 = vld [vmem:[%s312_s1 + $0x8] sm:$0xff]   ;;  %v227_v3 = vld [vmem:[%s312_s1 + $0x10] sm:$0xff]  }
   0x2   :  { %204 = vmatpush3.bf16.msra.mxu0 %v225_v1  ;;  %v228_v4 = vld [vmem:[%s312_s1 + $0x18] sm:$0xff]   ;;  %v229_v5 = vld [vmem:[%s312_s1 + $0x20] sm:$0xff]   ;;  %v230_v9 = vld [vmem:[%s312_s1 + $0x28] sm:$0xff]  }
   0x3   :  { %205 = vmatprep.subr.bf16.mxu0 %v233_v0  ;;  %v29_v6 = vld [vmem:[%s313_s0] sm:$0xff]  ;;  %v231_v12 = vld [vmem:[%s312_s1 + $0x30] sm:$0xff]   ;;  %v232_v14 = vld [vmem:[%s312_s1 + $0x38] sm:$0xff]  }
   0x4   :  { %v182_v7 = vld [vmem:[%s314_s2] ss:$0 sm:$0xff] }
   0x5   :  { %v37_v8 = vmul.f32 %v182_v7, %v29_v6  ;;  %v183_v10 = vld [vmem:[%s315_s3] ss:$0 sm:$0xff] }
   0x6   :  { %206 = vmatpush3.bf16.msra.mxu0 %v226_v2  ;;  %v192_v16 = vld [vmem:[%s316_s4] ss:$0 sm:$0xff] }
   0x7   :  { %207 = vmatprep.subr.bf16.mxu0 %v233_v0  ;;  %v45_v11 = vadd.f32 %v183_v10, %v37_v8  ;;  %v193_v18 = vld [vmem:[%s317_s5] ss:$0 sm:$0xff] }
   0x9   :  { %v46_v13 = vmax.f32 %v45_v11, 0.0 }
   0xa   :  { %208 = vmatpush3.bf16.msra.mxu0 %v227_v3 }
   0xb   :  { %209 = vmatprep.subr.bf16.mxu0 %v233_v0  ;;  %v48_v15 = vpack.c.bf16 %v46_v13, %v46_v13 }
   0xe   :  { %210 = vmatpush3.bf16.msra.mxu0 %v228_v4 }
   0xf   :  { %211 = vmatprep.subr.bf16.mxu0 %v233_v0 }
  0x12   :  { %212 = vmatpush3.bf16.msra.mxu0 %v229_v5 }
  0x13   :  { %213 = vmatprep.subr.bf16.mxu0 %v233_v0 }
  0x16   :  { %214 = vmatpush3.bf16.msra.mxu0 %v230_v9 }
  0x17   :  { %215 = vmatprep.subr.bf16.mxu0 %v233_v0 }
  0x1a   :  { %216 = vmatpush3.bf16.msra.mxu0 %v231_v12 }
  0x1b   :  { %217 = vmatprep.subr.bf16.mxu0 %v233_v0 }
  0x1e   :  { %218 = vmatpush3.bf16.msra.mxu0 %v232_v14 }
  0x21   :  { %220 = vmatmul.mubr.bf16.vlgmr.msra.gmra.mrb[0].mxu0 %v48_v15 }
  0xf4   :  { %v147_v17 = vpop.f32.mrb[0].mxu0 }
  0xf5   :  { %v166_v19 = vmul.f32 %v192_v16, %v147_v17  ;;  %v221_v20 = vpop.f32.mrb[1].mxu0 }
  0xf6   :  { %v150_v21 = vpop.f32.mrb[2].mxu0 }
  0xf7   :  { %v174_v22 = vadd.f32 %v193_v18, %v166_v19  ;;  %v222_v23 = vpop.f32.mrb[3].mxu0 }
  0xf9   :  { %v175_v24 = vmax.f32 %v174_v22, 0.0 }
  0xfb   :  { %v176_v25 = vpack.c.bf16 %v175_v24, %v175_v24 }
  0xfd   :  { %177 = vst [vmem:[%s318_s6] sm:$0xf] %v176_v25 }

// kernel: _lambda_.37
= control target key start
LH: loop header
LB: loop body
LE: loop exit
PB: predicated region body
PF: predicated region fallthrough
CT: control target
= control target key end

     0   :  { %s118_s0 = inlined_call_operand.vmem [shape: f32[8,32], index: 0, kind: input, shape index: {}]   ;;  %s119_s1 = inlined_call_operand.vmem [shape: f32[1,32], index: 1, kind: input, shape index: {}]   ;;  %s120_s2 = inlined_call_operand.vmem [shape: f32[1,32], index: 2, kind: input, shape index: {}]   ;;  %s121_s3 = inlined_call_operand.hbm [shape: f32[8,32], index: 3, kind: output, shape index: {}]  }
   0x1   :  { %v15_v0 = vld [vmem:[%s118_s0] sm:$0xff] }
   0x2   :  { %v49_v1 = vld [vmem:[%s119_s1] ss:$0 sm:$0xff] }
   0x3   :  { %v50_v2 = vld [vmem:[%s120_s2] ss:$0 sm:$0xff]  ;;  %v23_v3 = vmul.f32 %v49_v1, %v15_v0 }
   0x4   :  { %8 = vsyncpa [#allocation3], 0  ;;  %s76_s18 = smov [#allocation2]   ;;  %vm33_vm0 = vcmask 261120  }
   0x5   :  { %s41_s19 = sshll.u32 %s76_s18, 4  ;;  %v31_v4 = vadd.f32 %v50_v2, %v23_v3  ;;  %s42_s19 = int_to_ptr.vmem [resolvable:$true] %s41_s19 }
   0x6   :  { %s52_s20 = scalar_lea.vmem %s42_s19, 128  ;;  %p57_p1 = scmp.lt.s32.totalorder %s42_s19, %s42_s19 }
   0x7   :  { %v32_v5 = vmax.f32 %v31_v4, 0.0  ;;  %p53_p0 = scmp.ne.s32.totalorder %s42_s19, %s52_s20  ;;  %p58_p2 = scmp.lt.s32.totalorder %s52_s20, %s52_s20 }
   0x9   :  { %34 = vst.msk [vmem:[#allocation2] sm:$0xff] %vm33_vm0, %v32_v5  ;;  %p59_p3 = por %p58_p2, %p57_p1 }
   0xb   :  { %p60_p4 = pnand %p59_p3, %p53_p0 }
   0xd   :  { %63 = shalt.err (!%p60_p4)
}
   0xe   :  { %s64_s2 = scalar_lea.hbm %s121_s3, 128 }
   0xf   :  { %p65_p5 = scmp.ne.s32.totalorder %s121_s3, %s64_s2  ;;  %p68_p6 = scmp.lt.u32.totalorder %s64_s2, %s121_s3 }
  0x11   :  { %p70_p7 = pnand %p68_p6, %p65_p5 }
  0x13   :  { %73 = shalt.err (!%p70_p7)
}
  0x14   :  { %44 = dma.vmem_to_hbm [thread:$0]  %s42_s19, 128, %s121_s3, [#allocation3]  }
  0x15   :  { %74 = dma.done.wait [#allocation3], 128  }
  0x16   :  { %75 = vsyncadd [#allocation3], 4294967168 }
  0x17   :  { %48 = vsyncpa [#allocation3], 1 }

// kernel: _lambda_.34
= control target key start
LH: loop header
LB: loop body
LE: loop exit
PB: predicated region body
PF: predicated region fallthrough
CT: control target
= control target key end

     0   :  { %s1874_s9 = smov 0   ;;  %s2253_s0 = inlined_call_operand.vmem [shape: bf16[2,4,4,128], index: 0, kind: input, shape index: {}]   ;;  %s2254_s1 = inlined_call_operand.vmem [shape: bf16[9,128,128], index: 1, kind: input, shape index: {}]   ;;  %s2255_s2 = inlined_call_operand.vmem [shape: f32[2,2,2,128], index: 2, kind: output, shape index: {}]  }
   0x1 LB: > { %s1240_s10 = sadd.s32 4294967295, %s1850_s9   ;;  %p1244_p0 = scmp.ge.s32.totalorder %s1850_s9, 1  ;;  %s1850_s9 = sphi %s1874_s9, %s12_s9  }
   0x2   : > { %p112_p1 = scmp.lt.s32.totalorder %s1850_s9, 3 }
   0x4   : > { %p113_p2 = pnand %p1244_p0, %p112_p1 }
   0x5   : > { %p134_p3 = scmp.lt.s32.totalorder (!%p113_p2), %s1240_s10, 1  ;;  %s1892_s19 = smov (!%p113_p2), 0  }
   0x6   : > { %116 = sbr.rel (%p113_p2) target bundleno = 393 (0x189), region = 28 }
   0xd   : > { %s2257_s10 = smov (!%p134_p3, %s1240_s10), 1 }
   0xe   : > { %s1457_s11 = sshll.u32 %s2257_s10, 3  ;;  %s1458_s12 = sshll.u32 %s2257_s10, 2 }
   0xf   : > { %s1885_s15 = scalar_lea.vmem %s2253_s0, %s1457_s11  ;;  %s1890_s18 = scalar_lea.vmem %s2255_s2, %s1458_s12 }
  0x10 LB: >> { %v1768_v0 = vld [vmem:[%s2254_s1 + $0x40] sm:$0xff]   ;;  %v1856_v1 = vmov 0.0   ;;  %v1770_v3 = vld [vmem:[%s2254_s1 + $0x48] sm:$0xff]   ;;  %vm1857_vm0 = vmmov 0   ;;  %v1772_v5 = vld [vmem:[%s2254_s1 + $0x50] sm:$0xff]   ;;  %s1249_s8 = sshll.u32 %s1854_s19, 1  ;;  %v191_v9 = vlaneseq  ;;  %s1854_s19 = sphi %s1892_s19, %s150_s19  }
  0x11   : >> { %1540 = vmatprep.subr.bf16.mxu1 %v1856_v1  ;;  %1620 = vmatprep.subr.bf16.mxu0 %v1856_v1  ;;  %v1769_v2 = vld [vmem:[%s2254_s1 + $0x100] sm:$0xff]   ;;  %v1771_v4 = vld [vmem:[%s2254_s1 + $0x108] sm:$0xff]   ;;  %v1773_v6 = vld [vmem:[%s2254_s1 + $0x110] sm:$0xff]   ;;  %s1945_s14 = scalar_lea.vmem %s1885_s15, %s1249_s8  ;;  %v1858_v13 = vmov 1983009808   ;;  %s1168_s28 = scalar_lea.vmem %s1890_s18, %s1249_s8 }
  0x12   : >> { %1541 = vmatpush3.bf16.msra.mxu1 %v1768_v0  ;;  %1556 = vmatprep.mubr.msk.bf16.mxu1 %vm1857_vm0, %v1856_v1  ;;  %v1774_v7 = vld [vmem:[%s2254_s1 + $0x58] sm:$0xff]   ;;  %v1776_v10 = vld [vmem:[%s2254_s1 + $0x60] sm:$0xff]   ;;  %v1778_v12 = vld [vmem:[%s2254_s1 + $0x68] sm:$0xff]   ;;  %v189_v14 = vunpack.c.l.s4 %v1858_v13  ;;  %v192_v15 = vshrl.u32 %v191_v9, 7  ;;  %s150_s19 = sadd.s32 1, %s1854_s19  }
  0x13   : >> { %1621 = vmatpush3.bf16.msra.mxu0 %v1769_v2  ;;  %1542 = vmatprep.subr.bf16.mxu1 %v1856_v1  ;;  %v1775_v8 = vld [vmem:[%s2254_s1 + $0x118] sm:$0xff]   ;;  %v1777_v11 = vld [vmem:[%s2254_s1 + $0x120] sm:$0xff]   ;;  %v1779_v16 = vld [vmem:[%s2254_s1 + $0x128] sm:$0xff]   ;;  %p147_p4 = scmp.ge.s32.totalorder %s150_s19, 2  }
  0x14   : >> { %1622 = vmatprep.subr.bf16.mxu0 %v1856_v1  ;;  %1636 = vmatprep.mubr.msk.bf16.mxu0 %vm1857_vm0, %v1856_v1  ;;  %v1955_v17 = vld [vmem:[%s1945_s14] sm:$0x3]  ;;  %v190_v18 = vunpack.c.0.s8 %v189_v14  ;;  %v1959_v19 = vld [vmem:[%s1945_s14 + $0x2] sm:$0x3]  ;;  %v1780_v21 = vld [vmem:[%s2254_s1 + $0x70] sm:$0xff]  }
  0x15   : >> { %v1781_v22 = vld [vmem:[%s2254_s1 + $0x130] sm:$0xff]   ;;  %v1782_v28 = vld [vmem:[%s2254_s1 + $0x78] sm:$0xff]   ;;  %v1784_v34 = vld [vmem:[%s2254_s1] sm:$0xff]  }
  0x16   : >> { %1543 = vmatpush3.bf16.msra.mxu1 %v1770_v3  ;;  %v1961_v20 = vsub.s32 %v190_v18, %v192_v15  ;;  %v1783_v30 = vld [vmem:[%s2254_s1 + $0x138] sm:$0xff]   ;;  %v1785_v36 = vld [vmem:[%s2254_s1 + $0x140] sm:$0xff]   ;;  %v1786_v37 = vld [vmem:[%s2254_s1 + $0x8] sm:$0xff]  }
  0x17   : >> { %1623 = vmatpush3.bf16.msra.mxu0 %v1771_v4  ;;  %1544 = vmatprep.subr.bf16.mxu1 %v1856_v1  ;;  %v1787_v38 = vld [vmem:[%s2254_s1 + $0x148] sm:$0xff]   ;;  %v1788_v39 = vld [vmem:[%s2254_s1 + $0x10] sm:$0xff]   ;;  %v1790_v41 = vld [vmem:[%s2254_s1 + $0x18] sm:$0xff]  }
  0x18   : >> { %1624 = vmatprep.subr.bf16.mxu0 %v1856_v1  ;;  %v1972_v23 = vrot.slane %v1955_v17, %v1961_v20  ;;  %v1976_v24 = vrot.slane %v1959_v19, %v1961_v20  ;;  %v1789_v40 = vld [vmem:[%s2254_s1 + $0x150] sm:$0xff]   ;;  %v1791_v42 = vld [vmem:[%s2254_s1 + $0x158] sm:$0xff]   ;;  %v1792_v43 = vld [vmem:[%s2254_s1 + $0x20] sm:$0xff]  }
  0x19   : >> { %v1793_v44 = vld [vmem:[%s2254_s1 + $0x160] sm:$0xff]   ;;  %v1794_v45 = vld [vmem:[%s2254_s1 + $0x28] sm:$0xff]   ;;  %v1796_v49 = vld [vmem:[%s2254_s1 + $0x30] sm:$0xff]  }
  0x1a   : >> { %1545 = vmatpush3.bf16.msra.mxu1 %v1772_v5  ;;  %v196_v25 = vshrl.u32 %v1972_v23, 16  ;;  %v198_v26 = vshll.u32 %v1972_v23, 16  ;;  %v625_v27 = vshll.u32 %v1976_v24, 16  ;;  %v623_v29 = vshrl.u32 %v1976_v24, 16  ;;  %v2039_v46 = vld [vmem:[%s1945_s14 + $0x4] sm:$0x3] }
  0x1b   : >> { %1625 = vmatpush3.bf16.msra.mxu0 %v1773_v6  ;;  %1546 = vmatprep.subr.bf16.mxu1 %v1856_v1  ;;  %v1795_v47 = vld [vmem:[%s2254_s1 + $0x168] sm:$0xff]   ;;  %v2047_v48 = vrot.slane %v2039_v46, %v1961_v20  ;;  %v1797_v50 = vld [vmem:[%s2254_s1 + $0x170] sm:$0xff]   ;;  %v1798_v51 = vld [vmem:[%s2254_s1 + $0x38] sm:$0xff]   ;;  %v736_v54 = vrot.slane %v1976_v24, 1 }
  0x1c   : >> { %1626 = vmatprep.subr.bf16.mxu0 %v1856_v1  ;;  %v200_v31 = vrot.slane %v198_v26, 1  ;;  %v627_v32 = vrot.slane %v625_v27, 1  ;;  %v1799_v52 = vld [vmem:[%s2254_s1 + $0x178] sm:$0xff]   ;;  %v1800_v53 = vld [vmem:[%s2254_s1 + $0x80] sm:$0xff]   ;;  %v1802_v56 = vld [vmem:[%s2254_s1 + $0x88] sm:$0xff]  }
  0x1d   : >> { %v1801_v55 = vld [vmem:[%s2254_s1 + $0x180] sm:$0xff]   ;;  %v1803_v57 = vld [vmem:[%s2254_s1 + $0x188] sm:$0xff]   ;;  %v1804_v58 = vld [vmem:[%s2254_s1 + $0x90] sm:$0xff]   ;;  %v963_v24 = vshrl.u32 %v2047_v48, 16 }
  0x1e   : >> { %1547 = vmatpush3.bf16.msra.mxu1 %v1774_v7  ;;  %v201_v33 = vor.u32 %v200_v31, %v196_v25  ;;  %v628_v35 = vor.u32 %v627_v32, %v623_v29  ;;  %v1805_v59 = vld [vmem:[%s2254_s1 + $0x190] sm:$0xff]   ;;  %v1806_v60 = vld [vmem:[%s2254_s1 + $0x98] sm:$0xff]   ;;  %v1808_v62 = vld [vmem:[%s2254_s1 + $0xa0] sm:$0xff]   ;;  %v396_v7 = vrot.slane %v1972_v23, 1 }
  0x1f   : >> { %1627 = vmatpush3.bf16.msra.mxu0 %v1775_v8  ;;  %1548 = vmatprep.subr.bf16.mxu1 %v1856_v1  ;;  %v1807_v61 = vld [vmem:[%s2254_s1 + $0x198] sm:$0xff]   ;;  %v1809_v63 = vld [vmem:[%s2254_s1 + $0x1a0] sm:$0xff]   ;;  %v1810_v0 = vld [vmem:[%s2254_s1 + $0xa8] sm:$0xff]  }
  0x20   : >> { %1628 = vmatprep.subr.bf16.mxu0 %v1856_v1  ;;  %v1811_v2 = vld [vmem:[%s2254_s1 + $0x1a8] sm:$0xff]   ;;  %v1812_v3 = vld [vmem:[%s2254_s1 + $0xb0] sm:$0xff]   ;;  %v1814_v5 = vld [vmem:[%s2254_s1 + $0xb8] sm:$0xff]  }
  0x21   : >> { %v1813_v4 = vld [vmem:[%s2254_s1 + $0x1b0] sm:$0xff]   ;;  %v1815_v6 = vld [vmem:[%s2254_s1 + $0x1b8] sm:$0xff]   ;;  %v1816_v8 = vld [vmem:[%s2254_s1 + $0xc0] sm:$0xff]  }
  0x22   : >> { %1549 = vmatpush3.bf16.msra.mxu1 %v1776_v10  ;;  %v1817_v9 = vld [vmem:[%s2254_s1 + $0x1c0] sm:$0xff]   ;;  %v1818_v10 = vld [vmem:[%s2254_s1 + $0xc8] sm:$0xff]   ;;  %v1821_v13 = vld [vmem:[%s2254_s1 + $0x1d0] sm:$0xff]  }
  0x23   : >> { %1629 = vmatpush3.bf16.msra.mxu0 %v1777_v11  ;;  %1550 = vmatprep.subr.bf16.mxu1 %v1856_v1  ;;  %v1819_v11 = vld [vmem:[%s2254_s1 + $0x1c8] sm:$0xff]   ;;  %v1822_v14 = vld [vmem:[%s2254_s1 + $0xd8] sm:$0xff]   ;;  %v1829_v23 = vld [vmem:[%s2254_s1 + $0x1f0] sm:$0xff]  }
  0x24   : >> { %1630 = vmatprep.subr.bf16.mxu0 %v1856_v1  ;;  %v1823_v15 = vld [vmem:[%s2254_s1 + $0x1d8] sm:$0xff]   ;;  %v1826_v18 = vld [vmem:[%s2254_s1 + $0xe8] sm:$0xff]   ;;  %v1832_v29 = vld [vmem:[%s2254_s1 + $0x200] sm:$0xff]  }
  0x25   : >> { %v1827_v20 = vld [vmem:[%s2254_s1 + $0x1e8] sm:$0xff]   ;;  %v1830_v25 = vld [vmem:[%s2254_s1 + $0xf8] sm:$0xff]   ;;  %v1834_v31 = vld [vmem:[%s2254_s1 + $0x210] sm:$0xff]  }
  0x26   : >> { %1551 = vmatpush3.bf16.msra.mxu1 %v1778_v12  ;;  %v1820_v12 = vld [vmem:[%s2254_s1 + $0xd0] sm:$0xff]   ;;  %v1831_v27 = vld [vmem:[%s2254_s1 + $0x1f8] sm:$0xff]   ;;  %v1836_v32 = vld [vmem:[%s2254_s1 + $0x220] sm:$0xff]  }
  0x27   : >> { %1631 = vmatpush3.bf16.msra.mxu0 %v1779_v16  ;;  %1552 = vmatprep.subr.bf16.mxu1 %v1856_v1  ;;  %v1824_v16 = vld [vmem:[%s2254_s1 + $0xe0] sm:$0xff]  }
  0x28   : >> { %1632 = vmatprep.subr.bf16.mxu0 %v1856_v1 }
  0x2a   : >> { %1553 = vmatpush3.bf16.msra.mxu1 %v1780_v21  ;;  %v965_v21 = vshll.u32 %v2047_v48, 16 }
  0x2b   : >> { %1633 = vmatpush3.bf16.msra.mxu0 %v1781_v22  ;;  %1554 = vmatprep.subr.bf16.mxu1 %v1856_v1  ;;  %v1828_v22 = vld [vmem:[%s2254_s1 + $0xf0] sm:$0xff]  }
  0x2c   : >> { %1634 = vmatprep.subr.bf16.mxu0 %v1856_v1  ;;  %v967_v26 = vrot.slane %v965_v21, 1 }
  0x2e   : >> { %1555 = vmatpush3.bf16.msra.mxu1 %v1782_v28  ;;  %v968_v28 = vor.u32 %v967_v26, %v963_v24 }
  0x2f   : >> { %1635 = vmatpush3.bf16.msra.mxu0 %v1783_v30  ;;  %1560 = vmatprep.subr.bf16.mxu1 %v1856_v1  ;;  %v1833_v30 = vld [vmem:[%s2254_s1 + $0x208] sm:$0xff]  }
  0x30   : >> { %1640 = vmatprep.subr.bf16.mxu0 %v1856_v1 }
  0x31   : >> { %1557 = vmatmul.mubr.bf16.vlgmr.msra.gmra.mrb[0].mxu1 %v201_v33  ;;  %v1837_v33 = vld [vmem:[%s2254_s1 + $0x228] sm:$0xff]  }
  0x32   : >> { %1561 = vmatpush3.bf16.msra.mxu1 %v1784_v34  ;;  %1637 = vmatmul.mubr.bf16.vlgmr.msra.gmra.mrb[0].mxu0 %v628_v35  ;;  %v1838_v34 = vld [vmem:[%s2254_s1 + $0x230] sm:$0xff]   ;;  %v1839_v35 = vld [vmem:[%s2254_s1 + $0x238] sm:$0xff]  }
  0x33   : >> { %1641 = vmatpush3.bf16.msra.mxu0 %v1785_v36  ;;  %1562 = vmatprep.subr.bf16.mxu1 %v1856_v1  ;;  %v1076_v36 = vrot.slane %v2047_v48, 1 }
  0x34   : >> { %1642 = vmatprep.subr.bf16.mxu0 %v1856_v1  ;;  %1576 = vmatprep.mubr.msk.bf16.mxu1 %vm1857_vm0, %v1856_v1 }
  0x35   : >> { %1656 = vmatprep.mubr.msk.bf16.mxu0 %vm1857_vm0, %v1856_v1 }
  0x36   : >> { %1563 = vmatpush3.bf16.msra.mxu1 %v1786_v37 }
  0x37   : >> { %1643 = vmatpush3.bf16.msra.mxu0 %v1787_v38  ;;  %1564 = vmatprep.subr.bf16.mxu1 %v1856_v1 }
  0x38   : >> { %1644 = vmatprep.subr.bf16.mxu0 %v1856_v1 }
  0x3a   : >> { %1565 = vmatpush3.bf16.msra.mxu1 %v1788_v39 }
  0x3b   : >> { %1645 = vmatpush3.bf16.msra.mxu0 %v1789_v40  ;;  %1566 = vmatprep.subr.bf16.mxu1 %v1856_v1 }
  0x3c   : >> { %1646 = vmatprep.subr.bf16.mxu0 %v1856_v1 }
  0x3e   : >> { %1567 = vmatpush3.bf16.msra.mxu1 %v1790_v41 }
  0x3f   : >> { %1647 = vmatpush3.bf16.msra.mxu0 %v1791_v42  ;;  %1568 = vmatprep.subr.bf16.mxu1 %v1856_v1 }
  0x40   : >> { %1648 = vmatprep.subr.bf16.mxu0 %v1856_v1 }
  0x42   : >> { %1569 = vmatpush3.bf16.msra.mxu1 %v1792_v43 }
  0x43   : >> { %1649 = vmatpush3.bf16.msra.mxu0 %v1793_v44  ;;  %1570 = vmatprep.subr.bf16.mxu1 %v1856_v1 }
  0x44   : >> { %1650 = vmatprep.subr.bf16.mxu0 %v1856_v1 }
  0x46   : >> { %1571 = vmatpush3.bf16.msra.mxu1 %v1794_v45 }
  0x47   : >> { %1651 = vmatpush3.bf16.msra.mxu0 %v1795_v47  ;;  %1572 = vmatprep.subr.bf16.mxu1 %v1856_v1 }
  0x48   : >> { %1652 = vmatprep.subr.bf16.mxu0 %v1856_v1 }
  0x4a   : >> { %1573 = vmatpush3.bf16.msra.mxu1 %v1796_v49 }
  0x4b   : >> { %1653 = vmatpush3.bf16.msra.mxu0 %v1797_v50  ;;  %1574 = vmatprep.subr.bf16.mxu1 %v1856_v1 }
  0x4c   : >> { %1654 = vmatprep.subr.bf16.mxu0 %v1856_v1 }
  0x4e   : >> { %1575 = vmatpush3.bf16.msra.mxu1 %v1798_v51 }
  0x4f   : >> { %1655 = vmatpush3.bf16.msra.mxu0 %v1799_v52  ;;  %1580 = vmatprep.subr.bf16.mxu1 %v1856_v1 }
  0x50   : >> { %1660 = vmatprep.subr.bf16.mxu0 %v1856_v1 }
  0x51   : >> { %1577 = vmatmul.mubr.bf16.vlgmr.msra.gmra.mrb[0].mxu1 %v1955_v17  ;;  %v1825_v17 = vld [vmem:[%s2254_s1 + $0x1e0] sm:$0xff]  }
  0x52   : >> { %1581 = vmatpush3.bf16.msra.mxu1 %v1800_v53  ;;  %1657 = vmatmul.mubr.bf16.vlgmr.msra.gmra.mrb[0].mxu0 %v736_v54 }
  0x53   : >> { %1661 = vmatpush3.bf16.msra.mxu0 %v1801_v55  ;;  %1582 = vmatprep.subr.bf16.mxu1 %v1856_v1 }
  0x54   : >> { %1662 = vmatprep.subr.bf16.mxu0 %v1856_v1  ;;  %1596 = vmatprep.mubr.msk.bf16.mxu1 %vm1857_vm0, %v1856_v1 }
  0x55   : >> { %1676 = vmatprep.mubr.msk.bf16.mxu0 %vm1857_vm0, %v1856_v1 }
  0x56   : >> { %1583 = vmatpush3.bf16.msra.mxu1 %v1802_v56 }
  0x57   : >> { %1663 = vmatpush3.bf16.msra.mxu0 %v1803_v57  ;;  %1584 = vmatprep.subr.bf16.mxu1 %v1856_v1 }
  0x58   : >> { %1664 = vmatprep.subr.bf16.mxu0 %v1856_v1 }
  0x5a   : >> { %1585 = vmatpush3.bf16.msra.mxu1 %v1804_v58 }
  0x5b   : >> { %1665 = vmatpush3.bf16.msra.mxu0 %v1805_v59  ;;  %1586 = vmatprep.subr.bf16.mxu1 %v1856_v1 }
  0x5c   : >> { %1666 = vmatprep.subr.bf16.mxu0 %v1856_v1 }
  0x5e   : >> { %1587 = vmatpush3.bf16.msra.mxu1 %v1806_v60 }
  0x5f   : >> { %1667 = vmatpush3.bf16.msra.mxu0 %v1807_v61  ;;  %1588 = vmatprep.subr.bf16.mxu1 %v1856_v1 }
  0x60   : >> { %1668 = vmatprep.subr.bf16.mxu0 %v1856_v1 }
  0x62   : >> { %1589 = vmatpush3.bf16.msra.mxu1 %v1808_v62 }
  0x63   : >> { %1669 = vmatpush3.bf16.msra.mxu0 %v1809_v63  ;;  %1590 = vmatprep.subr.bf16.mxu1 %v1856_v1 }
  0x64   : >> { %1670 = vmatprep.subr.bf16.mxu0 %v1856_v1 }
  0x66   : >> { %1591 = vmatpush3.bf16.msra.mxu1 %v1810_v0 }
  0x67   : >> { %1671 = vmatpush3.bf16.msra.mxu0 %v1811_v2  ;;  %1592 = vmatprep.subr.bf16.mxu1 %v1856_v1 }
  0x68   : >> { %1672 = vmatprep.subr.bf16.mxu0 %v1856_v1 }
  0x6a   : >> { %1593 = vmatpush3.bf16.msra.mxu1 %v1812_v3 }
  0x6b   : >> { %1673 = vmatpush3.bf16.msra.mxu0 %v1813_v4  ;;  %1594 = vmatprep.subr.bf16.mxu1 %v1856_v1 }
  0x6c   : >> { %1674 = vmatprep.subr.bf16.mxu0 %v1856_v1 }
  0x6e   : >> { %1595 = vmatpush3.bf16.msra.mxu1 %v1814_v5 }
  0x6f   : >> { %1675 = vmatpush3.bf16.msra.mxu0 %v1815_v6  ;;  %1600 = vmatprep.subr.bf16.mxu1 %v1856_v1 }
  0x70   : >> { %1680 = vmatprep.subr.bf16.mxu0 %v1856_v1 }
  0x71   : >> { %1597 = vmatmul.mubr.bf16.vlgmr.msra.gmra.mrb[0].mxu1 %v396_v7 }
  0x72   : >> { %1601 = vmatpush3.bf16.msra.mxu1 %v1816_v8  ;;  %1677 = vmatmul.mubr.bf16.vlgmr.msra.gmra.mrb[0].mxu0 %v2039_v46 }
  0x73   : >> { %1681 = vmatpush3.bf16.msra.mxu0 %v1817_v9  ;;  %1602 = vmatprep.subr.bf16.mxu1 %v1856_v1 }
  0x74   : >> { %1682 = vmatprep.subr.bf16.mxu0 %v1856_v1  ;;  %1616 = vmatprep.mubr.msk.bf16.mxu1 %vm1857_vm0, %v1856_v1 }
  0x75   : >> { %1696 = vmatprep.mubr.msk.bf16.mxu0 %vm1857_vm0, %v1856_v1 }
  0x76   : >> { %1603 = vmatpush3.bf16.msra.mxu1 %v1818_v10 }
  0x77   : >> { %1683 = vmatpush3.bf16.msra.mxu0 %v1819_v11  ;;  %1604 = vmatprep.subr.bf16.mxu1 %v1856_v1 }
  0x78   : >> { %1684 = vmatprep.subr.bf16.mxu0 %v1856_v1 }
  0x7a   : >> { %1605 = vmatpush3.bf16.msra.mxu1 %v1820_v12 }
  0x7b   : >> { %1685 = vmatpush3.bf16.msra.mxu0 %v1821_v13  ;;  %1606 = vmatprep.subr.bf16.mxu1 %v1856_v1 }
  0x7c   : >> { %1686 = vmatprep.subr.bf16.mxu0 %v1856_v1 }
  0x7e   : >> { %1607 = vmatpush3.bf16.msra.mxu1 %v1822_v14 }
  0x7f   : >> { %1687 = vmatpush3.bf16.msra.mxu0 %v1823_v15  ;;  %1608 = vmatprep.subr.bf16.mxu1 %v1856_v1 }
  0x80   : >> { %1688 = vmatprep.subr.bf16.mxu0 %v1856_v1 }
  0x82   : >> { %1609 = vmatpush3.bf16.msra.mxu1 %v1824_v16 }
  0x83   : >> { %1689 = vmatpush3.bf16.msra.mxu0 %v1825_v17  ;;  %1610 = vmatprep.subr.bf16.mxu1 %v1856_v1 }
  0x84   : >> { %1690 = vmatprep.subr.bf16.mxu0 %v1856_v1 }
  0x86   : >> { %1611 = vmatpush3.bf16.msra.mxu1 %v1826_v18 }
  0x87   : >> { %1691 = vmatpush3.bf16.msra.mxu0 %v1827_v20  ;;  %1612 = vmatprep.subr.bf16.mxu1 %v1856_v1 }
  0x88   : >> { %1692 = vmatprep.subr.bf16.mxu0 %v1856_v1 }
  0x8a   : >> { %1613 = vmatpush3.bf16.msra.mxu1 %v1828_v22 }
  0x8b   : >> { %1693 = vmatpush3.bf16.msra.mxu0 %v1829_v23  ;;  %1614 = vmatprep.subr.bf16.mxu1 %v1856_v1 }
  0x8c   : >> { %1694 = vmatprep.subr.bf16.mxu0 %v1856_v1 }
  0x8e   : >> { %1615 = vmatpush3.bf16.msra.mxu1 %v1830_v25 }
  0x8f   : >> { %1695 = vmatpush3.bf16.msra.mxu0 %v1831_v27 }
  0x90   : >> { %1700 = vmatprep.subr.bf16.mxu0 %v1856_v1 }
  0x91   : >> { %1617 = vmatmul.mubr.bf16.vlgmr.msra.gmra.mrb[0].mxu1 %v1959_v19  ;;  %v1835_v19 = vld [vmem:[%s2254_s1 + $0x218] sm:$0xff]  }
  0x92   : >> { %1697 = vmatmul.mubr.bf16.vlgmr.msra.gmra.mrb[0].mxu0 %v968_v28 }
  0x93   : >> { %1701 = vmatpush3.bf16.msra.mxu0 %v1832_v29  ;;  %1716 = vmatprep.mubr.msk.bf16.mxu0 %vm1857_vm0, %v1856_v1 }
  0x94   : >> { %1702 = vmatprep.subr.bf16.mxu0 %v1856_v1 }
  0x97   : >> { %1703 = vmatpush3.bf16.msra.mxu0 %v1833_v30 }
  0x98   : >> { %1704 = vmatprep.subr.bf16.mxu0 %v1856_v1 }
  0x9b   : >> { %1705 = vmatpush3.bf16.msra.mxu0 %v1834_v31 }
  0x9c   : >> { %1706 = vmatprep.subr.bf16.mxu0 %v1856_v1 }
  0x9f   : >> { %1707 = vmatpush3.bf16.msra.mxu0 %v1835_v19 }
  0xa0   : >> { %1708 = vmatprep.subr.bf16.mxu0 %v1856_v1 }
  0xa3   : >> { %1709 = vmatpush3.bf16.msra.mxu0 %v1836_v32 }
  0xa4   : >> { %1710 = vmatprep.subr.bf16.mxu0 %v1856_v1 }
  0xa7   : >> { %1711 = vmatpush3.bf16.msra.mxu0 %v1837_v33 }
  0xa8   : >> { %1712 = vmatprep.subr.bf16.mxu0 %v1856_v1 }
  0xab   : >> { %1713 = vmatpush3.bf16.msra.mxu0 %v1838_v34 }
  0xac   : >> { %1714 = vmatprep.subr.bf16.mxu0 %v1856_v1 }
  0xaf   : >> { %1715 = vmatpush3.bf16.msra.mxu0 %v1839_v35 }
  0xb2   : >> { %1717 = vmatmul.mubr.bf16.vlgmr.msra.gmra.mrb[0].mxu0 %v1076_v36 }
 0x164   : >> { %v590_v37 = vpop.f32.mrb[0].mxu1 }
 0x165   : >> { %v1618_v38 = vpop.f32.mrb[1].mxu1 }
 0x166   : >> { %v593_v39 = vpop.f32.mrb[2].mxu1 }
 0x167   : >> { %v1619_v40 = vpop.f32.mrb[3].mxu1 }
 0x182   : > { %149 = sbr.rel (!%p147_p4) target bundleno = 16 (0x10), region = 77 }
 0x185   : >> { %v1160_v41 = vpop.f32.mrb[0].mxu0 }
 0x186   : >> { %v1720_v42 = vadd.f32 %v1160_v41, %v590_v37  ;;  %v1718_v43 = vpop.f32.mrb[1].mxu0 }
 0x187   : >> { %v1163_v44 = vpop.f32.mrb[2].mxu0 }
 0x188   : >> { %1169 = vst [vmem:[%s1168_s28] sm:$0x3] %v1720_v42  ;;  %v1719_v45 = vpop.f32.mrb[3].mxu0 }
 0x189 PF: > { %s12_s9 = sadd.s32 1, %s1850_s9  }
 0x18a   : > { %p9_p5 = scmp.ge.s32.totalorder %s12_s9, 4  }
 0x18c   :  { %11 = sbr.rel (!%p9_p5) target bundleno = 1 (0x1), region = 88 }

</bundles_post_ra>
